<compile_context>
chip_gen: v7x
topology: tpu7x:2x2x1
jax: 0.10.0
libtpu: 0.0.40
codegen_flags: <defaults>
</compile_context>

<pallas_src>
import jax
import jax.numpy as jnp
from jax.experimental import pallas as pl
from jax.experimental.pallas import tpu as pltpu

BN_EPS = 1e-5


# ----------------------------------------------------------------------------
# Fused Conv3x3(pad=1) + BatchNorm(eval) + ReLU + MaxPool2x2 kernel.
# Input arrives as pool-position-grouped im2col patches:
#   p[b, ho, q, wo, :] = K-wide patch for conv output pixel (2*ho + q//2, 2*wo + q%2)
# so the conv is ONE MXU matmul per grid step (whole image) and the 2x2 pool is
# a max over the major q axis (pure VPU, no relayout).
# ----------------------------------------------------------------------------
def _conv_bn_relu_pool_kernel(p_ref, w_ref, scale_ref, shift_ref, o_ref):
    # p_ref:     (1, Ho, 4, Wo, K9p) bf16 pool-grouped im2col patches
    # w_ref:     (K9p, Cout)         bf16 conv weights (tap-major rows, K-padded)
    # scale_ref: (1, Cout) f32       gamma / sqrt(var + eps)
    # shift_ref: (1, Cout) f32       (bias - mean) * scale + beta
    # o_ref:     (1, Ho, Wo, Cout) bf16 pooled NHWC output
    ho = p_ref.shape[1]
    wo = p_ref.shape[3]
    k9 = p_ref.shape[4]
    cout = w_ref.shape[1]

    patch = p_ref[0].reshape(ho * 4 * wo, k9)                      # free merge
    acc = jnp.dot(patch, w_ref[...], preferred_element_type=jnp.float32)
    y = jnp.maximum(acc * scale_ref[...] + shift_ref[...], 0.0)    # BN + ReLU (f32)
    y = y.reshape(ho, 4, wo, cout)                                  # free split
    pooled = jnp.maximum(jnp.maximum(y[:, 0], y[:, 1]),
                         jnp.maximum(y[:, 2], y[:, 3]))             # (ho, wo, cout)
    o_ref[0] = pooled.astype(o_ref.dtype)


def conv_bn_relu_pool(x, w_slab, scale, shift):
    """x: (B, H, W, Cin) NHWC (any float). w_slab: (K9p, Cout) bf16, rows in
    (dy, dx, cin) order, zero-padded to K9p. Returns (B, H//2, W//2, Cout) bf16."""
    B, H, W, Cin = x.shape
    K9p, Cout = w_slab.shape
    K9 = 9 * Cin
    assert H % 2 == 0 and W % 2 == 0, "2x2/2 max-pool needs even H, W"
    Ho, Wo = H // 2, W // 2
    pad_k = K9p - K9

    # Pool-grouped im2col built directly with stride-2 slices of the padded
    # input (no separate transpose pass over the 9x patch tensor).
    x = x.astype(jnp.bfloat16)
    xp = jnp.pad(x, ((0, 0), (1, 1), (1, 1), (0, 0)))
    groups = []
    for qy in range(2):
        for qx in range(2):
            taps = [xp[:, qy + dy::2, qx + dx::2, :][:, :Ho, :Wo, :]
                    for dy in range(3) for dx in range(3)]
            if pad_k:
                taps.append(jnp.zeros((B, Ho, Wo, pad_k), jnp.bfloat16))
            groups.append(jnp.concatenate(taps, axis=-1)[:, :, None, :, :])
    patches = jnp.concatenate(groups, axis=2)                       # (B, Ho, 4, Wo, K9p)

    return pl.pallas_call(
        _conv_bn_relu_pool_kernel,
        out_shape=jax.ShapeDtypeStruct((B, Ho, Wo, Cout), jnp.bfloat16),
        grid=(B,),
        in_specs=[
            pl.BlockSpec((1, Ho, 4, Wo, K9p), lambda b: (b, 0, 0, 0, 0)),
            pl.BlockSpec((K9p, Cout), lambda b: (0, 0)),
            pl.BlockSpec((1, Cout), lambda b: (0, 0)),
            pl.BlockSpec((1, Cout), lambda b: (0, 0)),
        ],
        out_specs=pl.BlockSpec((1, Ho, Wo, Cout), lambda b: (b, 0, 0, 0)),
        compiler_params=pltpu.CompilerParams(
            dimension_semantics=("parallel",),
            vmem_limit_bytes=32 * 1024 * 1024),
    )(patches, w_slab, scale, shift)


# ----------------------------------------------------------------------------
# Fused MLP head: tanh(fc1) -> tanh(fc2) -> sigmoid(fc_final).
# fc1 is coarsely K-tiled (tk=2048 -> 3 steps) so the 6.3 MB w1 DMA pipelines
# across steps while staying under v5e's default scoped-VMEM limit; fc2 /
# fc_final run fused in the final grid step.
# ----------------------------------------------------------------------------
def _mlp_kernel(x_ref, w1_ref, b1_ref, w2_ref, b2_ref, w3_ref, b3_ref,
                o_ref, acc_ref):
    k = pl.program_id(0)

    @pl.when(k == 0)
    def _():
        acc_ref[...] = jnp.zeros_like(acc_ref)

    acc_ref[...] += jnp.dot(x_ref[...], w1_ref[...],
                            preferred_element_type=jnp.float32)

    @pl.when(k == pl.num_programs(0) - 1)
    def _():
        h = jnp.tanh(acc_ref[...] + b1_ref[...])
        h = jnp.tanh(jnp.dot(h.astype(jnp.bfloat16), w2_ref[...],
                             preferred_element_type=jnp.float32) + b2_ref[...])
        z = jnp.dot(h.astype(jnp.bfloat16), w3_ref[...],
                    preferred_element_type=jnp.float32) + b3_ref[...]
        o_ref[...] = jax.nn.sigmoid(z).astype(o_ref.dtype)


def mlp_head(x, w1, b1, w2, b2, w3, b3, *, tk=2048):
    B, K = x.shape
    N1 = w1.shape[1]
    N2 = w2.shape[1]
    Nout = w3.shape[1]
    assert K % tk == 0
    x = x.astype(jnp.bfloat16)

    return pl.pallas_call(
        _mlp_kernel,
        out_shape=jax.ShapeDtypeStruct((B, Nout), jnp.float32),
        grid=(K // tk,),
        in_specs=[
            pl.BlockSpec((B, tk), lambda k: (0, k)),
            pl.BlockSpec((tk, N1), lambda k: (k, 0)),
            pl.BlockSpec((1, N1), lambda k: (0, 0)),
            pl.BlockSpec((N1, N2), lambda k: (0, 0)),
            pl.BlockSpec((1, N2), lambda k: (0, 0)),
            pl.BlockSpec((N2, Nout), lambda k: (0, 0)),
            pl.BlockSpec((1, Nout), lambda k: (0, 0)),
        ],
        out_specs=pl.BlockSpec((B, Nout), lambda k: (0, 0)),
        scratch_shapes=[pltpu.VMEM((B, N1), jnp.float32)],
        compiler_params=pltpu.CompilerParams(
            dimension_semantics=("arbitrary",)),
    )(x, w1, b1, w2, b2, w3, b3)


# ----------------------------------------------------------------------------
# Full forward pass (glue stays in plain JAX / XLA; conv outputs are already
# NHWC bf16 so no inter-layer reshapes are needed).
# ----------------------------------------------------------------------------
def forward(x_nchw, q):
    x = jnp.transpose(x_nchw, (0, 2, 3, 1))                        # NCHW -> NHWC
    B = x.shape[0]

    y = conv_bn_relu_pool(x, q["w1"], q["scale1"], q["shift1"])    # (B, 32, 32, 24)
    # Dropout(0.5): identity at inference
    y = conv_bn_relu_pool(y, q["w2"], q["scale2"], q["shift2"])    # (B, 16, 16, 48)
    y = conv_bn_relu_pool(y, q["w3"], q["scale3"], q["shift3"])    # (B, 8, 8, 96)

    # Flatten in (h, w, c) order; w_f1 rows were permuted at prep time to match
    # PyTorch's channel-major flatten — no transpose needed here.
    feat = y.reshape(B, 8 * 8 * 96)
    return mlp_head(feat, q["w_f1"], q["b_f1"], q["w_f2"], q["b_f2"],
                    q["w_f3"], q["b_f3"])


# ----------------------------------------------------------------------------
# One-time parameter preparation (weight reshapes, BN folding, bf16 cast,
# K-dim zero padding, fc1 row permutation for the NCHW flatten).
# ----------------------------------------------------------------------------
def prepare_params(p):
    q = {}
    for i, (wn, bn_, bnn) in enumerate(
            [("w_c1", "b_c1", "bn1"), ("w_c2", "b_c2", "bn2"),
             ("w_c3", "b_c3", "bn3")], start=1):
        w = p[wn]                                   # (3, 3, Cin, Cout) HWIO f32
        gamma, beta, mean, var = p[bnn]
        cin, cout = w.shape[2], w.shape[3]
        scale = gamma / jnp.sqrt(var + BN_EPS)
        shift = (p[bn_] - mean) * scale + beta      # conv bias folded into BN
        k9 = 9 * cin
        k9p = k9 if k9 <= 128 else ((k9 + 127) // 128) * 128   # 27, 256, 512
        wslab = w.reshape(k9, cout)
        if k9p != k9:
            wslab = jnp.pad(wslab, ((0, k9p - k9), (0, 0)))
        q[f"w{i}"] = wslab.astype(jnp.bfloat16)
        q[f"scale{i}"] = scale.reshape(1, cout).astype(jnp.float32)
        q[f"shift{i}"] = shift.reshape(1, cout).astype(jnp.float32)

    # fc1: permute rows from PyTorch (c, h, w) flatten order to (h, w, c).
    C3, H3, W3 = 96, 8, 8
    w1 = p["w_f1"].reshape(C3, H3, W3, -1)
    w1 = jnp.transpose(w1, (1, 2, 0, 3)).reshape(C3 * H3 * W3, -1)
    q["w_f1"] = w1.astype(jnp.bfloat16)
    q["b_f1"] = p["b_f1"].reshape(1, -1).astype(jnp.float32)
    q["w_f2"] = p["w_f2"].astype(jnp.bfloat16)
    q["b_f2"] = p["b_f2"].reshape(1, -1).astype(jnp.float32)
    q["w_f3"] = p["w_f3"].astype(jnp.bfloat16)
    q["b_f3"] = p["b_f3"].reshape(1, -1).astype(jnp.float32)
    return q


# ----------------------------------------------------------------------------
# Deterministic synthetic parameters (shapes from the module's __init__).
# ----------------------------------------------------------------------------
def init_params(key):
    ks = list(jax.random.split(key, 12))

    def conv_w(k, cin, cout):
        return 0.05 * jax.random.normal(k, (3, 3, cin, cout), jnp.float32)

    def bn(k, c):
        k1, k2, k3, k4 = jax.random.split(k, 4)
        gamma = 1.0 + 0.1 * jax.random.normal(k1, (c,), jnp.float32)
        beta = 0.1 * jax.random.normal(k2, (c,), jnp.float32)
        mean = 0.1 * jax.random.normal(k3, (c,), jnp.float32)
        var = 0.9 + 0.2 * jax.random.uniform(k4, (c,), jnp.float32)
        return gamma, beta, mean, var

    def fc(k, fin, fout):
        k1, k2 = jax.random.split(k)
        w = 0.01 * jax.random.normal(k1, (fin, fout), jnp.float32)
        b = 0.01 * jax.random.normal(k2, (fout,), jnp.float32)
        return w, b

    p = {}
    p["w_c1"] = conv_w(ks[0], 3, 24)
    p["b_c1"] = 0.01 * jax.random.normal(ks[1], (24,), jnp.float32)
    p["bn1"] = bn(ks[2], 24)
    p["w_c2"] = conv_w(ks[3], 24, 48)
    p["b_c2"] = 0.01 * jax.random.normal(ks[4], (48,), jnp.float32)
    p["bn2"] = bn(ks[5], 48)
    p["w_c3"] = conv_w(ks[6], 48, 96)
    p["b_c3"] = 0.01 * jax.random.normal(ks[7], (96,), jnp.float32)
    p["bn3"] = bn(ks[8], 96)
    p["w_f1"], p["b_f1"] = fc(ks[9], 6144, 512)
    p["w_f2"], p["b_f2"] = fc(ks[10], 512, 1024)
    p["w_f3"], p["b_f3"] = fc(ks[11], 1024, 2)
    return p


if __name__ == "__main__":
    key = jax.random.PRNGKey(0)
    kx, kp = jax.random.split(key)
    # fc1 expects 6144 = 96 * 8 * 8 features -> input spatial size must be 64x64.
    x = jax.random.normal(kx, (2, 3, 64, 64), jnp.float32)   # NCHW, like PyTorch
    params = init_params(kp)
    prepped = prepare_params(params)

    out = jax.jit(forward)(x, prepped)
    out = jax.block_until_ready(out)
    assert out.shape == (2, 2)
    assert bool(jnp.all(jnp.isfinite(out)))
    print("KERNEL_OK")
</pallas_src>

<mosaic_0001>
module attributes {stable_mosaic.version = 11 : i64} {
  func.func @_conv_bn_relu_pool_kernel(%arg0: i32, %arg1: memref<1x32x4x32x27xbf16, #tpu.memory_space<vmem>>, %arg2: memref<27x24xbf16, #tpu.memory_space<vmem>>, %arg3: memref<1x24xf32, #tpu.memory_space<vmem>>, %arg4: memref<1x24xf32, #tpu.memory_space<vmem>>, %arg5: memref<1x32x32x24xbf16, #tpu.memory_space<vmem>>) attributes {dimension_semantics = [#tpu.dimension_semantics<parallel>], iteration_bounds = array<i64: 2>, scalar_prefetch = 0 : i64, scratch_operands = 0 : i64, tpu.core_type = #tpu.core_type<tc>, window_params = [{transform_indices = @transform_0, window_bounds = array<i64: 1, 32, 4, 32, 27>}, {pipeline_mode = #tpu.pipeline_mode<synchronous>, transform_indices = @transform_1, window_bounds = array<i64: 27, 24>}, {pipeline_mode = #tpu.pipeline_mode<synchronous>, transform_indices = @transform_2, window_bounds = array<i64: 1, 24>}, {pipeline_mode = #tpu.pipeline_mode<synchronous>, transform_indices = @transform_3, window_bounds = array<i64: 1, 24>}, {transform_indices = @transform_4, window_bounds = array<i64: 1, 32, 32, 24>}]} {
    %c0 = arith.constant 0 : index
    %c0_0 = arith.constant 0 : index
    %c0_1 = arith.constant 0 : index
    %c0_2 = arith.constant 0 : index
    %c0_3 = arith.constant 0 : index
    %0 = vector.load %arg1[%c0, %c0_0, %c0_1, %c0_2, %c0_3] : memref<1x32x4x32x27xbf16, #tpu.memory_space<vmem>>, vector<1x32x4x32x27xbf16>
    %1 = vector.shape_cast %0 : vector<1x32x4x32x27xbf16> to vector<32x4x32x27xbf16>
    %2 = vector.shape_cast %1 : vector<32x4x32x27xbf16> to vector<4096x27xbf16>
    %c0_4 = arith.constant 0 : index
    %c0_5 = arith.constant 0 : index
    %3 = vector.load %arg2[%c0_4, %c0_5] : memref<27x24xbf16, #tpu.memory_space<vmem>>, vector<27x24xbf16>
    %cst = arith.constant dense<0.000000e+00> : vector<4096x24xf32>
    %4 = tpu.matmul %2, %3, %cst {dimension_numbers = #tpu.dot_dimension_numbers<[1], [0], [0], [1], [0, 0, 1, 1], [], []>} : vector<4096x27xbf16>, vector<27x24xbf16>, vector<4096x24xf32> -> vector<4096x24xf32>
    %c0_6 = arith.constant 0 : index
    %c0_7 = arith.constant 0 : index
    %5 = vector.load %arg3[%c0_6, %c0_7] : memref<1x24xf32, #tpu.memory_space<vmem>>, vector<1x24xf32>
    %6 = vector.broadcast %5 : vector<1x24xf32> to vector<4096x24xf32>
    %7 = arith.mulf %4, %6 : vector<4096x24xf32>
    %c0_8 = arith.constant 0 : index
    %c0_9 = arith.constant 0 : index
    %8 = vector.load %arg4[%c0_8, %c0_9] : memref<1x24xf32, #tpu.memory_space<vmem>>, vector<1x24xf32>
    %9 = vector.broadcast %8 : vector<1x24xf32> to vector<4096x24xf32>
    %10 = arith.addf %7, %9 : vector<4096x24xf32>
    %cst_10 = arith.constant 0.000000e+00 : f32
    %11 = vector.broadcast %cst_10 : f32 to vector<4096x24xf32>
    %12 = arith.maximumf %10, %11 : vector<4096x24xf32>
    %13 = vector.shape_cast %12 : vector<4096x24xf32> to vector<32x4x32x24xf32>
    %14 = vector.extract_strided_slice %13 {offsets = [0, 0, 0, 0], sizes = [32, 1, 32, 24], strides = [1, 1, 1, 1]} : vector<32x4x32x24xf32> to vector<32x1x32x24xf32>
    %15 = vector.shape_cast %14 : vector<32x1x32x24xf32> to vector<32x32x24xf32>
    %16 = vector.extract_strided_slice %13 {offsets = [0, 1, 0, 0], sizes = [32, 1, 32, 24], strides = [1, 1, 1, 1]} : vector<32x4x32x24xf32> to vector<32x1x32x24xf32>
    %17 = vector.shape_cast %16 : vector<32x1x32x24xf32> to vector<32x32x24xf32>
    %18 = arith.maximumf %15, %17 : vector<32x32x24xf32>
    %19 = vector.extract_strided_slice %13 {offsets = [0, 2, 0, 0], sizes = [32, 1, 32, 24], strides = [1, 1, 1, 1]} : vector<32x4x32x24xf32> to vector<32x1x32x24xf32>
    %20 = vector.shape_cast %19 : vector<32x1x32x24xf32> to vector<32x32x24xf32>
    %21 = vector.extract_strided_slice %13 {offsets = [0, 3, 0, 0], sizes = [32, 1, 32, 24], strides = [1, 1, 1, 1]} : vector<32x4x32x24xf32> to vector<32x1x32x24xf32>
    %22 = vector.shape_cast %21 : vector<32x1x32x24xf32> to vector<32x32x24xf32>
    %23 = arith.maximumf %20, %22 : vector<32x32x24xf32>
    %24 = arith.maximumf %18, %23 : vector<32x32x24xf32>
    %25 = arith.truncf %24 : vector<32x32x24xf32> to vector<32x32x24xbf16>
    %c0_11 = arith.constant 0 : index
    %c0_12 = arith.constant 0 : index
    %c0_13 = arith.constant 0 : index
    %c0_14 = arith.constant 0 : index
    %26 = vector.load %arg5[%c0_11, %c0_12, %c0_13, %c0_14] : memref<1x32x32x24xbf16, #tpu.memory_space<vmem>>, vector<1x32x32x24xbf16>
    %27 = vector.shape_cast %26 : vector<1x32x32x24xbf16> to vector<32x32x24xbf16>
    %28 = vector.shape_cast %25 : vector<32x32x24xbf16> to vector<1x32x32x24xbf16>
    tpu.vector_store %arg5[%c0_11, %c0_12, %c0_13, %c0_14], %28 {strides = array<i32>} : memref<1x32x32x24xbf16, #tpu.memory_space<vmem>>, vector<1x32x32x24xbf16>,
    return
  }
  func.func @transform_0(%arg0: i32) -> (i32, i32, i32, i32, i32) {
    %c0_i32 = arith.constant 0 : i32
    %c0_i32_0 = arith.constant 0 : i32
    %c0_i32_1 = arith.constant 0 : i32
    %c0_i32_2 = arith.constant 0 : i32
    %c0_i32_3 = arith.constant 0 : i32
    return %arg0, %c0_i32, %c0_i32_0, %c0_i32_1, %c0_i32_2 : i32, i32, i32, i32, i32
  }
  func.func @transform_1(%arg0: i32) -> (i32, i32) {
    %c0_i32 = arith.constant 0 : i32
    %c0_i32_0 = arith.constant 0 : i32
    %c0_i32_1 = arith.constant 0 : i32
    return %c0_i32, %c0_i32_0 : i32, i32
  }
  func.func @transform_2(%arg0: i32) -> (i32, i32) {
    %c0_i32 = arith.constant 0 : i32
    %c0_i32_0 = arith.constant 0 : i32
    %c0_i32_1 = arith.constant 0 : i32
    return %c0_i32, %c0_i32_0 : i32, i32
  }
  func.func @transform_3(%arg0: i32) -> (i32, i32) {
    %c0_i32 = arith.constant 0 : i32
    %c0_i32_0 = arith.constant 0 : i32
    %c0_i32_1 = arith.constant 0 : i32
    return %c0_i32, %c0_i32_0 : i32, i32
  }
  func.func @transform_4(%arg0: i32) -> (i32, i32, i32, i32) {
    %c0_i32 = arith.constant 0 : i32
    %c0_i32_0 = arith.constant 0 : i32
    %c0_i32_1 = arith.constant 0 : i32
    %c0_i32_2 = arith.constant 0 : i32
    return %arg0, %c0_i32, %c0_i32_0, %c0_i32_1 : i32, i32, i32, i32
  }
}

module attributes {stable_mosaic.version = 11 : i64} {
  func.func @_conv_bn_relu_pool_kernel(%arg0: i32, %arg1: memref<1x16x4x16x256xbf16, #tpu.memory_space<vmem>>, %arg2: memref<256x48xbf16, #tpu.memory_space<vmem>>, %arg3: memref<1x48xf32, #tpu.memory_space<vmem>>, %arg4: memref<1x48xf32, #tpu.memory_space<vmem>>, %arg5: memref<1x16x16x48xbf16, #tpu.memory_space<vmem>>) attributes {dimension_semantics = [#tpu.dimension_semantics<parallel>], iteration_bounds = array<i64: 2>, scalar_prefetch = 0 : i64, scratch_operands = 0 : i64, tpu.core_type = #tpu.core_type<tc>, window_params = [{transform_indices = @transform_0, window_bounds = array<i64: 1, 16, 4, 16, 256>}, {pipeline_mode = #tpu.pipeline_mode<synchronous>, transform_indices = @transform_1, window_bounds = array<i64: 256, 48>}, {pipeline_mode = #tpu.pipeline_mode<synchronous>, transform_indices = @transform_2, window_bounds = array<i64: 1, 48>}, {pipeline_mode = #tpu.pipeline_mode<synchronous>, transform_indices = @transform_3, window_bounds = array<i64: 1, 48>}, {transform_indices = @transform_4, window_bounds = array<i64: 1, 16, 16, 48>}]} {
    %c0 = arith.constant 0 : index
    %c0_0 = arith.constant 0 : index
    %c0_1 = arith.constant 0 : index
    %c0_2 = arith.constant 0 : index
    %c0_3 = arith.constant 0 : index
    %0 = vector.load %arg1[%c0, %c0_0, %c0_1, %c0_2, %c0_3] : memref<1x16x4x16x256xbf16, #tpu.memory_space<vmem>>, vector<1x16x4x16x256xbf16>
    %1 = vector.shape_cast %0 : vector<1x16x4x16x256xbf16> to vector<16x4x16x256xbf16>
    %2 = vector.shape_cast %1 : vector<16x4x16x256xbf16> to vector<1024x256xbf16>
    %c0_4 = arith.constant 0 : index
    %c0_5 = arith.constant 0 : index
    %3 = vector.load %arg2[%c0_4, %c0_5] : memref<256x48xbf16, #tpu.memory_space<vmem>>, vector<256x48xbf16>
    %cst = arith.constant dense<0.000000e+00> : vector<1024x48xf32>
    %4 = tpu.matmul %2, %3, %cst {dimension_numbers = #tpu.dot_dimension_numbers<[1], [0], [0], [1], [0, 0, 1, 1], [], []>} : vector<1024x256xbf16>, vector<256x48xbf16>, vector<1024x48xf32> -> vector<1024x48xf32>
    %c0_6 = arith.constant 0 : index
    %c0_7 = arith.constant 0 : index
    %5 = vector.load %arg3[%c0_6, %c0_7] : memref<1x48xf32, #tpu.memory_space<vmem>>, vector<1x48xf32>
    %6 = vector.broadcast %5 : vector<1x48xf32> to vector<1024x48xf32>
    %7 = arith.mulf %4, %6 : vector<1024x48xf32>
    %c0_8 = arith.constant 0 : index
    %c0_9 = arith.constant 0 : index
    %8 = vector.load %arg4[%c0_8, %c0_9] : memref<1x48xf32, #tpu.memory_space<vmem>>, vector<1x48xf32>
    %9 = vector.broadcast %8 : vector<1x48xf32> to vector<1024x48xf32>
    %10 = arith.addf %7, %9 : vector<1024x48xf32>
    %cst_10 = arith.constant 0.000000e+00 : f32
    %11 = vector.broadcast %cst_10 : f32 to vector<1024x48xf32>
    %12 = arith.maximumf %10, %11 : vector<1024x48xf32>
    %13 = vector.shape_cast %12 : vector<1024x48xf32> to vector<16x4x16x48xf32>
    %14 = vector.extract_strided_slice %13 {offsets = [0, 0, 0, 0], sizes = [16, 1, 16, 48], strides = [1, 1, 1, 1]} : vector<16x4x16x48xf32> to vector<16x1x16x48xf32>
    %15 = vector.shape_cast %14 : vector<16x1x16x48xf32> to vector<16x16x48xf32>
    %16 = vector.extract_strided_slice %13 {offsets = [0, 1, 0, 0], sizes = [16, 1, 16, 48], strides = [1, 1, 1, 1]} : vector<16x4x16x48xf32> to vector<16x1x16x48xf32>
    %17 = vector.shape_cast %16 : vector<16x1x16x48xf32> to vector<16x16x48xf32>
    %18 = arith.maximumf %15, %17 : vector<16x16x48xf32>
    %19 = vector.extract_strided_slice %13 {offsets = [0, 2, 0, 0], sizes = [16, 1, 16, 48], strides = [1, 1, 1, 1]} : vector<16x4x16x48xf32> to vector<16x1x16x48xf32>
    %20 = vector.shape_cast %19 : vector<16x1x16x48xf32> to vector<16x16x48xf32>
    %21 = vector.extract_strided_slice %13 {offsets = [0, 3, 0, 0], sizes = [16, 1, 16, 48], strides = [1, 1, 1, 1]} : vector<16x4x16x48xf32> to vector<16x1x16x48xf32>
    %22 = vector.shape_cast %21 : vector<16x1x16x48xf32> to vector<16x16x48xf32>
    %23 = arith.maximumf %20, %22 : vector<16x16x48xf32>
    %24 = arith.maximumf %18, %23 : vector<16x16x48xf32>
    %25 = arith.truncf %24 : vector<16x16x48xf32> to vector<16x16x48xbf16>
    %c0_11 = arith.constant 0 : index
    %c0_12 = arith.constant 0 : index
    %c0_13 = arith.constant 0 : index
    %c0_14 = arith.constant 0 : index
    %26 = vector.load %arg5[%c0_11, %c0_12, %c0_13, %c0_14] : memref<1x16x16x48xbf16, #tpu.memory_space<vmem>>, vector<1x16x16x48xbf16>
    %27 = vector.shape_cast %26 : vector<1x16x16x48xbf16> to vector<16x16x48xbf16>
    %28 = vector.shape_cast %25 : vector<16x16x48xbf16> to vector<1x16x16x48xbf16>
    tpu.vector_store %arg5[%c0_11, %c0_12, %c0_13, %c0_14], %28 {strides = array<i32>} : memref<1x16x16x48xbf16, #tpu.memory_space<vmem>>, vector<1x16x16x48xbf16>,
    return
  }
  func.func @transform_0(%arg0: i32) -> (i32, i32, i32, i32, i32) {
    %c0_i32 = arith.constant 0 : i32
    %c0_i32_0 = arith.constant 0 : i32
    %c0_i32_1 = arith.constant 0 : i32
    %c0_i32_2 = arith.constant 0 : i32
    %c0_i32_3 = arith.constant 0 : i32
    return %arg0, %c0_i32, %c0_i32_0, %c0_i32_1, %c0_i32_2 : i32, i32, i32, i32, i32
  }
  func.func @transform_1(%arg0: i32) -> (i32, i32) {
    %c0_i32 = arith.constant 0 : i32
    %c0_i32_0 = arith.constant 0 : i32
    %c0_i32_1 = arith.constant 0 : i32
    return %c0_i32, %c0_i32_0 : i32, i32
  }
  func.func @transform_2(%arg0: i32) -> (i32, i32) {
    %c0_i32 = arith.constant 0 : i32
    %c0_i32_0 = arith.constant 0 : i32
    %c0_i32_1 = arith.constant 0 : i32
    return %c0_i32, %c0_i32_0 : i32, i32
  }
  func.func @transform_3(%arg0: i32) -> (i32, i32) {
    %c0_i32 = arith.constant 0 : i32
    %c0_i32_0 = arith.constant 0 : i32
    %c0_i32_1 = arith.constant 0 : i32
    return %c0_i32, %c0_i32_0 : i32, i32
  }
  func.func @transform_4(%arg0: i32) -> (i32, i32, i32, i32) {
    %c0_i32 = arith.constant 0 : i32
    %c0_i32_0 = arith.constant 0 : i32
    %c0_i32_1 = arith.constant 0 : i32
    %c0_i32_2 = arith.constant 0 : i32
    return %arg0, %c0_i32, %c0_i32_0, %c0_i32_1 : i32, i32, i32, i32
  }
}

module attributes {stable_mosaic.version = 11 : i64} {
  func.func @_conv_bn_relu_pool_kernel(%arg0: i32, %arg1: memref<1x8x4x8x512xbf16, #tpu.memory_space<vmem>>, %arg2: memref<512x96xbf16, #tpu.memory_space<vmem>>, %arg3: memref<1x96xf32, #tpu.memory_space<vmem>>, %arg4: memref<1x96xf32, #tpu.memory_space<vmem>>, %arg5: memref<1x8x8x96xbf16, #tpu.memory_space<vmem>>) attributes {dimension_semantics = [#tpu.dimension_semantics<parallel>], iteration_bounds = array<i64: 2>, scalar_prefetch = 0 : i64, scratch_operands = 0 : i64, tpu.core_type = #tpu.core_type<tc>, window_params = [{transform_indices = @transform_0, window_bounds = array<i64: 1, 8, 4, 8, 512>}, {pipeline_mode = #tpu.pipeline_mode<synchronous>, transform_indices = @transform_1, window_bounds = array<i64: 512, 96>}, {pipeline_mode = #tpu.pipeline_mode<synchronous>, transform_indices = @transform_2, window_bounds = array<i64: 1, 96>}, {pipeline_mode = #tpu.pipeline_mode<synchronous>, transform_indices = @transform_3, window_bounds = array<i64: 1, 96>}, {transform_indices = @transform_4, window_bounds = array<i64: 1, 8, 8, 96>}]} {
    %c0 = arith.constant 0 : index
    %c0_0 = arith.constant 0 : index
    %c0_1 = arith.constant 0 : index
    %c0_2 = arith.constant 0 : index
    %c0_3 = arith.constant 0 : index
    %0 = vector.load %arg1[%c0, %c0_0, %c0_1, %c0_2, %c0_3] : memref<1x8x4x8x512xbf16, #tpu.memory_space<vmem>>, vector<1x8x4x8x512xbf16>
    %1 = vector.shape_cast %0 : vector<1x8x4x8x512xbf16> to vector<8x4x8x512xbf16>
    %2 = vector.shape_cast %1 : vector<8x4x8x512xbf16> to vector<256x512xbf16>
    %c0_4 = arith.constant 0 : index
    %c0_5 = arith.constant 0 : index
    %3 = vector.load %arg2[%c0_4, %c0_5] : memref<512x96xbf16, #tpu.memory_space<vmem>>, vector<512x96xbf16>
    %cst = arith.constant dense<0.000000e+00> : vector<256x96xf32>
    %4 = tpu.matmul %2, %3, %cst {dimension_numbers = #tpu.dot_dimension_numbers<[1], [0], [0], [1], [0, 0, 1, 1], [], []>} : vector<256x512xbf16>, vector<512x96xbf16>, vector<256x96xf32> -> vector<256x96xf32>
    %c0_6 = arith.constant 0 : index
    %c0_7 = arith.constant 0 : index
    %5 = vector.load %arg3[%c0_6, %c0_7] : memref<1x96xf32, #tpu.memory_space<vmem>>, vector<1x96xf32>
    %6 = vector.broadcast %5 : vector<1x96xf32> to vector<256x96xf32>
    %7 = arith.mulf %4, %6 : vector<256x96xf32>
    %c0_8 = arith.constant 0 : index
    %c0_9 = arith.constant 0 : index
    %8 = vector.load %arg4[%c0_8, %c0_9] : memref<1x96xf32, #tpu.memory_space<vmem>>, vector<1x96xf32>
    %9 = vector.broadcast %8 : vector<1x96xf32> to vector<256x96xf32>
    %10 = arith.addf %7, %9 : vector<256x96xf32>
    %cst_10 = arith.constant 0.000000e+00 : f32
    %11 = vector.broadcast %cst_10 : f32 to vector<256x96xf32>
    %12 = arith.maximumf %10, %11 : vector<256x96xf32>
    %13 = vector.shape_cast %12 : vector<256x96xf32> to vector<8x4x8x96xf32>
    %14 = vector.extract_strided_slice %13 {offsets = [0, 0, 0, 0], sizes = [8, 1, 8, 96], strides = [1, 1, 1, 1]} : vector<8x4x8x96xf32> to vector<8x1x8x96xf32>
    %15 = vector.shape_cast %14 : vector<8x1x8x96xf32> to vector<8x8x96xf32>
    %16 = vector.extract_strided_slice %13 {offsets = [0, 1, 0, 0], sizes = [8, 1, 8, 96], strides = [1, 1, 1, 1]} : vector<8x4x8x96xf32> to vector<8x1x8x96xf32>
    %17 = vector.shape_cast %16 : vector<8x1x8x96xf32> to vector<8x8x96xf32>
    %18 = arith.maximumf %15, %17 : vector<8x8x96xf32>
    %19 = vector.extract_strided_slice %13 {offsets = [0, 2, 0, 0], sizes = [8, 1, 8, 96], strides = [1, 1, 1, 1]} : vector<8x4x8x96xf32> to vector<8x1x8x96xf32>
    %20 = vector.shape_cast %19 : vector<8x1x8x96xf32> to vector<8x8x96xf32>
    %21 = vector.extract_strided_slice %13 {offsets = [0, 3, 0, 0], sizes = [8, 1, 8, 96], strides = [1, 1, 1, 1]} : vector<8x4x8x96xf32> to vector<8x1x8x96xf32>
    %22 = vector.shape_cast %21 : vector<8x1x8x96xf32> to vector<8x8x96xf32>
    %23 = arith.maximumf %20, %22 : vector<8x8x96xf32>
    %24 = arith.maximumf %18, %23 : vector<8x8x96xf32>
    %25 = arith.truncf %24 : vector<8x8x96xf32> to vector<8x8x96xbf16>
    %c0_11 = arith.constant 0 : index
    %c0_12 = arith.constant 0 : index
    %c0_13 = arith.constant 0 : index
    %c0_14 = arith.constant 0 : index
    %26 = vector.load %arg5[%c0_11, %c0_12, %c0_13, %c0_14] : memref<1x8x8x96xbf16, #tpu.memory_space<vmem>>, vector<1x8x8x96xbf16>
    %27 = vector.shape_cast %26 : vector<1x8x8x96xbf16> to vector<8x8x96xbf16>
    %28 = vector.shape_cast %25 : vector<8x8x96xbf16> to vector<1x8x8x96xbf16>
    tpu.vector_store %arg5[%c0_11, %c0_12, %c0_13, %c0_14], %28 {strides = array<i32>} : memref<1x8x8x96xbf16, #tpu.memory_space<vmem>>, vector<1x8x8x96xbf16>,
    return
  }
  func.func @transform_0(%arg0: i32) -> (i32, i32, i32, i32, i32) {
    %c0_i32 = arith.constant 0 : i32
    %c0_i32_0 = arith.constant 0 : i32
    %c0_i32_1 = arith.constant 0 : i32
    %c0_i32_2 = arith.constant 0 : i32
    %c0_i32_3 = arith.constant 0 : i32
    return %arg0, %c0_i32, %c0_i32_0, %c0_i32_1, %c0_i32_2 : i32, i32, i32, i32, i32
  }
  func.func @transform_1(%arg0: i32) -> (i32, i32) {
    %c0_i32 = arith.constant 0 : i32
    %c0_i32_0 = arith.constant 0 : i32
    %c0_i32_1 = arith.constant 0 : i32
    return %c0_i32, %c0_i32_0 : i32, i32
  }
  func.func @transform_2(%arg0: i32) -> (i32, i32) {
    %c0_i32 = arith.constant 0 : i32
    %c0_i32_0 = arith.constant 0 : i32
    %c0_i32_1 = arith.constant 0 : i32
    return %c0_i32, %c0_i32_0 : i32, i32
  }
  func.func @transform_3(%arg0: i32) -> (i32, i32) {
    %c0_i32 = arith.constant 0 : i32
    %c0_i32_0 = arith.constant 0 : i32
    %c0_i32_1 = arith.constant 0 : i32
    return %c0_i32, %c0_i32_0 : i32, i32
  }
  func.func @transform_4(%arg0: i32) -> (i32, i32, i32, i32) {
    %c0_i32 = arith.constant 0 : i32
    %c0_i32_0 = arith.constant 0 : i32
    %c0_i32_1 = arith.constant 0 : i32
    %c0_i32_2 = arith.constant 0 : i32
    return %arg0, %c0_i32, %c0_i32_0, %c0_i32_1 : i32, i32, i32, i32
  }
}

module attributes {stable_mosaic.version = 11 : i64} {
  func.func @_mlp_kernel(%arg0: i32, %arg1: memref<2x2048xbf16, #tpu.memory_space<vmem>>, %arg2: memref<2048x512xbf16, #tpu.memory_space<vmem>>, %arg3: memref<1x512xf32, #tpu.memory_space<vmem>>, %arg4: memref<512x1024xbf16, #tpu.memory_space<vmem>>, %arg5: memref<1x1024xf32, #tpu.memory_space<vmem>>, %arg6: memref<1024x2xbf16, #tpu.memory_space<vmem>>, %arg7: memref<1x2xf32, #tpu.memory_space<vmem>>, %arg8: memref<2x2xf32, #tpu.memory_space<vmem>>, %arg9: memref<2x512xf32, #tpu.memory_space<vmem>>) attributes {dimension_semantics = [#tpu.dimension_semantics<arbitrary>], iteration_bounds = array<i64: 3>, scalar_prefetch = 0 : i64, scratch_operands = 1 : i64, tpu.core_type = #tpu.core_type<tc>, window_params = [{transform_indices = @transform_0, window_bounds = array<i64: 2, 2048>}, {transform_indices = @transform_1, window_bounds = array<i64: 2048, 512>}, {pipeline_mode = #tpu.pipeline_mode<synchronous>, transform_indices = @transform_2, window_bounds = array<i64: 1, 512>}, {pipeline_mode = #tpu.pipeline_mode<synchronous>, transform_indices = @transform_3, window_bounds = array<i64: 512, 1024>}, {pipeline_mode = #tpu.pipeline_mode<synchronous>, transform_indices = @transform_4, window_bounds = array<i64: 1, 1024>}, {pipeline_mode = #tpu.pipeline_mode<synchronous>, transform_indices = @transform_5, window_bounds = array<i64: 1024, 2>}, {pipeline_mode = #tpu.pipeline_mode<synchronous>, transform_indices = @transform_6, window_bounds = array<i64: 1, 2>}, {pipeline_mode = #tpu.pipeline_mode<synchronous>, transform_indices = @transform_7, window_bounds = array<i64: 2, 2>}]} {
    %c0_i32 = arith.constant 0 : i32
    %0 = arith.cmpi eq, %arg0, %c0_i32 : i32
    %1 = arith.extui %0 : i1 to i32
    %c0_i32_0 = arith.constant 0 : i32
    %2 = arith.cmpi ne, %1, %c0_i32_0 : i32
    scf.if %2 {
      %cst_9 = arith.constant 0.000000e+00 : f32
      %12 = vector.broadcast %cst_9 : f32 to vector<2x512xf32>
      %c0_10 = arith.constant 0 : index
      %c0_11 = arith.constant 0 : index
      %13 = vector.load %arg9[%c0_10, %c0_11] : memref<2x512xf32, #tpu.memory_space<vmem>>, vector<2x512xf32>
      tpu.vector_store %arg9[%c0_10, %c0_11], %12 {strides = array<i32>} : memref<2x512xf32, #tpu.memory_space<vmem>>, vector<2x512xf32>,
    } else {
    }
    %c0 = arith.constant 0 : index
    %c0_1 = arith.constant 0 : index
    %3 = vector.load %arg9[%c0, %c0_1] : memref<2x512xf32, #tpu.memory_space<vmem>>, vector<2x512xf32>
    %c0_2 = arith.constant 0 : index
    %c0_3 = arith.constant 0 : index
    %4 = vector.load %arg1[%c0_2, %c0_3] : memref<2x2048xbf16, #tpu.memory_space<vmem>>, vector<2x2048xbf16>
    %c0_4 = arith.constant 0 : index
    %c0_5 = arith.constant 0 : index
    %5 = vector.load %arg2[%c0_4, %c0_5] : memref<2048x512xbf16, #tpu.memory_space<vmem>>, vector<2048x512xbf16>
    %cst = arith.constant dense<0.000000e+00> : vector<2x512xf32>
    %6 = tpu.matmul %4, %5, %cst {dimension_numbers = #tpu.dot_dimension_numbers<[1], [0], [0], [1], [0, 0, 1, 1], [], []>} : vector<2x2048xbf16>, vector<2048x512xbf16>, vector<2x512xf32> -> vector<2x512xf32>
    %7 = arith.addf %3, %6 : vector<2x512xf32>
    %c0_6 = arith.constant 0 : index
    %c0_7 = arith.constant 0 : index
    %8 = vector.load %arg9[%c0_6, %c0_7] : memref<2x512xf32, #tpu.memory_space<vmem>>, vector<2x512xf32>
    tpu.vector_store %arg9[%c0_6, %c0_7], %7 {strides = array<i32>} : memref<2x512xf32, #tpu.memory_space<vmem>>, vector<2x512xf32>,
    %c2_i32 = arith.constant 2 : i32
    %9 = arith.cmpi eq, %arg0, %c2_i32 : i32
    %10 = arith.extui %9 : i1 to i32
    %c0_i32_8 = arith.constant 0 : i32
    %11 = arith.cmpi ne, %10, %c0_i32_8 : i32
    scf.if %11 {
      %c0_9 = arith.constant 0 : index
      %c0_10 = arith.constant 0 : index
      %12 = vector.load %arg9[%c0_9, %c0_10] : memref<2x512xf32, #tpu.memory_space<vmem>>, vector<2x512xf32>
      %c0_11 = arith.constant 0 : index
      %c0_12 = arith.constant 0 : index
      %13 = vector.load %arg3[%c0_11, %c0_12] : memref<1x512xf32, #tpu.memory_space<vmem>>, vector<1x512xf32>
      %14 = vector.broadcast %13 : vector<1x512xf32> to vector<2x512xf32>
      %15 = arith.addf %12, %14 : vector<2x512xf32>
      %16 = math.tanh %15 : vector<2x512xf32>
      %17 = arith.truncf %16 : vector<2x512xf32> to vector<2x512xbf16>
      %c0_13 = arith.constant 0 : index
      %c0_14 = arith.constant 0 : index
      %18 = vector.load %arg4[%c0_13, %c0_14] : memref<512x1024xbf16, #tpu.memory_space<vmem>>, vector<512x1024xbf16>
      %cst_15 = arith.constant dense<0.000000e+00> : vector<2x1024xf32>
      %19 = tpu.matmul %17, %18, %cst_15 {dimension_numbers = #tpu.dot_dimension_numbers<[1], [0], [0], [1], [0, 0, 1, 1], [], []>} : vector<2x512xbf16>, vector<512x1024xbf16>, vector<2x1024xf32> -> vector<2x1024xf32>
      %c0_16 = arith.constant 0 : index
      %c0_17 = arith.constant 0 : index
      %20 = vector.load %arg5[%c0_16, %c0_17] : memref<1x1024xf32, #tpu.memory_space<vmem>>, vector<1x1024xf32>
      %21 = vector.broadcast %20 : vector<1x1024xf32> to vector<2x1024xf32>
      %22 = arith.addf %19, %21 : vector<2x1024xf32>
      %23 = math.tanh %22 : vector<2x1024xf32>
      %24 = arith.truncf %23 : vector<2x1024xf32> to vector<2x1024xbf16>
      %c0_18 = arith.constant 0 : index
      %c0_19 = arith.constant 0 : index
      %25 = vector.load %arg6[%c0_18, %c0_19] : memref<1024x2xbf16, #tpu.memory_space<vmem>>, vector<1024x2xbf16>
      %cst_20 = arith.constant dense<0.000000e+00> : vector<2x2xf32>
      %26 = tpu.matmul %24, %25, %cst_20 {dimension_numbers = #tpu.dot_dimension_numbers<[1], [0], [0], [1], [0, 0, 1, 1], [], []>} : vector<2x1024xbf16>, vector<1024x2xbf16>, vector<2x2xf32> -> vector<2x2xf32>
      %c0_21 = arith.constant 0 : index
      %c0_22 = arith.constant 0 : index
      %27 = vector.load %arg7[%c0_21, %c0_22] : memref<1x2xf32, #tpu.memory_space<vmem>>, vector<1x2xf32>
      %28 = vector.broadcast %27 : vector<1x2xf32> to vector<2x2xf32>
      %29 = arith.addf %26, %28 : vector<2x2xf32>
      %30 = arith.negf %29 : vector<2x2xf32>
      %31 = math.exp %30 : vector<2x2xf32>
      %cst_23 = arith.constant 1.000000e+00 : f32
      %32 = vector.broadcast %cst_23 : f32 to vector<2x2xf32>
      %33 = arith.addf %32, %31 : vector<2x2xf32>
      %34 = arith.divf %32, %33 : vector<2x2xf32>
      %c0_24 = arith.constant 0 : index
      %c0_25 = arith.constant 0 : index
      %35 = vector.load %arg8[%c0_24, %c0_25] : memref<2x2xf32, #tpu.memory_space<vmem>>, vector<2x2xf32>
      tpu.vector_store %arg8[%c0_24, %c0_25], %34 {strides = array<i32>} : memref<2x2xf32, #tpu.memory_space<vmem>>, vector<2x2xf32>,
    } else {
    }
    return
  }
  func.func @transform_0(%arg0: i32) -> (i32, i32) {
    %c0_i32 = arith.constant 0 : i32
    %c0_i32_0 = arith.constant 0 : i32
    return %c0_i32, %arg0 : i32, i32
  }
  func.func @transform_1(%arg0: i32) -> (i32, i32) {
    %c0_i32 = arith.constant 0 : i32
    %c0_i32_0 = arith.constant 0 : i32
    return %arg0, %c0_i32 : i32, i32
  }
  func.func @transform_2(%arg0: i32) -> (i32, i32) {
    %c0_i32 = arith.constant 0 : i32
    %c0_i32_0 = arith.constant 0 : i32
    %c0_i32_1 = arith.constant 0 : i32
    return %c0_i32, %c0_i32_0 : i32, i32
  }
  func.func @transform_3(%arg0: i32) -> (i32, i32) {
    %c0_i32 = arith.constant 0 : i32
    %c0_i32_0 = arith.constant 0 : i32
    %c0_i32_1 = arith.constant 0 : i32
    return %c0_i32, %c0_i32_0 : i32, i32
  }
  func.func @transform_4(%arg0: i32) -> (i32, i32) {
    %c0_i32 = arith.constant 0 : i32
    %c0_i32_0 = arith.constant 0 : i32
    %c0_i32_1 = arith.constant 0 : i32
    return %c0_i32, %c0_i32_0 : i32, i32
  }
  func.func @transform_5(%arg0: i32) -> (i32, i32) {
    %c0_i32 = arith.constant 0 : i32
    %c0_i32_0 = arith.constant 0 : i32
    %c0_i32_1 = arith.constant 0 : i32
    return %c0_i32, %c0_i32_0 : i32, i32
  }
  func.func @transform_6(%arg0: i32) -> (i32, i32) {
    %c0_i32 = arith.constant 0 : i32
    %c0_i32_0 = arith.constant 0 : i32
    %c0_i32_1 = arith.constant 0 : i32
    return %c0_i32, %c0_i32_0 : i32, i32
  }
  func.func @transform_7(%arg0: i32) -> (i32, i32) {
    %c0_i32 = arith.constant 0 : i32
    %c0_i32_0 = arith.constant 0 : i32
    %c0_i32_1 = arith.constant 0 : i32
    return %c0_i32, %c0_i32_0 : i32, i32
  }
}

</mosaic_0001>

<bundles_post_ra>
// kernel: forward.4
= control target key start
LH: loop header
LB: loop body
LE: loop exit
PB: predicated region body
PF: predicated region fallthrough
CT: control target
= control target key end

     0   :  { %s9367_s15 = smov 0   ;;  %s11760_s0 = inlined_call_operand.vmem [shape: bf16[2,32,4,32,27], index: 0, kind: input, shape index: {}]   ;;  %s11761_s1 = inlined_call_operand.vmem [shape: bf16[27,24], index: 1, kind: input, shape index: {}]   ;;  %s11762_s2 = inlined_call_operand.vmem [shape: f32[1,24], index: 2, kind: input, shape index: {}]   ;;  %s11763_s3 = inlined_call_operand.vmem [shape: f32[1,24], index: 3, kind: input, shape index: {}]   ;;  %s11764_s4 = inlined_call_operand.vmem [shape: bf16[2,32,32,24], index: 4, kind: output, shape index: {}]  }
   0x1 LB: > { %s7493_s16 = sadd.s32 4294967295, %s9339_s15   ;;  %p7497_p0 = scmp.ge.s32.totalorder %s9339_s15, 1  ;;  %s9339_s15 = sphi %s9367_s15, %s14_s15  }
   0x2   : > { %p162_p1 = scmp.lt.s32.totalorder %s9339_s15, 3 }
   0x4   : > { %p163_p2 = pnand %p7497_p0, %p162_p1 }
   0x5   : > { %v9065_v0 = vld [vmem:[%s11761_s1] sm:$0xff] (!%p163_p2)   ;;  %vm2775_vm0 = vcmask (!%p163_p2), 1044480   ;;  %v9066_v1 = vld [vmem:[%s11761_s1 + $0x8] sm:$0x3f] (!%p163_p2)   ;;  %vm2776_vm1 = vcmask (!%p163_p2), 1045504   ;;  %p188_p3 = scmp.lt.s32.totalorder (!%p163_p2), %s7493_s16, 1 }
   0x6   : > { %166 = sbr.rel (%p163_p2) target bundleno = 761 (0x2f9), region = 36  ;;  %8536 = vmatprep.subr.bf16.mxu0 (!%p163_p2), %v9065_v0  ;;  %9052 = vmatprep.subr.bf16.mxu1 (!%p163_p2), %v9065_v0  ;;  %v9341_v2 = vmov (!%p163_p2), 65535   ;;  %vm2006_vm2 = vcmask (!%p163_p2), 220160   ;;  %vm7309_vm3 = vcmask (!%p163_p2), 191488  }
   0x7   : > { %8537 = vmatpush3.bf16.msra.mxu0 (!%p163_p2), %v9065_v0  ;;  %9054 = vmatpush3.bf16.msra.mxu1 (!%p163_p2), %v9065_v0  ;;  %v2777_v3 = vsel (!%p163_p2), %vm2775_vm0, 4294967295, %v9341_v2 }
   0x8   : > { %v2778_v4 = vsel (!%p163_p2), %vm2776_vm1, %v2777_v3, 0 }
   0x9   : > { %v2780_v5 = vand.u32 (!%p163_p2), %v9066_v1, %v2778_v4 }
   0xb   : > { %8538 = vmatprep.subr.bf16.mxu0 (!%p163_p2), %v2780_v5  ;;  %9053 = vmatprep.subr.bf16.mxu1 (!%p163_p2), %v2780_v5 }
   0xc   : > { %8539 = vmatpush3.bf16.msra.mxu0 (!%p163_p2), %v2780_v5  ;;  %9055 = vmatpush3.bf16.msra.mxu1 (!%p163_p2), %v2780_v5 }
   0xd   : > { %s11766_s16 = smov (!%p188_p3, %s7493_s16), 1 }
   0xe   : > { %s8148_s21 = sshll.u32 %s11766_s16, 11  ;;  %s8149_s29 = sshll.u32 %s11766_s16, 9 }
   0xf   : > { %s9387_s24 = scalar_lea.vmem %s11760_s0, %s8148_s21  ;;  %s9776_s6 = scalar_lea.vmem %s11764_s4, %s8149_s29 }
  0x10   : > { %v9067_v6 = vld [vmem:[%s9387_s24] sm:$0xff]   ;;  %v9069_v8 = vld [vmem:[%s9387_s24 + $0x8] sm:$0xff]   ;;  %v9071_v10 = vld [vmem:[%s9387_s24 + $0x10] sm:$0xff]  }
  0x11   : > { %v9068_v7 = vld [vmem:[%s9387_s24 + $0x400] sm:$0xff]   ;;  %8540 = vmatprep.mubr.msk.bf16.mxu0 %vm2006_vm2, %v9067_v6  ;;  %v9070_v9 = vld [vmem:[%s9387_s24 + $0x408] sm:$0xff]   ;;  %v9072_v11 = vld [vmem:[%s9387_s24 + $0x410] sm:$0xff]  }
  0x12   : > { %8796 = vmatprep.mubr.msk.bf16.mxu1 %vm2006_vm2, %v9068_v7  ;;  %8541 = vmatmul.mubr.msk.bf16.vlgmr.msra.gmra.mrb[0].mxu0 %vm2006_vm2, %v9069_v8  ;;  %v9073_v12 = vld [vmem:[%s9387_s24 + $0x18] sm:$0xff]   ;;  %v9075_v14 = vld [vmem:[%s9387_s24 + $0x20] sm:$0xff]   ;;  %v9077_v16 = vld [vmem:[%s9387_s24 + $0x28] sm:$0xff]  }
  0x13   : > { %8797 = vmatmul.mubr.msk.bf16.vlgmr.msra.gmra.mrb[0].mxu1 %vm2006_vm2, %v9070_v9  ;;  %8544 = vmatprep.mubr.msk.bf16.mxu0 %vm2006_vm2, %v9071_v10  ;;  %v9074_v13 = vld [vmem:[%s9387_s24 + $0x418] sm:$0xff]   ;;  %v9076_v15 = vld [vmem:[%s9387_s24 + $0x420] sm:$0xff]   ;;  %v9078_v17 = vld [vmem:[%s9387_s24 + $0x428] sm:$0xff]  }
  0x14   : > { %8800 = vmatprep.mubr.msk.bf16.mxu1 %vm2006_vm2, %v9072_v11  ;;  %v9079_v18 = vld [vmem:[%s9387_s24 + $0x30] sm:$0xff]   ;;  %v9081_v20 = vld [vmem:[%s9387_s24 + $0x38] sm:$0xff]   ;;  %v9083_v22 = vld [vmem:[%s9387_s24 + $0x40] sm:$0xff]  }
  0x15   : > { %v9080_v19 = vld [vmem:[%s9387_s24 + $0x430] sm:$0xff]   ;;  %v9082_v21 = vld [vmem:[%s9387_s24 + $0x438] sm:$0xff]   ;;  %v9084_v23 = vld [vmem:[%s9387_s24 + $0x440] sm:$0xff]  }
  0x16   : > { %v9085_v24 = vld [vmem:[%s9387_s24 + $0x48] sm:$0xff]   ;;  %v9087_v26 = vld [vmem:[%s9387_s24 + $0x50] sm:$0xff]   ;;  %v9089_v28 = vld [vmem:[%s9387_s24 + $0x58] sm:$0xff]  }
  0x17   : > { %v9086_v25 = vld [vmem:[%s9387_s24 + $0x448] sm:$0xff]   ;;  %v9088_v27 = vld [vmem:[%s9387_s24 + $0x450] sm:$0xff]   ;;  %v9090_v29 = vld [vmem:[%s9387_s24 + $0x458] sm:$0xff]  }
  0x18   : > { %v9091_v30 = vld [vmem:[%s9387_s24 + $0x60] sm:$0xff]   ;;  %v9093_v32 = vld [vmem:[%s9387_s24 + $0x68] sm:$0xff]   ;;  %v9095_v34 = vld [vmem:[%s9387_s24 + $0x70] sm:$0xff]  }
  0x19   : > { %v9092_v31 = vld [vmem:[%s9387_s24 + $0x460] sm:$0xff]   ;;  %v9094_v33 = vld [vmem:[%s9387_s24 + $0x468] sm:$0xff]   ;;  %v9096_v35 = vld [vmem:[%s9387_s24 + $0x470] sm:$0xff]  }
  0x1a   : > { %8545 = vmatmul.mubr.msk.bf16.gmra.mrb[4].mxu0 %vm2006_vm2, %v9073_v12  ;;  %v9097_v36 = vld [vmem:[%s9387_s24 + $0x78] sm:$0xff]   ;;  %v9099_v38 = vld [vmem:[%s9387_s24 + $0x80] sm:$0xff]   ;;  %v9101_v40 = vld [vmem:[%s9387_s24 + $0x88] sm:$0xff]  }
  0x1b   : > { %8801 = vmatmul.mubr.msk.bf16.gmra.mrb[4].mxu1 %vm2006_vm2, %v9074_v13  ;;  %8548 = vmatprep.mubr.msk.bf16.mxu0 %vm2006_vm2, %v9075_v14  ;;  %v9098_v37 = vld [vmem:[%s9387_s24 + $0x478] sm:$0xff]   ;;  %v9100_v39 = vld [vmem:[%s9387_s24 + $0x480] sm:$0xff]   ;;  %v9102_v41 = vld [vmem:[%s9387_s24 + $0x488] sm:$0xff]  }
  0x1c   : > { %8804 = vmatprep.mubr.msk.bf16.mxu1 %vm2006_vm2, %v9076_v15  ;;  %v9103_v42 = vld [vmem:[%s9387_s24 + $0x90] sm:$0xff]   ;;  %v9105_v44 = vld [vmem:[%s9387_s24 + $0x98] sm:$0xff]   ;;  %v9107_v46 = vld [vmem:[%s9387_s24 + $0xa0] sm:$0xff]  }
  0x1d   : > { %v9104_v43 = vld [vmem:[%s9387_s24 + $0x490] sm:$0xff]   ;;  %v9106_v45 = vld [vmem:[%s9387_s24 + $0x498] sm:$0xff]   ;;  %v9108_v47 = vld [vmem:[%s9387_s24 + $0x4a0] sm:$0xff]  }
  0x1e   : > { %v9109_v48 = vld [vmem:[%s9387_s24 + $0xa8] sm:$0xff]   ;;  %v9111_v50 = vld [vmem:[%s9387_s24 + $0xb0] sm:$0xff]   ;;  %v9113_v52 = vld [vmem:[%s9387_s24 + $0xb8] sm:$0xff]  }
  0x1f   : > { %v9110_v49 = vld [vmem:[%s9387_s24 + $0x4a8] sm:$0xff]   ;;  %v9112_v51 = vld [vmem:[%s9387_s24 + $0x4b0] sm:$0xff]   ;;  %v9114_v53 = vld [vmem:[%s9387_s24 + $0x4b8] sm:$0xff]  }
  0x20   : > { %v9115_v54 = vld [vmem:[%s9387_s24 + $0xc0] sm:$0xff]   ;;  %v9117_v56 = vld [vmem:[%s9387_s24 + $0xc8] sm:$0xff]   ;;  %v9119_v58 = vld [vmem:[%s9387_s24 + $0xd0] sm:$0xff]  }
  0x21   : > { %v9116_v55 = vld [vmem:[%s9387_s24 + $0x4c0] sm:$0xff]   ;;  %v9118_v57 = vld [vmem:[%s9387_s24 + $0x4c8] sm:$0xff]   ;;  %v9120_v59 = vld [vmem:[%s9387_s24 + $0x4d0] sm:$0xff]  }
  0x22   : > { %8549 = vmatmul.mubr.msk.bf16.gmra.mrb[8].mxu0 %vm2006_vm2, %v9077_v16  ;;  %v9121_v60 = vld [vmem:[%s9387_s24 + $0xd8] sm:$0xff]   ;;  %v9123_v62 = vld [vmem:[%s9387_s24 + $0xe0] sm:$0xff]   ;;  %v9125_v0 = vld [vmem:[%s9387_s24 + $0xe8] sm:$0xff]  }
  0x23   : > { %8805 = vmatmul.mubr.msk.bf16.gmra.mrb[8].mxu1 %vm2006_vm2, %v9078_v17  ;;  %8552 = vmatprep.mubr.msk.bf16.mxu0 %vm2006_vm2, %v9079_v18  ;;  %v9122_v61 = vld [vmem:[%s9387_s24 + $0x4d8] sm:$0xff]   ;;  %v9124_v63 = vld [vmem:[%s9387_s24 + $0x4e0] sm:$0xff]   ;;  %v9126_v1 = vld [vmem:[%s9387_s24 + $0x4e8] sm:$0xff]  }
  0x24   : > { %8808 = vmatprep.mubr.msk.bf16.mxu1 %vm2006_vm2, %v9080_v19  ;;  %v9127_v2 = vld [vmem:[%s9387_s24 + $0xf0] sm:$0xff]   ;;  %v9129_v4 = vld [vmem:[%s9387_s24 + $0xf8] sm:$0xff]   ;;  %v9131_v6 = vld [vmem:[%s9387_s24 + $0x100] sm:$0xff]  }
  0x25   : > { %v9128_v3 = vld [vmem:[%s9387_s24 + $0x4f0] sm:$0xff]   ;;  %v9130_v5 = vld [vmem:[%s9387_s24 + $0x4f8] sm:$0xff]   ;;  %v9132_v7 = vld [vmem:[%s9387_s24 + $0x500] sm:$0xff]  }
  0x26   : > { %v9133_v8 = vld [vmem:[%s9387_s24 + $0x108] sm:$0xff]   ;;  %v9135_v10 = vld [vmem:[%s9387_s24 + $0x110] sm:$0xff]   ;;  %v9137_v12 = vld [vmem:[%s9387_s24 + $0x118] sm:$0xff]  }
  0x27   : > { %v9134_v9 = vld [vmem:[%s9387_s24 + $0x508] sm:$0xff]   ;;  %v9136_v11 = vld [vmem:[%s9387_s24 + $0x510] sm:$0xff]   ;;  %v9138_v13 = vld [vmem:[%s9387_s24 + $0x518] sm:$0xff]  }
  0x28   : > { %v9139_v14 = vld [vmem:[%s9387_s24 + $0x120] sm:$0xff]   ;;  %v9141_v16 = vld [vmem:[%s9387_s24 + $0x128] sm:$0xff]   ;;  %v9143_v18 = vld [vmem:[%s9387_s24 + $0x130] sm:$0xff]  }
  0x29   : > { %v9140_v15 = vld [vmem:[%s9387_s24 + $0x520] sm:$0xff]   ;;  %v9142_v17 = vld [vmem:[%s9387_s24 + $0x528] sm:$0xff]   ;;  %v9144_v19 = vld [vmem:[%s9387_s24 + $0x530] sm:$0xff]  }
  0x2a   : > { %8553 = vmatmul.mubr.msk.bf16.gmra.mrb[12].mxu0 %vm2006_vm2, %v9081_v20  ;;  %v9145_v20 = vld [vmem:[%s9387_s24 + $0x138] sm:$0xff]  }
  0x2b   : > { %8809 = vmatmul.mubr.msk.bf16.gmra.mrb[12].mxu1 %vm2006_vm2, %v9082_v21  ;;  %8556 = vmatprep.mubr.msk.bf16.mxu0 %vm2006_vm2, %v9083_v22  ;;  %v9146_v21 = vld [vmem:[%s9387_s24 + $0x538] sm:$0xff]   ;;  %v9147_v22 = vld [vmem:[%s9387_s24 + $0x140] sm:$0xff]  }
  0x2c   : > { %8812 = vmatprep.mubr.msk.bf16.mxu1 %vm2006_vm2, %v9084_v23  ;;  %v9148_v23 = vld [vmem:[%s9387_s24 + $0x540] sm:$0xff]  }
  0x32   : > { %8557 = vmatmul.mubr.msk.bf16.gmra.mrb[16].mxu0 %vm2006_vm2, %v9085_v24  ;;  %v9149_v24 = vld [vmem:[%s9387_s24 + $0x148] sm:$0xff]  }
  0x33   : > { %8813 = vmatmul.mubr.msk.bf16.gmra.mrb[16].mxu1 %vm2006_vm2, %v9086_v25  ;;  %8560 = vmatprep.mubr.msk.bf16.mxu0 %vm2006_vm2, %v9087_v26  ;;  %v9150_v25 = vld [vmem:[%s9387_s24 + $0x548] sm:$0xff]   ;;  %v9151_v26 = vld [vmem:[%s9387_s24 + $0x150] sm:$0xff]  }
  0x34   : > { %8816 = vmatprep.mubr.msk.bf16.mxu1 %vm2006_vm2, %v9088_v27  ;;  %v9152_v27 = vld [vmem:[%s9387_s24 + $0x550] sm:$0xff]  }
  0x3a   : > { %8561 = vmatmul.mubr.msk.bf16.gmra.mrb[20].mxu0 %vm2006_vm2, %v9089_v28  ;;  %v9153_v28 = vld [vmem:[%s9387_s24 + $0x158] sm:$0xff]  }
  0x3b   : > { %8817 = vmatmul.mubr.msk.bf16.gmra.mrb[20].mxu1 %vm2006_vm2, %v9090_v29  ;;  %8564 = vmatprep.mubr.msk.bf16.mxu0 %vm2006_vm2, %v9091_v30  ;;  %v9154_v29 = vld [vmem:[%s9387_s24 + $0x558] sm:$0xff]   ;;  %v9155_v30 = vld [vmem:[%s9387_s24 + $0x160] sm:$0xff]  }
  0x3c   : > { %8820 = vmatprep.mubr.msk.bf16.mxu1 %vm2006_vm2, %v9092_v31  ;;  %v9156_v31 = vld [vmem:[%s9387_s24 + $0x560] sm:$0xff]  }
  0x42   : > { %8565 = vmatmul.mubr.msk.bf16.gmra.mrb[24].mxu0 %vm2006_vm2, %v9093_v32  ;;  %v9157_v32 = vld [vmem:[%s9387_s24 + $0x168] sm:$0xff]  }
  0x43   : > { %8821 = vmatmul.mubr.msk.bf16.gmra.mrb[24].mxu1 %vm2006_vm2, %v9094_v33  ;;  %8568 = vmatprep.mubr.msk.bf16.mxu0 %vm2006_vm2, %v9095_v34  ;;  %v9158_v33 = vld [vmem:[%s9387_s24 + $0x568] sm:$0xff]   ;;  %v9159_v34 = vld [vmem:[%s9387_s24 + $0x170] sm:$0xff]  }
  0x44   : > { %8824 = vmatprep.mubr.msk.bf16.mxu1 %vm2006_vm2, %v9096_v35  ;;  %v9160_v35 = vld [vmem:[%s9387_s24 + $0x570] sm:$0xff]  }
  0x4a   : > { %8569 = vmatmul.mubr.msk.bf16.gmra.mrb[28].mxu0 %vm2006_vm2, %v9097_v36  ;;  %v9161_v36 = vld [vmem:[%s9387_s24 + $0x178] sm:$0xff]  }
  0x4b   : > { %8825 = vmatmul.mubr.msk.bf16.gmra.mrb[28].mxu1 %vm2006_vm2, %v9098_v37  ;;  %8572 = vmatprep.mubr.msk.bf16.mxu0 %vm2006_vm2, %v9099_v38  ;;  %v9162_v37 = vld [vmem:[%s9387_s24 + $0x578] sm:$0xff]   ;;  %v9163_v38 = vld [vmem:[%s9387_s24 + $0x180] sm:$0xff]  }
  0x4c   : > { %8828 = vmatprep.mubr.msk.bf16.mxu1 %vm2006_vm2, %v9100_v39  ;;  %v9164_v39 = vld [vmem:[%s9387_s24 + $0x580] sm:$0xff]  }
  0x52   : > { %8573 = vmatmul.mubr.msk.bf16.gmra.mrb[32].mxu0 %vm2006_vm2, %v9101_v40  ;;  %v9165_v40 = vld [vmem:[%s9387_s24 + $0x188] sm:$0xff]  }
  0x53   : > { %8829 = vmatmul.mubr.msk.bf16.gmra.mrb[32].mxu1 %vm2006_vm2, %v9102_v41  ;;  %8576 = vmatprep.mubr.msk.bf16.mxu0 %vm2006_vm2, %v9103_v42  ;;  %v9166_v41 = vld [vmem:[%s9387_s24 + $0x588] sm:$0xff]   ;;  %v9167_v42 = vld [vmem:[%s9387_s24 + $0x190] sm:$0xff]  }
  0x54   : > { %8832 = vmatprep.mubr.msk.bf16.mxu1 %vm2006_vm2, %v9104_v43  ;;  %v9168_v43 = vld [vmem:[%s9387_s24 + $0x590] sm:$0xff]  }
  0x5a   : > { %8577 = vmatmul.mubr.msk.bf16.gmra.mrb[36].mxu0 %vm2006_vm2, %v9105_v44  ;;  %v9169_v44 = vld [vmem:[%s9387_s24 + $0x198] sm:$0xff]  }
  0x5b   : > { %8833 = vmatmul.mubr.msk.bf16.gmra.mrb[36].mxu1 %vm2006_vm2, %v9106_v45  ;;  %8580 = vmatprep.mubr.msk.bf16.mxu0 %vm2006_vm2, %v9107_v46  ;;  %v9170_v45 = vld [vmem:[%s9387_s24 + $0x598] sm:$0xff]   ;;  %v9171_v46 = vld [vmem:[%s9387_s24 + $0x1a0] sm:$0xff]  }
  0x5c   : > { %8836 = vmatprep.mubr.msk.bf16.mxu1 %vm2006_vm2, %v9108_v47  ;;  %v9172_v47 = vld [vmem:[%s9387_s24 + $0x5a0] sm:$0xff]  }
  0x62   : > { %8581 = vmatmul.mubr.msk.bf16.gmra.mrb[40].mxu0 %vm2006_vm2, %v9109_v48  ;;  %v9173_v48 = vld [vmem:[%s9387_s24 + $0x1a8] sm:$0xff]  }
  0x63   : > { %8837 = vmatmul.mubr.msk.bf16.gmra.mrb[40].mxu1 %vm2006_vm2, %v9110_v49  ;;  %8584 = vmatprep.mubr.msk.bf16.mxu0 %vm2006_vm2, %v9111_v50  ;;  %v9174_v49 = vld [vmem:[%s9387_s24 + $0x5a8] sm:$0xff]   ;;  %v9175_v50 = vld [vmem:[%s9387_s24 + $0x1b0] sm:$0xff]  }
  0x64   : > { %8840 = vmatprep.mubr.msk.bf16.mxu1 %vm2006_vm2, %v9112_v51  ;;  %v9176_v51 = vld [vmem:[%s9387_s24 + $0x5b0] sm:$0xff]  }
  0x6a   : > { %8585 = vmatmul.mubr.msk.bf16.gmra.mrb[44].mxu0 %vm2006_vm2, %v9113_v52  ;;  %v9608_v52 = vld [vmem:[%s11762_s2] ss:$0 sm:$0xff] }
  0x6b   : > { %8841 = vmatmul.mubr.msk.bf16.gmra.mrb[44].mxu1 %vm2006_vm2, %v9114_v53  ;;  %8588 = vmatprep.mubr.msk.bf16.mxu0 %vm2006_vm2, %v9115_v54  ;;  %v9616_v53 = vld [vmem:[%s11763_s3] ss:$0 sm:$0xff]  ;;  %v9177_v54 = vld [vmem:[%s9387_s24 + $0x1b8] sm:$0xff]  }
  0x6c   : > { %8844 = vmatprep.mubr.msk.bf16.mxu1 %vm2006_vm2, %v9116_v55 }
  0x72   : > { %8589 = vmatmul.mubr.msk.bf16.gmra.mrb[48].mxu0 %vm2006_vm2, %v9117_v56  ;;  %v9178_v56 = vld [vmem:[%s9387_s24 + $0x5b8] sm:$0xff]  }
  0x73   : > { %8845 = vmatmul.mubr.msk.bf16.gmra.mrb[48].mxu1 %vm2006_vm2, %v9118_v57  ;;  %8592 = vmatprep.mubr.msk.bf16.mxu0 %vm2006_vm2, %v9119_v58  ;;  %v9179_v57 = vld [vmem:[%s9387_s24 + $0x1c0] sm:$0xff]  }
  0x74   : > { %8848 = vmatprep.mubr.msk.bf16.mxu1 %vm2006_vm2, %v9120_v59 }
  0x7a   : > { %8593 = vmatmul.mubr.msk.bf16.gmra.mrb[52].mxu0 %vm2006_vm2, %v9121_v60 }
  0x7b   : > { %8849 = vmatmul.mubr.msk.bf16.gmra.mrb[52].mxu1 %vm2006_vm2, %v9122_v61  ;;  %8596 = vmatprep.mubr.msk.bf16.mxu0 %vm2006_vm2, %v9123_v62  ;;  %v9180_v61 = vld [vmem:[%s9387_s24 + $0x5c0] sm:$0xff]  }
  0x7c   : > { %8852 = vmatprep.mubr.msk.bf16.mxu1 %vm2006_vm2, %v9124_v63 }
  0x82   : > { %8597 = vmatmul.mubr.msk.bf16.gmra.mrb[56].mxu0 %vm2006_vm2, %v9125_v0 }
  0x83   : > { %8853 = vmatmul.mubr.msk.bf16.gmra.mrb[56].mxu1 %vm2006_vm2, %v9126_v1  ;;  %8600 = vmatprep.mubr.msk.bf16.mxu0 %vm2006_vm2, %v9127_v2 }
  0x84   : > { %8856 = vmatprep.mubr.msk.bf16.mxu1 %vm2006_vm2, %v9128_v3 }
  0x8a   : > { %8601 = vmatmul.mubr.msk.bf16.gmra.mrb[60].mxu0 %vm2006_vm2, %v9129_v4 }
  0x8b   : > { %8857 = vmatmul.mubr.msk.bf16.gmra.mrb[60].mxu1 %vm2006_vm2, %v9130_v5  ;;  %8604 = vmatprep.mubr.msk.bf16.mxu0 %vm2006_vm2, %v9131_v6 }
  0x8c   : > { %8860 = vmatprep.mubr.msk.bf16.mxu1 %vm2006_vm2, %v9132_v7 }
  0x92   : > { %8605 = vmatmul.mubr.msk.bf16.gmra.mrb[64].mxu0 %vm2006_vm2, %v9133_v8 }
  0x93   : > { %8861 = vmatmul.mubr.msk.bf16.gmra.mrb[64].mxu1 %vm2006_vm2, %v9134_v9  ;;  %8608 = vmatprep.mubr.msk.bf16.mxu0 %vm2006_vm2, %v9135_v10 }
  0x94   : > { %8864 = vmatprep.mubr.msk.bf16.mxu1 %vm2006_vm2, %v9136_v11 }
  0x9a   : > { %8609 = vmatmul.mubr.msk.bf16.gmra.mrb[68].mxu0 %vm2006_vm2, %v9137_v12 }
  0x9b   : > { %8865 = vmatmul.mubr.msk.bf16.gmra.mrb[68].mxu1 %vm2006_vm2, %v9138_v13  ;;  %8612 = vmatprep.mubr.msk.bf16.mxu0 %vm2006_vm2, %v9139_v14 }
  0x9c   : > { %8868 = vmatprep.mubr.msk.bf16.mxu1 %vm2006_vm2, %v9140_v15 }
  0xa2   : > { %8613 = vmatmul.mubr.msk.bf16.gmra.mrb[72].mxu0 %vm2006_vm2, %v9141_v16 }
  0xa3   : > { %8869 = vmatmul.mubr.msk.bf16.gmra.mrb[72].mxu1 %vm2006_vm2, %v9142_v17  ;;  %8616 = vmatprep.mubr.msk.bf16.mxu0 %vm2006_vm2, %v9143_v18 }
  0xa4   : > { %8872 = vmatprep.mubr.msk.bf16.mxu1 %vm2006_vm2, %v9144_v19 }
  0xaa   : > { %8617 = vmatmul.mubr.msk.bf16.gmra.mrb[76].mxu0 %vm2006_vm2, %v9145_v20  ;;  %v9181_v20 = vld [vmem:[%s9387_s24 + $0x1c8] sm:$0xff]  }
  0xab   : > { %8873 = vmatmul.mubr.msk.bf16.gmra.mrb[76].mxu1 %vm2006_vm2, %v9146_v21  ;;  %8620 = vmatprep.mubr.msk.bf16.mxu0 %vm2006_vm2, %v9147_v22 }
  0xac   : > { %8876 = vmatprep.mubr.msk.bf16.mxu1 %vm2006_vm2, %v9148_v23 }
  0xb2   : > { %8621 = vmatmul.mubr.msk.bf16.gmra.mrb[80].mxu0 %vm2006_vm2, %v9149_v24 }
  0xb3   : > { %8877 = vmatmul.mubr.msk.bf16.gmra.mrb[80].mxu1 %vm2006_vm2, %v9150_v25  ;;  %8624 = vmatprep.mubr.msk.bf16.mxu0 %vm2006_vm2, %v9151_v26  ;;  %v9182_v26 = vld [vmem:[%s9387_s24 + $0x5c8] sm:$0xff]  }
  0xb4   : > { %8880 = vmatprep.mubr.msk.bf16.mxu1 %vm2006_vm2, %v9152_v27  ;;  %v9183_v27 = vld [vmem:[%s9387_s24 + $0x1d0] sm:$0xff]  }
  0xba   : > { %8625 = vmatmul.mubr.msk.bf16.gmra.mrb[84].mxu0 %vm2006_vm2, %v9153_v28 }
  0xbb   : > { %8881 = vmatmul.mubr.msk.bf16.gmra.mrb[84].mxu1 %vm2006_vm2, %v9154_v29  ;;  %8628 = vmatprep.mubr.msk.bf16.mxu0 %vm2006_vm2, %v9155_v30 }
  0xbc   : > { %8884 = vmatprep.mubr.msk.bf16.mxu1 %vm2006_vm2, %v9156_v31 }
  0xc2   : > { %8629 = vmatmul.mubr.msk.bf16.gmra.mrb[88].mxu0 %vm2006_vm2, %v9157_v32 }
  0xc3   : > { %8885 = vmatmul.mubr.msk.bf16.gmra.mrb[88].mxu1 %vm2006_vm2, %v9158_v33  ;;  %8632 = vmatprep.mubr.msk.bf16.mxu0 %vm2006_vm2, %v9159_v34  ;;  %v9184_v33 = vld [vmem:[%s9387_s24 + $0x5d0] sm:$0xff]  }
  0xc4   : > { %8888 = vmatprep.mubr.msk.bf16.mxu1 %vm2006_vm2, %v9160_v35 }
  0xca   : > { %8633 = vmatmul.mubr.msk.bf16.gmra.mrb[92].mxu0 %vm2006_vm2, %v9161_v36 }
  0xcb   : > { %8889 = vmatmul.mubr.msk.bf16.gmra.mrb[92].mxu1 %vm2006_vm2, %v9162_v37  ;;  %8636 = vmatprep.mubr.msk.bf16.mxu0 %vm2006_vm2, %v9163_v38 }
  0xcc   : > { %8892 = vmatprep.mubr.msk.bf16.mxu1 %vm2006_vm2, %v9164_v39 }
  0xd2   : > { %8637 = vmatmul.mubr.msk.bf16.gmra.mrb[96].mxu0 %vm2006_vm2, %v9165_v40 }
  0xd3   : > { %8893 = vmatmul.mubr.msk.bf16.gmra.mrb[96].mxu1 %vm2006_vm2, %v9166_v41  ;;  %8640 = vmatprep.mubr.msk.bf16.mxu0 %vm2006_vm2, %v9167_v42 }
  0xd4   : > { %8896 = vmatprep.mubr.msk.bf16.mxu1 %vm2006_vm2, %v9168_v43 }
  0xda   : > { %8641 = vmatmul.mubr.msk.bf16.gmra.mrb[100].mxu0 %vm2006_vm2, %v9169_v44 }
  0xdb   : > { %8897 = vmatmul.mubr.msk.bf16.gmra.mrb[100].mxu1 %vm2006_vm2, %v9170_v45  ;;  %8644 = vmatprep.mubr.msk.bf16.mxu0 %vm2006_vm2, %v9171_v46 }
  0xdc   : > { %8900 = vmatprep.mubr.msk.bf16.mxu1 %vm2006_vm2, %v9172_v47 }
  0xe2   : > { %8645 = vmatmul.mubr.msk.bf16.gmra.mrb[104].mxu0 %vm2006_vm2, %v9173_v48 }
  0xe3   : > { %8901 = vmatmul.mubr.msk.bf16.gmra.mrb[104].mxu1 %vm2006_vm2, %v9174_v49  ;;  %8648 = vmatprep.mubr.msk.bf16.mxu0 %vm2006_vm2, %v9175_v50 }
  0xe4   : > { %8904 = vmatprep.mubr.msk.bf16.mxu1 %vm2006_vm2, %v9176_v51 }
  0xe5   : > { %v8542_v55 = vpop.f32.mrb[0].mxu0 }
  0xe6   : > { %v4872_v58 = vmul.f32 %v8542_v55, %v9608_v52  ;;  %v8798_v59 = vpop.f32.mrb[0].mxu1  ;;  %v2816_v60 = vpop.f32.mrb[1].mxu0 }
  0xe7   : > { %v5128_v62 = vmul.f32 %v8798_v59, %v9608_v52  ;;  %v4870_v63 = vmul.f32 %v9608_v52, %v2816_v60  ;;  %v3840_v0 = vpop.f32.mrb[1].mxu1  ;;  %v8543_v1 = vpop.f32.mrb[2].mxu0 }
  0xe8   : > { %v5391_v2 = vadd.f32 %v9616_v53, %v4872_v58  ;;  %v5126_v3 = vmul.f32 %v9608_v52, %v3840_v0  ;;  %v4873_v4 = vmul.f32 %v8543_v1, %v9608_v52  ;;  %v8799_v5 = vpop.f32.mrb[2].mxu1  ;;  %v2819_v6 = vpop.f32.mrb[3].mxu0 }
  0xe9   : > { %v5647_v7 = vadd.f32 %v9616_v53, %v5128_v62  ;;  %v5389_v8 = vadd.f32 %v9616_v53, %v4870_v63  ;;  %v5129_v9 = vmul.f32 %v8799_v5, %v9608_v52  ;;  %v4871_v10 = vmul.f32 %v9608_v52, %v2819_v6  ;;  %v3843_v11 = vpop.f32.mrb[3].mxu1  ;;  %v9187_v5 = vld [vmem:[%s9387_s24 + $0x1e0] sm:$0xff]  }
  0xea   : > { %v9634_v12 = vadd.f32 %v9616_v53, %v5126_v3  ;;  %v9637_v13 = vadd.f32 %v9616_v53, %v4873_v4  ;;  %v5127_v14 = vmul.f32 %v9608_v52, %v3843_v11  ;;  %8649 = vmatmul.mubr.msk.bf16.gmra.mrb[108].mxu0 %vm2006_vm2, %v9177_v54  ;;  %v5903_v17 = vmax.f32 %v5391_v2, 0.0  ;;  %v9185_v3 = vld [vmem:[%s9387_s24 + $0x1d8] sm:$0xff]  }
  0xeb   : > { %v9642_v15 = vadd.f32 %v9616_v53, %v5129_v9  ;;  %v9645_v16 = vadd.f32 %v9616_v53, %v4871_v10  ;;  %8905 = vmatmul.mubr.msk.bf16.gmra.mrb[108].mxu1 %vm2006_vm2, %v9178_v56  ;;  %8652 = vmatprep.mubr.msk.bf16.mxu0 %vm2006_vm2, %v9179_v57  ;;  %v6159_v18 = vmax.f32 %v5647_v7, 0.0  ;;  %v5901_v21 = vmax.f32 %v5389_v8, 0.0  ;;  %v9186_v4 = vld [vmem:[%s9387_s24 + $0x5d8] sm:$0xff]  }
  0xec   : > { %v9650_v19 = vadd.f32 %v9616_v53, %v5127_v14  ;;  %8908 = vmatprep.mubr.msk.bf16.mxu1 %vm2006_vm2, %v9180_v61  ;;  %v6157_v22 = vmax.f32 %v9634_v12, 0.0  ;;  %v5904_v23 = vmax.f32 %v9637_v13, 0.0  ;;  %v9188_v12 = vld [vmem:[%s9387_s24 + $0x5e0] sm:$0xff]  }
  0xed   : > { %v6160_v24 = vmax.f32 %v9642_v15, 0.0  ;;  %v8546_v25 = vpop.f32.mrb[4].mxu0  ;;  %v5902_v28 = vmax.f32 %v9645_v16, 0.0 }
  0xee   : > { %v6158_v29 = vmax.f32 %v9650_v19, 0.0  ;;  %v4876_v30 = vmul.f32 %v8546_v25, %v9608_v52  ;;  %v8802_v31 = vpop.f32.mrb[4].mxu1  ;;  %v2832_v32 = vpop.f32.mrb[5].mxu0 }
  0xef   : > { %v5132_v34 = vmul.f32 %v8802_v31, %v9608_v52  ;;  %v4874_v35 = vmul.f32 %v9608_v52, %v2832_v32  ;;  %v3856_v36 = vpop.f32.mrb[5].mxu1  ;;  %v8547_v37 = vpop.f32.mrb[6].mxu0 }
  0xf0   : > { %v5395_v38 = vadd.f32 %v9616_v53, %v4876_v30  ;;  %v5130_v39 = vmul.f32 %v9608_v52, %v3856_v36  ;;  %v4877_v40 = vmul.f32 %v8547_v37, %v9608_v52  ;;  %v8803_v41 = vpop.f32.mrb[6].mxu1  ;;  %v2835_v42 = vpop.f32.mrb[7].mxu0 }
  0xf1   : > { %v5651_v43 = vadd.f32 %v9616_v53, %v5132_v34  ;;  %v5393_v44 = vadd.f32 %v9616_v53, %v4874_v35  ;;  %v5133_v45 = vmul.f32 %v8803_v41, %v9608_v52  ;;  %v4875_v46 = vmul.f32 %v9608_v52, %v2835_v42  ;;  %v3859_v47 = vpop.f32.mrb[7].mxu1 }
  0xf2   : > { %v5907_v48 = vmax.f32 %v5395_v38, 0.0  ;;  %v5649_v49 = vadd.f32 %v9616_v53, %v5130_v39  ;;  %v5396_v50 = vadd.f32 %v9616_v53, %v4877_v40  ;;  %v5131_v51 = vmul.f32 %v9608_v52, %v3859_v47  ;;  %8653 = vmatmul.mubr.msk.bf16.gmra.mrb[112].mxu0 %vm2006_vm2, %v9181_v20  ;;  %v9189_v40 = vld [vmem:[%s9387_s24 + $0x1e8] sm:$0xff]  }
  0xf3   : > { %v6163_v54 = vmax.f32 %v5651_v43, 0.0  ;;  %v5905_v55 = vmax.f32 %v5393_v44, 0.0  ;;  %v5652_v56 = vadd.f32 %v9616_v53, %v5133_v45  ;;  %v5394_v57 = vadd.f32 %v9616_v53, %v4875_v46  ;;  %8909 = vmatmul.mubr.msk.bf16.gmra.mrb[112].mxu1 %vm2006_vm2, %v9182_v26  ;;  %8656 = vmatprep.mubr.msk.bf16.mxu0 %vm2006_vm2, %v9183_v27 }
  0xf4   : > { %v9680_v58 = vmax.f32 %v5903_v17, %v5907_v48  ;;  %v6161_v59 = vmax.f32 %v5649_v49, 0.0  ;;  %v5908_v60 = vmax.f32 %v5396_v50, 0.0  ;;  %v5650_v61 = vadd.f32 %v9616_v53, %v5131_v51  ;;  %8912 = vmatprep.mubr.msk.bf16.mxu1 %vm2006_vm2, %v9184_v33 }
  0xf5   : > { %v9684_v62 = vmax.f32 %v6159_v18, %v6163_v54  ;;  %v9686_v63 = vmax.f32 %v5901_v21, %v5905_v55  ;;  %v6164_v0 = vmax.f32 %v5652_v56, 0.0  ;;  %v5906_v1 = vmax.f32 %v5394_v57, 0.0  ;;  %v8550_v2 = vpop.f32.mrb[8].mxu0  ;;  %v9190_v54 = vld [vmem:[%s9387_s24 + $0x5e8] sm:$0xff]   ;;  %v9191_v55 = vld [vmem:[%s9387_s24 + $0x1f0] sm:$0xff]  }
  0xf6   : > { %v9691_v6 = vmax.f32 %v6157_v22, %v6161_v59  ;;  %v9693_v7 = vmax.f32 %v5904_v23, %v5908_v60  ;;  %v6162_v8 = vmax.f32 %v5650_v61, 0.0  ;;  %v4880_v9 = vmul.f32 %v8550_v2, %v9608_v52  ;;  %v8806_v10 = vpop.f32.mrb[8].mxu1  ;;  %v2848_v11 = vpop.f32.mrb[9].mxu0 }
  0xf7   : > { %v9697_v13 = vmax.f32 %v6160_v24, %v6164_v0  ;;  %v9699_v14 = vmax.f32 %v5902_v28, %v5906_v1  ;;  %v5136_v15 = vmul.f32 %v8806_v10, %v9608_v52  ;;  %v4878_v16 = vmul.f32 %v9608_v52, %v2848_v11  ;;  %v3872_v17 = vpop.f32.mrb[9].mxu1  ;;  %v8551_v18 = vpop.f32.mrb[10].mxu0  ;;  %v9192_v1 = vld [vmem:[%s9387_s24 + $0x5f0] sm:$0xff]  }
  0xf8   : > { %v9703_v19 = vmax.f32 %v6158_v29, %v6162_v8  ;;  %v9706_v20 = vadd.f32 %v9616_v53, %v4880_v9  ;;  %v5134_v21 = vmul.f32 %v9608_v52, %v3872_v17  ;;  %v4881_v22 = vmul.f32 %v8551_v18, %v9608_v52  ;;  %v8807_v23 = vpop.f32.mrb[10].mxu1  ;;  %v2851_v24 = vpop.f32.mrb[11].mxu0 }
  0xf9   : > { %v9711_v25 = vadd.f32 %v9616_v53, %v5136_v15  ;;  %v9714_v26 = vadd.f32 %v9616_v53, %v4878_v16  ;;  %v5137_v27 = vmul.f32 %v8807_v23, %v9608_v52  ;;  %v4879_v28 = vmul.f32 %v9608_v52, %v2851_v24  ;;  %v3875_v29 = vpop.f32.mrb[11].mxu1 }
  0xfa   : > { %v9719_v30 = vadd.f32 %v9616_v53, %v5134_v21  ;;  %v9722_v31 = vadd.f32 %v9616_v53, %v4881_v22  ;;  %v5135_v32 = vmul.f32 %v9608_v52, %v3875_v29  ;;  %8657 = vmatmul.mubr.msk.bf16.gmra.mrb[116].mxu0 %vm2006_vm2, %v9185_v3  ;;  %v5911_v36 = vmax.f32 %v9706_v20, 0.0 }
  0xfb   : > { %v9727_v33 = vadd.f32 %v9616_v53, %v5137_v27  ;;  %v9730_v34 = vadd.f32 %v9616_v53, %v4879_v28  ;;  %8913 = vmatmul.mubr.msk.bf16.gmra.mrb[116].mxu1 %vm2006_vm2, %v9186_v4  ;;  %8660 = vmatprep.mubr.msk.bf16.mxu0 %vm2006_vm2, %v9187_v5  ;;  %v6167_v37 = vmax.f32 %v9711_v25, 0.0  ;;  %v5909_v38 = vmax.f32 %v9714_v26, 0.0 }
  0xfc   : > { %v9735_v35 = vadd.f32 %v9616_v53, %v5135_v32  ;;  %8916 = vmatprep.mubr.msk.bf16.mxu1 %vm2006_vm2, %v9188_v12  ;;  %v6165_v41 = vmax.f32 %v9719_v30, 0.0  ;;  %v5912_v42 = vmax.f32 %v9722_v31, 0.0 }
  0xfd   : > { %v8554_v39 = vpop.f32.mrb[12].mxu0  ;;  %v6168_v46 = vmax.f32 %v9727_v33, 0.0  ;;  %v5910_v47 = vmax.f32 %v9730_v34, 0.0 }
  0xfe   : > { %v4884_v43 = vmul.f32 %v8554_v39, %v9608_v52  ;;  %v8810_v44 = vpop.f32.mrb[12].mxu1  ;;  %v2864_v45 = vpop.f32.mrb[13].mxu0  ;;  %v6166_v56 = vmax.f32 %v9735_v35, 0.0  ;;  %v9193_v35 = vld [vmem:[%s9387_s24 + $0x1f8] sm:$0xff]  }
  0xff   : > { %v5140_v48 = vmul.f32 %v8810_v44, %v9608_v52  ;;  %v4882_v49 = vmul.f32 %v9608_v52, %v2864_v45  ;;  %v3888_v50 = vpop.f32.mrb[13].mxu1  ;;  %v8555_v51 = vpop.f32.mrb[14].mxu0 }
 0x100   : > { %v5403_v57 = vadd.f32 %v9616_v53, %v4884_v43  ;;  %v5138_v59 = vmul.f32 %v9608_v52, %v3888_v50  ;;  %v4885_v60 = vmul.f32 %v8555_v51, %v9608_v52  ;;  %v8811_v61 = vpop.f32.mrb[14].mxu1  ;;  %v2867_v0 = vpop.f32.mrb[15].mxu0 }
 0x101   : > { %v5659_v2 = vadd.f32 %v9616_v53, %v5140_v48  ;;  %v5401_v3 = vadd.f32 %v9616_v53, %v4882_v49  ;;  %v5141_v4 = vmul.f32 %v8811_v61, %v9608_v52  ;;  %v4883_v5 = vmul.f32 %v9608_v52, %v2867_v0  ;;  %v3891_v8 = vpop.f32.mrb[15].mxu1 }
 0x102   : > { %v5915_v9 = vmax.f32 %v5403_v57, 0.0  ;;  %v5657_v10 = vadd.f32 %v9616_v53, %v5138_v59  ;;  %v5404_v11 = vadd.f32 %v9616_v53, %v4885_v60  ;;  %v5139_v12 = vmul.f32 %v9608_v52, %v3891_v8  ;;  %8661 = vmatmul.mubr.msk.bf16.gmra.mrb[120].mxu0 %vm2006_vm2, %v9189_v40 }
 0x103   : > { %v6171_v15 = vmax.f32 %v5659_v2, 0.0  ;;  %v5913_v16 = vmax.f32 %v5401_v3, 0.0  ;;  %v5660_v17 = vadd.f32 %v9616_v53, %v5141_v4  ;;  %v5402_v18 = vadd.f32 %v9616_v53, %v4883_v5  ;;  %8917 = vmatmul.mubr.msk.bf16.gmra.mrb[120].mxu1 %vm2006_vm2, %v9190_v54  ;;  %8664 = vmatprep.mubr.msk.bf16.mxu0 %vm2006_vm2, %v9191_v55  ;;  %v9196_v54 = vld [vmem:[%s9387_s24 + $0x600] sm:$0xff]  }
 0x104   : > { %v6543_v20 = vmax.f32 %v5911_v36, %v5915_v9  ;;  %v6169_v21 = vmax.f32 %v5657_v10, 0.0  ;;  %v5916_v22 = vmax.f32 %v5404_v11, 0.0  ;;  %v5658_v23 = vadd.f32 %v9616_v53, %v5139_v12  ;;  %8920 = vmatprep.mubr.msk.bf16.mxu1 %vm2006_vm2, %v9192_v1 }
 0x105   : > { %v6607_v24 = vmax.f32 %v6167_v37, %v6171_v15  ;;  %v6541_v25 = vmax.f32 %v5909_v38, %v5913_v16  ;;  %v6172_v26 = vmax.f32 %v5660_v17, 0.0  ;;  %v5914_v27 = vmax.f32 %v5402_v18, 0.0  ;;  %v8558_v28 = vpop.f32.mrb[16].mxu0  ;;  %v9197_v16 = vld [vmem:[%s9387_s24 + $0x208] sm:$0xff]  }
 0x106   : > { %v6671_v29 = vmax.f32 %v9680_v58, %v6543_v20  ;;  %v6605_v30 = vmax.f32 %v6165_v41, %v6169_v21  ;;  %v6544_v31 = vmax.f32 %v5912_v42, %v5916_v22  ;;  %v6170_v32 = vmax.f32 %v5658_v23, 0.0  ;;  %v8814_v33 = vpop.f32.mrb[16].mxu1  ;;  %v2880_v34 = vpop.f32.mrb[17].mxu0  ;;  %v9194_v41 = vld [vmem:[%s9387_s24 + $0x5f8] sm:$0xff]  }
 0x107   : > { %v6735_v36 = vmax.f32 %v9684_v62, %v6607_v24  ;;  %v6669_v37 = vmax.f32 %v9686_v63, %v6541_v25  ;;  %v6608_v38 = vmax.f32 %v6168_v46, %v6172_v26  ;;  %v6542_v39 = vmax.f32 %v5910_v47, %v5914_v27  ;;  %v3904_v58 = vpop.f32.mrb[17].mxu1  ;;  %v8559_v40 = vpop.f32.mrb[18].mxu0  ;;  %v9195_v62 = vld [vmem:[%s9387_s24 + $0x200] sm:$0xff]   ;;  %v9198_v24 = vld [vmem:[%s9387_s24 + $0x608] sm:$0xff]  }
 0x108   : > { %v8152_v42 = vpack.c.bf16 %v6671_v29, %v6671_v29  ;;  %v6733_v43 = vmax.f32 %v9691_v6, %v6605_v30  ;;  %v6672_v44 = vmax.f32 %v9693_v7, %v6544_v31  ;;  %v6606_v45 = vmax.f32 %v6166_v56, %v6170_v32  ;;  %v8815_v48 = vpop.f32.mrb[18].mxu1  ;;  %v2883_v49 = vpop.f32.mrb[19].mxu0  ;;  %v9199_v31 = vld [vmem:[%s9387_s24 + $0x210] sm:$0xff]  }
 0x109   : > { %v8216_v50 = vpack.c.bf16 %v6735_v36, %v6735_v36  ;;  %v8150_v63 = vpack.c.bf16 %v6669_v37, %v6669_v37  ;;  %v6736_v46 = vmax.f32 %v9697_v13, %v6608_v38  ;;  %v6670_v47 = vmax.f32 %v9699_v14, %v6542_v39  ;;  %v3907_v51 = vpop.f32.mrb[19].mxu1  ;;  %v9200_v32 = vld [vmem:[%s9387_s24 + $0x610] sm:$0xff]  }
 0x10a   : > { %7312 = vst.msk [vmem:[%s9776_s6 + $0x8] sm:$0xf] %vm7309_vm3, %v8152_v42  ;;  %v8214_v6 = vpack.c.bf16 %v6733_v43, %v6733_v43  ;;  %v8153_v7 = vpack.c.bf16 %v6672_v44, %v6672_v44  ;;  %v6734_v55 = vmax.f32 %v9703_v19, %v6606_v45  ;;  %v4888_v56 = vmul.f32 %v8558_v28, %v9608_v52 }
 0x10b   : > { %8665 = vmatmul.mubr.msk.bf16.gmra.mrb[124].mxu0 %vm2006_vm2, %v9193_v35  ;;  %7376 = vst.msk [vmem:[%s9776_s6 + $0x108] sm:$0xf] %vm7309_vm3, %v8216_v50  ;;  %7310 = vst.msk [vmem:[%s9776_s6] sm:$0xf] %vm7309_vm3, %v8150_v63  ;;  %v8217_v13 = vpack.c.bf16 %v6736_v46, %v6736_v46  ;;  %v8151_v14 = vpack.c.bf16 %v6670_v47, %v6670_v47  ;;  %v5144_v57 = vmul.f32 %v8814_v33, %v9608_v52 }
 0x10c   : > { %v4886_v59 = vmul.f32 %v9608_v52, %v2880_v34  ;;  %8921 = vmatmul.mubr.msk.bf16.gmra.mrb[124].mxu1 %vm2006_vm2, %v9194_v41  ;;  %7374 = vst.msk [vmem:[%s9776_s6 + $0x100] sm:$0xf] %vm7309_vm3, %v8214_v6  ;;  %7313 = vst.msk [vmem:[%s9776_s6 + $0xc] sm:$0xf] %vm7309_vm3, %v8153_v7  ;;  %v8215_v19 = vpack.c.bf16 %v6734_v55, %v6734_v55  ;;  %v5407_v60 = vadd.f32 %v9616_v53, %v4888_v56 }
 0x10d   : > { %v5142_v61 = vmul.f32 %v9608_v52, %v3904_v58  ;;  %v4889_v0 = vmul.f32 %v8559_v40, %v9608_v52  ;;  %8668 = vmatprep.mubr.msk.bf16.mxu0 %vm2006_vm2, %v9195_v62  ;;  %7377 = vst.msk [vmem:[%s9776_s6 + $0x10c] sm:$0xf] %vm7309_vm3, %v8217_v13  ;;  %7311 = vst.msk [vmem:[%s9776_s6 + $0x4] sm:$0xf] %vm7309_vm3, %v8151_v14  ;;  %v9812_v1 = vadd.f32 %v9616_v53, %v5144_v57  ;;  %v8562_v5 = vpop.f32.mrb[20].mxu0  ;;  %v9201_v14 = vld [vmem:[%s9387_s24 + $0x218] sm:$0xff]  }
 0x10e   : > { %v9815_v2 = vadd.f32 %v9616_v53, %v4886_v59  ;;  %v5145_v3 = vmul.f32 %v8815_v48, %v9608_v52  ;;  %v4887_v4 = vmul.f32 %v9608_v52, %v2883_v49  ;;  %8924 = vmatprep.mubr.msk.bf16.mxu1 %vm2006_vm2, %v9196_v54  ;;  %7375 = vst.msk [vmem:[%s9776_s6 + $0x104] sm:$0xf] %vm7309_vm3, %v8215_v19  ;;  %v5919_v8 = vmax.f32 %v5407_v60, 0.0  ;;  %v8818_v12 = vpop.f32.mrb[20].mxu1  ;;  %v2896_v15 = vpop.f32.mrb[21].mxu0 }
 0x10f   : > { %v5661_v9 = vadd.f32 %v9616_v53, %v5142_v61  ;;  %v5408_v10 = vadd.f32 %v9616_v53, %v4889_v0  ;;  %v5143_v11 = vmul.f32 %v9608_v52, %v3907_v51  ;;  %v6175_v17 = vmax.f32 %v9812_v1, 0.0  ;;  %v3920_v22 = vpop.f32.mrb[21].mxu1  ;;  %v8563_v23 = vpop.f32.mrb[22].mxu0  ;;  %v9202_v1 = vld [vmem:[%s9387_s24 + $0x618] sm:$0xff]  }
 0x110   : > { %v5917_v18 = vmax.f32 %v9815_v2, 0.0  ;;  %v5664_v20 = vadd.f32 %v9616_v53, %v5145_v3  ;;  %v5406_v21 = vadd.f32 %v9616_v53, %v4887_v4  ;;  %v4892_v28 = vmul.f32 %v8562_v5, %v9608_v52  ;;  %v8819_v29 = vpop.f32.mrb[22].mxu1  ;;  %v2899_v30 = vpop.f32.mrb[23].mxu0 }
 0x111   : > { %v6173_v25 = vmax.f32 %v5661_v9, 0.0  ;;  %v5920_v26 = vmax.f32 %v5408_v10, 0.0  ;;  %v5662_v27 = vadd.f32 %v9616_v53, %v5143_v11  ;;  %v5148_v35 = vmul.f32 %v8818_v12, %v9608_v52  ;;  %v3923_v37 = vpop.f32.mrb[23].mxu1  ;;  %v9203_v10 = vld [vmem:[%s9387_s24 + $0x220] sm:$0xff]  }
 0x112   : > { %v6176_v33 = vmax.f32 %v5664_v20, 0.0  ;;  %v5918_v34 = vmax.f32 %v5406_v21, 0.0  ;;  %v4890_v36 = vmul.f32 %v9608_v52, %v2896_v15  ;;  %v5411_v39 = vadd.f32 %v9616_v53, %v4892_v28  ;;  %v9204_v11 = vld [vmem:[%s9387_s24 + $0x620] sm:$0xff]  }
 0x113   : > { %v6174_v38 = vmax.f32 %v5662_v27, 0.0  ;;  %v5146_v58 = vmul.f32 %v9608_v52, %v3920_v22  ;;  %v4893_v40 = vmul.f32 %v8563_v23, %v9608_v52  ;;  %8669 = vmatmul.mubr.msk.bf16.gmra.mrb[128].mxu0 %vm2006_vm2, %v9197_v16  ;;  %v5667_v41 = vadd.f32 %v9616_v53, %v5148_v35 }
 0x114   : > { %v5409_v42 = vadd.f32 %v9616_v53, %v4890_v36  ;;  %v5149_v43 = vmul.f32 %v8819_v29, %v9608_v52  ;;  %v4891_v44 = vmul.f32 %v9608_v52, %v2899_v30  ;;  %8925 = vmatmul.mubr.msk.bf16.gmra.mrb[128].mxu1 %vm2006_vm2, %v9198_v24  ;;  %v5923_v45 = vmax.f32 %v5411_v39, 0.0  ;;  %8672 = vmatprep.mubr.msk.bf16.mxu0 %vm2006_vm2, %v9199_v31 }
 0x115   : > { %v5665_v48 = vadd.f32 %v9616_v53, %v5146_v58  ;;  %v5412_v49 = vadd.f32 %v9616_v53, %v4893_v40  ;;  %v5147_v62 = vmul.f32 %v9608_v52, %v3923_v37  ;;  %8928 = vmatprep.mubr.msk.bf16.mxu1 %vm2006_vm2, %v9200_v32  ;;  %v6179_v50 = vmax.f32 %v5667_v41, 0.0  ;;  %v8566_v51 = vpop.f32.mrb[24].mxu0 }
 0x116   : > { %v5921_v63 = vmax.f32 %v5409_v42, 0.0  ;;  %v5668_v46 = vadd.f32 %v9616_v53, %v5149_v43  ;;  %v5410_v47 = vadd.f32 %v9616_v53, %v4891_v44  ;;  %v9853_v54 = vmax.f32 %v5919_v8, %v5923_v45  ;;  %v8822_v56 = vpop.f32.mrb[24].mxu1  ;;  %v2912_v13 = vpop.f32.mrb[25].mxu0  ;;  %v9205_v42 = vld [vmem:[%s9387_s24 + $0x228] sm:$0xff]  }
 0x117   : > { %v6177_v6 = vmax.f32 %v5665_v48, 0.0  ;;  %v5924_v7 = vmax.f32 %v5412_v49, 0.0  ;;  %v5666_v55 = vadd.f32 %v9616_v53, %v5147_v62  ;;  %v9857_v57 = vmax.f32 %v6175_v17, %v6179_v50  ;;  %v3936_v61 = vpop.f32.mrb[25].mxu1  ;;  %v8567_v0 = vpop.f32.mrb[26].mxu0  ;;  %v9206_v50 = vld [vmem:[%s9387_s24 + $0x628] sm:$0xff]  }
 0x118   : > { %v9859_v59 = vmax.f32 %v5917_v18, %v5921_v63  ;;  %v6180_v19 = vmax.f32 %v5668_v46, 0.0  ;;  %v5922_v60 = vmax.f32 %v5410_v47, 0.0  ;;  %v4896_v5 = vmul.f32 %v8566_v51, %v9608_v52  ;;  %v8823_v8 = vpop.f32.mrb[26].mxu1  ;;  %v2915_v9 = vpop.f32.mrb[27].mxu0  ;;  %v9207_v63 = vld [vmem:[%s9387_s24 + $0x230] sm:$0xff]  }
 0x119   : > { %v9862_v2 = vmax.f32 %v6173_v25, %v6177_v6  ;;  %v9864_v3 = vmax.f32 %v5920_v26, %v5924_v7  ;;  %v6178_v4 = vmax.f32 %v5666_v55, 0.0  ;;  %v5152_v16 = vmul.f32 %v8822_v56, %v9608_v52  ;;  %v3939_v18 = vpop.f32.mrb[27].mxu1  ;;  %v9208_v56 = vld [vmem:[%s9387_s24 + $0x630] sm:$0xff]  }
 0x11a   : > { %v9869_v12 = vmax.f32 %v6176_v33, %v6180_v19  ;;  %v9871_v15 = vmax.f32 %v5918_v34, %v5922_v60  ;;  %v4894_v17 = vmul.f32 %v9608_v52, %v2912_v13  ;;  %v5415_v21 = vadd.f32 %v9616_v53, %v4896_v5 }
 0x11b   : > { %v9875_v20 = vmax.f32 %v6174_v38, %v6178_v4  ;;  %v5150_v22 = vmul.f32 %v9608_v52, %v3936_v61  ;;  %v4897_v23 = vmul.f32 %v8567_v0, %v9608_v52  ;;  %8673 = vmatmul.mubr.msk.bf16.gmra.mrb[132].mxu0 %vm2006_vm2, %v9201_v14  ;;  %v5671_v24 = vadd.f32 %v9616_v53, %v5152_v16 }
 0x11c   : > { %v5413_v25 = vadd.f32 %v9616_v53, %v4894_v17  ;;  %v5153_v26 = vmul.f32 %v8823_v8, %v9608_v52  ;;  %v4895_v27 = vmul.f32 %v9608_v52, %v2915_v9  ;;  %8929 = vmatmul.mubr.msk.bf16.gmra.mrb[132].mxu1 %vm2006_vm2, %v9202_v1  ;;  %v5927_v28 = vmax.f32 %v5415_v21, 0.0  ;;  %8676 = vmatprep.mubr.msk.bf16.mxu0 %vm2006_vm2, %v9203_v10 }
 0x11d   : > { %v5669_v29 = vadd.f32 %v9616_v53, %v5150_v22  ;;  %v5416_v30 = vadd.f32 %v9616_v53, %v4897_v23  ;;  %v5151_v31 = vmul.f32 %v9608_v52, %v3939_v18  ;;  %8932 = vmatprep.mubr.msk.bf16.mxu1 %vm2006_vm2, %v9204_v11  ;;  %v6183_v32 = vmax.f32 %v5671_v24, 0.0  ;;  %v8570_v36 = vpop.f32.mrb[28].mxu0 }
 0x11e   : > { %v5925_v33 = vmax.f32 %v5413_v25, 0.0  ;;  %v5672_v34 = vadd.f32 %v9616_v53, %v5153_v26  ;;  %v5414_v35 = vadd.f32 %v9616_v53, %v4895_v27  ;;  %v4900_v58 = vmul.f32 %v8570_v36, %v9608_v52  ;;  %v8826_v40 = vpop.f32.mrb[28].mxu1  ;;  %v2928_v41 = vpop.f32.mrb[29].mxu0 }
 0x11f   : > { %v6181_v37 = vmax.f32 %v5669_v29, 0.0  ;;  %v5928_v38 = vmax.f32 %v5416_v30, 0.0  ;;  %v9894_v39 = vadd.f32 %v9616_v53, %v5151_v31  ;;  %v5156_v45 = vmul.f32 %v8826_v40, %v9608_v52  ;;  %v3952_v49 = vpop.f32.mrb[29].mxu1  ;;  %v8571_v62 = vpop.f32.mrb[30].mxu0 }
 0x120   : > { %v6184_v43 = vmax.f32 %v5672_v34, 0.0  ;;  %v5926_v44 = vmax.f32 %v5414_v35, 0.0  ;;  %v4898_v48 = vmul.f32 %v9608_v52, %v2928_v41  ;;  %v5419_v47 = vadd.f32 %v9616_v53, %v4900_v58  ;;  %v8827_v7 = vpop.f32.mrb[30].mxu1  ;;  %v2931_v55 = vpop.f32.mrb[31].mxu0  ;;  %v9209_v35 = vld [vmem:[%s9387_s24 + $0x238] sm:$0xff]  }
 0x121   : > { %v6182_v46 = vmax.f32 %v9894_v39, 0.0  ;;  %v5154_v51 = vmul.f32 %v9608_v52, %v3952_v49  ;;  %v4901_v6 = vmul.f32 %v8571_v62, %v9608_v52  ;;  %v5675_v13 = vadd.f32 %v9616_v53, %v5156_v45  ;;  %v3955_v61 = vpop.f32.mrb[31].mxu1  ;;  %v9210_v41 = vld [vmem:[%s9387_s24 + $0x638] sm:$0xff]  }
 0x122   : > { %v5417_v14 = vadd.f32 %v9616_v53, %v4898_v48  ;;  %v5157_v19 = vmul.f32 %v8827_v7, %v9608_v52  ;;  %v4899_v60 = vmul.f32 %v9608_v52, %v2931_v55  ;;  %v5931_v0 = vmax.f32 %v5419_v47, 0.0 }
 0x123   : > { %v5673_v1 = vadd.f32 %v9616_v53, %v5154_v51  ;;  %v5420_v4 = vadd.f32 %v9616_v53, %v4901_v6  ;;  %v5155_v5 = vmul.f32 %v9608_v52, %v3955_v61  ;;  %8677 = vmatmul.mubr.msk.bf16.gmra.mrb[136].mxu0 %vm2006_vm2, %v9205_v42  ;;  %v6187_v8 = vmax.f32 %v5675_v13, 0.0 }
 0x124   : > { %v5929_v9 = vmax.f32 %v5417_v14, 0.0  ;;  %v5676_v10 = vadd.f32 %v9616_v53, %v5157_v19  ;;  %v5418_v11 = vadd.f32 %v9616_v53, %v4899_v60  ;;  %8933 = vmatmul.mubr.msk.bf16.gmra.mrb[136].mxu1 %vm2006_vm2, %v9206_v50  ;;  %8680 = vmatprep.mubr.msk.bf16.mxu0 %vm2006_vm2, %v9207_v63  ;;  %v6547_v16 = vmax.f32 %v5927_v28, %v5931_v0  ;;  %v9212_v50 = vld [vmem:[%s9387_s24 + $0x640] sm:$0xff]  }
 0x125   : > { %v6185_v17 = vmax.f32 %v5673_v1, 0.0  ;;  %v5932_v18 = vmax.f32 %v5420_v4, 0.0  ;;  %v5674_v21 = vadd.f32 %v9616_v53, %v5155_v5  ;;  %8936 = vmatprep.mubr.msk.bf16.mxu1 %vm2006_vm2, %v9208_v56  ;;  %v6611_v22 = vmax.f32 %v6183_v32, %v6187_v8  ;;  %v8574_v26 = vpop.f32.mrb[32].mxu0 }
 0x126   : > { %v6545_v23 = vmax.f32 %v5925_v33, %v5929_v9  ;;  %v6188_v24 = vmax.f32 %v5676_v10, 0.0  ;;  %v5930_v25 = vmax.f32 %v5418_v11, 0.0  ;;  %v6675_v27 = vmax.f32 %v9853_v54, %v6547_v16  ;;  %v8830_v34 = vpop.f32.mrb[32].mxu1  ;;  %v2944_v28 = vpop.f32.mrb[33].mxu0  ;;  %v9213_v9 = vld [vmem:[%s9387_s24 + $0x248] sm:$0xff]  }
 0x127   : > { %v6609_v29 = vmax.f32 %v6181_v37, %v6185_v17  ;;  %v6548_v30 = vmax.f32 %v5928_v38, %v5932_v18  ;;  %v6186_v31 = vmax.f32 %v5674_v21, 0.0  ;;  %v6739_v36 = vmax.f32 %v9857_v57, %v6611_v22  ;;  %v3968_v33 = vpop.f32.mrb[33].mxu1  ;;  %v8575_v40 = vpop.f32.mrb[34].mxu0  ;;  %v9211_v57 = vld [vmem:[%s9387_s24 + $0x240] sm:$0xff]   ;;  %v9214_v22 = vld [vmem:[%s9387_s24 + $0x648] sm:$0xff]  }
 0x128   : > { %v6673_v39 = vmax.f32 %v9859_v59, %v6545_v23  ;;  %v6612_v58 = vmax.f32 %v6184_v43, %v6188_v24  ;;  %v6546_v32 = vmax.f32 %v5926_v44, %v5930_v25  ;;  %v8156_v42 = vpack.c.bf16 %v6675_v27, %v6675_v27  ;;  %v8831_v45 = vpop.f32.mrb[34].mxu1  ;;  %v2947_v48 = vpop.f32.mrb[35].mxu0 }
 0x129   : > { %v6737_v54 = vmax.f32 %v9862_v2, %v6609_v29  ;;  %v6676_v37 = vmax.f32 %v9864_v3, %v6548_v30  ;;  %v6610_v38 = vmax.f32 %v6182_v46, %v6186_v31  ;;  %v8220_v49 = vpack.c.bf16 %v6739_v36, %v6739_v36  ;;  %v3971_v62 = vpop.f32.mrb[35].mxu1  ;;  %v9215_v30 = vld [vmem:[%s9387_s24 + $0x250] sm:$0xff]  }
 0x12a   : > { %v8154_v59 = vpack.c.bf16 %v6673_v39, %v6673_v39  ;;  %v6740_v43 = vmax.f32 %v9869_v12, %v6612_v58  ;;  %v6674_v44 = vmax.f32 %v9871_v15, %v6546_v32  ;;  %7316 = vst.msk [vmem:[%s9776_s6 + $0x18] sm:$0xf] %vm7309_vm3, %v8156_v42  ;;  %v4904_v46 = vmul.f32 %v8574_v26, %v9608_v52  ;;  %v9216_v31 = vld [vmem:[%s9387_s24 + $0x650] sm:$0xff]  }
 0x12b   : > { %v8218_v2 = vpack.c.bf16 %v6737_v54, %v6737_v54  ;;  %v8157_v3 = vpack.c.bf16 %v6676_v37, %v6676_v37  ;;  %v6738_v63 = vmax.f32 %v9875_v20, %v6610_v38  ;;  %8681 = vmatmul.mubr.msk.bf16.gmra.mrb[140].mxu0 %vm2006_vm2, %v9209_v35  ;;  %7380 = vst.msk [vmem:[%s9776_s6 + $0x118] sm:$0xf] %vm7309_vm3, %v8220_v49 }
 0x12c   : > { %7314 = vst.msk [vmem:[%s9776_s6 + $0x10] sm:$0xf] %vm7309_vm3, %v8154_v59  ;;  %v8221_v12 = vpack.c.bf16 %v6740_v43, %v6740_v43  ;;  %v8155_v15 = vpack.c.bf16 %v6674_v44, %v6674_v44  ;;  %v5160_v47 = vmul.f32 %v8830_v34, %v9608_v52  ;;  %v4902_v51 = vmul.f32 %v9608_v52, %v2944_v28  ;;  %v10019_v43 = vld [vmem:[%s11763_s3] ss:$0 sm:$0xff] }
 0x12d   : > { %8937 = vmatmul.mubr.msk.bf16.gmra.mrb[140].mxu1 %vm2006_vm2, %v9210_v41  ;;  %7378 = vst.msk [vmem:[%s9776_s6 + $0x110] sm:$0xf] %vm7309_vm3, %v8218_v2  ;;  %7317 = vst.msk [vmem:[%s9776_s6 + $0x1c] sm:$0xf] %vm7309_vm3, %v8157_v3  ;;  %v8219_v20 = vpack.c.bf16 %v6738_v63, %v6738_v63  ;;  %v9949_v6 = vadd.f32 %v9616_v53, %v4904_v46  ;;  %v5158_v7 = vmul.f32 %v9608_v52, %v3968_v33  ;;  %v8578_v60 = vpop.f32.mrb[36].mxu0 }
 0x12e   : > { %v4905_v55 = vmul.f32 %v8575_v40, %v9608_v52  ;;  %8684 = vmatprep.mubr.msk.bf16.mxu0 %vm2006_vm2, %v9211_v57  ;;  %7381 = vst.msk [vmem:[%s9776_s6 + $0x11c] sm:$0xf] %vm7309_vm3, %v8221_v12  ;;  %7315 = vst.msk [vmem:[%s9776_s6 + $0x14] sm:$0xf] %vm7309_vm3, %v8155_v15  ;;  %v9959_v56 = vadd.f32 %v9616_v53, %v5160_v47  ;;  %v9962_v13 = vadd.f32 %v9616_v53, %v4902_v51  ;;  %v8834_v5 = vpop.f32.mrb[36].mxu1  ;;  %v2960_v8 = vpop.f32.mrb[37].mxu0 }
 0x12f   : > { %v5161_v14 = vmul.f32 %v8831_v45, %v9608_v52  ;;  %v4903_v19 = vmul.f32 %v9608_v52, %v2947_v48  ;;  %8940 = vmatprep.mubr.msk.bf16.mxu1 %vm2006_vm2, %v9212_v50  ;;  %7379 = vst.msk [vmem:[%s9776_s6 + $0x114] sm:$0xf] %vm7309_vm3, %v8219_v20  ;;  %v5935_v61 = vmax.f32 %v9949_v6, 0.0  ;;  %v9971_v0 = vadd.f32 %v9616_v53, %v5158_v7  ;;  %v3984_v18 = vpop.f32.mrb[37].mxu1  ;;  %v8579_v21 = vpop.f32.mrb[38].mxu0  ;;  %v9217_v15 = vld [vmem:[%s9387_s24 + $0x258] sm:$0xff]  }
 0x130   : > { %v9974_v1 = vadd.f32 %v9616_v53, %v4905_v55  ;;  %v5159_v4 = vmul.f32 %v9608_v52, %v3971_v62  ;;  %v6191_v10 = vmax.f32 %v9959_v56, 0.0  ;;  %v5933_v11 = vmax.f32 %v9962_v13, 0.0  ;;  %v8835_v27 = vpop.f32.mrb[38].mxu1  ;;  %v2963_v29 = vpop.f32.mrb[39].mxu0  ;;  %v10001_v33 = vld [vmem:[%s11762_s2] ss:$0 sm:$0xff] }
 0x131   : > { %v9981_v16 = vadd.f32 %v9616_v53, %v5161_v14  ;;  %v9984_v17 = vadd.f32 %v9616_v53, %v4903_v19  ;;  %v6189_v23 = vmax.f32 %v9971_v0, 0.0  ;;  %v4908_v26 = vmul.f32 %v8578_v60, %v9608_v52  ;;  %v3987_v39 = vpop.f32.mrb[39].mxu1  ;;  %v9218_v56 = vld [vmem:[%s9387_s24 + $0x658] sm:$0xff]  }
 0x132   : > { %v5936_v24 = vmax.f32 %v9974_v1, 0.0  ;;  %v5678_v25 = vadd.f32 %v9616_v53, %v5159_v4  ;;  %v5164_v35 = vmul.f32 %v8834_v5, %v9608_v52  ;;  %v4906_v36 = vmul.f32 %v9608_v52, %v2960_v8  ;;  %v9219_v1 = vld [vmem:[%s9387_s24 + $0x260] sm:$0xff]  }
 0x133   : > { %v6192_v34 = vmax.f32 %v9981_v16, 0.0  ;;  %v5934_v28 = vmax.f32 %v9984_v17, 0.0  ;;  %v5427_v32 = vadd.f32 %v9616_v53, %v4908_v26  ;;  %v5162_v40 = vmul.f32 %v10001_v33, %v3984_v18  ;;  %8685 = vmatmul.mubr.msk.bf16.gmra.mrb[144].mxu0 %vm2006_vm2, %v9213_v9  ;;  %v9220_v4 = vld [vmem:[%s9387_s24 + $0x660] sm:$0xff]  }
 0x134   : > { %v6190_v58 = vmax.f32 %v5678_v25, 0.0  ;;  %v4909_v41 = vmul.f32 %v10001_v33, %v8579_v21  ;;  %v5683_v42 = vadd.f32 %v9616_v53, %v5164_v35  ;;  %v5425_v54 = vadd.f32 %v9616_v53, %v4906_v36  ;;  %8688 = vmatprep.mubr.msk.bf16.mxu0 %vm2006_vm2, %v9215_v30 }
 0x135   : > { %v5165_v52 = vmul.f32 %v10001_v33, %v8835_v27  ;;  %v4907_v37 = vmul.f32 %v10001_v33, %v2963_v29  ;;  %8941 = vmatmul.mubr.msk.bf16.gmra.mrb[144].mxu1 %vm2006_vm2, %v9214_v22  ;;  %v5939_v38 = vmax.f32 %v5427_v32, 0.0  ;;  %v5681_v45 = vadd.f32 %v9616_v53, %v5162_v40 }
 0x136   : > { %v5428_v48 = vadd.f32 %v9616_v53, %v4909_v41  ;;  %v5163_v57 = vmul.f32 %v10001_v33, %v3987_v39  ;;  %8944 = vmatprep.mubr.msk.bf16.mxu1 %vm2006_vm2, %v9216_v31  ;;  %v6195_v49 = vmax.f32 %v5683_v42, 0.0  ;;  %v5937_v59 = vmax.f32 %v5425_v54, 0.0  ;;  %v8582_v53 = vpop.f32.mrb[40].mxu0  ;;  %v8838_v46 = vpop.f32.mrb[40].mxu1  ;;  %v9221_v54 = vld [vmem:[%s9387_s24 + $0x268] sm:$0xff]  }
 0x137   : > { %v5684_v44 = vadd.f32 %v10019_v43, %v5165_v52  ;;  %v5426_v62 = vadd.f32 %v10019_v43, %v4907_v37  ;;  %v10023_v50 = vmax.f32 %v5935_v61, %v5939_v38  ;;  %v6193_v2 = vmax.f32 %v5681_v45, 0.0  ;;  %v2976_v12 = vpop.f32.mrb[41].mxu0  ;;  %v4000_v7 = vpop.f32.mrb[41].mxu1 }
 0x138   : > { %v5940_v3 = vmax.f32 %v5428_v48, 0.0  ;;  %v5682_v63 = vadd.f32 %v10019_v43, %v5163_v57  ;;  %v10027_v47 = vmax.f32 %v6191_v10, %v6195_v49  ;;  %v10029_v51 = vmax.f32 %v5933_v11, %v5937_v59  ;;  %v8583_v55 = vpop.f32.mrb[42].mxu0  ;;  %v8839_v61 = vpop.f32.mrb[42].mxu1  ;;  %v9222_v49 = vld [vmem:[%s9387_s24 + $0x668] sm:$0xff]   ;;  %v9223_v59 = vld [vmem:[%s9387_s24 + $0x270] sm:$0xff]  }
 0x139   : > { %v6196_v20 = vmax.f32 %v5684_v44, 0.0  ;;  %v5938_v6 = vmax.f32 %v5426_v62, 0.0  ;;  %v10032_v13 = vmax.f32 %v6189_v23, %v6193_v2  ;;  %v4912_v60 = vmul.f32 %v10001_v33, %v8582_v53  ;;  %v2979_v0 = vpop.f32.mrb[43].mxu0  ;;  %v4003_v11 = vpop.f32.mrb[43].mxu1 }
 0x13a   : > { %v10034_v14 = vmax.f32 %v5936_v24, %v5940_v3  ;;  %v6194_v19 = vmax.f32 %v5682_v63, 0.0  ;;  %v5168_v9 = vmul.f32 %v10001_v33, %v8838_v46  ;;  %v4910_v10 = vmul.f32 %v10001_v33, %v2976_v12  ;;  %v9224_v46 = vld [vmem:[%s9387_s24 + $0x670] sm:$0xff]  }
 0x13b   : > { %v10039_v5 = vmax.f32 %v6192_v34, %v6196_v20  ;;  %v10041_v8 = vmax.f32 %v5934_v28, %v5938_v6  ;;  %v5431_v17 = vadd.f32 %v10019_v43, %v4912_v60  ;;  %v5166_v18 = vmul.f32 %v10001_v33, %v4000_v7  ;;  %8689 = vmatmul.mubr.msk.bf16.gmra.mrb[148].mxu0 %vm2006_vm2, %v9217_v15 }
 0x13c   : > { %v10045_v16 = vmax.f32 %v6190_v58, %v6194_v19  ;;  %v4913_v21 = vmul.f32 %v10001_v33, %v8583_v55  ;;  %v5687_v22 = vadd.f32 %v10019_v43, %v5168_v9  ;;  %v5429_v23 = vadd.f32 %v10019_v43, %v4910_v10  ;;  %8692 = vmatprep.mubr.msk.bf16.mxu0 %vm2006_vm2, %v9219_v1 }
 0x13d   : > { %v5169_v24 = vmul.f32 %v10001_v33, %v8839_v61  ;;  %v4911_v25 = vmul.f32 %v10001_v33, %v2979_v0  ;;  %8945 = vmatmul.mubr.msk.bf16.gmra.mrb[148].mxu1 %vm2006_vm2, %v9218_v56  ;;  %v5943_v26 = vmax.f32 %v5431_v17, 0.0  ;;  %v5685_v27 = vadd.f32 %v10019_v43, %v5166_v18  ;;  %v8586_v36 = vpop.f32.mrb[44].mxu0 }
 0x13e   : > { %v5432_v29 = vadd.f32 %v10019_v43, %v4913_v21  ;;  %v5167_v30 = vmul.f32 %v10001_v33, %v4003_v11  ;;  %8948 = vmatprep.mubr.msk.bf16.mxu1 %vm2006_vm2, %v9220_v4  ;;  %v6199_v31 = vmax.f32 %v5687_v22, 0.0  ;;  %v5941_v34 = vmax.f32 %v5429_v23, 0.0  ;;  %v8842_v41 = vpop.f32.mrb[44].mxu1  ;;  %v2992_v42 = vpop.f32.mrb[45].mxu0 }
 0x13f   : > { %v5688_v28 = vadd.f32 %v10019_v43, %v5169_v24  ;;  %v5430_v35 = vadd.f32 %v10019_v43, %v4911_v25  ;;  %v6197_v39 = vmax.f32 %v5685_v27, 0.0  ;;  %v4916_v40 = vmul.f32 %v10001_v33, %v8586_v36  ;;  %v4016_v48 = vpop.f32.mrb[45].mxu1  ;;  %v8587_v57 = vpop.f32.mrb[46].mxu0 }
 0x140   : > { %v5944_v58 = vmax.f32 %v5432_v29, 0.0  ;;  %v10064_v32 = vadd.f32 %v10019_v43, %v5167_v30  ;;  %v5172_v38 = vmul.f32 %v10001_v33, %v8842_v41  ;;  %v4914_v45 = vmul.f32 %v10001_v33, %v2992_v42  ;;  %v8843_v3 = vpop.f32.mrb[46].mxu1  ;;  %v2995_v63 = vpop.f32.mrb[47].mxu0  ;;  %v9226_v42 = vld [vmem:[%s9387_s24 + $0x678] sm:$0xff]  }
 0x141   : > { %v6200_v52 = vmax.f32 %v5688_v28, 0.0  ;;  %v5942_v37 = vmax.f32 %v5430_v35, 0.0  ;;  %v5435_v62 = vadd.f32 %v10019_v43, %v4916_v40  ;;  %v5170_v53 = vmul.f32 %v10001_v33, %v4016_v48  ;;  %v4019_v7 = vpop.f32.mrb[47].mxu1  ;;  %v9225_v35 = vld [vmem:[%s9387_s24 + $0x278] sm:$0xff]  }
 0x142   : > { %v6198_v44 = vmax.f32 %v10064_v32, 0.0  ;;  %v4917_v2 = vmul.f32 %v10001_v33, %v8587_v57  ;;  %v5691_v12 = vadd.f32 %v10019_v43, %v5172_v38  ;;  %v5433_v15 = vadd.f32 %v10019_v43, %v4914_v45 }
 0x143   : > { %v5173_v20 = vmul.f32 %v10001_v33, %v8843_v3  ;;  %v4915_v6 = vmul.f32 %v10001_v33, %v2995_v63  ;;  %v5947_v55 = vmax.f32 %v5435_v62, 0.0  ;;  %v5689_v56 = vadd.f32 %v10019_v43, %v5170_v53  ;;  %8693 = vmatmul.mubr.msk.bf16.gmra.mrb[152].mxu0 %vm2006_vm2, %v9221_v54 }
 0x144   : > { %v5436_v19 = vadd.f32 %v10019_v43, %v4917_v2  ;;  %v5171_v60 = vmul.f32 %v10001_v33, %v4019_v7  ;;  %v6203_v61 = vmax.f32 %v5691_v12, 0.0  ;;  %v5945_v0 = vmax.f32 %v5433_v15, 0.0  ;;  %8696 = vmatprep.mubr.msk.bf16.mxu0 %vm2006_vm2, %v9223_v59 }
 0x145   : > { %v5692_v1 = vadd.f32 %v10019_v43, %v5173_v20  ;;  %v5434_v4 = vadd.f32 %v10019_v43, %v4915_v6  ;;  %8949 = vmatmul.mubr.msk.bf16.gmra.mrb[152].mxu1 %vm2006_vm2, %v9222_v49  ;;  %v6551_v9 = vmax.f32 %v5943_v26, %v5947_v55  ;;  %v6201_v10 = vmax.f32 %v5689_v56, 0.0  ;;  %v8590_v24 = vpop.f32.mrb[48].mxu0  ;;  %v9228_v49 = vld [vmem:[%s9387_s24 + $0x680] sm:$0xff]  }
 0x146   : > { %v5948_v11 = vmax.f32 %v5436_v19, 0.0  ;;  %v5690_v17 = vadd.f32 %v10019_v43, %v5171_v60  ;;  %8952 = vmatprep.mubr.msk.bf16.mxu1 %vm2006_vm2, %v9224_v46  ;;  %v6615_v18 = vmax.f32 %v6199_v31, %v6203_v61  ;;  %v6549_v21 = vmax.f32 %v5941_v34, %v5945_v0  ;;  %v8846_v28 = vpop.f32.mrb[48].mxu1  ;;  %v3008_v26 = vpop.f32.mrb[49].mxu0  ;;  %v9229_v0 = vld [vmem:[%s9387_s24 + $0x288] sm:$0xff]  }
 0x147   : > { %v6204_v22 = vmax.f32 %v5692_v1, 0.0  ;;  %v5946_v23 = vmax.f32 %v5434_v4, 0.0  ;;  %v6679_v25 = vmax.f32 %v10023_v50, %v6551_v9  ;;  %v6613_v27 = vmax.f32 %v6197_v39, %v6201_v10  ;;  %v4032_v34 = vpop.f32.mrb[49].mxu1  ;;  %v8591_v41 = vpop.f32.mrb[50].mxu0 }
 0x148   : > { %v6552_v29 = vmax.f32 %v5944_v58, %v5948_v11  ;;  %v6202_v30 = vmax.f32 %v5690_v17, 0.0  ;;  %v6743_v36 = vmax.f32 %v10027_v47, %v6615_v18  ;;  %v6677_v32 = vmax.f32 %v10029_v51, %v6549_v21  ;;  %v8847_v38 = vpop.f32.mrb[50].mxu1  ;;  %v3011_v45 = vpop.f32.mrb[51].mxu0  ;;  %v9227_v47 = vld [vmem:[%s9387_s24 + $0x280] sm:$0xff]   ;;  %v9230_v18 = vld [vmem:[%s9387_s24 + $0x688] sm:$0xff]  }
 0x149   : > { %v6616_v40 = vmax.f32 %v6200_v52, %v6204_v22  ;;  %v6550_v31 = vmax.f32 %v5942_v37, %v5946_v23  ;;  %v8160_v54 = vpack.c.bf16 %v6679_v25, %v6679_v25  ;;  %v6741_v50 = vmax.f32 %v10032_v13, %v6613_v27  ;;  %v4035_v57 = vpop.f32.mrb[51].mxu1 }
 0x14a   : > { %v6680_v39 = vmax.f32 %v10034_v14, %v6552_v29  ;;  %v6614_v58 = vmax.f32 %v6198_v44, %v6202_v30  ;;  %v8224_v48 = vpack.c.bf16 %v6743_v36, %v6743_v36  ;;  %v8158_v51 = vpack.c.bf16 %v6677_v32, %v6677_v32  ;;  %v9231_v29 = vld [vmem:[%s9387_s24 + $0x290] sm:$0xff]  }
 0x14b   : > { %v6744_v52 = vmax.f32 %v10039_v5, %v6616_v40  ;;  %v6678_v37 = vmax.f32 %v10041_v8, %v6550_v31  ;;  %7320 = vst.msk [vmem:[%s9776_s6 + $0x28] sm:$0xf] %vm7309_vm3, %v8160_v54  ;;  %v8222_v13 = vpack.c.bf16 %v6741_v50, %v6741_v50  ;;  %v4920_v44 = vmul.f32 %v10001_v33, %v8590_v24  ;;  %v9232_v30 = vld [vmem:[%s9387_s24 + $0x690] sm:$0xff]  }
 0x14c   : > { %v8161_v14 = vpack.c.bf16 %v6680_v39, %v6680_v39  ;;  %v6742_v59 = vmax.f32 %v10045_v16, %v6614_v58  ;;  %8697 = vmatmul.mubr.msk.bf16.gmra.mrb[156].mxu0 %vm2006_vm2, %v9225_v35  ;;  %7384 = vst.msk [vmem:[%s9776_s6 + $0x128] sm:$0xf] %vm7309_vm3, %v8224_v48  ;;  %7318 = vst.msk [vmem:[%s9776_s6 + $0x20] sm:$0xf] %vm7309_vm3, %v8158_v51  ;;  %v5176_v62 = vmul.f32 %v10001_v33, %v8846_v28 }
 0x14d   : > { %v8225_v5 = vpack.c.bf16 %v6744_v52, %v6744_v52  ;;  %v8159_v8 = vpack.c.bf16 %v6678_v37, %v6678_v37  ;;  %v4918_v53 = vmul.f32 %v10001_v33, %v3008_v26  ;;  %8953 = vmatmul.mubr.msk.bf16.gmra.mrb[156].mxu1 %vm2006_vm2, %v9226_v42  ;;  %7382 = vst.msk [vmem:[%s9776_s6 + $0x120] sm:$0xf] %vm7309_vm3, %v8222_v13  ;;  %v8594_v6 = vpop.f32.mrb[52].mxu0 }
 0x14e   : > { %7321 = vst.msk [vmem:[%s9776_s6 + $0x2c] sm:$0xf] %vm7309_vm3, %v8161_v14  ;;  %v8223_v16 = vpack.c.bf16 %v6742_v59, %v6742_v59  ;;  %v5439_v2 = vadd.f32 %v10019_v43, %v4920_v44  ;;  %v5174_v3 = vmul.f32 %v10001_v33, %v4032_v34  ;;  %v4921_v63 = vmul.f32 %v10001_v33, %v8591_v41  ;;  %v8850_v60 = vpop.f32.mrb[52].mxu1  ;;  %v3024_v61 = vpop.f32.mrb[53].mxu0 }
 0x14f   : > { %8700 = vmatprep.mubr.msk.bf16.mxu0 %vm2006_vm2, %v9227_v47  ;;  %7385 = vst.msk [vmem:[%s9776_s6 + $0x12c] sm:$0xf] %vm7309_vm3, %v8225_v5  ;;  %7319 = vst.msk [vmem:[%s9776_s6 + $0x24] sm:$0xf] %vm7309_vm3, %v8159_v8  ;;  %v10127_v46 = vadd.f32 %v10019_v43, %v5176_v62  ;;  %v10130_v12 = vadd.f32 %v10019_v43, %v4918_v53  ;;  %v5177_v15 = vmul.f32 %v10001_v33, %v8847_v38  ;;  %v4048_v11 = vpop.f32.mrb[53].mxu1  ;;  %v8595_v17 = vpop.f32.mrb[54].mxu0 }
 0x150   : > { %v4919_v20 = vmul.f32 %v10001_v33, %v3011_v45  ;;  %8956 = vmatprep.mubr.msk.bf16.mxu1 %vm2006_vm2, %v9228_v49  ;;  %7383 = vst.msk [vmem:[%s9776_s6 + $0x124] sm:$0xf] %vm7309_vm3, %v8223_v16  ;;  %v5951_v7 = vmax.f32 %v5439_v2, 0.0  ;;  %v5693_v55 = vadd.f32 %v10019_v43, %v5174_v3  ;;  %v5440_v56 = vadd.f32 %v10019_v43, %v4921_v63  ;;  %v8851_v25 = vpop.f32.mrb[54].mxu1  ;;  %v3027_v27 = vpop.f32.mrb[55].mxu0  ;;  %v9233_v8 = vld [vmem:[%s9387_s24 + $0x298] sm:$0xff]  }
 0x151   : > { %v5175_v19 = vmul.f32 %v10001_v33, %v4035_v57  ;;  %v6207_v1 = vmax.f32 %v10127_v46, 0.0  ;;  %v5949_v4 = vmax.f32 %v10130_v12, 0.0  ;;  %v5696_v9 = vadd.f32 %v10019_v43, %v5177_v15  ;;  %v4051_v32 = vpop.f32.mrb[55].mxu1  ;;  %v9234_v46 = vld [vmem:[%s9387_s24 + $0x698] sm:$0xff]  }
 0x152   : > { %v5438_v10 = vadd.f32 %v10019_v43, %v4919_v20  ;;  %v6205_v21 = vmax.f32 %v5693_v55, 0.0  ;;  %v5952_v22 = vmax.f32 %v5440_v56, 0.0  ;;  %v4924_v24 = vmul.f32 %v10001_v33, %v8594_v6  ;;  %v9235_v56 = vld [vmem:[%s9387_s24 + $0x2a0] sm:$0xff]  }
 0x153   : > { %v5694_v23 = vadd.f32 %v10019_v43, %v5175_v19  ;;  %v6208_v28 = vmax.f32 %v5696_v9, 0.0  ;;  %v5180_v35 = vmul.f32 %v10001_v33, %v8850_v60  ;;  %v4922_v36 = vmul.f32 %v10001_v33, %v3024_v61  ;;  %v9236_v19 = vld [vmem:[%s9387_s24 + $0x6a0] sm:$0xff]  }
 0x154   : > { %v5950_v26 = vmax.f32 %v5438_v10, 0.0  ;;  %v5443_v31 = vadd.f32 %v10019_v43, %v4924_v24  ;;  %v5178_v34 = vmul.f32 %v10001_v33, %v4048_v11  ;;  %v4925_v41 = vmul.f32 %v10001_v33, %v8595_v17  ;;  %8701 = vmatmul.mubr.msk.bf16.gmra.mrb[160].mxu0 %vm2006_vm2, %v9229_v0 }
 0x155   : > { %v6206_v40 = vmax.f32 %v5694_v23, 0.0  ;;  %v5699_v42 = vadd.f32 %v10019_v43, %v5180_v35  ;;  %v5441_v54 = vadd.f32 %v10019_v43, %v4922_v36  ;;  %v5181_v50 = vmul.f32 %v10001_v33, %v8851_v25  ;;  %8957 = vmatmul.mubr.msk.bf16.gmra.mrb[160].mxu1 %vm2006_vm2, %v9230_v18  ;;  %8704 = vmatprep.mubr.msk.bf16.mxu0 %vm2006_vm2, %v9231_v29  ;;  %v8598_v57 = vpop.f32.mrb[56].mxu0 }
 0x156   : > { %v4923_v39 = vmul.f32 %v10001_v33, %v3027_v27  ;;  %v5955_v58 = vmax.f32 %v5443_v31, 0.0  ;;  %v5697_v38 = vadd.f32 %v10019_v43, %v5178_v34  ;;  %v5444_v45 = vadd.f32 %v10019_v43, %v4925_v41  ;;  %8960 = vmatprep.mubr.msk.bf16.mxu1 %vm2006_vm2, %v9232_v30  ;;  %v8854_v44 = vpop.f32.mrb[56].mxu1  ;;  %v3040_v5 = vpop.f32.mrb[57].mxu0 }
 0x157   : > { %v5179_v47 = vmul.f32 %v10001_v33, %v4051_v32  ;;  %v6211_v48 = vmax.f32 %v5699_v42, 0.0  ;;  %v5953_v51 = vmax.f32 %v5441_v54, 0.0  ;;  %v5700_v52 = vadd.f32 %v10019_v43, %v5181_v50  ;;  %v4064_v3 = vpop.f32.mrb[57].mxu1  ;;  %v8599_v63 = vpop.f32.mrb[58].mxu0  ;;  %v9237_v54 = vld [vmem:[%s9387_s24 + $0x2a8] sm:$0xff]  }
 0x158   : > { %v5442_v37 = vadd.f32 %v10019_v43, %v4923_v39  ;;  %v10168_v49 = vmax.f32 %v5951_v7, %v5955_v58  ;;  %v6209_v13 = vmax.f32 %v5697_v38, 0.0  ;;  %v5956_v14 = vmax.f32 %v5444_v45, 0.0  ;;  %v8855_v7 = vpop.f32.mrb[58].mxu1  ;;  %v3043_v55 = vpop.f32.mrb[59].mxu0 }
 0x159   : > { %v5698_v59 = vadd.f32 %v10019_v43, %v5179_v47  ;;  %v10172_v62 = vmax.f32 %v6207_v1, %v6211_v48  ;;  %v10174_v53 = vmax.f32 %v5949_v4, %v5953_v51  ;;  %v6212_v16 = vmax.f32 %v5700_v52, 0.0  ;;  %v4067_v4 = vpop.f32.mrb[59].mxu1  ;;  %v9238_v48 = vld [vmem:[%s9387_s24 + $0x6a8] sm:$0xff]   ;;  %v9239_v51 = vld [vmem:[%s9387_s24 + $0x2b0] sm:$0xff]  }
 0x15a   : > { %v5954_v2 = vmax.f32 %v5442_v37, 0.0  ;;  %v10177_v12 = vmax.f32 %v6205_v21, %v6209_v13  ;;  %v10179_v15 = vmax.f32 %v5952_v22, %v5956_v14  ;;  %v4928_v6 = vmul.f32 %v10001_v33, %v8598_v57 }
 0x15b   : > { %v6210_v20 = vmax.f32 %v5698_v59, 0.0  ;;  %v10184_v60 = vmax.f32 %v6208_v28, %v6212_v16  ;;  %v5184_v0 = vmul.f32 %v10001_v33, %v8854_v44  ;;  %v4926_v1 = vmul.f32 %v10001_v33, %v3040_v5  ;;  %v9240_v44 = vld [vmem:[%s9387_s24 + $0x6b0] sm:$0xff]  }
 0x15c   : > { %v10186_v61 = vmax.f32 %v5950_v26, %v5954_v2  ;;  %v5447_v10 = vadd.f32 %v10019_v43, %v4928_v6  ;;  %v5182_v11 = vmul.f32 %v10001_v33, %v4064_v3  ;;  %v4929_v17 = vmul.f32 %v10001_v33, %v8599_v63  ;;  %8705 = vmatmul.mubr.msk.bf16.gmra.mrb[164].mxu0 %vm2006_vm2, %v9233_v8 }
 0x15d   : > { %v10190_v9 = vmax.f32 %v6206_v40, %v6210_v20  ;;  %v5703_v18 = vadd.f32 %v10019_v43, %v5184_v0  ;;  %v5445_v21 = vadd.f32 %v10019_v43, %v4926_v1  ;;  %v5185_v22 = vmul.f32 %v10001_v33, %v8855_v7  ;;  %8961 = vmatmul.mubr.msk.bf16.gmra.mrb[164].mxu1 %vm2006_vm2, %v9234_v46  ;;  %v8602_v36 = vpop.f32.mrb[60].mxu0 }
 0x15e   : > { %v4927_v23 = vmul.f32 %v10001_v33, %v3043_v55  ;;  %v5959_v24 = vmax.f32 %v5447_v10, 0.0  ;;  %v5701_v25 = vadd.f32 %v10019_v43, %v5182_v11  ;;  %v5448_v27 = vadd.f32 %v10019_v43, %v4929_v17  ;;  %8708 = vmatprep.mubr.msk.bf16.mxu0 %vm2006_vm2, %v9235_v56  ;;  %8964 = vmatprep.mubr.msk.bf16.mxu1 %vm2006_vm2, %v9236_v19  ;;  %v8858_v41 = vpop.f32.mrb[60].mxu1  ;;  %v3056_v42 = vpop.f32.mrb[61].mxu0 }
 0x15f   : > { %v5183_v29 = vmul.f32 %v10001_v33, %v4067_v4  ;;  %v6215_v30 = vmax.f32 %v5703_v18, 0.0  ;;  %v5957_v28 = vmax.f32 %v5445_v21, 0.0  ;;  %v5704_v26 = vadd.f32 %v10019_v43, %v5185_v22  ;;  %v4080_v45 = vpop.f32.mrb[61].mxu1  ;;  %v8603_v47 = vpop.f32.mrb[62].mxu0 }
 0x160   : > { %v5446_v35 = vadd.f32 %v10019_v43, %v4927_v23  ;;  %v6213_v32 = vmax.f32 %v5701_v25, 0.0  ;;  %v5960_v40 = vmax.f32 %v5448_v27, 0.0  ;;  %v4932_v34 = vmul.f32 %v10001_v33, %v8602_v36  ;;  %v8859_v14 = vpop.f32.mrb[62].mxu1  ;;  %v3059_v59 = vpop.f32.mrb[63].mxu0 }
 0x161   : > { %v10209_v31 = vadd.f32 %v10019_v43, %v5183_v29  ;;  %v6216_v50 = vmax.f32 %v5704_v26, 0.0  ;;  %v5188_v58 = vmul.f32 %v10001_v33, %v8858_v41  ;;  %v4930_v38 = vmul.f32 %v10001_v33, %v3056_v42  ;;  %v4083_v3 = vpop.f32.mrb[63].mxu1  ;;  %v9242_v42 = vld [vmem:[%s9387_s24 + $0x6b8] sm:$0xff]  }
 0x162   : > { %v5958_v39 = vmax.f32 %v5446_v35, 0.0  ;;  %v5451_v37 = vadd.f32 %v10019_v43, %v4932_v34  ;;  %v5186_v57 = vmul.f32 %v10001_v33, %v4080_v45  ;;  %v4933_v13 = vmul.f32 %v10001_v33, %v8603_v47  ;;  %v9241_v35 = vld [vmem:[%s9387_s24 + $0x2b8] sm:$0xff]  }
 0x163   : > { %v6214_v52 = vmax.f32 %v10209_v31, 0.0  ;;  %v5707_v5 = vadd.f32 %v10019_v43, %v5188_v58  ;;  %v5449_v8 = vadd.f32 %v10019_v43, %v4930_v38  ;;  %v5189_v16 = vmul.f32 %v10001_v33, %v8859_v14 }
 0x164   : > { %v4931_v2 = vmul.f32 %v10001_v33, %v3059_v59  ;;  %v5963_v63 = vmax.f32 %v5451_v37, 0.0  ;;  %v5705_v46 = vadd.f32 %v10019_v43, %v5186_v57  ;;  %v5452_v20 = vadd.f32 %v10019_v43, %v4933_v13  ;;  %8709 = vmatmul.mubr.msk.bf16.gmra.mrb[168].mxu0 %vm2006_vm2, %v9237_v54 }
 0x165   : > { %v5187_v6 = vmul.f32 %v10001_v33, %v4083_v3  ;;  %v6219_v7 = vmax.f32 %v5707_v5, 0.0  ;;  %v5961_v55 = vmax.f32 %v5449_v8, 0.0  ;;  %v5708_v56 = vadd.f32 %v10019_v43, %v5189_v16  ;;  %8965 = vmatmul.mubr.msk.bf16.gmra.mrb[168].mxu1 %vm2006_vm2, %v9238_v48  ;;  %8712 = vmatprep.mubr.msk.bf16.mxu0 %vm2006_vm2, %v9239_v51  ;;  %v8606_v22 = vpop.f32.mrb[64].mxu0  ;;  %v9244_v48 = vld [vmem:[%s9387_s24 + $0x6c0] sm:$0xff]  }
 0x166   : > { %v5450_v19 = vadd.f32 %v10019_v43, %v4931_v2  ;;  %v6555_v0 = vmax.f32 %v5959_v24, %v5963_v63  ;;  %v6217_v1 = vmax.f32 %v5705_v46, 0.0  ;;  %v5964_v4 = vmax.f32 %v5452_v20, 0.0  ;;  %8968 = vmatprep.mubr.msk.bf16.mxu1 %vm2006_vm2, %v9240_v44  ;;  %v8862_v26 = vpop.f32.mrb[64].mxu1  ;;  %v3072_v24 = vpop.f32.mrb[65].mxu0 }
 0x167   : > { %v5706_v10 = vadd.f32 %v10019_v43, %v5187_v6  ;;  %v6619_v11 = vmax.f32 %v6215_v30, %v6219_v7  ;;  %v6553_v17 = vmax.f32 %v5957_v28, %v5961_v55  ;;  %v6220_v18 = vmax.f32 %v5708_v56, 0.0  ;;  %v4096_v28 = vpop.f32.mrb[65].mxu1  ;;  %v8607_v41 = vpop.f32.mrb[66].mxu0  ;;  %v9245_v55 = vld [vmem:[%s9387_s24 + $0x2c8] sm:$0xff]  }
 0x168   : > { %v5962_v21 = vmax.f32 %v5450_v19, 0.0  ;;  %v6683_v23 = vmax.f32 %v10168_v49, %v6555_v0  ;;  %v6617_v25 = vmax.f32 %v6213_v32, %v6217_v1  ;;  %v6556_v27 = vmax.f32 %v5960_v40, %v5964_v4  ;;  %v8863_v58 = vpop.f32.mrb[66].mxu1  ;;  %v3075_v38 = vpop.f32.mrb[67].mxu0 }
 0x169   : > { %v6218_v29 = vmax.f32 %v5706_v10, 0.0  ;;  %v6747_v36 = vmax.f32 %v10172_v62, %v6619_v11  ;;  %v6681_v31 = vmax.f32 %v10174_v53, %v6553_v17  ;;  %v6620_v34 = vmax.f32 %v6216_v50, %v6220_v18  ;;  %v9243_v62 = vld [vmem:[%s9387_s24 + $0x2c0] sm:$0xff]   ;;  %v4099_v47 = vpop.f32.mrb[67].mxu1  ;;  %v9246_v11 = vld [vmem:[%s9387_s24 + $0x6c8] sm:$0xff]  }
 0x16a   : > { %v6554_v30 = vmax.f32 %v5958_v39, %v5962_v21  ;;  %v8164_v54 = vpack.c.bf16 %v6683_v23, %v6683_v23  ;;  %v6745_v49 = vmax.f32 %v10177_v12, %v6617_v25  ;;  %v6684_v32 = vmax.f32 %v10179_v15, %v6556_v27  ;;  %v9247_v27 = vld [vmem:[%s9387_s24 + $0x2d0] sm:$0xff]  }
 0x16b   : > { %v6618_v40 = vmax.f32 %v6214_v52, %v6218_v29  ;;  %v8228_v45 = vpack.c.bf16 %v6747_v36, %v6747_v36  ;;  %v8162_v53 = vpack.c.bf16 %v6681_v31, %v6681_v31  ;;  %v6748_v50 = vmax.f32 %v10184_v60, %v6620_v34  ;;  %v9248_v29 = vld [vmem:[%s9387_s24 + $0x6d0] sm:$0xff]  }
 0x16c   : > { %v6682_v39 = vmax.f32 %v10186_v61, %v6554_v30  ;;  %7324 = vst.msk [vmem:[%s9776_s6 + $0x38] sm:$0xf] %vm7309_vm3, %v8164_v54  ;;  %v8226_v12 = vpack.c.bf16 %v6745_v49, %v6745_v49  ;;  %v8165_v15 = vpack.c.bf16 %v6684_v32, %v6684_v32  ;;  %v4936_v52 = vmul.f32 %v10001_v33, %v8606_v22 }
 0x16d   : > { %v6746_v51 = vmax.f32 %v10190_v9, %v6618_v40  ;;  %8713 = vmatmul.mubr.msk.bf16.gmra.mrb[172].mxu0 %vm2006_vm2, %v9241_v35  ;;  %7388 = vst.msk [vmem:[%s9776_s6 + $0x138] sm:$0xf] %vm7309_vm3, %v8228_v45  ;;  %7322 = vst.msk [vmem:[%s9776_s6 + $0x30] sm:$0xf] %vm7309_vm3, %v8162_v53  ;;  %v8229_v60 = vpack.c.bf16 %v6748_v50, %v6748_v50  ;;  %v5192_v37 = vmul.f32 %v10001_v33, %v8862_v26  ;;  %v8610_v2 = vpop.f32.mrb[68].mxu0 }
 0x16e   : > { %v8163_v61 = vpack.c.bf16 %v6682_v39, %v6682_v39  ;;  %v4934_v57 = vmul.f32 %v10001_v33, %v3072_v24  ;;  %8969 = vmatmul.mubr.msk.bf16.gmra.mrb[172].mxu1 %vm2006_vm2, %v9242_v42  ;;  %7386 = vst.msk [vmem:[%s9776_s6 + $0x130] sm:$0xf] %vm7309_vm3, %v8226_v12  ;;  %7325 = vst.msk [vmem:[%s9776_s6 + $0x3c] sm:$0xf] %vm7309_vm3, %v8165_v15  ;;  %v5455_v13 = vadd.f32 %v10019_v43, %v4936_v52  ;;  %v8866_v6 = vpop.f32.mrb[68].mxu1  ;;  %v3088_v7 = vpop.f32.mrb[69].mxu0 }
 0x16f   : > { %v8227_v9 = vpack.c.bf16 %v6746_v51, %v6746_v51  ;;  %v5190_v14 = vmul.f32 %v10001_v33, %v4096_v28  ;;  %v4937_v59 = vmul.f32 %v10001_v33, %v8607_v41  ;;  %8716 = vmatprep.mubr.msk.bf16.mxu0 %vm2006_vm2, %v9243_v62  ;;  %7389 = vst.msk [vmem:[%s9776_s6 + $0x13c] sm:$0xf] %vm7309_vm3, %v8229_v60  ;;  %v4112_v4 = vpop.f32.mrb[69].mxu1  ;;  %v8611_v10 = vpop.f32.mrb[70].mxu0 }
 0x170   : > { %7323 = vst.msk [vmem:[%s9776_s6 + $0x34] sm:$0xf] %vm7309_vm3, %v8163_v61  ;;  %v10272_v44 = vadd.f32 %v10019_v43, %v5192_v37  ;;  %v10275_v5 = vadd.f32 %v10019_v43, %v4934_v57  ;;  %v5193_v8 = vmul.f32 %v10001_v33, %v8863_v58  ;;  %v4935_v16 = vmul.f32 %v10001_v33, %v3075_v38  ;;  %v8867_v23 = vpop.f32.mrb[70].mxu1  ;;  %v3091_v25 = vpop.f32.mrb[71].mxu0  ;;  %v9249_v61 = vld [vmem:[%s9387_s24 + $0x2d8] sm:$0xff]  }
 0x171   : > { %8972 = vmatprep.mubr.msk.bf16.mxu1 %vm2006_vm2, %v9244_v48  ;;  %7387 = vst.msk [vmem:[%s9776_s6 + $0x134] sm:$0xf] %vm7309_vm3, %v8227_v9  ;;  %v5967_v3 = vmax.f32 %v5455_v13, 0.0  ;;  %v5709_v63 = vadd.f32 %v10019_v43, %v5190_v14  ;;  %v5456_v46 = vadd.f32 %v10019_v43, %v4937_v59  ;;  %v5191_v20 = vmul.f32 %v10001_v33, %v4099_v47  ;;  %v4115_v31 = vpop.f32.mrb[71].mxu1 }
 0x172   : > { %v6223_v56 = vmax.f32 %v10272_v44, 0.0  ;;  %v5965_v19 = vmax.f32 %v10275_v5, 0.0  ;;  %v5712_v0 = vadd.f32 %v10019_v43, %v5193_v8  ;;  %v5454_v1 = vadd.f32 %v10019_v43, %v4935_v16  ;;  %v9250_v44 = vld [vmem:[%s9387_s24 + $0x6d8] sm:$0xff]  }
 0x173   : > { %v6221_v17 = vmax.f32 %v5709_v63, 0.0  ;;  %v5968_v18 = vmax.f32 %v5456_v46, 0.0  ;;  %v5710_v21 = vadd.f32 %v10019_v43, %v5191_v20  ;;  %v4940_v22 = vmul.f32 %v10001_v33, %v8610_v2  ;;  %v9251_v46 = vld [vmem:[%s9387_s24 + $0x2e0] sm:$0xff]  }
 0x174   : > { %v6224_v26 = vmax.f32 %v5712_v0, 0.0  ;;  %v5966_v24 = vmax.f32 %v5454_v1, 0.0  ;;  %v5196_v35 = vmul.f32 %v10001_v33, %v8866_v6  ;;  %v4938_v36 = vmul.f32 %v10001_v33, %v3088_v7  ;;  %v9252_v20 = vld [vmem:[%s9387_s24 + $0x6e0] sm:$0xff]  }
 0x175   : > { %v6222_v34 = vmax.f32 %v5710_v21, 0.0  ;;  %v5459_v30 = vadd.f32 %v10019_v43, %v4940_v22  ;;  %v5194_v28 = vmul.f32 %v10001_v33, %v4112_v4  ;;  %v4941_v41 = vmul.f32 %v10001_v33, %v8611_v10  ;;  %8717 = vmatmul.mubr.msk.bf16.gmra.mrb[176].mxu0 %vm2006_vm2, %v9245_v55  ;;  %v8614_v47 = vpop.f32.mrb[72].mxu0 }
 0x176   : > { %v5715_v42 = vadd.f32 %v10019_v43, %v5196_v35  ;;  %v5457_v54 = vadd.f32 %v10019_v43, %v4938_v36  ;;  %v5197_v49 = vmul.f32 %v10001_v33, %v8867_v23  ;;  %v4939_v32 = vmul.f32 %v10001_v33, %v3091_v25  ;;  %8973 = vmatmul.mubr.msk.bf16.gmra.mrb[176].mxu1 %vm2006_vm2, %v9246_v11  ;;  %v8870_v52 = vpop.f32.mrb[72].mxu1  ;;  %v3104_v60 = vpop.f32.mrb[73].mxu0 }
 0x177   : > { %v5971_v40 = vmax.f32 %v5459_v30, 0.0  ;;  %v5713_v58 = vadd.f32 %v10019_v43, %v5194_v28  ;;  %v5460_v38 = vadd.f32 %v10019_v43, %v4941_v41  ;;  %v5195_v62 = vmul.f32 %v10001_v33, %v4115_v31  ;;  %8720 = vmatprep.mubr.msk.bf16.mxu0 %vm2006_vm2, %v9247_v27  ;;  %8976 = vmatprep.mubr.msk.bf16.mxu1 %vm2006_vm2, %v9248_v29  ;;  %v4128_v14 = vpop.f32.mrb[73].mxu1  ;;  %v8615_v59 = vpop.f32.mrb[74].mxu0 }
 0x178   : > { %v6227_v45 = vmax.f32 %v5715_v42, 0.0  ;;  %v5969_v53 = vmax.f32 %v5457_v54, 0.0  ;;  %v5716_v50 = vadd.f32 %v10019_v43, %v5197_v49  ;;  %v5458_v39 = vadd.f32 %v10019_v43, %v4939_v32  ;;  %v3107_v63 = vpop.f32.mrb[75].mxu0  ;;  %v9253_v54 = vld [vmem:[%s9387_s24 + $0x2e8] sm:$0xff]  }
 0x179   : > { %v10313_v48 = vmax.f32 %v5967_v3, %v5971_v40  ;;  %v6225_v12 = vmax.f32 %v5713_v58, 0.0  ;;  %v5972_v15 = vmax.f32 %v5460_v38, 0.0  ;;  %v5714_v51 = vadd.f32 %v10019_v43, %v5195_v62  ;;  %v8871_v3 = vpop.f32.mrb[74].mxu1 }
 0x17a   : > { %v10317_v37 = vmax.f32 %v6223_v56, %v6227_v45  ;;  %v10319_v57 = vmax.f32 %v5965_v19, %v5969_v53  ;;  %v6228_v9 = vmax.f32 %v5716_v50, 0.0  ;;  %v5970_v13 = vmax.f32 %v5458_v39, 0.0  ;;  %v4131_v19 = vpop.f32.mrb[75].mxu1  ;;  %v9254_v45 = vld [vmem:[%s9387_s24 + $0x6e8] sm:$0xff]   ;;  %v9255_v53 = vld [vmem:[%s9387_s24 + $0x2f0] sm:$0xff]  }
 0x17b   : > { %v10322_v5 = vmax.f32 %v6221_v17, %v6225_v12  ;;  %v10324_v8 = vmax.f32 %v5968_v18, %v5972_v15  ;;  %v6226_v16 = vmax.f32 %v5714_v51, 0.0  ;;  %v4944_v2 = vmul.f32 %v10001_v33, %v8614_v47 }
 0x17c   : > { %v10329_v6 = vmax.f32 %v6224_v26, %v6228_v9  ;;  %v10331_v7 = vmax.f32 %v5966_v24, %v5970_v13  ;;  %v5200_v55 = vmul.f32 %v10001_v33, %v8870_v52  ;;  %v4942_v56 = vmul.f32 %v10001_v33, %v3104_v60  ;;  %v9256_v52 = vld [vmem:[%s9387_s24 + $0x6f0] sm:$0xff]  }
 0x17d   : > { %v10335_v0 = vmax.f32 %v6222_v34, %v6226_v16  ;;  %v5463_v1 = vadd.f32 %v10019_v43, %v4944_v2  ;;  %v5198_v4 = vmul.f32 %v10001_v33, %v4128_v14  ;;  %v4945_v10 = vmul.f32 %v10001_v33, %v8615_v59  ;;  %8721 = vmatmul.mubr.msk.bf16.gmra.mrb[180].mxu0 %vm2006_vm2, %v9249_v61  ;;  %v8618_v36 = vpop.f32.mrb[76].mxu0 }
 0x17e   : > { %v5719_v11 = vadd.f32 %v10019_v43, %v5200_v55  ;;  %v5461_v17 = vadd.f32 %v10019_v43, %v4942_v56  ;;  %v5201_v18 = vmul.f32 %v10001_v33, %v8871_v3  ;;  %v4943_v21 = vmul.f32 %v10001_v33, %v3107_v63  ;;  %8977 = vmatmul.mubr.msk.bf16.gmra.mrb[180].mxu1 %vm2006_vm2, %v9250_v44  ;;  %v8874_v41 = vpop.f32.mrb[76].mxu1  ;;  %v3120_v42 = vpop.f32.mrb[77].mxu0 }
 0x17f   : > { %v5975_v22 = vmax.f32 %v5463_v1, 0.0  ;;  %v5717_v23 = vadd.f32 %v10019_v43, %v5198_v4  ;;  %v5464_v25 = vadd.f32 %v10019_v43, %v4945_v10  ;;  %v5199_v27 = vmul.f32 %v10001_v33, %v4131_v19  ;;  %8724 = vmatprep.mubr.msk.bf16.mxu0 %vm2006_vm2, %v9251_v46  ;;  %8980 = vmatprep.mubr.msk.bf16.mxu1 %vm2006_vm2, %v9252_v20  ;;  %v4144_v38 = vpop.f32.mrb[77].mxu1  ;;  %v8619_v62 = vpop.f32.mrb[78].mxu0 }
 0x180   : > { %v6231_v29 = vmax.f32 %v5719_v11, 0.0  ;;  %v5973_v26 = vmax.f32 %v5461_v17, 0.0  ;;  %v5720_v24 = vadd.f32 %v10019_v43, %v5201_v18  ;;  %v5462_v35 = vadd.f32 %v10019_v43, %v4943_v21  ;;  %v8875_v15 = vpop.f32.mrb[78].mxu1  ;;  %v3123_v51 = vpop.f32.mrb[79].mxu0 }
 0x181   : > { %v6229_v31 = vmax.f32 %v5717_v23, 0.0  ;;  %v5976_v34 = vmax.f32 %v5464_v25, 0.0  ;;  %v10354_v30 = vadd.f32 %v10019_v43, %v5199_v27  ;;  %v4948_v28 = vmul.f32 %v10001_v33, %v8618_v36  ;;  %v4147_v14 = vpop.f32.mrb[79].mxu1 }
 0x182   : > { %v6232_v49 = vmax.f32 %v5720_v24, 0.0  ;;  %v5974_v32 = vmax.f32 %v5462_v35, 0.0  ;;  %v5204_v40 = vmul.f32 %v10001_v33, %v8874_v41  ;;  %v4946_v58 = vmul.f32 %v10001_v33, %v3120_v42  ;;  %v9257_v24 = vld [vmem:[%s9387_s24 + $0x2f8] sm:$0xff]  }
 0x183   : > { %v6230_v50 = vmax.f32 %v10354_v30, 0.0  ;;  %v5467_v39 = vadd.f32 %v10019_v43, %v4948_v28  ;;  %v5202_v47 = vmul.f32 %v10001_v33, %v4144_v38  ;;  %v4949_v12 = vmul.f32 %v10001_v33, %v8619_v62  ;;  %v9258_v28 = vld [vmem:[%s9387_s24 + $0x6f8] sm:$0xff]   ;;  %v9260_v38 = vld [vmem:[%s9387_s24 + $0x700] sm:$0xff]  }
 0x184   : > { %v5723_v60 = vadd.f32 %v10019_v43, %v5204_v40  ;;  %v5465_v61 = vadd.f32 %v10019_v43, %v4946_v58  ;;  %v5205_v9 = vmul.f32 %v10001_v33, %v8875_v15  ;;  %v4947_v13 = vmul.f32 %v10001_v33, %v3123_v51 }
 0x185   : > { %v5979_v59 = vmax.f32 %v5467_v39, 0.0  ;;  %v5721_v44 = vadd.f32 %v10019_v43, %v5202_v47  ;;  %v5468_v16 = vadd.f32 %v10019_v43, %v4949_v12  ;;  %v5203_v2 = vmul.f32 %v10001_v33, %v4147_v14  ;;  %8725 = vmatmul.mubr.msk.bf16.gmra.mrb[184].mxu0 %vm2006_vm2, %v9253_v54  ;;  %v8622_v17 = vpop.f32.mrb[80].mxu0  ;;  %v10416_v47 = vld [vmem:[%s11763_s3] ss:$0 sm:$0xff] }
 0x186   : > { %v6235_v3 = vmax.f32 %v5723_v60, 0.0  ;;  %v5977_v63 = vmax.f32 %v5465_v61, 0.0  ;;  %v5724_v46 = vadd.f32 %v10019_v43, %v5205_v9  ;;  %v5466_v20 = vadd.f32 %v10019_v43, %v4947_v13  ;;  %8981 = vmatmul.mubr.msk.bf16.gmra.mrb[184].mxu1 %vm2006_vm2, %v9254_v45  ;;  %8728 = vmatprep.mubr.msk.bf16.mxu0 %vm2006_vm2, %v9255_v53  ;;  %v8878_v27 = vpop.f32.mrb[80].mxu1  ;;  %v10398_v45 = vld [vmem:[%s11762_s2] ss:$0 sm:$0xff] }
 0x187   : > { %v6559_v55 = vmax.f32 %v5975_v22, %v5979_v59  ;;  %v6233_v56 = vmax.f32 %v5721_v44, 0.0  ;;  %v5980_v19 = vmax.f32 %v5468_v16, 0.0  ;;  %v5722_v1 = vadd.f32 %v10019_v43, %v5203_v2  ;;  %8984 = vmatprep.mubr.msk.bf16.mxu1 %vm2006_vm2, %v9256_v52  ;;  %v3136_v22 = vpop.f32.mrb[81].mxu0 }
 0x188   : > { %v6623_v33 = vmax.f32 %v6231_v29, %v6235_v3  ;;  %v6557_v4 = vmax.f32 %v5973_v26, %v5977_v63  ;;  %v6236_v10 = vmax.f32 %v5724_v46, 0.0  ;;  %v5978_v11 = vmax.f32 %v5466_v20, 0.0  ;;  %v4160_v26 = vpop.f32.mrb[81].mxu1  ;;  %v8623_v30 = vpop.f32.mrb[82].mxu0  ;;  %v9261_v63 = vld [vmem:[%s9387_s24 + $0x308] sm:$0xff]  }
 0x189   : > { %v6687_v18 = vmax.f32 %v10313_v48, %v6559_v55  ;;  %v6621_v21 = vmax.f32 %v6229_v31, %v6233_v56  ;;  %v6560_v23 = vmax.f32 %v5976_v34, %v5980_v19  ;;  %v6234_v25 = vmax.f32 %v5722_v1, 0.0  ;;  %v8879_v42 = vpop.f32.mrb[82].mxu1  ;;  %v3139_v54 = vpop.f32.mrb[83].mxu0 }
 0x18a   : > { %v6751_v35 = vmax.f32 %v10317_v37, %v6623_v33  ;;  %v6685_v43 = vmax.f32 %v10319_v57, %v6557_v4  ;;  %v6624_v36 = vmax.f32 %v6232_v49, %v6236_v10  ;;  %v6558_v29 = vmax.f32 %v5974_v32, %v5978_v11  ;;  %v9259_v37 = vld [vmem:[%s9387_s24 + $0x300] sm:$0xff]   ;;  %v4163_v58 = vpop.f32.mrb[83].mxu1  ;;  %v9262_v33 = vld [vmem:[%s9387_s24 + $0x708] sm:$0xff]  }
 0x18b   : > { %v8168_v41 = vpack.c.bf16 %v6687_v18, %v6687_v18  ;;  %v6749_v48 = vmax.f32 %v10322_v5, %v6621_v21  ;;  %v6688_v31 = vmax.f32 %v10324_v8, %v6560_v23  ;;  %v6622_v34 = vmax.f32 %v6230_v50, %v6234_v25  ;;  %v9263_v23 = vld [vmem:[%s9387_s24 + $0x310] sm:$0xff]  }
 0x18c   : > { %v8232_v40 = vpack.c.bf16 %v6751_v35, %v6751_v35  ;;  %v8166_v57 = vpack.c.bf16 %v6685_v43, %v6685_v43  ;;  %v6752_v49 = vmax.f32 %v10329_v6, %v6624_v36  ;;  %v6686_v32 = vmax.f32 %v10331_v7, %v6558_v29  ;;  %v9264_v25 = vld [vmem:[%s9387_s24 + $0x710] sm:$0xff]  }
 0x18d   : > { %7328 = vst.msk [vmem:[%s9776_s6 + $0x48] sm:$0xf] %vm7309_vm3, %v8168_v41  ;;  %v8230_v5 = vpack.c.bf16 %v6749_v48, %v6749_v48  ;;  %v8169_v8 = vpack.c.bf16 %v6688_v31, %v6688_v31  ;;  %v6750_v62 = vmax.f32 %v10335_v0, %v6622_v34  ;;  %v4952_v53 = vmul.f32 %v10398_v45, %v8622_v17  ;;  %v8626_v13 = vpop.f32.mrb[84].mxu0 }
 0x18e   : > { %8729 = vmatmul.mubr.msk.bf16.gmra.mrb[188].mxu0 %vm2006_vm2, %v9257_v24  ;;  %7392 = vst.msk [vmem:[%s9776_s6 + $0x148] sm:$0xf] %vm7309_vm3, %v8232_v40  ;;  %7326 = vst.msk [vmem:[%s9776_s6 + $0x40] sm:$0xf] %vm7309_vm3, %v8166_v57  ;;  %v8233_v6 = vpack.c.bf16 %v6752_v49, %v6752_v49  ;;  %v8167_v7 = vpack.c.bf16 %v6686_v32, %v6686_v32  ;;  %v5208_v50 = vmul.f32 %v10398_v45, %v8878_v27  ;;  %v8882_v2 = vpop.f32.mrb[84].mxu1  ;;  %v3152_v3 = vpop.f32.mrb[85].mxu0 }
 0x18f   : > { %v4950_v0 = vmul.f32 %v10398_v45, %v3136_v22  ;;  %8985 = vmatmul.mubr.msk.bf16.gmra.mrb[188].mxu1 %vm2006_vm2, %v9258_v28  ;;  %7390 = vst.msk [vmem:[%s9776_s6 + $0x140] sm:$0xf] %vm7309_vm3, %v8230_v5  ;;  %7329 = vst.msk [vmem:[%s9776_s6 + $0x4c] sm:$0xf] %vm7309_vm3, %v8169_v8  ;;  %v8231_v39 = vpack.c.bf16 %v6750_v62, %v6750_v62  ;;  %v5471_v12 = vadd.f32 %v10416_v47, %v4952_v53  ;;  %v4176_v19 = vpop.f32.mrb[85].mxu1  ;;  %v8627_v1 = vpop.f32.mrb[86].mxu0 }
 0x190   : > { %v5206_v15 = vmul.f32 %v10398_v45, %v4160_v26  ;;  %v4953_v51 = vmul.f32 %v10398_v45, %v8623_v30  ;;  %8732 = vmatprep.mubr.msk.bf16.mxu0 %vm2006_vm2, %v9259_v37  ;;  %7393 = vst.msk [vmem:[%s9776_s6 + $0x14c] sm:$0xf] %vm7309_vm3, %v8233_v6  ;;  %7327 = vst.msk [vmem:[%s9776_s6 + $0x44] sm:$0xf] %vm7309_vm3, %v8167_v7  ;;  %v10427_v52 = vadd.f32 %v10416_v47, %v5208_v50  ;;  %v8883_v18 = vpop.f32.mrb[86].mxu1  ;;  %v3155_v21 = vpop.f32.mrb[87].mxu0 }
 0x191   : > { %v10430_v60 = vadd.f32 %v10416_v47, %v4950_v0  ;;  %v5209_v61 = vmul.f32 %v10398_v45, %v8879_v42  ;;  %v4951_v9 = vmul.f32 %v10398_v45, %v3139_v54  ;;  %8988 = vmatprep.mubr.msk.bf16.mxu1 %vm2006_vm2, %v9260_v38  ;;  %7391 = vst.msk [vmem:[%s9776_s6 + $0x144] sm:$0xf] %vm7309_vm3, %v8231_v39  ;;  %v5983_v14 = vmax.f32 %v5471_v12, 0.0  ;;  %v4179_v43 = vpop.f32.mrb[87].mxu1  ;;  %v9265_v7 = vld [vmem:[%s9387_s24 + $0x318] sm:$0xff]  }
 0x192   : > { %v5725_v59 = vadd.f32 %v10416_v47, %v5206_v15  ;;  %v5472_v44 = vadd.f32 %v10416_v47, %v4953_v51  ;;  %v5207_v16 = vmul.f32 %v10398_v45, %v4163_v58  ;;  %v6239_v46 = vmax.f32 %v10427_v52, 0.0  ;;  %v9266_v52 = vld [vmem:[%s9387_s24 + $0x718] sm:$0xff]  }
 0x193   : > { %v5981_v20 = vmax.f32 %v10430_v60, 0.0  ;;  %v5728_v55 = vadd.f32 %v10416_v47, %v5209_v61  ;;  %v5470_v56 = vadd.f32 %v10416_v47, %v4951_v9  ;;  %v4956_v17 = vmul.f32 %v10398_v45, %v8626_v13 }
 0x194   : > { %v6237_v4 = vmax.f32 %v5725_v59, 0.0  ;;  %v5984_v10 = vmax.f32 %v5472_v44, 0.0  ;;  %v5726_v11 = vadd.f32 %v10416_v47, %v5207_v16  ;;  %v5212_v24 = vmul.f32 %v10398_v45, %v8882_v2  ;;  %v9267_v44 = vld [vmem:[%s9387_s24 + $0x320] sm:$0xff]  }
 0x195   : > { %v6240_v27 = vmax.f32 %v5728_v55, 0.0  ;;  %v5982_v22 = vmax.f32 %v5470_v56, 0.0  ;;  %v4954_v35 = vmul.f32 %v10398_v45, %v3152_v3  ;;  %v5475_v29 = vadd.f32 %v10416_v47, %v4956_v17  ;;  %v8630_v58 = vpop.f32.mrb[88].mxu0  ;;  %v9268_v16 = vld [vmem:[%s9387_s24 + $0x720] sm:$0xff]  }
 0x196   : > { %v6238_v36 = vmax.f32 %v5726_v11, 0.0  ;;  %v5210_v26 = vmul.f32 %v10398_v45, %v4176_v19  ;;  %v4957_v30 = vmul.f32 %v10398_v45, %v8627_v1  ;;  %8733 = vmatmul.mubr.msk.bf16.gmra.mrb[192].mxu0 %vm2006_vm2, %v9261_v63  ;;  %v5731_v28 = vadd.f32 %v10416_v47, %v5212_v24  ;;  %v8886_v53 = vpop.f32.mrb[88].mxu1  ;;  %v3168_v6 = vpop.f32.mrb[89].mxu0 }
 0x197   : > { %v5473_v41 = vadd.f32 %v10416_v47, %v4954_v35  ;;  %v5213_v48 = vmul.f32 %v10398_v45, %v8883_v18  ;;  %v4955_v31 = vmul.f32 %v10398_v45, %v3155_v21  ;;  %8989 = vmatmul.mubr.msk.bf16.gmra.mrb[192].mxu1 %vm2006_vm2, %v9262_v33  ;;  %v5987_v34 = vmax.f32 %v5475_v29, 0.0  ;;  %8736 = vmatprep.mubr.msk.bf16.mxu0 %vm2006_vm2, %v9263_v23  ;;  %v4192_v15 = vpop.f32.mrb[89].mxu1  ;;  %v8631_v51 = vpop.f32.mrb[90].mxu0 }
 0x198   : > { %v5729_v42 = vadd.f32 %v10416_v47, %v5210_v26  ;;  %v5476_v54 = vadd.f32 %v10416_v47, %v4957_v30  ;;  %v5211_v37 = vmul.f32 %v10398_v45, %v4179_v43  ;;  %8992 = vmatprep.mubr.msk.bf16.mxu1 %vm2006_vm2, %v9264_v25  ;;  %v6243_v40 = vmax.f32 %v5731_v28, 0.0  ;;  %v3171_v59 = vpop.f32.mrb[91].mxu0 }
 0x199   : > { %v5985_v57 = vmax.f32 %v5473_v41, 0.0  ;;  %v5732_v49 = vadd.f32 %v10416_v47, %v5213_v48  ;;  %v5474_v32 = vadd.f32 %v10416_v47, %v4955_v31  ;;  %v10468_v38 = vmax.f32 %v5983_v14, %v5987_v34  ;;  %v8887_v14 = vpop.f32.mrb[90].mxu1  ;;  %v9269_v41 = vld [vmem:[%s9387_s24 + $0x328] sm:$0xff]  }
 0x19a   : > { %v6241_v5 = vmax.f32 %v5729_v42, 0.0  ;;  %v5988_v8 = vmax.f32 %v5476_v54, 0.0  ;;  %v5730_v62 = vadd.f32 %v10416_v47, %v5211_v37  ;;  %v10472_v50 = vmax.f32 %v6239_v46, %v6243_v40  ;;  %v9270_v40 = vld [vmem:[%s9387_s24 + $0x728] sm:$0xff]  }
 0x19b   : > { %v10474_v0 = vmax.f32 %v5981_v20, %v5985_v57  ;;  %v6244_v39 = vmax.f32 %v5732_v49, 0.0  ;;  %v5986_v12 = vmax.f32 %v5474_v32, 0.0  ;;  %v4960_v13 = vmul.f32 %v10398_v45, %v8630_v58  ;;  %v4195_v20 = vpop.f32.mrb[91].mxu1  ;;  %v9271_v57 = vld [vmem:[%s9387_s24 + $0x330] sm:$0xff]  }
 0x19c   : > { %v10477_v60 = vmax.f32 %v6237_v4, %v6241_v5  ;;  %v10479_v61 = vmax.f32 %v5984_v10, %v5988_v8  ;;  %v6242_v9 = vmax.f32 %v5730_v62, 0.0  ;;  %v5216_v63 = vmul.f32 %v10398_v45, %v8886_v53  ;;  %v9272_v53 = vld [vmem:[%s9387_s24 + $0x730] sm:$0xff]  }
 0x19d   : > { %v10484_v2 = vmax.f32 %v6240_v27, %v6244_v39  ;;  %v10486_v3 = vmax.f32 %v5982_v22, %v5986_v12  ;;  %v4958_v46 = vmul.f32 %v10398_v45, %v3168_v6  ;;  %v5479_v56 = vadd.f32 %v10416_v47, %v4960_v13  ;;  %v8634_v35 = vpop.f32.mrb[92].mxu0 }
 0x19e   : > { %v10490_v55 = vmax.f32 %v6238_v36, %v6242_v9  ;;  %v5214_v19 = vmul.f32 %v10398_v45, %v4192_v15  ;;  %v4961_v1 = vmul.f32 %v10398_v45, %v8631_v51  ;;  %8737 = vmatmul.mubr.msk.bf16.gmra.mrb[196].mxu0 %vm2006_vm2, %v9265_v7  ;;  %v5735_v33 = vadd.f32 %v10416_v47, %v5216_v63  ;;  %v8890_v30 = vpop.f32.mrb[92].mxu1  ;;  %v3184_v28 = vpop.f32.mrb[93].mxu0 }
 0x19f   : > { %v5477_v4 = vadd.f32 %v10416_v47, %v4958_v46  ;;  %v5217_v10 = vmul.f32 %v10398_v45, %v8887_v14  ;;  %v4959_v11 = vmul.f32 %v10398_v45, %v3171_v59  ;;  %8993 = vmatmul.mubr.msk.bf16.gmra.mrb[196].mxu1 %vm2006_vm2, %v9266_v52  ;;  %v5991_v17 = vmax.f32 %v5479_v56, 0.0  ;;  %8740 = vmatprep.mubr.msk.bf16.mxu0 %vm2006_vm2, %v9267_v44  ;;  %v4208_v54 = vpop.f32.mrb[93].mxu1  ;;  %v8635_v37 = vpop.f32.mrb[94].mxu0 }
 0x1a0   : > { %v5733_v18 = vadd.f32 %v10416_v47, %v5214_v19  ;;  %v5480_v21 = vadd.f32 %v10416_v47, %v4961_v1  ;;  %v5215_v23 = vmul.f32 %v10398_v45, %v4195_v20  ;;  %8996 = vmatprep.mubr.msk.bf16.mxu1 %vm2006_vm2, %v9268_v16  ;;  %v6247_v25 = vmax.f32 %v5735_v33, 0.0  ;;  %v8891_v8 = vpop.f32.mrb[94].mxu1  ;;  %v3187_v62 = vpop.f32.mrb[95].mxu0 }
 0x1a1   : > { %v5989_v27 = vmax.f32 %v5477_v4, 0.0  ;;  %v5736_v22 = vadd.f32 %v10416_v47, %v5217_v10  ;;  %v5478_v24 = vadd.f32 %v10416_v47, %v4959_v11  ;;  %v4964_v26 = vmul.f32 %v10398_v45, %v8634_v35  ;;  %v4211_v15 = vpop.f32.mrb[95].mxu1 }
 0x1a2   : > { %v6245_v43 = vmax.f32 %v5733_v18, 0.0  ;;  %v5992_v36 = vmax.f32 %v5480_v21, 0.0  ;;  %v10509_v29 = vadd.f32 %v10416_v47, %v5215_v23  ;;  %v5220_v34 = vmul.f32 %v10398_v45, %v8890_v30 }
 0x1a3   : > { %v6248_v48 = vmax.f32 %v5736_v22, 0.0  ;;  %v5990_v31 = vmax.f32 %v5478_v24, 0.0  ;;  %v4962_v42 = vmul.f32 %v10398_v45, %v3184_v28  ;;  %v5483_v32 = vadd.f32 %v10416_v47, %v4964_v26  ;;  %v9273_v24 = vld [vmem:[%s9387_s24 + $0x338] sm:$0xff]  }
 0x1a4   : > { %v6246_v49 = vmax.f32 %v10509_v29, 0.0  ;;  %v5218_v58 = vmul.f32 %v10398_v45, %v4208_v54  ;;  %v4965_v5 = vmul.f32 %v10398_v45, %v8635_v37  ;;  %v5739_v6 = vadd.f32 %v10416_v47, %v5220_v34  ;;  %v9274_v28 = vld [vmem:[%s9387_s24 + $0x738] sm:$0xff]  }
 0x1a5   : > { %v5481_v7 = vadd.f32 %v10416_v47, %v4962_v42  ;;  %v5221_v39 = vmul.f32 %v10398_v45, %v8891_v8  ;;  %v4963_v12 = vmul.f32 %v10398_v45, %v3187_v62  ;;  %v5995_v51 = vmax.f32 %v5483_v32, 0.0  ;;  %v8638_v10 = vpop.f32.mrb[96].mxu0 }
 0x1a6   : > { %v5737_v52 = vadd.f32 %v10416_v47, %v5218_v58  ;;  %v5484_v9 = vadd.f32 %v10416_v47, %v4965_v5  ;;  %v5219_v13 = vmul.f32 %v10398_v45, %v4211_v15  ;;  %8741 = vmatmul.mubr.msk.bf16.gmra.mrb[200].mxu0 %vm2006_vm2, %v9269_v41  ;;  %v6251_v14 = vmax.f32 %v5739_v6, 0.0  ;;  %v8894_v22 = vpop.f32.mrb[96].mxu1 }
 0x1a7   : > { %v5993_v59 = vmax.f32 %v5481_v7, 0.0  ;;  %v5740_v44 = vadd.f32 %v10416_v47, %v5221_v39  ;;  %v5482_v16 = vadd.f32 %v10416_v47, %v4963_v12  ;;  %8997 = vmatmul.mubr.msk.bf16.gmra.mrb[200].mxu1 %vm2006_vm2, %v9270_v40  ;;  %8744 = vmatprep.mubr.msk.bf16.mxu0 %vm2006_vm2, %v9271_v57  ;;  %v6563_v63 = vmax.f32 %v5991_v17, %v5995_v51  ;;  %v3200_v17 = vpop.f32.mrb[97].mxu0  ;;  %v9276_v40 = vld [vmem:[%s9387_s24 + $0x740] sm:$0xff]  }
 0x1a8   : > { %v6249_v46 = vmax.f32 %v5737_v52, 0.0  ;;  %v5996_v20 = vmax.f32 %v5484_v9, 0.0  ;;  %v5738_v56 = vadd.f32 %v10416_v47, %v5219_v13  ;;  %9000 = vmatprep.mubr.msk.bf16.mxu1 %vm2006_vm2, %v9272_v53  ;;  %v6627_v19 = vmax.f32 %v6247_v25, %v6251_v14  ;;  %v8639_v30 = vpop.f32.mrb[98].mxu0 }
 0x1a9   : > { %v6561_v1 = vmax.f32 %v5989_v27, %v5993_v59  ;;  %v6252_v33 = vmax.f32 %v5740_v44, 0.0  ;;  %v5994_v4 = vmax.f32 %v5482_v16, 0.0  ;;  %v6691_v11 = vmax.f32 %v10468_v38, %v6563_v63  ;;  %v4224_v27 = vpop.f32.mrb[97].mxu1  ;;  %v3203_v42 = vpop.f32.mrb[99].mxu0  ;;  %v9277_v59 = vld [vmem:[%s9387_s24 + $0x348] sm:$0xff]  }
 0x1aa   : > { %v6625_v18 = vmax.f32 %v6245_v43, %v6249_v46  ;;  %v6564_v21 = vmax.f32 %v5992_v36, %v5996_v20  ;;  %v6250_v23 = vmax.f32 %v5738_v56, 0.0  ;;  %v6755_v35 = vmax.f32 %v10472_v50, %v6627_v19  ;;  %v8895_v34 = vpop.f32.mrb[98].mxu1  ;;  %v9275_v50 = vld [vmem:[%s9387_s24 + $0x340] sm:$0xff]   ;;  %v9278_v19 = vld [vmem:[%s9387_s24 + $0x748] sm:$0xff]  }
 0x1ab   : > { %v6689_v29 = vmax.f32 %v10474_v0, %v6561_v1  ;;  %v6628_v26 = vmax.f32 %v6248_v48, %v6252_v33  ;;  %v6562_v25 = vmax.f32 %v5990_v31, %v5994_v4  ;;  %v8172_v41 = vpack.c.bf16 %v6691_v11, %v6691_v11  ;;  %v4227_v37 = vpop.f32.mrb[99].mxu1 }
 0x1ac   : > { %v6753_v38 = vmax.f32 %v10477_v60, %v6625_v18  ;;  %v6692_v43 = vmax.f32 %v10479_v61, %v6564_v21  ;;  %v6626_v36 = vmax.f32 %v6246_v49, %v6250_v23  ;;  %v8236_v54 = vpack.c.bf16 %v6755_v35, %v6755_v35  ;;  %v9279_v21 = vld [vmem:[%s9387_s24 + $0x350] sm:$0xff]  }
 0x1ad   : > { %v8170_v0 = vpack.c.bf16 %v6689_v29, %v6689_v29  ;;  %v6756_v48 = vmax.f32 %v10484_v2, %v6628_v26  ;;  %v6690_v31 = vmax.f32 %v10486_v3, %v6562_v25  ;;  %7332 = vst.msk [vmem:[%s9776_s6 + $0x58] sm:$0xf] %vm7309_vm3, %v8172_v41  ;;  %v4968_v49 = vmul.f32 %v10398_v45, %v8638_v10  ;;  %v8642_v12 = vpop.f32.mrb[100].mxu0  ;;  %v9280_v23 = vld [vmem:[%s9387_s24 + $0x750] sm:$0xff]  }
 0x1ae   : > { %v8234_v60 = vpack.c.bf16 %v6753_v38, %v6753_v38  ;;  %v8173_v61 = vpack.c.bf16 %v6692_v43, %v6692_v43  ;;  %v6754_v57 = vmax.f32 %v10490_v55, %v6626_v36  ;;  %8745 = vmatmul.mubr.msk.bf16.gmra.mrb[204].mxu0 %vm2006_vm2, %v9273_v24  ;;  %7396 = vst.msk [vmem:[%s9776_s6 + $0x158] sm:$0xf] %vm7309_vm3, %v8236_v54  ;;  %v8898_v13 = vpop.f32.mrb[100].mxu1  ;;  %v3216_v14 = vpop.f32.mrb[101].mxu0 }
 0x1af   : > { %7330 = vst.msk [vmem:[%s9776_s6 + $0x50] sm:$0xf] %vm7309_vm3, %v8170_v0  ;;  %v8237_v2 = vpack.c.bf16 %v6756_v48, %v6756_v48  ;;  %v8171_v3 = vpack.c.bf16 %v6690_v31, %v6690_v31  ;;  %v5224_v32 = vmul.f32 %v10398_v45, %v8894_v22  ;;  %v4966_v58 = vmul.f32 %v10398_v45, %v3200_v17  ;;  %v4240_v20 = vpop.f32.mrb[101].mxu1  ;;  %v8643_v56 = vpop.f32.mrb[102].mxu0 }
 0x1b0   : > { %9001 = vmatmul.mubr.msk.bf16.gmra.mrb[204].mxu1 %vm2006_vm2, %v9274_v28  ;;  %7394 = vst.msk [vmem:[%s9776_s6 + $0x150] sm:$0xf] %vm7309_vm3, %v8234_v60  ;;  %7333 = vst.msk [vmem:[%s9776_s6 + $0x5c] sm:$0xf] %vm7309_vm3, %v8173_v61  ;;  %v8235_v55 = vpack.c.bf16 %v6754_v57, %v6754_v57  ;;  %v5487_v5 = vadd.f32 %v10416_v47, %v4968_v49  ;;  %v5222_v8 = vmul.f32 %v10398_v45, %v4224_v27  ;;  %v8899_v11 = vpop.f32.mrb[102].mxu1  ;;  %v3219_v18 = vpop.f32.mrb[103].mxu0 }
 0x1b1   : > { %v4969_v62 = vmul.f32 %v10398_v45, %v8639_v30  ;;  %8748 = vmatprep.mubr.msk.bf16.mxu0 %vm2006_vm2, %v9275_v50  ;;  %7397 = vst.msk [vmem:[%s9776_s6 + $0x15c] sm:$0xf] %vm7309_vm3, %v8237_v2  ;;  %7331 = vst.msk [vmem:[%s9776_s6 + $0x54] sm:$0xf] %vm7309_vm3, %v8171_v3  ;;  %v10572_v53 = vadd.f32 %v10416_v47, %v5224_v32  ;;  %v10575_v6 = vadd.f32 %v10416_v47, %v4966_v58  ;;  %v4243_v29 = vpop.f32.mrb[103].mxu1  ;;  %v9281_v3 = vld [vmem:[%s9387_s24 + $0x358] sm:$0xff]  }
 0x1b2   : > { %v5225_v7 = vmul.f32 %v10398_v45, %v8895_v34  ;;  %v4967_v39 = vmul.f32 %v10398_v45, %v3203_v42  ;;  %9004 = vmatprep.mubr.msk.bf16.mxu1 %vm2006_vm2, %v9276_v40  ;;  %7395 = vst.msk [vmem:[%s9776_s6 + $0x154] sm:$0xf] %vm7309_vm3, %v8235_v55  ;;  %v5999_v15 = vmax.f32 %v5487_v5, 0.0  ;;  %v5741_v51 = vadd.f32 %v10416_v47, %v5222_v8 }
 0x1b3   : > { %v5488_v52 = vadd.f32 %v10416_v47, %v4969_v62  ;;  %v5223_v9 = vmul.f32 %v10398_v45, %v4227_v37  ;;  %v6255_v44 = vmax.f32 %v10572_v53, 0.0  ;;  %v5997_v16 = vmax.f32 %v10575_v6, 0.0  ;;  %v9282_v53 = vld [vmem:[%s9387_s24 + $0x758] sm:$0xff]  }
 0x1b4   : > { %v5744_v63 = vadd.f32 %v10416_v47, %v5225_v7  ;;  %v5486_v46 = vadd.f32 %v10416_v47, %v4967_v39  ;;  %v6253_v1 = vmax.f32 %v5741_v51, 0.0  ;;  %v4972_v10 = vmul.f32 %v10398_v45, %v8642_v12 }
 0x1b5   : > { %v6000_v33 = vmax.f32 %v5488_v52, 0.0  ;;  %v5742_v4 = vadd.f32 %v10416_v47, %v5223_v9  ;;  %v5228_v24 = vmul.f32 %v10398_v45, %v8898_v13  ;;  %v4970_v35 = vmul.f32 %v10398_v45, %v3216_v14  ;;  %v8646_v37 = vpop.f32.mrb[104].mxu0  ;;  %v9283_v52 = vld [vmem:[%s9387_s24 + $0x360] sm:$0xff]  }
 0x1b6   : > { %v6256_v22 = vmax.f32 %v5744_v63, 0.0  ;;  %v5998_v17 = vmax.f32 %v5486_v46, 0.0  ;;  %v5491_v25 = vadd.f32 %v10416_v47, %v4972_v10  ;;  %v5226_v27 = vmul.f32 %v10398_v45, %v4240_v20  ;;  %8749 = vmatmul.mubr.msk.bf16.gmra.mrb[208].mxu0 %vm2006_vm2, %v9277_v59  ;;  %v8902_v49 = vpop.f32.mrb[104].mxu1  ;;  %v3232_v2 = vpop.f32.mrb[105].mxu0  ;;  %v9284_v9 = vld [vmem:[%s9387_s24 + $0x760] sm:$0xff]  }
 0x1b7   : > { %v6254_v26 = vmax.f32 %v5742_v4, 0.0  ;;  %v4973_v30 = vmul.f32 %v10398_v45, %v8643_v56  ;;  %v5747_v28 = vadd.f32 %v10416_v47, %v5228_v24  ;;  %v5489_v41 = vadd.f32 %v10416_v47, %v4970_v35  ;;  %8752 = vmatprep.mubr.msk.bf16.mxu0 %vm2006_vm2, %v9279_v21  ;;  %v4256_v8 = vpop.f32.mrb[105].mxu1  ;;  %v8647_v62 = vpop.f32.mrb[106].mxu0 }
 0x1b8   : > { %v5229_v38 = vmul.f32 %v10398_v45, %v8899_v11  ;;  %v4971_v43 = vmul.f32 %v10398_v45, %v3219_v18  ;;  %9005 = vmatmul.mubr.msk.bf16.gmra.mrb[208].mxu1 %vm2006_vm2, %v9278_v19  ;;  %v6003_v36 = vmax.f32 %v5491_v25, 0.0  ;;  %v5745_v34 = vadd.f32 %v10416_v47, %v5226_v27  ;;  %v3235_v51 = vpop.f32.mrb[107].mxu0 }
 0x1b9   : > { %v5492_v42 = vadd.f32 %v10416_v47, %v4973_v30  ;;  %v5227_v50 = vmul.f32 %v10398_v45, %v4243_v29  ;;  %9008 = vmatprep.mubr.msk.bf16.mxu1 %vm2006_vm2, %v9280_v23  ;;  %v6259_v54 = vmax.f32 %v5747_v28, 0.0  ;;  %v6001_v0 = vmax.f32 %v5489_v41, 0.0  ;;  %v9285_v41 = vld [vmem:[%s9387_s24 + $0x368] sm:$0xff]  }
 0x1ba   : > { %v5748_v48 = vadd.f32 %v10416_v47, %v5229_v38  ;;  %v5490_v31 = vadd.f32 %v10416_v47, %v4971_v43  ;;  %v10613_v40 = vmax.f32 %v5999_v15, %v6003_v36  ;;  %v6257_v60 = vmax.f32 %v5745_v34, 0.0  ;;  %v8903_v15 = vpop.f32.mrb[106].mxu1 }
 0x1bb   : > { %v6004_v61 = vmax.f32 %v5492_v42, 0.0  ;;  %v5746_v57 = vadd.f32 %v10416_v47, %v5227_v50  ;;  %v10617_v32 = vmax.f32 %v6255_v44, %v6259_v54  ;;  %v10619_v58 = vmax.f32 %v5997_v16, %v6001_v0  ;;  %v4259_v16 = vpop.f32.mrb[107].mxu1  ;;  %v9286_v54 = vld [vmem:[%s9387_s24 + $0x768] sm:$0xff]   ;;  %v9287_v0 = vld [vmem:[%s9387_s24 + $0x370] sm:$0xff]  }
 0x1bc   : > { %v6260_v55 = vmax.f32 %v5748_v48, 0.0  ;;  %v6002_v5 = vmax.f32 %v5490_v31, 0.0  ;;  %v10622_v6 = vmax.f32 %v6253_v1, %v6257_v60  ;;  %v4976_v12 = vmul.f32 %v10398_v45, %v8646_v37 }
 0x1bd   : > { %v10624_v7 = vmax.f32 %v6000_v33, %v6004_v61  ;;  %v6258_v39 = vmax.f32 %v5746_v57, 0.0  ;;  %v5232_v59 = vmul.f32 %v10398_v45, %v8902_v49  ;;  %v4974_v44 = vmul.f32 %v10398_v45, %v3232_v2  ;;  %v8650_v35 = vpop.f32.mrb[108].mxu0  ;;  %v9288_v49 = vld [vmem:[%s9387_s24 + $0x770] sm:$0xff]  }
 0x1be   : > { %v10629_v13 = vmax.f32 %v6256_v22, %v6260_v55  ;;  %v10631_v14 = vmax.f32 %v5998_v17, %v6002_v5  ;;  %v5495_v46 = vadd.f32 %v10416_v47, %v4976_v12  ;;  %v5230_v20 = vmul.f32 %v10398_v45, %v4256_v8  ;;  %8753 = vmatmul.mubr.msk.bf16.gmra.mrb[212].mxu0 %vm2006_vm2, %v9281_v3  ;;  %v8906_v30 = vpop.f32.mrb[108].mxu1  ;;  %v3248_v28 = vpop.f32.mrb[109].mxu0 }
 0x1bf   : > { %v10635_v63 = vmax.f32 %v6254_v26, %v6258_v39  ;;  %v4977_v56 = vmul.f32 %v10398_v45, %v8647_v62  ;;  %v5751_v19 = vadd.f32 %v10416_v47, %v5232_v59  ;;  %v5493_v1 = vadd.f32 %v10416_v47, %v4974_v44  ;;  %8756 = vmatprep.mubr.msk.bf16.mxu0 %vm2006_vm2, %v9283_v52  ;;  %v4272_v42 = vpop.f32.mrb[109].mxu1  ;;  %v8651_v50 = vpop.f32.mrb[110].mxu0 }
 0x1c0   : > { %v5233_v33 = vmul.f32 %v10398_v45, %v8903_v15  ;;  %v4975_v4 = vmul.f32 %v10398_v45, %v3235_v51  ;;  %9009 = vmatmul.mubr.msk.bf16.gmra.mrb[212].mxu1 %vm2006_vm2, %v9282_v53  ;;  %v6007_v10 = vmax.f32 %v5495_v46, 0.0  ;;  %v5749_v11 = vadd.f32 %v10416_v47, %v5230_v20  ;;  %v8907_v61 = vpop.f32.mrb[110].mxu1  ;;  %v3251_v57 = vpop.f32.mrb[111].mxu0 }
 0x1c1   : > { %v5496_v18 = vadd.f32 %v10416_v47, %v4977_v56  ;;  %v5231_v21 = vmul.f32 %v10398_v45, %v4259_v16  ;;  %9012 = vmatprep.mubr.msk.bf16.mxu1 %vm2006_vm2, %v9284_v9  ;;  %v6263_v23 = vmax.f32 %v5751_v19, 0.0  ;;  %v6005_v22 = vmax.f32 %v5493_v1, 0.0  ;;  %v4275_v8 = vpop.f32.mrb[111].mxu1 }
 0x1c2   : > { %v5752_v17 = vadd.f32 %v10416_v47, %v5233_v33  ;;  %v5494_v24 = vadd.f32 %v10416_v47, %v4975_v4  ;;  %v6261_v29 = vmax.f32 %v5749_v11, 0.0  ;;  %v4980_v27 = vmul.f32 %v10398_v45, %v8650_v35 }
 0x1c3   : > { %v6008_v26 = vmax.f32 %v5496_v18, 0.0  ;;  %v10654_v25 = vadd.f32 %v10416_v47, %v5231_v21  ;;  %v5236_v36 = vmul.f32 %v10398_v45, %v8906_v30  ;;  %v4978_v34 = vmul.f32 %v10398_v45, %v3248_v28  ;;  %v9290_v28 = vld [vmem:[%s9387_s24 + $0x778] sm:$0xff]  }
 0x1c4   : > { %v6264_v38 = vmax.f32 %v5752_v17, 0.0  ;;  %v6006_v43 = vmax.f32 %v5494_v24, 0.0  ;;  %v5499_v31 = vadd.f32 %v10416_v47, %v4980_v27  ;;  %v5234_v37 = vmul.f32 %v10398_v45, %v4272_v42  ;;  %v9289_v24 = vld [vmem:[%s9387_s24 + $0x378] sm:$0xff]  }
 0x1c5   : > { %v6262_v48 = vmax.f32 %v10654_v25, 0.0  ;;  %v4981_v60 = vmul.f32 %v10398_v45, %v8651_v50  ;;  %v5755_v2 = vadd.f32 %v10416_v47, %v5236_v36  ;;  %v5497_v3 = vadd.f32 %v10416_v47, %v4978_v34  ;;  %v8654_v33 = vpop.f32.mrb[112].mxu0 }
 0x1c6   : > { %v5237_v55 = vmul.f32 %v10398_v45, %v8907_v61  ;;  %v4979_v5 = vmul.f32 %v10398_v45, %v3251_v57  ;;  %v6011_v62 = vmax.f32 %v5499_v31, 0.0  ;;  %v5753_v53 = vadd.f32 %v10416_v47, %v5234_v37  ;;  %8757 = vmatmul.mubr.msk.bf16.gmra.mrb[216].mxu0 %vm2006_vm2, %v9285_v41  ;;  %v8910_v17 = vpop.f32.mrb[112].mxu1 }
 0x1c7   : > { %v5500_v39 = vadd.f32 %v10416_v47, %v4981_v60  ;;  %v5235_v12 = vmul.f32 %v10398_v45, %v4275_v8  ;;  %v6267_v15 = vmax.f32 %v5755_v2, 0.0  ;;  %v6009_v51 = vmax.f32 %v5497_v3, 0.0  ;;  %8760 = vmatprep.mubr.msk.bf16.mxu0 %vm2006_vm2, %v9287_v0 }
 0x1c8   : > { %v5756_v52 = vadd.f32 %v10416_v47, %v5237_v55  ;;  %v5498_v9 = vadd.f32 %v10416_v47, %v4979_v5  ;;  %9013 = vmatmul.mubr.msk.bf16.gmra.mrb[216].mxu1 %vm2006_vm2, %v9286_v54  ;;  %v6567_v59 = vmax.f32 %v6007_v10, %v6011_v62  ;;  %v6265_v44 = vmax.f32 %v5753_v53, 0.0  ;;  %v3264_v10 = vpop.f32.mrb[113].mxu0  ;;  %v9292_v54 = vld [vmem:[%s9387_s24 + $0x780] sm:$0xff]  }
 0x1c9   : > { %v6012_v16 = vmax.f32 %v5500_v39, 0.0  ;;  %v5754_v46 = vadd.f32 %v10416_v47, %v5235_v12  ;;  %9016 = vmatprep.mubr.msk.bf16.mxu1 %vm2006_vm2, %v9288_v49  ;;  %v6631_v20 = vmax.f32 %v6263_v23, %v6267_v15  ;;  %v6565_v56 = vmax.f32 %v6005_v22, %v6009_v51  ;;  %v4288_v22 = vpop.f32.mrb[113].mxu1  ;;  %v8655_v30 = vpop.f32.mrb[114].mxu0  ;;  %v9293_v51 = vld [vmem:[%s9387_s24 + $0x388] sm:$0xff]  }
 0x1ca   : > { %v6268_v19 = vmax.f32 %v5756_v52, 0.0  ;;  %v6010_v1 = vmax.f32 %v5498_v9, 0.0  ;;  %v6695_v4 = vmax.f32 %v10613_v40, %v6567_v59  ;;  %v6629_v11 = vmax.f32 %v6261_v29, %v6265_v44  ;;  %v8911_v36 = vpop.f32.mrb[114].mxu1  ;;  %v3267_v34 = vpop.f32.mrb[115].mxu0 }
 0x1cb   : > { %v6568_v18 = vmax.f32 %v6008_v26, %v6012_v16  ;;  %v6266_v21 = vmax.f32 %v5754_v46, 0.0  ;;  %v6759_v35 = vmax.f32 %v10617_v32, %v6631_v20  ;;  %v6693_v25 = vmax.f32 %v10619_v58, %v6565_v56  ;;  %v9291_v32 = vld [vmem:[%s9387_s24 + $0x380] sm:$0xff]   ;;  %v4291_v50 = vpop.f32.mrb[115].mxu1  ;;  %v9294_v20 = vld [vmem:[%s9387_s24 + $0x788] sm:$0xff]  }
 0x1cc   : > { %v6632_v27 = vmax.f32 %v6264_v38, %v6268_v19  ;;  %v6566_v23 = vmax.f32 %v6006_v43, %v6010_v1  ;;  %v8176_v41 = vpack.c.bf16 %v6695_v4, %v6695_v4  ;;  %v6757_v40 = vmax.f32 %v10622_v6, %v6629_v11 }
 0x1cd   : > { %v6696_v29 = vmax.f32 %v10624_v7, %v6568_v18  ;;  %v6630_v26 = vmax.f32 %v6262_v48, %v6266_v21  ;;  %v8240_v42 = vpack.c.bf16 %v6759_v35, %v6759_v35  ;;  %v8174_v58 = vpack.c.bf16 %v6693_v25, %v6693_v25  ;;  %v8658_v5 = vpop.f32.mrb[116].mxu0  ;;  %v9295_v18 = vld [vmem:[%s9387_s24 + $0x390] sm:$0xff]  }
 0x1ce   : > { %v6760_v38 = vmax.f32 %v10629_v13, %v6632_v27  ;;  %v6694_v43 = vmax.f32 %v10631_v14, %v6566_v23  ;;  %7336 = vst.msk [vmem:[%s9776_s6 + $0x68] sm:$0xf] %vm7309_vm3, %v8176_v41  ;;  %v8238_v6 = vpack.c.bf16 %v6757_v40, %v6757_v40  ;;  %v4984_v48 = vmul.f32 %v10398_v45, %v8654_v33  ;;  %v8914_v12 = vpop.f32.mrb[116].mxu1  ;;  %v3280_v15 = vpop.f32.mrb[117].mxu0  ;;  %v9296_v21 = vld [vmem:[%s9387_s24 + $0x790] sm:$0xff]  }
 0x1cf   : > { %v8177_v7 = vpack.c.bf16 %v6696_v29, %v6696_v29  ;;  %v6758_v0 = vmax.f32 %v10635_v63, %v6630_v26  ;;  %8761 = vmatmul.mubr.msk.bf16.gmra.mrb[220].mxu0 %vm2006_vm2, %v9289_v24  ;;  %7400 = vst.msk [vmem:[%s9776_s6 + $0x168] sm:$0xf] %vm7309_vm3, %v8240_v42  ;;  %7334 = vst.msk [vmem:[%s9776_s6 + $0x60] sm:$0xf] %vm7309_vm3, %v8174_v58  ;;  %v5240_v31 = vmul.f32 %v10398_v45, %v8910_v17  ;;  %v4304_v16 = vpop.f32.mrb[117].mxu1  ;;  %v8659_v46 = vpop.f32.mrb[118].mxu0 }
 0x1d0   : > { %v8241_v13 = vpack.c.bf16 %v6760_v38, %v6760_v38  ;;  %v8175_v14 = vpack.c.bf16 %v6694_v43, %v6694_v43  ;;  %v4982_v37 = vmul.f32 %v10398_v45, %v3264_v10  ;;  %9017 = vmatmul.mubr.msk.bf16.gmra.mrb[220].mxu1 %vm2006_vm2, %v9290_v28  ;;  %7398 = vst.msk [vmem:[%s9776_s6 + $0x160] sm:$0xf] %vm7309_vm3, %v8238_v6  ;;  %v8915_v4 = vpop.f32.mrb[118].mxu1  ;;  %v3283_v11 = vpop.f32.mrb[119].mxu0 }
 0x1d1   : > { %7337 = vst.msk [vmem:[%s9776_s6 + $0x6c] sm:$0xf] %vm7309_vm3, %v8177_v7  ;;  %v8239_v63 = vpack.c.bf16 %v6758_v0, %v6758_v0  ;;  %v5503_v60 = vadd.f32 %v10416_v47, %v4984_v48  ;;  %v5238_v61 = vmul.f32 %v10398_v45, %v4288_v22  ;;  %v4985_v57 = vmul.f32 %v10398_v45, %v8655_v30  ;;  %v4307_v25 = vpop.f32.mrb[119].mxu1 }
 0x1d2   : > { %8764 = vmatprep.mubr.msk.bf16.mxu0 %vm2006_vm2, %v9291_v32  ;;  %7401 = vst.msk [vmem:[%s9776_s6 + $0x16c] sm:$0xf] %vm7309_vm3, %v8241_v13  ;;  %7335 = vst.msk [vmem:[%s9776_s6 + $0x64] sm:$0xf] %vm7309_vm3, %v8175_v14  ;;  %v10717_v49 = vadd.f32 %v10416_v47, %v5240_v31  ;;  %v10720_v2 = vadd.f32 %v10416_v47, %v4982_v37  ;;  %v5241_v3 = vmul.f32 %v10398_v45, %v8911_v36  ;;  %v9297_v14 = vld [vmem:[%s9387_s24 + $0x398] sm:$0xff]  }
 0x1d3   : > { %v4983_v55 = vmul.f32 %v10398_v45, %v3267_v34  ;;  %9020 = vmatprep.mubr.msk.bf16.mxu1 %vm2006_vm2, %v9292_v54  ;;  %7399 = vst.msk [vmem:[%s9776_s6 + $0x164] sm:$0xf] %vm7309_vm3, %v8239_v63  ;;  %v6015_v8 = vmax.f32 %v5503_v60, 0.0  ;;  %v5757_v62 = vadd.f32 %v10416_v47, %v5238_v61  ;;  %v5504_v53 = vadd.f32 %v10416_v47, %v4985_v57 }
 0x1d4   : > { %v5239_v39 = vmul.f32 %v10398_v45, %v4291_v50  ;;  %v6271_v52 = vmax.f32 %v10717_v49, 0.0  ;;  %v6013_v9 = vmax.f32 %v10720_v2, 0.0  ;;  %v5760_v59 = vadd.f32 %v10416_v47, %v5241_v3  ;;  %v9298_v49 = vld [vmem:[%s9387_s24 + $0x798] sm:$0xff]  }
 0x1d5   : > { %v5502_v44 = vadd.f32 %v10416_v47, %v4983_v55  ;;  %v6269_v56 = vmax.f32 %v5757_v62, 0.0  ;;  %v6016_v19 = vmax.f32 %v5504_v53, 0.0  ;;  %v4988_v33 = vmul.f32 %v10398_v45, %v8658_v5  ;;  %v8662_v50 = vpop.f32.mrb[120].mxu0  ;;  %v9299_v53 = vld [vmem:[%s9387_s24 + $0x3a0] sm:$0xff]  }
 0x1d6   : > { %v5758_v1 = vadd.f32 %v10416_v47, %v5239_v39  ;;  %v6272_v17 = vmax.f32 %v5760_v59, 0.0  ;;  %v5244_v24 = vmul.f32 %v10398_v45, %v8914_v12  ;;  %v4986_v35 = vmul.f32 %v10398_v45, %v3280_v15  ;;  %v8918_v48 = vpop.f32.mrb[120].mxu1  ;;  %v3296_v13 = vpop.f32.mrb[121].mxu0  ;;  %v9300_v39 = vld [vmem:[%s9387_s24 + $0x7a0] sm:$0xff]  }
 0x1d7   : > { %v6014_v10 = vmax.f32 %v5502_v44, 0.0  ;;  %v5507_v23 = vadd.f32 %v10416_v47, %v4988_v33  ;;  %v5242_v22 = vmul.f32 %v10398_v45, %v4304_v16  ;;  %v4989_v30 = vmul.f32 %v10398_v45, %v8659_v46  ;;  %8765 = vmatmul.mubr.msk.bf16.gmra.mrb[224].mxu0 %vm2006_vm2, %v9293_v51  ;;  %v4320_v61 = vpop.f32.mrb[121].mxu1  ;;  %v8663_v57 = vpop.f32.mrb[122].mxu0 }
 0x1d8   : > { %v6270_v27 = vmax.f32 %v5758_v1, 0.0  ;;  %v5763_v28 = vadd.f32 %v10416_v47, %v5244_v24  ;;  %v5505_v41 = vadd.f32 %v10416_v47, %v4986_v35  ;;  %v5245_v40 = vmul.f32 %v10398_v45, %v8915_v4  ;;  %9021 = vmatmul.mubr.msk.bf16.gmra.mrb[224].mxu1 %vm2006_vm2, %v9294_v20  ;;  %8768 = vmatprep.mubr.msk.bf16.mxu0 %vm2006_vm2, %v9295_v18  ;;  %v3299_v62 = vpop.f32.mrb[123].mxu0  ;;  %v10796_v18 = vld [vmem:[%s11762_s2] ss:$0 sm:$0xff] }
 0x1d9   : > { %v4987_v29 = vmul.f32 %v10398_v45, %v3283_v11  ;;  %v6019_v26 = vmax.f32 %v5507_v23, 0.0  ;;  %v5761_v36 = vadd.f32 %v10416_v47, %v5242_v22  ;;  %v5508_v34 = vadd.f32 %v10416_v47, %v4989_v30  ;;  %9024 = vmatprep.mubr.msk.bf16.mxu1 %vm2006_vm2, %v9296_v21 }
 0x1da   : > { %v5243_v32 = vmul.f32 %v10398_v45, %v4307_v25  ;;  %v6275_v42 = vmax.f32 %v5763_v28, 0.0  ;;  %v6017_v58 = vmax.f32 %v5505_v41, 0.0  ;;  %v5764_v38 = vadd.f32 %v10416_v47, %v5245_v40  ;;  %v9301_v41 = vld [vmem:[%s9387_s24 + $0x3a8] sm:$0xff]  }
 0x1db   : > { %v5506_v43 = vadd.f32 %v10416_v47, %v4987_v29  ;;  %v10758_v54 = vmax.f32 %v6015_v8, %v6019_v26  ;;  %v6273_v6 = vmax.f32 %v5761_v36, 0.0  ;;  %v6020_v7 = vmax.f32 %v5508_v34, 0.0  ;;  %v8919_v8 = vpop.f32.mrb[122].mxu1 }
 0x1dc   : > { %v5762_v0 = vadd.f32 %v10416_v47, %v5243_v32  ;;  %v10762_v31 = vmax.f32 %v6271_v52, %v6275_v42  ;;  %v10764_v37 = vmax.f32 %v6013_v9, %v6017_v58  ;;  %v6276_v63 = vmax.f32 %v5764_v38, 0.0  ;;  %v4323_v9 = vpop.f32.mrb[123].mxu1  ;;  %v9302_v42 = vld [vmem:[%s9387_s24 + $0x7a8] sm:$0xff]   ;;  %v9303_v58 = vld [vmem:[%s9387_s24 + $0x3b0] sm:$0xff]  }
 0x1dd   : > { %v6018_v60 = vmax.f32 %v5506_v43, 0.0  ;;  %v10767_v2 = vmax.f32 %v6269_v56, %v6273_v6  ;;  %v10769_v3 = vmax.f32 %v6016_v19, %v6020_v7  ;;  %v4992_v5 = vmul.f32 %v10398_v45, %v8662_v50 }
 0x1de   : > { %v6274_v55 = vmax.f32 %v5762_v0, 0.0  ;;  %v10774_v12 = vmax.f32 %v6272_v17, %v6276_v63  ;;  %v5248_v51 = vmul.f32 %v10398_v45, %v8918_v48  ;;  %v4990_v52 = vmul.f32 %v10398_v45, %v3296_v13  ;;  %v8666_v35 = vpop.f32.mrb[124].mxu0  ;;  %v9304_v48 = vld [vmem:[%s9387_s24 + $0x7b0] sm:$0xff]  }
 0x1df   : > { %v10776_v15 = vmax.f32 %v6014_v10, %v6018_v60  ;;  %v5511_v44 = vadd.f32 %v10416_v47, %v4992_v5  ;;  %v5246_v16 = vmul.f32 %v10398_v45, %v4320_v61  ;;  %v4993_v46 = vmul.f32 %v10398_v45, %v8663_v57  ;;  %8769 = vmatmul.mubr.msk.bf16.gmra.mrb[228].mxu0 %vm2006_vm2, %v9297_v14  ;;  %v8922_v30 = vpop.f32.mrb[124].mxu1  ;;  %v3312_v28 = vpop.f32.mrb[125].mxu0 }
 0x1e0   : > { %v10780_v59 = vmax.f32 %v6270_v27, %v6274_v55  ;;  %v5767_v20 = vadd.f32 %v10416_v47, %v5248_v51  ;;  %v5509_v56 = vadd.f32 %v10416_v47, %v4990_v52  ;;  %v5249_v19 = vmul.f32 %v10398_v45, %v8919_v8  ;;  %9025 = vmatmul.mubr.msk.bf16.gmra.mrb[228].mxu1 %vm2006_vm2, %v9298_v49  ;;  %v4336_v34 = vpop.f32.mrb[125].mxu1  ;;  %v8667_v32 = vpop.f32.mrb[126].mxu0 }
 0x1e1   : > { %v4991_v1 = vmul.f32 %v10398_v45, %v3299_v62  ;;  %v6023_v33 = vmax.f32 %v5511_v44, 0.0  ;;  %v5765_v4 = vadd.f32 %v10416_v47, %v5246_v16  ;;  %v5512_v11 = vadd.f32 %v10416_v47, %v4993_v46  ;;  %8772 = vmatprep.mubr.msk.bf16.mxu0 %vm2006_vm2, %v9299_v53  ;;  %9028 = vmatprep.mubr.msk.bf16.mxu1 %vm2006_vm2, %v9300_v39  ;;  %v8923_v7 = vpop.f32.mrb[126].mxu1  ;;  %v3315_v0 = vpop.f32.mrb[127].mxu0 }
 0x1e2   : > { %v5247_v21 = vmul.f32 %v10796_v18, %v4323_v9  ;;  %v6279_v45 = vmax.f32 %v5767_v20, 0.0  ;;  %v6021_v17 = vmax.f32 %v5509_v56, 0.0  ;;  %v5768_v10 = vadd.f32 %v10416_v47, %v5249_v19  ;;  %v4339_v61 = vpop.f32.mrb[127].mxu1 }
 0x1e3   : > { %v5510_v24 = vadd.f32 %v10416_v47, %v4991_v1  ;;  %v6277_v25 = vmax.f32 %v5765_v4, 0.0  ;;  %v6024_v27 = vmax.f32 %v5512_v11, 0.0  ;;  %v4996_v22 = vmul.f32 %v10796_v18, %v8666_v35 }
 0x1e4   : > { %v10804_v23 = vadd.f32 %v10416_v47, %v5247_v21  ;;  %v6280_v40 = vmax.f32 %v5768_v10, 0.0  ;;  %v5252_v26 = vmul.f32 %v10796_v18, %v8922_v30  ;;  %v4994_v36 = vmul.f32 %v10796_v18, %v3312_v28  ;;  %v10816_v47 = vld [vmem:[%s11763_s3] ss:$0 sm:$0xff]  ;;  %v9306_v28 = vld [vmem:[%s9387_s24 + $0x7b8] sm:$0xff]  }
 0x1e5   : > { %v6022_v29 = vmax.f32 %v5510_v24, 0.0  ;;  %v5515_v43 = vadd.f32 %v10816_v47, %v4996_v22  ;;  %v5250_v50 = vmul.f32 %v10796_v18, %v4336_v34  ;;  %v4997_v6 = vmul.f32 %v10796_v18, %v8667_v32  ;;  %v9305_v24 = vld [vmem:[%s9387_s24 + $0x3b8] sm:$0xff]  }
 0x1e6   : > { %v6278_v38 = vmax.f32 %v10804_v23, 0.0  ;;  %v5771_v13 = vadd.f32 %v10816_v47, %v5252_v26  ;;  %v5513_v14 = vadd.f32 %v10816_v47, %v4994_v36  ;;  %v5253_v63 = vmul.f32 %v10796_v18, %v8923_v7  ;;  %v8670_v19 = vpop.f32.mrb[128].mxu0 }
 0x1e7   : > { %v4995_v60 = vmul.f32 %v10796_v18, %v3315_v0  ;;  %v6027_v57 = vmax.f32 %v5515_v43, 0.0  ;;  %v5769_v49 = vadd.f32 %v10816_v47, %v5250_v50  ;;  %v5516_v55 = vadd.f32 %v10816_v47, %v4997_v6  ;;  %8773 = vmatmul.mubr.msk.bf16.gmra.mrb[232].mxu0 %vm2006_vm2, %v9301_v41  ;;  %v8926_v10 = vpop.f32.mrb[128].mxu1 }
 0x1e8   : > { %v5251_v5 = vmul.f32 %v10796_v18, %v4339_v61  ;;  %v6283_v8 = vmax.f32 %v5771_v13, 0.0  ;;  %v6025_v62 = vmax.f32 %v5513_v14, 0.0  ;;  %v5772_v53 = vadd.f32 %v10816_v47, %v5253_v63  ;;  %9029 = vmatmul.mubr.msk.bf16.gmra.mrb[232].mxu1 %vm2006_vm2, %v9302_v42  ;;  %8776 = vmatprep.mubr.msk.bf16.mxu0 %vm2006_vm2, %v9303_v58  ;;  %v9308_v42 = vld [vmem:[%s9387_s24 + $0x7c0] sm:$0xff]  }
 0x1e9   : > { %v5514_v39 = vadd.f32 %v10816_v47, %v4995_v60  ;;  %v6571_v51 = vmax.f32 %v6023_v33, %v6027_v57  ;;  %v6281_v52 = vmax.f32 %v5769_v49, 0.0  ;;  %v6028_v9 = vmax.f32 %v5516_v55, 0.0  ;;  %9032 = vmatprep.mubr.msk.bf16.mxu1 %vm2006_vm2, %v9304_v48  ;;  %v3328_v33 = vpop.f32.mrb[129].mxu0 }
 0x1ea   : > { %v5770_v44 = vadd.f32 %v10816_v47, %v5251_v5  ;;  %v6635_v16 = vmax.f32 %v6279_v45, %v6283_v8  ;;  %v6569_v46 = vmax.f32 %v6021_v17, %v6025_v62  ;;  %v6284_v20 = vmax.f32 %v5772_v53, 0.0  ;;  %v4352_v17 = vpop.f32.mrb[129].mxu1  ;;  %v8671_v30 = vpop.f32.mrb[130].mxu0  ;;  %v9309_v62 = vld [vmem:[%s9387_s24 + $0x3c8] sm:$0xff]  }
 0x1eb   : > { %v6026_v56 = vmax.f32 %v5514_v39, 0.0  ;;  %v6699_v1 = vmax.f32 %v10758_v54, %v6571_v51  ;;  %v6633_v4 = vmax.f32 %v6277_v25, %v6281_v52  ;;  %v6572_v11 = vmax.f32 %v6024_v27, %v6028_v9  ;;  %v8927_v26 = vpop.f32.mrb[130].mxu1  ;;  %v3331_v36 = vpop.f32.mrb[131].mxu0 }
 0x1ec   : > { %v6282_v21 = vmax.f32 %v5770_v44, 0.0  ;;  %v6763_v35 = vmax.f32 %v10762_v31, %v6635_v16  ;;  %v6697_v23 = vmax.f32 %v10764_v37, %v6569_v46  ;;  %v6636_v22 = vmax.f32 %v6280_v40, %v6284_v20  ;;  %v9307_v31 = vld [vmem:[%s9387_s24 + $0x3c0] sm:$0xff]   ;;  %v4355_v32 = vpop.f32.mrb[131].mxu1  ;;  %v9310_v16 = vld [vmem:[%s9387_s24 + $0x7c8] sm:$0xff]  }
 0x1ed   : > { %v6570_v45 = vmax.f32 %v6022_v29, %v6026_v56  ;;  %v8180_v41 = vpack.c.bf16 %v6699_v1, %v6699_v1  ;;  %v6761_v54 = vmax.f32 %v10767_v2, %v6633_v4  ;;  %v6700_v25 = vmax.f32 %v10769_v3, %v6572_v11  ;;  %v9311_v11 = vld [vmem:[%s9387_s24 + $0x3d0] sm:$0xff]  }
 0x1ee   : > { %v6634_v27 = vmax.f32 %v6278_v38, %v6282_v21  ;;  %v8244_v34 = vpack.c.bf16 %v6763_v35, %v6763_v35  ;;  %v8178_v37 = vpack.c.bf16 %v6697_v23, %v6697_v23  ;;  %v6764_v40 = vmax.f32 %v10774_v12, %v6636_v22  ;;  %v8674_v60 = vpop.f32.mrb[132].mxu0  ;;  %v9312_v21 = vld [vmem:[%s9387_s24 + $0x7d0] sm:$0xff]  }
 0x1ef   : > { %v6698_v29 = vmax.f32 %v10776_v15, %v6570_v45  ;;  %7340 = vst.msk [vmem:[%s9776_s6 + $0x78] sm:$0xf] %vm7309_vm3, %v8180_v41  ;;  %v8242_v2 = vpack.c.bf16 %v6761_v54, %v6761_v54  ;;  %v8181_v3 = vpack.c.bf16 %v6700_v25, %v6700_v25  ;;  %v5000_v38 = vmul.f32 %v10796_v18, %v8670_v19  ;;  %v8930_v5 = vpop.f32.mrb[132].mxu1  ;;  %v3344_v8 = vpop.f32.mrb[133].mxu0 }
 0x1f0   : > { %v6762_v58 = vmax.f32 %v10780_v59, %v6634_v27  ;;  %8777 = vmatmul.mubr.msk.bf16.gmra.mrb[236].mxu0 %vm2006_vm2, %v9305_v24  ;;  %7404 = vst.msk [vmem:[%s9776_s6 + $0x178] sm:$0xf] %vm7309_vm3, %v8244_v34  ;;  %7338 = vst.msk [vmem:[%s9776_s6 + $0x70] sm:$0xf] %vm7309_vm3, %v8178_v37  ;;  %v8245_v12 = vpack.c.bf16 %v6764_v40, %v6764_v40  ;;  %v5256_v43 = vmul.f32 %v10796_v18, %v8926_v10  ;;  %v4368_v9 = vpop.f32.mrb[133].mxu1  ;;  %v8675_v44 = vpop.f32.mrb[134].mxu0 }
 0x1f1   : > { %v8179_v15 = vpack.c.bf16 %v6698_v29, %v6698_v29  ;;  %v4998_v50 = vmul.f32 %v10796_v18, %v3328_v33  ;;  %9033 = vmatmul.mubr.msk.bf16.gmra.mrb[236].mxu1 %vm2006_vm2, %v9306_v28  ;;  %7402 = vst.msk [vmem:[%s9776_s6 + $0x170] sm:$0xf] %vm7309_vm3, %v8242_v2  ;;  %7341 = vst.msk [vmem:[%s9776_s6 + $0x7c] sm:$0xf] %vm7309_vm3, %v8181_v3  ;;  %v5519_v6 = vadd.f32 %v10816_v47, %v5000_v38  ;;  %v8931_v1 = vpop.f32.mrb[134].mxu1  ;;  %v3347_v4 = vpop.f32.mrb[135].mxu0 }
 0x1f2   : > { %v8243_v59 = vpack.c.bf16 %v6762_v58, %v6762_v58  ;;  %v5254_v7 = vmul.f32 %v10796_v18, %v4352_v17  ;;  %v5001_v0 = vmul.f32 %v10796_v18, %v8671_v30  ;;  %8780 = vmatprep.mubr.msk.bf16.mxu0 %vm2006_vm2, %v9307_v31  ;;  %7405 = vst.msk [vmem:[%s9776_s6 + $0x17c] sm:$0xf] %vm7309_vm3, %v8245_v12  ;;  %v4371_v23 = vpop.f32.mrb[135].mxu1 }
 0x1f3   : > { %7339 = vst.msk [vmem:[%s9776_s6 + $0x74] sm:$0xf] %vm7309_vm3, %v8179_v15  ;;  %v10872_v48 = vadd.f32 %v10816_v47, %v5256_v43  ;;  %v10875_v13 = vadd.f32 %v10816_v47, %v4998_v50  ;;  %v5257_v14 = vmul.f32 %v10796_v18, %v8927_v26  ;;  %v4999_v63 = vmul.f32 %v10796_v18, %v3331_v36  ;;  %v9313_v15 = vld [vmem:[%s9387_s24 + $0x3d8] sm:$0xff]  }
 0x1f4   : > { %9036 = vmatprep.mubr.msk.bf16.mxu1 %vm2006_vm2, %v9308_v42  ;;  %7403 = vst.msk [vmem:[%s9776_s6 + $0x174] sm:$0xf] %vm7309_vm3, %v8243_v59  ;;  %v6031_v61 = vmax.f32 %v5519_v6, 0.0  ;;  %v5773_v57 = vadd.f32 %v10816_v47, %v5254_v7  ;;  %v5520_v49 = vadd.f32 %v10816_v47, %v5001_v0  ;;  %v5255_v55 = vmul.f32 %v10796_v18, %v4355_v32 }
 0x1f5   : > { %v6287_v53 = vmax.f32 %v10872_v48, 0.0  ;;  %v6029_v39 = vmax.f32 %v10875_v13, 0.0  ;;  %v5776_v51 = vadd.f32 %v10816_v47, %v5257_v14  ;;  %v5518_v52 = vadd.f32 %v10816_v47, %v4999_v63  ;;  %v9314_v48 = vld [vmem:[%s9387_s24 + $0x7d8] sm:$0xff]  }
 0x1f6   : > { %v6285_v46 = vmax.f32 %v5773_v57, 0.0  ;;  %v6032_v20 = vmax.f32 %v5520_v49, 0.0  ;;  %v5774_v56 = vadd.f32 %v10816_v47, %v5255_v55  ;;  %v5004_v19 = vmul.f32 %v10796_v18, %v8674_v60  ;;  %v8678_v32 = vpop.f32.mrb[136].mxu0  ;;  %v9315_v49 = vld [vmem:[%s9387_s24 + $0x3e0] sm:$0xff]  }
 0x1f7   : > { %v6288_v10 = vmax.f32 %v5776_v51, 0.0  ;;  %v6030_v33 = vmax.f32 %v5518_v52, 0.0  ;;  %v5260_v24 = vmul.f32 %v10796_v18, %v8930_v5  ;;  %v5002_v35 = vmul.f32 %v10796_v18, %v3344_v8  ;;  %v8934_v38 = vpop.f32.mrb[136].mxu1  ;;  %v3360_v12 = vpop.f32.mrb[137].mxu0  ;;  %v9316_v55 = vld [vmem:[%s9387_s24 + $0x7e0] sm:$0xff]  }
 0x1f8   : > { %v6286_v22 = vmax.f32 %v5774_v56, 0.0  ;;  %v5523_v45 = vadd.f32 %v10816_v47, %v5004_v19  ;;  %v5258_v17 = vmul.f32 %v10796_v18, %v4368_v9  ;;  %v5005_v30 = vmul.f32 %v10796_v18, %v8675_v44  ;;  %8781 = vmatmul.mubr.msk.bf16.gmra.mrb[240].mxu0 %vm2006_vm2, %v9309_v62  ;;  %v4384_v7 = vpop.f32.mrb[137].mxu1  ;;  %v8679_v0 = vpop.f32.mrb[138].mxu0 }
 0x1f9   : > { %v5779_v28 = vadd.f32 %v10816_v47, %v5260_v24  ;;  %v5521_v41 = vadd.f32 %v10816_v47, %v5002_v35  ;;  %v5261_v54 = vmul.f32 %v10796_v18, %v8931_v1  ;;  %v5003_v25 = vmul.f32 %v10796_v18, %v3347_v4  ;;  %9037 = vmatmul.mubr.msk.bf16.gmra.mrb[240].mxu1 %vm2006_vm2, %v9310_v16  ;;  %v3363_v57 = vpop.f32.mrb[139].mxu0 }
 0x1fa   : > { %v6035_v27 = vmax.f32 %v5523_v45, 0.0  ;;  %v5777_v26 = vadd.f32 %v10816_v47, %v5258_v17  ;;  %v5524_v36 = vadd.f32 %v10816_v47, %v5005_v30  ;;  %v5259_v31 = vmul.f32 %v10796_v18, %v4371_v23  ;;  %8784 = vmatprep.mubr.msk.bf16.mxu0 %vm2006_vm2, %v9311_v11  ;;  %9040 = vmatprep.mubr.msk.bf16.mxu1 %vm2006_vm2, %v9312_v21 }
 0x1fb   : > { %v6291_v34 = vmax.f32 %v5779_v28, 0.0  ;;  %v6033_v37 = vmax.f32 %v5521_v41, 0.0  ;;  %v5780_v40 = vadd.f32 %v10816_v47, %v5261_v54  ;;  %v5522_v29 = vadd.f32 %v10816_v47, %v5003_v25  ;;  %v9317_v41 = vld [vmem:[%s9387_s24 + $0x3e8] sm:$0xff]  }
 0x1fc   : > { %v10913_v42 = vmax.f32 %v6031_v61, %v6035_v27  ;;  %v6289_v2 = vmax.f32 %v5777_v26, 0.0  ;;  %v6036_v3 = vmax.f32 %v5524_v36, 0.0  ;;  %v5778_v58 = vadd.f32 %v10816_v47, %v5259_v31  ;;  %v8935_v61 = vpop.f32.mrb[138].mxu1 }
 0x1fd   : > { %v10917_v43 = vmax.f32 %v6287_v53, %v6291_v34  ;;  %v10919_v50 = vmax.f32 %v6029_v39, %v6033_v37  ;;  %v6292_v59 = vmax.f32 %v5780_v40, 0.0  ;;  %v6034_v6 = vmax.f32 %v5522_v29, 0.0  ;;  %v4387_v39 = vpop.f32.mrb[139].mxu1  ;;  %v9318_v34 = vld [vmem:[%s9387_s24 + $0x7e8] sm:$0xff]   ;;  %v9319_v37 = vld [vmem:[%s9387_s24 + $0x3f0] sm:$0xff]  }
 0x1fe   : > { %v10922_v13 = vmax.f32 %v6285_v46, %v6289_v2  ;;  %v10924_v14 = vmax.f32 %v6032_v20, %v6036_v3  ;;  %v6290_v63 = vmax.f32 %v5778_v58, 0.0  ;;  %v5008_v60 = vmul.f32 %v10796_v18, %v8678_v32  ;;  %v8682_v35 = vpop.f32.mrb[140].mxu0 }
 0x1ff   : > { %v10929_v5 = vmax.f32 %v6288_v10, %v6292_v59  ;;  %v10931_v8 = vmax.f32 %v6030_v33, %v6034_v6  ;;  %v5264_v62 = vmul.f32 %v10796_v18, %v8934_v38  ;;  %v5006_v53 = vmul.f32 %v10796_v18, %v3360_v12  ;;  %v3376_v28 = vpop.f32.mrb[141].mxu0  ;;  %v9320_v38 = vld [vmem:[%s9387_s24 + $0x7f0] sm:$0xff]  }
 0x200   : > { %v10935_v51 = vmax.f32 %v6286_v22, %v6290_v63  ;;  %v5527_v52 = vadd.f32 %v10816_v47, %v5008_v60  ;;  %v5262_v9 = vmul.f32 %v10796_v18, %v4384_v7  ;;  %v5009_v44 = vmul.f32 %v10796_v18, %v8679_v0  ;;  %8785 = vmatmul.mubr.msk.bf16.gmra.mrb[244].mxu0 %vm2006_vm2, %v9313_v15  ;;  %v8938_v30 = vpop.f32.mrb[140].mxu1  ;;  %v8683_v31 = vpop.f32.mrb[142].mxu0 }
 0x201   : > { %v5783_v16 = vadd.f32 %v10816_v47, %v5264_v62  ;;  %v5525_v46 = vadd.f32 %v10816_v47, %v5006_v53  ;;  %v5265_v20 = vmul.f32 %v10796_v18, %v8935_v61  ;;  %v5007_v56 = vmul.f32 %v10796_v18, %v3363_v57  ;;  %9041 = vmatmul.mubr.msk.bf16.gmra.mrb[244].mxu1 %vm2006_vm2, %v9314_v48  ;;  %v4400_v36 = vpop.f32.mrb[141].mxu1  ;;  %v3379_v58 = vpop.f32.mrb[143].mxu0 }
 0x202   : > { %v6039_v19 = vmax.f32 %v5527_v52, 0.0  ;;  %v5781_v1 = vadd.f32 %v10816_v47, %v5262_v9  ;;  %v5528_v4 = vadd.f32 %v10816_v47, %v5009_v44  ;;  %v5263_v11 = vmul.f32 %v10796_v18, %v4387_v39  ;;  %8788 = vmatprep.mubr.msk.bf16.mxu0 %vm2006_vm2, %v9315_v49  ;;  %9044 = vmatprep.mubr.msk.bf16.mxu1 %vm2006_vm2, %v9316_v55  ;;  %v8939_v3 = vpop.f32.mrb[142].mxu1 }
 0x203   : > { %v6295_v21 = vmax.f32 %v5783_v16, 0.0  ;;  %v6037_v10 = vmax.f32 %v5525_v46, 0.0  ;;  %v5784_v33 = vadd.f32 %v10816_v47, %v5265_v20  ;;  %v5526_v24 = vadd.f32 %v10816_v47, %v5007_v56  ;;  %v4403_v7 = vpop.f32.mrb[143].mxu1 }
 0x204   : > { %v6293_v23 = vmax.f32 %v5781_v1, 0.0  ;;  %v6040_v22 = vmax.f32 %v5528_v4, 0.0  ;;  %v10954_v45 = vadd.f32 %v10816_v47, %v5263_v11  ;;  %v5012_v17 = vmul.f32 %v10796_v18, %v8682_v35 }
 0x205   : > { %v6296_v54 = vmax.f32 %v5784_v33, 0.0  ;;  %v6038_v25 = vmax.f32 %v5526_v24, 0.0  ;;  %v5268_v27 = vmul.f32 %v10796_v18, %v8938_v30  ;;  %v5010_v26 = vmul.f32 %v10796_v18, %v3376_v28  ;;  %v9321_v24 = vld [vmem:[%s9387_s24 + $0x3f8] sm:$0xff]  }
 0x206   : > { %v6294_v40 = vmax.f32 %v10954_v45, 0.0  ;;  %v5531_v29 = vadd.f32 %v10816_v47, %v5012_v17  ;;  %v5266_v32 = vmul.f32 %v10796_v18, %v4400_v36  ;;  %v5013_v2 = vmul.f32 %v10796_v18, %v8683_v31  ;;  %v8686_v20 = vpop.f32.mrb[144].mxu0  ;;  %v9322_v28 = vld [vmem:[%s9387_s24 + $0x7f8] sm:$0xff]  }
 0x207   : > { %v5787_v12 = vadd.f32 %v10816_v47, %v5268_v27  ;;  %v5529_v15 = vadd.f32 %v10816_v47, %v5010_v26  ;;  %v5269_v59 = vmul.f32 %v10796_v18, %v8939_v3  ;;  %v5011_v6 = vmul.f32 %v10796_v18, %v3379_v58 }
 0x208   : > { %v6043_v0 = vmax.f32 %v5531_v29, 0.0  ;;  %v5785_v48 = vadd.f32 %v10816_v47, %v5266_v32  ;;  %v5532_v63 = vadd.f32 %v10816_v47, %v5013_v2  ;;  %v5267_v60 = vmul.f32 %v10796_v18, %v4403_v7  ;;  %8789 = vmatmul.mubr.msk.bf16.gmra.mrb[248].mxu0 %vm2006_vm2, %v9317_v41  ;;  %v8942_v33 = vpop.f32.mrb[144].mxu1 }
 0x209   : > { %v6299_v61 = vmax.f32 %v5787_v12, 0.0  ;;  %v6041_v57 = vmax.f32 %v5529_v15, 0.0  ;;  %v5788_v49 = vadd.f32 %v10816_v47, %v5269_v59  ;;  %v5530_v55 = vadd.f32 %v10816_v47, %v5011_v6  ;;  %9045 = vmatmul.mubr.msk.bf16.gmra.mrb[248].mxu1 %vm2006_vm2, %v9318_v34  ;;  %8792 = vmatprep.mubr.msk.bf16.mxu0 %vm2006_vm2, %v9319_v37 }
 0x20a   : > { %v6575_v62 = vmax.f32 %v6039_v19, %v6043_v0  ;;  %v6297_v53 = vmax.f32 %v5785_v48, 0.0  ;;  %v6044_v39 = vmax.f32 %v5532_v63, 0.0  ;;  %v5786_v52 = vadd.f32 %v10816_v47, %v5267_v60  ;;  %9048 = vmatprep.mubr.msk.bf16.mxu1 %vm2006_vm2, %v9320_v38  ;;  %v3392_v19 = vpop.f32.mrb[145].mxu0 }
 0x20b   : > { %v6639_v9 = vmax.f32 %v6295_v21, %v6299_v61  ;;  %v6573_v44 = vmax.f32 %v6037_v10, %v6041_v57  ;;  %v6300_v16 = vmax.f32 %v5788_v49, 0.0  ;;  %v6042_v46 = vmax.f32 %v5530_v55, 0.0  ;;  %v4416_v10 = vpop.f32.mrb[145].mxu1  ;;  %v8687_v30 = vpop.f32.mrb[146].mxu0 }
 0x20c   : > { %v6703_v56 = vmax.f32 %v10913_v42, %v6575_v62  ;;  %v6637_v1 = vmax.f32 %v6293_v23, %v6297_v53  ;;  %v6576_v4 = vmax.f32 %v6040_v22, %v6044_v39  ;;  %v6298_v11 = vmax.f32 %v5786_v52, 0.0  ;;  %v8943_v22 = vpop.f32.mrb[146].mxu1  ;;  %v3395_v26 = vpop.f32.mrb[147].mxu0 }
 0x20d   : > { %v6767_v35 = vmax.f32 %v10917_v43, %v6639_v9  ;;  %v6701_v45 = vmax.f32 %v10919_v50, %v6573_v44  ;;  %v6640_v17 = vmax.f32 %v6296_v54, %v6300_v16  ;;  %v6574_v21 = vmax.f32 %v6038_v25, %v6042_v46  ;;  %v4419_v25 = vpop.f32.mrb[147].mxu1 }
 0x20e   : > { %v8184_v41 = vpack.c.bf16 %v6703_v56, %v6703_v56  ;;  %v6765_v27 = vmax.f32 %v10922_v13, %v6637_v1  ;;  %v6704_v42 = vmax.f32 %v10924_v14, %v6576_v4  ;;  %v6638_v23 = vmax.f32 %v6294_v40, %v6298_v11  ;;  %v8690_v15 = vpop.f32.mrb[148].mxu0 }
 0x20f   : > { %v8248_v36 = vpack.c.bf16 %v6767_v35, %v6767_v35  ;;  %v8182_v43 = vpack.c.bf16 %v6701_v45, %v6701_v45  ;;  %v6768_v50 = vmax.f32 %v10929_v5, %v6640_v17  ;;  %v6702_v54 = vmax.f32 %v10931_v8, %v6574_v21  ;;  %v3408_v63 = vpop.f32.mrb[149].mxu0 }
 0x210   : > { %7344 = vst.msk [vmem:[%s9776_s6 + $0x88] sm:$0xf] %vm7309_vm3, %v8184_v41  ;;  %v8246_v31 = vpack.c.bf16 %v6765_v27, %v6765_v27  ;;  %v8185_v13 = vpack.c.bf16 %v6704_v42, %v6704_v42  ;;  %v6766_v34 = vmax.f32 %v10935_v51, %v6638_v23  ;;  %v5016_v14 = vmul.f32 %v10796_v18, %v8686_v20  ;;  %v8946_v48 = vpop.f32.mrb[148].mxu1  ;;  %v8691_v62 = vpop.f32.mrb[150].mxu0 }
 0x211   : > { %8793 = vmatmul.mubr.msk.bf16.gmra.mrb[252].mxu0 %vm2006_vm2, %v9321_v24  ;;  %7408 = vst.msk [vmem:[%s9776_s6 + $0x188] sm:$0xf] %vm7309_vm3, %v8248_v36  ;;  %7342 = vst.msk [vmem:[%s9776_s6 + $0x80] sm:$0xf] %vm7309_vm3, %v8182_v43  ;;  %v8249_v5 = vpack.c.bf16 %v6768_v50, %v6768_v50  ;;  %v8183_v8 = vpack.c.bf16 %v6702_v54, %v6702_v54  ;;  %v5272_v37 = vmul.f32 %v10796_v18, %v8942_v33  ;;  %v4432_v55 = vpop.f32.mrb[149].mxu1  ;;  %v3411_v16 = vpop.f32.mrb[151].mxu0 }
 0x212   : > { %v5014_v40 = vmul.f32 %v10796_v18, %v3392_v19  ;;  %9049 = vmatmul.mubr.msk.bf16.gmra.mrb[252].mxu1 %vm2006_vm2, %v9322_v28  ;;  %7406 = vst.msk [vmem:[%s9776_s6 + $0x180] sm:$0xf] %vm7309_vm3, %v8246_v31  ;;  %7345 = vst.msk [vmem:[%s9776_s6 + $0x8c] sm:$0xf] %vm7309_vm3, %v8185_v13  ;;  %v8247_v51 = vpack.c.bf16 %v6766_v34, %v6766_v34  ;;  %v5535_v29 = vadd.f32 %v10816_v47, %v5016_v14  ;;  %v8947_v44 = vpop.f32.mrb[150].mxu1 }
 0x213   : > { %v5270_v32 = vmul.f32 %v10796_v18, %v4416_v10  ;;  %v5017_v2 = vmul.f32 %v10796_v18, %v8687_v30  ;;  %7409 = vst.msk [vmem:[%s9776_s6 + $0x18c] sm:$0xf] %vm7309_vm3, %v8249_v5  ;;  %7343 = vst.msk [vmem:[%s9776_s6 + $0x84] sm:$0xf] %vm7309_vm3, %v8183_v8  ;;  %v5791_v3 = vadd.f32 %v10816_v47, %v5272_v37  ;;  %v4435_v4 = vpop.f32.mrb[151].mxu1 }
 0x214   : > { %v5533_v58 = vadd.f32 %v10816_v47, %v5014_v40  ;;  %v5273_v38 = vmul.f32 %v10796_v18, %v8943_v22  ;;  %v5015_v12 = vmul.f32 %v10796_v18, %v3395_v26  ;;  %7407 = vst.msk [vmem:[%s9776_s6 + $0x184] sm:$0xf] %vm7309_vm3, %v8247_v51  ;;  %v6047_v59 = vmax.f32 %v5535_v29, 0.0 }
 0x215   : > { %v5789_v6 = vadd.f32 %v10816_v47, %v5270_v32  ;;  %v5536_v7 = vadd.f32 %v10816_v47, %v5017_v2  ;;  %v5271_v0 = vmul.f32 %v10796_v18, %v4419_v25  ;;  %v6303_v60 = vmax.f32 %v5791_v3, 0.0 }
 0x216   : > { %v6045_v61 = vmax.f32 %v5533_v58, 0.0  ;;  %v5792_v57 = vadd.f32 %v10816_v47, %v5273_v38  ;;  %v5534_v49 = vadd.f32 %v10816_v47, %v5015_v12  ;;  %v5020_v9 = vmul.f32 %v10796_v18, %v8690_v15  ;;  %v8694_v26 = vpop.f32.mrb[152].mxu0 }
 0x217   : > { %v6301_v53 = vmax.f32 %v5789_v6, 0.0  ;;  %v6048_v39 = vmax.f32 %v5536_v7, 0.0  ;;  %v5790_v52 = vadd.f32 %v10816_v47, %v5271_v0  ;;  %v5276_v56 = vmul.f32 %v10796_v18, %v8946_v48  ;;  %v3424_v31 = vpop.f32.mrb[153].mxu0 }
 0x218   : > { %v6304_v46 = vmax.f32 %v5792_v57, 0.0  ;;  %v6046_v20 = vmax.f32 %v5534_v49, 0.0  ;;  %v5018_v1 = vmul.f32 %v10796_v18, %v3408_v63  ;;  %v5539_v33 = vadd.f32 %v10816_v47, %v5020_v9  ;;  %v8950_v25 = vpop.f32.mrb[152].mxu1  ;;  %v8695_v37 = vpop.f32.mrb[154].mxu0 }
 0x219   : > { %v6302_v11 = vmax.f32 %v5790_v52, 0.0  ;;  %v5274_v19 = vmul.f32 %v10796_v18, %v4432_v55  ;;  %v5021_v24 = vmul.f32 %v10796_v18, %v8691_v62  ;;  %v5795_v35 = vadd.f32 %v10816_v47, %v5276_v56  ;;  %v4448_v8 = vpop.f32.mrb[153].mxu1  ;;  %v3427_v3 = vpop.f32.mrb[155].mxu0 }
 0x21a   : > { %v5537_v45 = vadd.f32 %v10816_v47, %v5018_v1  ;;  %v5277_v17 = vmul.f32 %v10796_v18, %v8947_v44  ;;  %v5019_v21 = vmul.f32 %v10796_v18, %v3411_v16  ;;  %v6051_v10 = vmax.f32 %v5539_v33, 0.0  ;;  %v8951_v2 = vpop.f32.mrb[154].mxu1 }
 0x21b   : > { %v5793_v30 = vadd.f32 %v10816_v47, %v5274_v19  ;;  %v5540_v28 = vadd.f32 %v10816_v47, %v5021_v24  ;;  %v5275_v41 = vmul.f32 %v10796_v18, %v4435_v4  ;;  %v6307_v27 = vmax.f32 %v5795_v35, 0.0 }
 0x21c   : > { %v6049_v42 = vmax.f32 %v5537_v45, 0.0  ;;  %v5796_v23 = vadd.f32 %v10816_v47, %v5277_v17  ;;  %v5538_v22 = vadd.f32 %v10816_v47, %v5019_v21  ;;  %v11040_v36 = vmax.f32 %v6047_v59, %v6051_v10  ;;  %v4451_v59 = vpop.f32.mrb[155].mxu1 }
 0x21d   : > { %v6305_v43 = vmax.f32 %v5793_v30, 0.0  ;;  %v6052_v50 = vmax.f32 %v5540_v28, 0.0  ;;  %v5794_v54 = vadd.f32 %v10816_v47, %v5275_v41  ;;  %v11043_v13 = vmax.f32 %v6303_v60, %v6307_v27 }
 0x21e   : > { %v11045_v34 = vmax.f32 %v6045_v61, %v6049_v42  ;;  %v6308_v14 = vmax.f32 %v5796_v23, 0.0  ;;  %v6050_v5 = vmax.f32 %v5538_v22, 0.0  ;;  %v5024_v32 = vmul.f32 %v10796_v18, %v8694_v26 }
 0x21f   : > { %v11047_v40 = vmax.f32 %v6301_v53, %v6305_v43  ;;  %v11049_v51 = vmax.f32 %v6048_v39, %v6052_v50  ;;  %v6306_v29 = vmax.f32 %v5794_v54, 0.0  ;;  %v5280_v12 = vmul.f32 %v10796_v18, %v8950_v25  ;;  %v8698_v16 = vpop.f32.mrb[156].mxu0 }
 0x220   : > { %v11052_v58 = vmax.f32 %v6304_v46, %v6308_v14  ;;  %v11054_v38 = vmax.f32 %v6046_v20, %v6050_v5  ;;  %v5022_v15 = vmul.f32 %v10796_v18, %v3424_v31  ;;  %v5543_v7 = vadd.f32 %v10816_v47, %v5024_v32  ;;  %v8954_v4 = vpop.f32.mrb[156].mxu1 }
 0x221   : > { %v11058_v6 = vmax.f32 %v6302_v11, %v6306_v29  ;;  %v5278_v0 = vmul.f32 %v10796_v18, %v4448_v8  ;;  %v5025_v48 = vmul.f32 %v10796_v18, %v8695_v37  ;;  %v5799_v63 = vadd.f32 %v10816_v47, %v5280_v12  ;;  %v3440_v11 = vpop.f32.mrb[157].mxu0  ;;  %v4464_v45 = vpop.f32.mrb[157].mxu1 }
 0x222   : > { %v5541_v60 = vadd.f32 %v10816_v47, %v5022_v15  ;;  %v5281_v61 = vmul.f32 %v10796_v18, %v8951_v2  ;;  %v5023_v57 = vmul.f32 %v10796_v18, %v3427_v3  ;;  %v6055_v49 = vmax.f32 %v5543_v7, 0.0  ;;  %v8699_v17 = vpop.f32.mrb[158].mxu0  ;;  %v8955_v41 = vpop.f32.mrb[158].mxu1 }
 0x223   : > { %v5797_v55 = vadd.f32 %v10816_v47, %v5278_v0  ;;  %v5544_v62 = vadd.f32 %v10816_v47, %v5025_v48  ;;  %v5279_v53 = vmul.f32 %v10796_v18, %v4451_v59  ;;  %v6311_v39 = vmax.f32 %v5799_v63, 0.0  ;;  %v3443_v27 = vpop.f32.mrb[159].mxu0  ;;  %v4467_v43 = vpop.f32.mrb[159].mxu1 }
 0x224   : > { %v6053_v52 = vmax.f32 %v5541_v60, 0.0  ;;  %v5800_v9 = vadd.f32 %v10816_v47, %v5281_v61  ;;  %v5542_v44 = vadd.f32 %v10816_v47, %v5023_v57  ;;  %v5028_v1 = vmul.f32 %v10796_v18, %v8698_v16 }
 0x225   : > { %v6309_v46 = vmax.f32 %v5797_v55, 0.0  ;;  %v6056_v20 = vmax.f32 %v5544_v62, 0.0  ;;  %v5798_v56 = vadd.f32 %v10816_v47, %v5279_v53  ;;  %v5284_v24 = vmul.f32 %v10796_v18, %v8954_v4 }
 0x226   : > { %v6312_v33 = vmax.f32 %v5800_v9, 0.0  ;;  %v6054_v19 = vmax.f32 %v5542_v44, 0.0  ;;  %v5026_v35 = vmul.f32 %v10796_v18, %v3440_v11  ;;  %v5547_v10 = vadd.f32 %v10816_v47, %v5028_v1 }
 0x227   : > { %v6310_v21 = vmax.f32 %v5798_v56, 0.0  ;;  %v5282_v30 = vmul.f32 %v10796_v18, %v4464_v45  ;;  %v5029_v28 = vmul.f32 %v10796_v18, %v8699_v17  ;;  %v5803_v42 = vadd.f32 %v10816_v47, %v5284_v24  ;;  %v8702_v0 = vpop.f32.mrb[160].mxu0 }
 0x228   : > { %v5545_v23 = vadd.f32 %v10816_v47, %v5026_v35  ;;  %v5285_v22 = vmul.f32 %v10796_v18, %v8955_v41  ;;  %v5027_v26 = vmul.f32 %v10796_v18, %v3443_v27  ;;  %v6059_v50 = vmax.f32 %v5547_v10, 0.0  ;;  %v8958_v57 = vpop.f32.mrb[160].mxu1  ;;  %v3456_v55 = vpop.f32.mrb[161].mxu0 }
 0x229   : > { %v5801_v54 = vadd.f32 %v10816_v47, %v5282_v30  ;;  %v5548_v25 = vadd.f32 %v10816_v47, %v5029_v28  ;;  %v5283_v31 = vmul.f32 %v10796_v18, %v4467_v43  ;;  %v6315_v14 = vmax.f32 %v5803_v42, 0.0  ;;  %v4480_v44 = vpop.f32.mrb[161].mxu1 }
 0x22a   : > { %v6057_v5 = vmax.f32 %v5545_v23, 0.0  ;;  %v5804_v8 = vadd.f32 %v10816_v47, %v5285_v22  ;;  %v5546_v37 = vadd.f32 %v10816_v47, %v5027_v26  ;;  %v6579_v29 = vmax.f32 %v6055_v49, %v6059_v50 }
 0x22b   : > { %v6313_v32 = vmax.f32 %v5801_v54, 0.0  ;;  %v6060_v2 = vmax.f32 %v5548_v25, 0.0  ;;  %v5802_v3 = vadd.f32 %v10816_v47, %v5283_v31  ;;  %v6643_v12 = vmax.f32 %v6311_v39, %v6315_v14  ;;  %v8703_v39 = vpop.f32.mrb[162].mxu0 }
 0x22c   : > { %v6577_v15 = vmax.f32 %v6053_v52, %v6057_v5  ;;  %v6316_v59 = vmax.f32 %v5804_v8, 0.0  ;;  %v6058_v7 = vmax.f32 %v5546_v37, 0.0  ;;  %v6707_v48 = vmax.f32 %v11040_v36, %v6579_v29  ;;  %v3459_v56 = vpop.f32.mrb[163].mxu0 }
 0x22d   : > { %v6641_v63 = vmax.f32 %v6309_v46, %v6313_v32  ;;  %v6580_v60 = vmax.f32 %v6056_v20, %v6060_v2  ;;  %v6314_v61 = vmax.f32 %v5802_v3, 0.0  ;;  %v6771_v62 = vmax.f32 %v11043_v13, %v6643_v12  ;;  %v8959_v20 = vpop.f32.mrb[162].mxu1 }
 0x22e   : > { %v6705_v49 = vmax.f32 %v11045_v34, %v6577_v15  ;;  %v6644_v53 = vmax.f32 %v6312_v33, %v6316_v59  ;;  %v6578_v9 = vmax.f32 %v6054_v19, %v6058_v7  ;;  %v8188_v52 = vpack.c.bf16 %v6707_v48, %v6707_v48  ;;  %v4483_v11 = vpop.f32.mrb[163].mxu1 }
 0x22f   : > { %v6769_v16 = vmax.f32 %v11047_v40, %v6641_v63  ;;  %v6708_v36 = vmax.f32 %v11049_v51, %v6580_v60  ;;  %v6642_v46 = vmax.f32 %v6310_v21, %v6314_v61  ;;  %v8252_v1 = vpack.c.bf16 %v6771_v62, %v6771_v62  ;;  %v8706_v27 = vpop.f32.mrb[164].mxu0 }
 0x230   : > { %v8186_v13 = vpack.c.bf16 %v6705_v49, %v6705_v49  ;;  %v6772_v34 = vmax.f32 %v11052_v58, %v6644_v53  ;;  %v6706_v4 = vmax.f32 %v11054_v38, %v6578_v9  ;;  %7348 = vst.msk [vmem:[%s9776_s6 + $0x98] sm:$0xf] %vm7309_vm3, %v8188_v52  ;;  %v5032_v19 = vmul.f32 %v10796_v18, %v8702_v0  ;;  %v8962_v43 = vpop.f32.mrb[164].mxu1  ;;  %v3472_v50 = vpop.f32.mrb[165].mxu0 }
 0x231   : > { %v8250_v33 = vpack.c.bf16 %v6769_v16, %v6769_v16  ;;  %v8189_v40 = vpack.c.bf16 %v6708_v36, %v6708_v36  ;;  %v6770_v51 = vmax.f32 %v11058_v6, %v6642_v46  ;;  %7412 = vst.msk [vmem:[%s9776_s6 + $0x198] sm:$0xf] %vm7309_vm3, %v8252_v1  ;;  %v5288_v58 = vmul.f32 %v10796_v18, %v8958_v57  ;;  %v4496_v5 = vpop.f32.mrb[165].mxu1  ;;  %v8707_v8 = vpop.f32.mrb[166].mxu0 }
 0x232   : > { %7346 = vst.msk [vmem:[%s9776_s6 + $0x90] sm:$0xf] %vm7309_vm3, %v8186_v13  ;;  %v8253_v24 = vpack.c.bf16 %v6772_v34, %v6772_v34  ;;  %v8187_v35 = vpack.c.bf16 %v6706_v4, %v6706_v4  ;;  %v5030_v38 = vmul.f32 %v10796_v18, %v3456_v55  ;;  %v5551_v6 = vadd.f32 %v10816_v47, %v5032_v19  ;;  %v8963_v3 = vpop.f32.mrb[166].mxu1  ;;  %v3475_v12 = vpop.f32.mrb[167].mxu0 }
 0x233   : > { %7410 = vst.msk [vmem:[%s9776_s6 + $0x190] sm:$0xf] %vm7309_vm3, %v8250_v33  ;;  %7349 = vst.msk [vmem:[%s9776_s6 + $0x9c] sm:$0xf] %vm7309_vm3, %v8189_v40  ;;  %v8251_v45 = vpack.c.bf16 %v6770_v51, %v6770_v51  ;;  %v5286_v17 = vmul.f32 %v10796_v18, %v4480_v44  ;;  %v5033_v21 = vmul.f32 %v10796_v18, %v8703_v39  ;;  %v4499_v48 = vpop.f32.mrb[167].mxu1 }
 0x234   : > { %7413 = vst.msk [vmem:[%s9776_s6 + $0x19c] sm:$0xf] %vm7309_vm3, %v8253_v24  ;;  %7347 = vst.msk [vmem:[%s9776_s6 + $0x94] sm:$0xf] %vm7309_vm3, %v8187_v35  ;;  %v5807_v10 = vadd.f32 %v10816_v47, %v5288_v58  ;;  %v5549_v30 = vadd.f32 %v10816_v47, %v5030_v38  ;;  %v5289_v28 = vmul.f32 %v10796_v18, %v8959_v20  ;;  %v6063_v42 = vmax.f32 %v5551_v6, 0.0 }
 0x235   : > { %v5031_v41 = vmul.f32 %v10796_v18, %v3459_v56  ;;  %7411 = vst.msk [vmem:[%s9776_s6 + $0x194] sm:$0xf] %vm7309_vm3, %v8251_v45  ;;  %v5805_v23 = vadd.f32 %v10816_v47, %v5286_v17  ;;  %v5552_v22 = vadd.f32 %v10816_v47, %v5033_v21  ;;  %v5287_v26 = vmul.f32 %v10796_v18, %v4483_v11  ;;  %v11158_v6 = vld [vmem:[%s11762_s2] ss:$0 sm:$0xff] }
 0x236   : > { %v6319_v54 = vmax.f32 %v5807_v10, 0.0  ;;  %v6061_v25 = vmax.f32 %v5549_v30, 0.0  ;;  %v5808_v31 = vadd.f32 %v10816_v47, %v5289_v28  ;;  %v5036_v2 = vmul.f32 %v10796_v18, %v8706_v27 }
 0x237   : > { %v5550_v14 = vadd.f32 %v10816_v47, %v5031_v41  ;;  %v6317_v37 = vmax.f32 %v5805_v23, 0.0  ;;  %v6064_v29 = vmax.f32 %v5552_v22, 0.0  ;;  %v5806_v32 = vadd.f32 %v10816_v47, %v5287_v26  ;;  %v8710_v56 = vpop.f32.mrb[168].mxu0  ;;  %v11172_v23 = vld [vmem:[%s11763_s3] ss:$0 sm:$0xff] }
 0x238   : > { %v6320_v15 = vmax.f32 %v5808_v31, 0.0  ;;  %v5292_v7 = vmul.f32 %v10796_v18, %v8962_v43  ;;  %v5034_v0 = vmul.f32 %v10796_v18, %v3472_v50  ;;  %v5555_v60 = vadd.f32 %v10816_v47, %v5036_v2  ;;  %v8966_v11 = vpop.f32.mrb[168].mxu1  ;;  %v3488_v33 = vpop.f32.mrb[169].mxu0 }
 0x239   : > { %v6062_v59 = vmax.f32 %v5550_v14, 0.0  ;;  %v6318_v63 = vmax.f32 %v5806_v32, 0.0  ;;  %v5290_v61 = vmul.f32 %v10796_v18, %v4496_v5  ;;  %v5037_v57 = vmul.f32 %v10796_v18, %v8707_v8  ;;  %v4512_v24 = vpop.f32.mrb[169].mxu1  ;;  %v8711_v35 = vpop.f32.mrb[170].mxu0 }
 0x23a   : > { %v5811_v55 = vadd.f32 %v10816_v47, %v5292_v7  ;;  %v5553_v62 = vadd.f32 %v10816_v47, %v5034_v0  ;;  %v5293_v49 = vmul.f32 %v10796_v18, %v8963_v3  ;;  %v5035_v53 = vmul.f32 %v10796_v18, %v3475_v12  ;;  %v8967_v17 = vpop.f32.mrb[170].mxu1  ;;  %v3491_v21 = vpop.f32.mrb[171].mxu0 }
 0x23b   : > { %v6067_v9 = vmax.f32 %v5555_v60, 0.0  ;;  %v5809_v44 = vadd.f32 %v10816_v47, %v5290_v61  ;;  %v5556_v39 = vadd.f32 %v10816_v47, %v5037_v57  ;;  %v5291_v52 = vmul.f32 %v10796_v18, %v4499_v48  ;;  %v4515_v27 = vpop.f32.mrb[171].mxu1 }
 0x23c   : > { %v6323_v16 = vmax.f32 %v5811_v55, 0.0  ;;  %v6065_v36 = vmax.f32 %v5553_v62, 0.0  ;;  %v5812_v46 = vadd.f32 %v10816_v47, %v5293_v49  ;;  %v5554_v20 = vadd.f32 %v10816_v47, %v5035_v53 }
 0x23d   : > { %v11144_v1 = vmax.f32 %v6063_v42, %v6067_v9  ;;  %v6321_v13 = vmax.f32 %v5809_v44, 0.0  ;;  %v6068_v34 = vmax.f32 %v5556_v39, 0.0  ;;  %v5810_v4 = vadd.f32 %v10816_v47, %v5291_v52 }
 0x23e   : > { %v11147_v40 = vmax.f32 %v6319_v54, %v6323_v16  ;;  %v11149_v51 = vmax.f32 %v6061_v25, %v6065_v36  ;;  %v6324_v18 = vmax.f32 %v5812_v46, 0.0  ;;  %v6066_v19 = vmax.f32 %v5554_v20, 0.0 }
 0x23f   : > { %v11151_v58 = vmax.f32 %v6317_v37, %v6321_v13  ;;  %v11153_v38 = vmax.f32 %v6064_v29, %v6068_v34  ;;  %v6322_v45 = vmax.f32 %v5810_v4, 0.0  ;;  %v5040_v47 = vmul.f32 %v11158_v6, %v8710_v56 }
 0x240   : > { %v11161_v10 = vmax.f32 %v6320_v15, %v6324_v18  ;;  %v11163_v30 = vmax.f32 %v6062_v59, %v6066_v19  ;;  %v5296_v28 = vmul.f32 %v11158_v6, %v8966_v11  ;;  %v5038_v41 = vmul.f32 %v11158_v6, %v3488_v33  ;;  %v8714_v12 = vpop.f32.mrb[172].mxu0 }
 0x241   : > { %v11167_v42 = vmax.f32 %v6318_v63, %v6322_v45  ;;  %v5559_v22 = vadd.f32 %v11172_v23, %v5040_v47  ;;  %v5294_v26 = vmul.f32 %v11158_v6, %v4512_v24  ;;  %v5041_v43 = vmul.f32 %v11158_v6, %v8711_v35  ;;  %v8970_v48 = vpop.f32.mrb[172].mxu1  ;;  %v3504_v63 = vpop.f32.mrb[173].mxu0 }
 0x242   : > { %v5815_v50 = vadd.f32 %v11172_v23, %v5296_v28  ;;  %v5557_v54 = vadd.f32 %v11172_v23, %v5038_v41  ;;  %v5297_v25 = vmul.f32 %v11158_v6, %v8967_v17  ;;  %v5039_v31 = vmul.f32 %v11158_v6, %v3491_v21  ;;  %v4528_v62 = vpop.f32.mrb[173].mxu1  ;;  %v8715_v49 = vpop.f32.mrb[174].mxu0 }
 0x243   : > { %v6071_v14 = vmax.f32 %v5559_v22, 0.0  ;;  %v5813_v5 = vadd.f32 %v11172_v23, %v5294_v26  ;;  %v5560_v8 = vadd.f32 %v11172_v23, %v5041_v43  ;;  %v5295_v37 = vmul.f32 %v11158_v6, %v4515_v27  ;;  %v8971_v52 = vpop.f32.mrb[174].mxu1  ;;  %v3507_v16 = vpop.f32.mrb[175].mxu0 }
 0x244   : > { %v6327_v29 = vmax.f32 %v5815_v50, 0.0  ;;  %v6069_v32 = vmax.f32 %v5557_v54, 0.0  ;;  %v5816_v2 = vadd.f32 %v11172_v23, %v5297_v25  ;;  %v5558_v3 = vadd.f32 %v11172_v23, %v5039_v31  ;;  %v4531_v13 = vpop.f32.mrb[175].mxu1 }
 0x245   : > { %v6325_v15 = vmax.f32 %v5813_v5, 0.0  ;;  %v6072_v59 = vmax.f32 %v5560_v8, 0.0  ;;  %v5814_v7 = vadd.f32 %v11172_v23, %v5295_v37  ;;  %v5044_v0 = vmul.f32 %v11158_v6, %v8714_v12 }
 0x246   : > { %v6328_v60 = vmax.f32 %v5816_v2, 0.0  ;;  %v6070_v61 = vmax.f32 %v5558_v3, 0.0  ;;  %v5300_v57 = vmul.f32 %v11158_v6, %v8970_v48  ;;  %v5042_v55 = vmul.f32 %v11158_v6, %v3504_v63 }
 0x247   : > { %v6326_v53 = vmax.f32 %v5814_v7, 0.0  ;;  %v5563_v9 = vadd.f32 %v11172_v23, %v5044_v0  ;;  %v5298_v44 = vmul.f32 %v11158_v6, %v4528_v62  ;;  %v5045_v39 = vmul.f32 %v11158_v6, %v8715_v49 }
 0x248   : > { %v5819_v36 = vadd.f32 %v11172_v23, %v5300_v57  ;;  %v5561_v46 = vadd.f32 %v11172_v23, %v5042_v55  ;;  %v5301_v20 = vmul.f32 %v11158_v6, %v8971_v52  ;;  %v5043_v56 = vmul.f32 %v11158_v6, %v3507_v16  ;;  %v8718_v26 = vpop.f32.mrb[176].mxu0 }
 0x249   : > { %v6075_v34 = vmax.f32 %v5563_v9, 0.0  ;;  %v5817_v4 = vadd.f32 %v11172_v23, %v5298_v44  ;;  %v5564_v11 = vadd.f32 %v11172_v23, %v5045_v39  ;;  %v5299_v33 = vmul.f32 %v11158_v6, %v4531_v13  ;;  %v8974_v31 = vpop.f32.mrb[176].mxu1  ;;  %v3520_v5 = vpop.f32.mrb[177].mxu0 }
 0x24a   : > { %v6331_v18 = vmax.f32 %v5819_v36, 0.0  ;;  %v6073_v19 = vmax.f32 %v5561_v46, 0.0  ;;  %v5820_v24 = vadd.f32 %v11172_v23, %v5301_v20  ;;  %v5562_v35 = vadd.f32 %v11172_v23, %v5043_v56  ;;  %v4544_v3 = vpop.f32.mrb[177].mxu1 }
 0x24b   : > { %v6583_v45 = vmax.f32 %v6071_v14, %v6075_v34  ;;  %v6329_v47 = vmax.f32 %v5817_v4, 0.0  ;;  %v6076_v17 = vmax.f32 %v5564_v11, 0.0  ;;  %v5818_v21 = vadd.f32 %v11172_v23, %v5299_v33 }
 0x24c   : > { %v6647_v28 = vmax.f32 %v6327_v29, %v6331_v18  ;;  %v6581_v41 = vmax.f32 %v6069_v32, %v6073_v19  ;;  %v6332_v27 = vmax.f32 %v5820_v24, 0.0  ;;  %v6074_v22 = vmax.f32 %v5562_v35, 0.0  ;;  %v8719_v29 = vpop.f32.mrb[178].mxu0 }
 0x24d   : > { %v6711_v43 = vmax.f32 %v11144_v1, %v6583_v45  ;;  %v6645_v50 = vmax.f32 %v6325_v15, %v6329_v47  ;;  %v6584_v54 = vmax.f32 %v6072_v59, %v6076_v17  ;;  %v6330_v25 = vmax.f32 %v5818_v21, 0.0  ;;  %v8975_v59 = vpop.f32.mrb[178].mxu1  ;;  %v3523_v7 = vpop.f32.mrb[179].mxu0 }
 0x24e   : > { %v6775_v8 = vmax.f32 %v11147_v40, %v6647_v28  ;;  %v6709_v14 = vmax.f32 %v11149_v51, %v6581_v41  ;;  %v6648_v37 = vmax.f32 %v6328_v60, %v6332_v27  ;;  %v6582_v2 = vmax.f32 %v6070_v61, %v6074_v22  ;;  %v4547_v63 = vpop.f32.mrb[179].mxu1 }
 0x24f   : > { %v8192_v32 = vpack.c.bf16 %v6711_v43, %v6711_v43  ;;  %v6773_v12 = vmax.f32 %v11151_v58, %v6645_v50  ;;  %v6712_v1 = vmax.f32 %v11153_v38, %v6584_v54  ;;  %v6646_v15 = vmax.f32 %v6326_v53, %v6330_v25 }
 0x250   : > { %v8256_v0 = vpack.c.bf16 %v6775_v8, %v6775_v8  ;;  %v8190_v40 = vpack.c.bf16 %v6709_v14, %v6709_v14  ;;  %v6776_v51 = vmax.f32 %v11161_v10, %v6648_v37  ;;  %v6710_v48 = vmax.f32 %v11163_v30, %v6582_v2  ;;  %v8722_v16 = vpop.f32.mrb[180].mxu0 }
 0x251   : > { %7352 = vst.msk [vmem:[%s9776_s6 + $0xa8] sm:$0xf] %vm7309_vm3, %v8192_v32  ;;  %v8254_v60 = vpack.c.bf16 %v6773_v12, %v6773_v12  ;;  %v8193_v58 = vpack.c.bf16 %v6712_v1, %v6712_v1  ;;  %v6774_v38 = vmax.f32 %v11167_v42, %v6646_v15  ;;  %v5048_v61 = vmul.f32 %v11158_v6, %v8718_v26  ;;  %v8978_v13 = vpop.f32.mrb[180].mxu1  ;;  %v3536_v34 = vpop.f32.mrb[181].mxu0 }
 0x252   : > { %7416 = vst.msk [vmem:[%s9776_s6 + $0x1a8] sm:$0xf] %vm7309_vm3, %v8256_v0  ;;  %7350 = vst.msk [vmem:[%s9776_s6 + $0xa0] sm:$0xf] %vm7309_vm3, %v8190_v40  ;;  %v8257_v57 = vpack.c.bf16 %v6776_v51, %v6776_v51  ;;  %v8191_v55 = vpack.c.bf16 %v6710_v48, %v6710_v48  ;;  %v5304_v10 = vmul.f32 %v11158_v6, %v8974_v31  ;;  %v4560_v19 = vpop.f32.mrb[181].mxu1  ;;  %v8723_v24 = vpop.f32.mrb[182].mxu0 }
 0x253   : > { %v5046_v30 = vmul.f32 %v11158_v6, %v3520_v5  ;;  %7414 = vst.msk [vmem:[%s9776_s6 + $0x1a0] sm:$0xf] %vm7309_vm3, %v8254_v60  ;;  %7353 = vst.msk [vmem:[%s9776_s6 + $0xac] sm:$0xf] %vm7309_vm3, %v8193_v58  ;;  %v8255_v62 = vpack.c.bf16 %v6774_v38, %v6774_v38  ;;  %v5567_v42 = vadd.f32 %v11172_v23, %v5048_v61  ;;  %v8979_v21 = vpop.f32.mrb[182].mxu1  ;;  %v3539_v28 = vpop.f32.mrb[183].mxu0 }
 0x254   : > { %v5302_v49 = vmul.f32 %v11158_v6, %v4544_v3  ;;  %v5049_v53 = vmul.f32 %v11158_v6, %v8719_v29  ;;  %7417 = vst.msk [vmem:[%s9776_s6 + $0x1ac] sm:$0xf] %vm7309_vm3, %v8257_v57  ;;  %7351 = vst.msk [vmem:[%s9776_s6 + $0xa4] sm:$0xf] %vm7309_vm3, %v8191_v55  ;;  %v5823_v9 = vadd.f32 %v11172_v23, %v5304_v10  ;;  %v4563_v43 = vpop.f32.mrb[183].mxu1 }
 0x255   : > { %v5565_v44 = vadd.f32 %v11172_v23, %v5046_v30  ;;  %v5305_v39 = vmul.f32 %v11158_v6, %v8975_v59  ;;  %v5047_v52 = vmul.f32 %v11158_v6, %v3523_v7  ;;  %7415 = vst.msk [vmem:[%s9776_s6 + $0x1a4] sm:$0xf] %vm7309_vm3, %v8255_v62  ;;  %v6079_v36 = vmax.f32 %v5567_v42, 0.0 }
 0x256   : > { %v5821_v46 = vadd.f32 %v11172_v23, %v5302_v49  ;;  %v5568_v20 = vadd.f32 %v11172_v23, %v5049_v53  ;;  %v5303_v56 = vmul.f32 %v11158_v6, %v4547_v63  ;;  %v6335_v4 = vmax.f32 %v5823_v9, 0.0 }
 0x257   : > { %v6077_v11 = vmax.f32 %v5565_v44, 0.0  ;;  %v5824_v33 = vadd.f32 %v11172_v23, %v5305_v39  ;;  %v5566_v18 = vadd.f32 %v11172_v23, %v5047_v52  ;;  %v5052_v17 = vmul.f32 %v11158_v6, %v8722_v16 }
 0x258   : > { %v6333_v35 = vmax.f32 %v5821_v46, 0.0  ;;  %v6080_v45 = vmax.f32 %v5568_v20, 0.0  ;;  %v5822_v47 = vadd.f32 %v11172_v23, %v5303_v56  ;;  %v5308_v22 = vmul.f32 %v11158_v6, %v8978_v13  ;;  %v8726_v7 = vpop.f32.mrb[184].mxu0 }
 0x259   : > { %v6336_v41 = vmax.f32 %v5824_v33, 0.0  ;;  %v6078_v27 = vmax.f32 %v5566_v18, 0.0  ;;  %v5050_v26 = vmul.f32 %v11158_v6, %v3536_v34  ;;  %v5571_v54 = vadd.f32 %v11172_v23, %v5052_v17  ;;  %v8982_v63 = vpop.f32.mrb[184].mxu1  ;;  %v3552_v60 = vpop.f32.mrb[185].mxu0 }
 0x25a   : > { %v6334_v50 = vmax.f32 %v5822_v47, 0.0  ;;  %v5306_v25 = vmul.f32 %v11158_v6, %v4560_v19  ;;  %v5053_v31 = vmul.f32 %v11158_v6, %v8723_v24  ;;  %v5827_v5 = vadd.f32 %v11172_v23, %v5308_v22  ;;  %v4576_v55 = vpop.f32.mrb[185].mxu1  ;;  %v8727_v10 = vpop.f32.mrb[186].mxu0 }
 0x25b   : > { %v5569_v8 = vadd.f32 %v11172_v23, %v5050_v26  ;;  %v5309_v14 = vmul.f32 %v11158_v6, %v8979_v21  ;;  %v5051_v37 = vmul.f32 %v11158_v6, %v3539_v28  ;;  %v6083_v2 = vmax.f32 %v5571_v54, 0.0  ;;  %v8983_v53 = vpop.f32.mrb[186].mxu1  ;;  %v3555_v9 = vpop.f32.mrb[187].mxu0 }
 0x25c   : > { %v5825_v3 = vadd.f32 %v11172_v23, %v5306_v25  ;;  %v5572_v29 = vadd.f32 %v11172_v23, %v5053_v31  ;;  %v5307_v32 = vmul.f32 %v11158_v6, %v4563_v43  ;;  %v6339_v12 = vmax.f32 %v5827_v5, 0.0 }
 0x25d   : > { %v6081_v1 = vmax.f32 %v5569_v8, 0.0  ;;  %v5828_v15 = vadd.f32 %v11172_v23, %v5309_v14  ;;  %v5570_v59 = vadd.f32 %v11172_v23, %v5051_v37  ;;  %v11258_v0 = vmax.f32 %v6079_v36, %v6083_v2  ;;  %v4579_v36 = vpop.f32.mrb[187].mxu1 }
 0x25e   : > { %v6337_v40 = vmax.f32 %v5825_v3, 0.0  ;;  %v6084_v51 = vmax.f32 %v5572_v29, 0.0  ;;  %v5826_v48 = vadd.f32 %v11172_v23, %v5307_v32  ;;  %v11261_v58 = vmax.f32 %v6335_v4, %v6339_v12 }
 0x25f   : > { %v11263_v38 = vmax.f32 %v6077_v11, %v6081_v1  ;;  %v6340_v61 = vmax.f32 %v5828_v15, 0.0  ;;  %v6082_v57 = vmax.f32 %v5570_v59, 0.0  ;;  %v5056_v49 = vmul.f32 %v11158_v6, %v8726_v7 }
 0x260   : > { %v11265_v30 = vmax.f32 %v6333_v35, %v6337_v40  ;;  %v11267_v62 = vmax.f32 %v6080_v45, %v6084_v51  ;;  %v6338_v42 = vmax.f32 %v5826_v48, 0.0  ;;  %v5312_v52 = vmul.f32 %v11158_v6, %v8982_v63 }
 0x261   : > { %v11270_v44 = vmax.f32 %v6336_v41, %v6340_v61  ;;  %v11272_v39 = vmax.f32 %v6078_v27, %v6082_v57  ;;  %v5054_v16 = vmul.f32 %v11158_v6, %v3552_v60  ;;  %v5575_v20 = vadd.f32 %v11172_v23, %v5056_v49  ;;  %v8730_v28 = vpop.f32.mrb[188].mxu0 }
 0x262   : > { %v11276_v46 = vmax.f32 %v6334_v50, %v6338_v42  ;;  %v5310_v56 = vmul.f32 %v11158_v6, %v4576_v55  ;;  %v5057_v13 = vmul.f32 %v11158_v6, %v8727_v10  ;;  %v5831_v34 = vadd.f32 %v11172_v23, %v5312_v52  ;;  %v8986_v43 = vpop.f32.mrb[188].mxu1  ;;  %v3568_v50 = vpop.f32.mrb[189].mxu0 }
 0x263   : > { %v5573_v4 = vadd.f32 %v11172_v23, %v5054_v16  ;;  %v5313_v11 = vmul.f32 %v11158_v6, %v8983_v53  ;;  %v5055_v33 = vmul.f32 %v11158_v6, %v3555_v9  ;;  %v6087_v18 = vmax.f32 %v5575_v20, 0.0  ;;  %v4592_v8 = vpop.f32.mrb[189].mxu1  ;;  %v8731_v14 = vpop.f32.mrb[190].mxu0 }
 0x264   : > { %v5829_v19 = vadd.f32 %v11172_v23, %v5310_v56  ;;  %v5576_v24 = vadd.f32 %v11172_v23, %v5057_v13  ;;  %v5311_v35 = vmul.f32 %v11158_v6, %v4579_v36  ;;  %v6343_v45 = vmax.f32 %v5831_v34, 0.0  ;;  %v8987_v32 = vpop.f32.mrb[190].mxu1  ;;  %v3571_v12 = vpop.f32.mrb[191].mxu0 }
 0x265   : > { %v6085_v47 = vmax.f32 %v5573_v4, 0.0  ;;  %v5832_v17 = vadd.f32 %v11172_v23, %v5313_v11  ;;  %v5574_v21 = vadd.f32 %v11172_v23, %v5055_v33  ;;  %v5060_v26 = vmul.f32 %v11158_v6, %v8730_v28  ;;  %v4595_v40 = vpop.f32.mrb[191].mxu1 }
 0x266   : > { %v6341_v41 = vmax.f32 %v5829_v19, 0.0  ;;  %v6088_v27 = vmax.f32 %v5576_v24, 0.0  ;;  %v5830_v22 = vadd.f32 %v11172_v23, %v5311_v35  ;;  %v5316_v31 = vmul.f32 %v11158_v6, %v8986_v43 }
 0x267   : > { %v6344_v54 = vmax.f32 %v5832_v17, 0.0  ;;  %v6086_v25 = vmax.f32 %v5574_v21, 0.0  ;;  %v5058_v5 = vmul.f32 %v11158_v6, %v3568_v50  ;;  %v5579_v2 = vadd.f32 %v11172_v23, %v5060_v26 }
 0x268   : > { %v6342_v37 = vmax.f32 %v5830_v22, 0.0  ;;  %v5314_v3 = vmul.f32 %v11158_v6, %v4592_v8  ;;  %v5061_v29 = vmul.f32 %v11158_v6, %v8731_v14  ;;  %v5835_v1 = vadd.f32 %v11172_v23, %v5316_v31 }
 0x269   : > { %v5577_v15 = vadd.f32 %v11172_v23, %v5058_v5  ;;  %v5317_v59 = vmul.f32 %v11158_v6, %v8987_v32  ;;  %v5059_v7 = vmul.f32 %v11158_v6, %v3571_v12  ;;  %v6091_v51 = vmax.f32 %v5579_v2, 0.0  ;;  %v8734_v56 = vpop.f32.mrb[192].mxu0 }
 0x26a   : > { %v5833_v48 = vadd.f32 %v11172_v23, %v5314_v3  ;;  %v5580_v63 = vadd.f32 %v11172_v23, %v5061_v29  ;;  %v5315_v60 = vmul.f32 %v11158_v6, %v4595_v40  ;;  %v6347_v61 = vmax.f32 %v5835_v1, 0.0  ;;  %v8990_v33 = vpop.f32.mrb[192].mxu1  ;;  %v3584_v19 = vpop.f32.mrb[193].mxu0 }
 0x26b   : > { %v6089_v57 = vmax.f32 %v5577_v15, 0.0  ;;  %v5836_v55 = vadd.f32 %v11172_v23, %v5317_v59  ;;  %v5578_v10 = vadd.f32 %v11172_v23, %v5059_v7  ;;  %v6587_v42 = vmax.f32 %v6087_v18, %v6091_v51  ;;  %v4608_v21 = vpop.f32.mrb[193].mxu1 }
 0x26c   : > { %v6345_v49 = vmax.f32 %v5833_v48, 0.0  ;;  %v6092_v53 = vmax.f32 %v5580_v63, 0.0  ;;  %v5834_v9 = vadd.f32 %v11172_v23, %v5315_v60  ;;  %v6651_v52 = vmax.f32 %v6343_v45, %v6347_v61  ;;  %v8735_v45 = vpop.f32.mrb[194].mxu0 }
 0x26d   : > { %v6585_v16 = vmax.f32 %v6085_v47, %v6089_v57  ;;  %v6348_v36 = vmax.f32 %v5836_v55, 0.0  ;;  %v6090_v20 = vmax.f32 %v5578_v10, 0.0  ;;  %v6715_v13 = vmax.f32 %v11258_v0, %v6587_v42  ;;  %v3587_v22 = vpop.f32.mrb[195].mxu0 }
 0x26e   : > { %v6649_v34 = vmax.f32 %v6341_v41, %v6345_v49  ;;  %v6588_v4 = vmax.f32 %v6088_v27, %v6092_v53  ;;  %v6346_v11 = vmax.f32 %v5834_v9, 0.0  ;;  %v6779_v24 = vmax.f32 %v11261_v58, %v6651_v52  ;;  %v8991_v27 = vpop.f32.mrb[194].mxu1 }
 0x26f   : > { %v6713_v18 = vmax.f32 %v11263_v38, %v6585_v16  ;;  %v6652_v35 = vmax.f32 %v6344_v54, %v6348_v36  ;;  %v6586_v17 = vmax.f32 %v6086_v25, %v6090_v20  ;;  %v8196_v47 = vpack.c.bf16 %v6715_v13, %v6715_v13  ;;  %v4611_v50 = vpop.f32.mrb[195].mxu1 }
 0x270   : > { %v6777_v28 = vmax.f32 %v11265_v30, %v6649_v34  ;;  %v6716_v0 = vmax.f32 %v11267_v62, %v6588_v4  ;;  %v6650_v41 = vmax.f32 %v6342_v37, %v6346_v11  ;;  %v8260_v26 = vpack.c.bf16 %v6779_v24, %v6779_v24 }
 0x271   : > { %v8194_v58 = vpack.c.bf16 %v6713_v18, %v6713_v18  ;;  %v6780_v38 = vmax.f32 %v11270_v44, %v6652_v35  ;;  %v6714_v43 = vmax.f32 %v11272_v39, %v6586_v17  ;;  %7356 = vst.msk [vmem:[%s9776_s6 + $0xb8] sm:$0xf] %vm7309_vm3, %v8196_v47  ;;  %v5064_v25 = vmul.f32 %v11158_v6, %v8734_v56  ;;  %v8738_v12 = vpop.f32.mrb[196].mxu0 }
 0x272   : > { %v8258_v54 = vpack.c.bf16 %v6777_v28, %v6777_v28  ;;  %v8197_v30 = vpack.c.bf16 %v6716_v0, %v6716_v0  ;;  %v6778_v62 = vmax.f32 %v11276_v46, %v6650_v41  ;;  %7420 = vst.msk [vmem:[%s9776_s6 + $0x1b8] sm:$0xf] %vm7309_vm3, %v8260_v26  ;;  %v5320_v44 = vmul.f32 %v11158_v6, %v8990_v33  ;;  %v8994_v40 = vpop.f32.mrb[196].mxu1  ;;  %v3600_v51 = vpop.f32.mrb[197].mxu0 }
 0x273   : > { %7354 = vst.msk [vmem:[%s9776_s6 + $0xb0] sm:$0xf] %vm7309_vm3, %v8194_v58  ;;  %v8261_v31 = vpack.c.bf16 %v6780_v38, %v6780_v38  ;;  %v8195_v5 = vpack.c.bf16 %v6714_v43, %v6714_v43  ;;  %v5062_v39 = vmul.f32 %v11158_v6, %v3584_v19  ;;  %v5583_v46 = vadd.f32 %v11172_v23, %v5064_v25  ;;  %v4624_v57 = vpop.f32.mrb[197].mxu1  ;;  %v8739_v55 = vpop.f32.mrb[198].mxu0 }
 0x274   : > { %7418 = vst.msk [vmem:[%s9776_s6 + $0x1b0] sm:$0xf] %vm7309_vm3, %v8258_v54  ;;  %7357 = vst.msk [vmem:[%s9776_s6 + $0xbc] sm:$0xf] %vm7309_vm3, %v8197_v30  ;;  %v8259_v8 = vpack.c.bf16 %v6778_v62, %v6778_v62  ;;  %v5318_v14 = vmul.f32 %v11158_v6, %v4608_v21  ;;  %v5065_v37 = vmul.f32 %v11158_v6, %v8735_v45  ;;  %v8995_v9 = vpop.f32.mrb[198].mxu1  ;;  %v3603_v52 = vpop.f32.mrb[199].mxu0 }
 0x275   : > { %7421 = vst.msk [vmem:[%s9776_s6 + $0x1bc] sm:$0xf] %vm7309_vm3, %v8261_v31  ;;  %7355 = vst.msk [vmem:[%s9776_s6 + $0xb4] sm:$0xf] %vm7309_vm3, %v8195_v5  ;;  %v5839_v2 = vadd.f32 %v11172_v23, %v5320_v44  ;;  %v5581_v3 = vadd.f32 %v11172_v23, %v5062_v39  ;;  %v5321_v29 = vmul.f32 %v11158_v6, %v8991_v27  ;;  %v6095_v1 = vmax.f32 %v5583_v46, 0.0  ;;  %v4627_v13 = vpop.f32.mrb[199].mxu1 }
 0x276   : > { %v5063_v32 = vmul.f32 %v11158_v6, %v3587_v22  ;;  %7419 = vst.msk [vmem:[%s9776_s6 + $0x1b4] sm:$0xf] %vm7309_vm3, %v8259_v8  ;;  %v5837_v15 = vadd.f32 %v11172_v23, %v5318_v14  ;;  %v5584_v59 = vadd.f32 %v11172_v23, %v5065_v37  ;;  %v5319_v7 = vmul.f32 %v11158_v6, %v4611_v50 }
 0x277   : > { %v6351_v48 = vmax.f32 %v5839_v2, 0.0  ;;  %v6093_v63 = vmax.f32 %v5581_v3, 0.0  ;;  %v5840_v60 = vadd.f32 %v11172_v23, %v5321_v29  ;;  %v5068_v53 = vmul.f32 %v11158_v6, %v8738_v12 }
 0x278   : > { %v5582_v61 = vadd.f32 %v11172_v23, %v5063_v32  ;;  %v6349_v10 = vmax.f32 %v5837_v15, 0.0  ;;  %v6096_v42 = vmax.f32 %v5584_v59, 0.0  ;;  %v5838_v49 = vadd.f32 %v11172_v23, %v5319_v7 }
 0x279   : > { %v6352_v16 = vmax.f32 %v5840_v60, 0.0  ;;  %v5324_v20 = vmul.f32 %v11158_v6, %v8994_v40  ;;  %v5066_v56 = vmul.f32 %v11158_v6, %v3600_v51  ;;  %v5587_v4 = vadd.f32 %v11172_v23, %v5068_v53  ;;  %v8742_v22 = vpop.f32.mrb[200].mxu0 }
 0x27a   : > { %v6094_v36 = vmax.f32 %v5582_v61, 0.0  ;;  %v6350_v34 = vmax.f32 %v5838_v49, 0.0  ;;  %v5322_v11 = vmul.f32 %v11158_v6, %v4624_v57  ;;  %v5069_v33 = vmul.f32 %v11158_v6, %v8739_v55  ;;  %v8998_v50 = vpop.f32.mrb[200].mxu1  ;;  %v3616_v54 = vpop.f32.mrb[201].mxu0 }
 0x27b   : > { %v5843_v19 = vadd.f32 %v11172_v23, %v5324_v20  ;;  %v5585_v24 = vadd.f32 %v11172_v23, %v5066_v56  ;;  %v5325_v18 = vmul.f32 %v11158_v6, %v8995_v9  ;;  %v5067_v35 = vmul.f32 %v11158_v6, %v3603_v52  ;;  %v4640_v5 = vpop.f32.mrb[201].mxu1  ;;  %v8743_v44 = vpop.f32.mrb[202].mxu0 }
 0x27c   : > { %v6099_v17 = vmax.f32 %v5587_v4, 0.0  ;;  %v5841_v21 = vadd.f32 %v11172_v23, %v5322_v11  ;;  %v5588_v45 = vadd.f32 %v11172_v23, %v5069_v33  ;;  %v5323_v47 = vmul.f32 %v11158_v6, %v4627_v13  ;;  %v8999_v37 = vpop.f32.mrb[202].mxu1  ;;  %v3619_v2 = vpop.f32.mrb[203].mxu0 }
 0x27d   : > { %v6355_v28 = vmax.f32 %v5843_v19, 0.0  ;;  %v6097_v0 = vmax.f32 %v5585_v24, 0.0  ;;  %v5844_v41 = vadd.f32 %v11172_v23, %v5325_v18  ;;  %v5586_v27 = vadd.f32 %v11172_v23, %v5067_v35 }
 0x27e   : > { %v11362_v26 = vmax.f32 %v6095_v1, %v6099_v17  ;;  %v6353_v58 = vmax.f32 %v5841_v21, 0.0  ;;  %v6100_v38 = vmax.f32 %v5588_v45, 0.0  ;;  %v5842_v43 = vadd.f32 %v11172_v23, %v5323_v47  ;;  %v4643_v1 = vpop.f32.mrb[203].mxu1 }
 0x27f   : > { %v11365_v30 = vmax.f32 %v6351_v48, %v6355_v28  ;;  %v11367_v62 = vmax.f32 %v6093_v63, %v6097_v0  ;;  %v6356_v25 = vmax.f32 %v5844_v41, 0.0  ;;  %v6098_v31 = vmax.f32 %v5586_v27, 0.0 }
 0x280   : > { %v11369_v39 = vmax.f32 %v6349_v10, %v6353_v58  ;;  %v11371_v8 = vmax.f32 %v6096_v42, %v6100_v38  ;;  %v6354_v46 = vmax.f32 %v5842_v43, 0.0  ;;  %v5072_v14 = vmul.f32 %v11158_v6, %v8742_v22 }
 0x281   : > { %v11374_v3 = vmax.f32 %v6352_v16, %v6356_v25  ;;  %v11376_v29 = vmax.f32 %v6094_v36, %v6098_v31  ;;  %v5328_v32 = vmul.f32 %v11158_v6, %v8998_v50  ;;  %v5070_v12 = vmul.f32 %v11158_v6, %v3616_v54  ;;  %v8746_v52 = vpop.f32.mrb[204].mxu0 }
 0x282   : > { %v11380_v15 = vmax.f32 %v6350_v34, %v6354_v46  ;;  %v5591_v59 = vadd.f32 %v11172_v23, %v5072_v14  ;;  %v5326_v7 = vmul.f32 %v11158_v6, %v4640_v5  ;;  %v5073_v40 = vmul.f32 %v11158_v6, %v8743_v44  ;;  %v3632_v34 = vpop.f32.mrb[205].mxu0 }
 0x283   : > { %v5847_v51 = vadd.f32 %v11172_v23, %v5328_v32  ;;  %v5589_v48 = vadd.f32 %v11172_v23, %v5070_v12  ;;  %v5329_v63 = vmul.f32 %v11158_v6, %v8999_v37  ;;  %v5071_v60 = vmul.f32 %v11158_v6, %v3619_v2  ;;  %v9002_v13 = vpop.f32.mrb[204].mxu1  ;;  %v8747_v18 = vpop.f32.mrb[206].mxu0 }
 0x284   : > { %v6103_v61 = vmax.f32 %v5591_v59, 0.0  ;;  %v5845_v57 = vadd.f32 %v11172_v23, %v5326_v7  ;;  %v5592_v55 = vadd.f32 %v11172_v23, %v5073_v40  ;;  %v5327_v10 = vmul.f32 %v11158_v6, %v4643_v1  ;;  %v4656_v24 = vpop.f32.mrb[205].mxu1  ;;  %v3635_v28 = vpop.f32.mrb[207].mxu0 }
 0x285   : > { %v6359_v42 = vmax.f32 %v5847_v51, 0.0  ;;  %v6101_v49 = vmax.f32 %v5589_v48, 0.0  ;;  %v5848_v53 = vadd.f32 %v11172_v23, %v5329_v63  ;;  %v5590_v9 = vadd.f32 %v11172_v23, %v5071_v60  ;;  %v9003_v47 = vpop.f32.mrb[206].mxu1 }
 0x286   : > { %v6357_v16 = vmax.f32 %v5845_v57, 0.0  ;;  %v6104_v36 = vmax.f32 %v5592_v55, 0.0  ;;  %v5846_v20 = vadd.f32 %v11172_v23, %v5327_v10  ;;  %v5076_v56 = vmul.f32 %v11158_v6, %v8746_v52  ;;  %v4659_v58 = vpop.f32.mrb[207].mxu1 }
 0x287   : > { %v6360_v4 = vmax.f32 %v5848_v53, 0.0  ;;  %v6102_v11 = vmax.f32 %v5590_v9, 0.0  ;;  %v5332_v33 = vmul.f32 %v11158_v6, %v9002_v13  ;;  %v5074_v19 = vmul.f32 %v11158_v6, %v3632_v34 }
 0x288   : > { %v6358_v35 = vmax.f32 %v5846_v20, 0.0  ;;  %v5595_v17 = vadd.f32 %v11172_v23, %v5076_v56  ;;  %v5330_v21 = vmul.f32 %v11158_v6, %v4656_v24  ;;  %v5077_v45 = vmul.f32 %v11158_v6, %v8747_v18 }
 0x289   : > { %v5851_v0 = vadd.f32 %v11172_v23, %v5332_v33  ;;  %v5593_v41 = vadd.f32 %v11172_v23, %v5074_v19  ;;  %v5333_v27 = vmul.f32 %v11158_v6, %v9003_v47  ;;  %v5075_v22 = vmul.f32 %v11158_v6, %v3635_v28  ;;  %v8750_v7 = vpop.f32.mrb[208].mxu0 }
 0x28a   : > { %v6107_v38 = vmax.f32 %v5595_v17, 0.0  ;;  %v5849_v43 = vadd.f32 %v11172_v23, %v5330_v21  ;;  %v5596_v50 = vadd.f32 %v11172_v23, %v5077_v45  ;;  %v5331_v54 = vmul.f32 %v11158_v6, %v4659_v58  ;;  %v3648_v57 = vpop.f32.mrb[209].mxu0 }
 0x28b   : > { %v6363_v25 = vmax.f32 %v5851_v0, 0.0  ;;  %v6105_v31 = vmax.f32 %v5593_v41, 0.0  ;;  %v5852_v5 = vadd.f32 %v11172_v23, %v5333_v27  ;;  %v5594_v44 = vadd.f32 %v11172_v23, %v5075_v22  ;;  %v9006_v60 = vpop.f32.mrb[208].mxu1 }
 0x28c   : > { %v6591_v46 = vmax.f32 %v6103_v61, %v6107_v38  ;;  %v6361_v14 = vmax.f32 %v5849_v43, 0.0  ;;  %v6108_v37 = vmax.f32 %v5596_v50, 0.0  ;;  %v5850_v2 = vadd.f32 %v11172_v23, %v5331_v54  ;;  %v4672_v9 = vpop.f32.mrb[209].mxu1 }
 0x28d   : > { %v6655_v32 = vmax.f32 %v6359_v42, %v6363_v25  ;;  %v6589_v12 = vmax.f32 %v6101_v49, %v6105_v31  ;;  %v6364_v1 = vmax.f32 %v5852_v5, 0.0  ;;  %v6106_v59 = vmax.f32 %v5594_v44, 0.0  ;;  %v8751_v42 = vpop.f32.mrb[210].mxu0 }
 0x28e   : > { %v6719_v40 = vmax.f32 %v11362_v26, %v6591_v46  ;;  %v6653_v51 = vmax.f32 %v6357_v16, %v6361_v14  ;;  %v6592_v48 = vmax.f32 %v6104_v36, %v6108_v37  ;;  %v6362_v63 = vmax.f32 %v5850_v2, 0.0  ;;  %v9007_v36 = vpop.f32.mrb[210].mxu1  ;;  %v3651_v20 = vpop.f32.mrb[211].mxu0 }
 0x28f   : > { %v6783_v55 = vmax.f32 %v11365_v30, %v6655_v32  ;;  %v6717_v61 = vmax.f32 %v11367_v62, %v6589_v12  ;;  %v6656_v10 = vmax.f32 %v6360_v4, %v6364_v1  ;;  %v6590_v53 = vmax.f32 %v6102_v11, %v6106_v59  ;;  %v4675_v34 = vpop.f32.mrb[211].mxu1 }
 0x290   : > { %v8200_v49 = vpack.c.bf16 %v6719_v40, %v6719_v40  ;;  %v6781_v52 = vmax.f32 %v11369_v39, %v6653_v51  ;;  %v6720_v26 = vmax.f32 %v11371_v8, %v6592_v48  ;;  %v6654_v16 = vmax.f32 %v6358_v35, %v6362_v63 }
 0x291   : > { %v8264_v56 = vpack.c.bf16 %v6783_v55, %v6783_v55  ;;  %v8198_v30 = vpack.c.bf16 %v6717_v61, %v6717_v61  ;;  %v6784_v62 = vmax.f32 %v11374_v3, %v6656_v10  ;;  %v6718_v13 = vmax.f32 %v11376_v29, %v6590_v53  ;;  %v8754_v28 = vpop.f32.mrb[212].mxu0 }
 0x292   : > { %7360 = vst.msk [vmem:[%s9776_s6 + $0xc8] sm:$0xf] %vm7309_vm3, %v8200_v49  ;;  %v8262_v4 = vpack.c.bf16 %v6781_v52, %v6781_v52  ;;  %v8201_v39 = vpack.c.bf16 %v6720_v26, %v6720_v26  ;;  %v6782_v8 = vmax.f32 %v11380_v15, %v6654_v16  ;;  %v5080_v11 = vmul.f32 %v11158_v6, %v8750_v7  ;;  %v3664_v38 = vpop.f32.mrb[213].mxu0 }
 0x293   : > { %7424 = vst.msk [vmem:[%s9776_s6 + $0x1c8] sm:$0xf] %vm7309_vm3, %v8264_v56  ;;  %7358 = vst.msk [vmem:[%s9776_s6 + $0xc0] sm:$0xf] %vm7309_vm3, %v8198_v30  ;;  %v8265_v33 = vpack.c.bf16 %v6784_v62, %v6784_v62  ;;  %v8199_v19 = vpack.c.bf16 %v6718_v13, %v6718_v13  ;;  %v5336_v3 = vmul.f32 %v11158_v6, %v9006_v60  ;;  %v9010_v58 = vpop.f32.mrb[212].mxu1  ;;  %v8755_v5 = vpop.f32.mrb[214].mxu0 }
 0x294   : > { %v5078_v29 = vmul.f32 %v11158_v6, %v3648_v57  ;;  %7422 = vst.msk [vmem:[%s9776_s6 + $0x1c0] sm:$0xf] %vm7309_vm3, %v8262_v4  ;;  %7361 = vst.msk [vmem:[%s9776_s6 + $0xcc] sm:$0xf] %vm7309_vm3, %v8201_v39  ;;  %v8263_v24 = vpack.c.bf16 %v6782_v8, %v6782_v8  ;;  %v5599_v15 = vadd.f32 %v11172_v23, %v5080_v11  ;;  %v4688_v31 = vpop.f32.mrb[213].mxu1  ;;  %v3667_v32 = vpop.f32.mrb[215].mxu0 }
 0x295   : > { %v5334_v18 = vmul.f32 %v11158_v6, %v4672_v9  ;;  %v5081_v35 = vmul.f32 %v11158_v6, %v8751_v42  ;;  %7425 = vst.msk [vmem:[%s9776_s6 + $0x1cc] sm:$0xf] %vm7309_vm3, %v8265_v33  ;;  %7359 = vst.msk [vmem:[%s9776_s6 + $0xc4] sm:$0xf] %vm7309_vm3, %v8199_v19  ;;  %v5855_v17 = vadd.f32 %v11172_v23, %v5336_v3  ;;  %v9011_v2 = vpop.f32.mrb[214].mxu1 }
 0x296   : > { %v5597_v21 = vadd.f32 %v11172_v23, %v5078_v29  ;;  %v5337_v45 = vmul.f32 %v11158_v6, %v9007_v36  ;;  %v5079_v47 = vmul.f32 %v11158_v6, %v3651_v20  ;;  %7423 = vst.msk [vmem:[%s9776_s6 + $0x1c4] sm:$0xf] %vm7309_vm3, %v8263_v24  ;;  %v6111_v0 = vmax.f32 %v5599_v15, 0.0  ;;  %v4691_v40 = vpop.f32.mrb[215].mxu1 }
 0x297   : > { %v5853_v41 = vadd.f32 %v11172_v23, %v5334_v18  ;;  %v5600_v27 = vadd.f32 %v11172_v23, %v5081_v35  ;;  %v5335_v22 = vmul.f32 %v11158_v6, %v4675_v34  ;;  %v6367_v43 = vmax.f32 %v5855_v17, 0.0 }
 0x298   : > { %v6109_v50 = vmax.f32 %v5597_v21, 0.0  ;;  %v5856_v54 = vadd.f32 %v11172_v23, %v5337_v45  ;;  %v5598_v25 = vadd.f32 %v11172_v23, %v5079_v47  ;;  %v5084_v37 = vmul.f32 %v11158_v6, %v8754_v28 }
 0x299   : > { %v6365_v44 = vmax.f32 %v5853_v41, 0.0  ;;  %v6112_v46 = vmax.f32 %v5600_v27, 0.0  ;;  %v5854_v14 = vadd.f32 %v11172_v23, %v5335_v22  ;;  %v5340_v59 = vmul.f32 %v11158_v6, %v9010_v58  ;;  %v8758_v20 = vpop.f32.mrb[216].mxu0  ;;  %v11490_v22 = vld [vmem:[%s11762_s2] ss:$0 sm:$0xff] }
 0x29a   : > { %v6368_v12 = vmax.f32 %v5856_v54, 0.0  ;;  %v6110_v1 = vmax.f32 %v5598_v25, 0.0  ;;  %v5082_v7 = vmul.f32 %v11158_v6, %v3664_v38  ;;  %v5603_v48 = vadd.f32 %v11172_v23, %v5084_v37  ;;  %v3680_v4 = vpop.f32.mrb[217].mxu0 }
 0x29b   : > { %v6366_v51 = vmax.f32 %v5854_v14, 0.0  ;;  %v5338_v63 = vmul.f32 %v11158_v6, %v4688_v31  ;;  %v5085_v60 = vmul.f32 %v11158_v6, %v8755_v5  ;;  %v5859_v57 = vadd.f32 %v11172_v23, %v5340_v59  ;;  %v9014_v34 = vpop.f32.mrb[216].mxu1  ;;  %v8759_v3 = vpop.f32.mrb[218].mxu0  ;;  %v11501_v31 = vld [vmem:[%s11763_s3] ss:$0 sm:$0xff] }
 0x29c   : > { %v5601_v55 = vadd.f32 %v11172_v23, %v5082_v7  ;;  %v5341_v61 = vmul.f32 %v11158_v6, %v9011_v2  ;;  %v5083_v10 = vmul.f32 %v11158_v6, %v3667_v32  ;;  %v6115_v53 = vmax.f32 %v5603_v48, 0.0  ;;  %v4704_v19 = vpop.f32.mrb[217].mxu1  ;;  %v3683_v17 = vpop.f32.mrb[219].mxu0 }
 0x29d   : > { %v5857_v9 = vadd.f32 %v11172_v23, %v5338_v63  ;;  %v5604_v42 = vadd.f32 %v11172_v23, %v5085_v60  ;;  %v5339_v49 = vmul.f32 %v11158_v6, %v4691_v40  ;;  %v6371_v52 = vmax.f32 %v5859_v57, 0.0  ;;  %v9015_v35 = vpop.f32.mrb[218].mxu1 }
 0x29e   : > { %v6113_v26 = vmax.f32 %v5601_v55, 0.0  ;;  %v5860_v16 = vadd.f32 %v11172_v23, %v5341_v61  ;;  %v5602_v36 = vadd.f32 %v11172_v23, %v5083_v10  ;;  %v11466_v56 = vmax.f32 %v6111_v0, %v6115_v53  ;;  %v4707_v0 = vpop.f32.mrb[219].mxu1 }
 0x29f   : > { %v6369_v30 = vmax.f32 %v5857_v9, 0.0  ;;  %v6116_v62 = vmax.f32 %v5604_v42, 0.0  ;;  %v5858_v13 = vadd.f32 %v11172_v23, %v5339_v49  ;;  %v11469_v39 = vmax.f32 %v6367_v43, %v6371_v52 }
 0x2a0   : > { %v11471_v8 = vmax.f32 %v6109_v50, %v6113_v26  ;;  %v6372_v11 = vmax.f32 %v5860_v16, 0.0  ;;  %v6114_v33 = vmax.f32 %v5602_v36, 0.0  ;;  %v5088_v18 = vmul.f32 %v11158_v6, %v8758_v20 }
 0x2a1   : > { %v11473_v29 = vmax.f32 %v6365_v44, %v6369_v30  ;;  %v11475_v24 = vmax.f32 %v6112_v46, %v6116_v62  ;;  %v6370_v15 = vmax.f32 %v5858_v13, 0.0  ;;  %v5344_v47 = vmul.f32 %v11158_v6, %v9014_v34 }
 0x2a2   : > { %v11478_v21 = vmax.f32 %v6368_v12, %v6372_v11  ;;  %v11480_v45 = vmax.f32 %v6110_v1, %v6114_v33  ;;  %v5086_v28 = vmul.f32 %v11158_v6, %v3680_v4  ;;  %v5607_v27 = vadd.f32 %v11172_v23, %v5088_v18  ;;  %v8762_v32 = vpop.f32.mrb[220].mxu0 }
 0x2a3   : > { %v11484_v41 = vmax.f32 %v6366_v51, %v6370_v15  ;;  %v5342_v58 = vmul.f32 %v11490_v22, %v4704_v19  ;;  %v5089_v38 = vmul.f32 %v11490_v22, %v8759_v3  ;;  %v5863_v43 = vadd.f32 %v11172_v23, %v5344_v47  ;;  %v9018_v40 = vpop.f32.mrb[220].mxu1  ;;  %v3696_v51 = vpop.f32.mrb[221].mxu0 }
 0x2a4   : > { %v5605_v50 = vadd.f32 %v11172_v23, %v5086_v28  ;;  %v5345_v6 = vmul.f32 %v11490_v22, %v9015_v35  ;;  %v5087_v54 = vmul.f32 %v11490_v22, %v3683_v17  ;;  %v6119_v25 = vmax.f32 %v5607_v27, 0.0  ;;  %v4720_v55 = vpop.f32.mrb[221].mxu1  ;;  %v8763_v61 = vpop.f32.mrb[222].mxu0 }
 0x2a5   : > { %v5861_v5 = vadd.f32 %v11501_v31, %v5342_v58  ;;  %v5608_v44 = vadd.f32 %v11501_v31, %v5089_v38  ;;  %v5343_v46 = vmul.f32 %v11490_v22, %v4707_v0  ;;  %v6375_v14 = vmax.f32 %v5863_v43, 0.0  ;;  %v9019_v49 = vpop.f32.mrb[222].mxu1  ;;  %v3699_v52 = vpop.f32.mrb[223].mxu0 }
 0x2a6   : > { %v6117_v37 = vmax.f32 %v5605_v50, 0.0  ;;  %v5864_v23 = vadd.f32 %v11501_v31, %v5345_v6  ;;  %v5606_v2 = vadd.f32 %v11501_v31, %v5087_v54  ;;  %v5092_v7 = vmul.f32 %v11490_v22, %v8762_v32  ;;  %v4723_v30 = vpop.f32.mrb[223].mxu1 }
 0x2a7   : > { %v6373_v12 = vmax.f32 %v5861_v5, 0.0  ;;  %v6120_v1 = vmax.f32 %v5608_v44, 0.0  ;;  %v5862_v59 = vadd.f32 %v11501_v31, %v5343_v46  ;;  %v5348_v60 = vmul.f32 %v11490_v22, %v9018_v40 }
 0x2a8   : > { %v6376_v48 = vmax.f32 %v5864_v23, 0.0  ;;  %v6118_v63 = vmax.f32 %v5606_v2, 0.0  ;;  %v5090_v57 = vmul.f32 %v11490_v22, %v3696_v51  ;;  %v5611_v53 = vadd.f32 %v11501_v31, %v5092_v7 }
 0x2a9   : > { %v6374_v10 = vmax.f32 %v5862_v59, 0.0  ;;  %v5346_v9 = vmul.f32 %v11490_v22, %v4720_v55  ;;  %v5093_v42 = vmul.f32 %v11490_v22, %v8763_v61  ;;  %v5867_v26 = vadd.f32 %v11501_v31, %v5348_v60 }
 0x2aa   : > { %v5609_v16 = vadd.f32 %v11501_v31, %v5090_v57  ;;  %v5349_v36 = vmul.f32 %v11490_v22, %v9019_v49  ;;  %v5091_v20 = vmul.f32 %v11490_v22, %v3699_v52  ;;  %v6123_v62 = vmax.f32 %v5611_v53, 0.0  ;;  %v8766_v58 = vpop.f32.mrb[224].mxu0 }
 0x2ab   : > { %v5865_v13 = vadd.f32 %v11501_v31, %v5346_v9  ;;  %v5612_v34 = vadd.f32 %v11501_v31, %v5093_v42  ;;  %v5347_v4 = vmul.f32 %v11490_v22, %v4723_v30  ;;  %v6379_v11 = vmax.f32 %v5867_v26, 0.0  ;;  %v9022_v54 = vpop.f32.mrb[224].mxu1  ;;  %v3712_v5 = vpop.f32.mrb[225].mxu0 }
 0x2ac   : > { %v6121_v33 = vmax.f32 %v5609_v16, 0.0  ;;  %v5868_v19 = vadd.f32 %v11501_v31, %v5349_v36  ;;  %v5610_v3 = vadd.f32 %v11501_v31, %v5091_v20  ;;  %v6595_v15 = vmax.f32 %v6119_v25, %v6123_v62  ;;  %v4736_v2 = vpop.f32.mrb[225].mxu1 }
 0x2ad   : > { %v6377_v18 = vmax.f32 %v5865_v13, 0.0  ;;  %v6124_v35 = vmax.f32 %v5612_v34, 0.0  ;;  %v5866_v17 = vadd.f32 %v11501_v31, %v5347_v4  ;;  %v6659_v47 = vmax.f32 %v6375_v14, %v6379_v11  ;;  %v8767_v14 = vpop.f32.mrb[226].mxu0 }
 0x2ae   : > { %v6593_v28 = vmax.f32 %v6117_v37, %v6121_v33  ;;  %v6380_v0 = vmax.f32 %v5868_v19, 0.0  ;;  %v6122_v27 = vmax.f32 %v5610_v3, 0.0  ;;  %v6723_v38 = vmax.f32 %v11466_v56, %v6595_v15  ;;  %v3715_v59 = vpop.f32.mrb[227].mxu0 }
 0x2af   : > { %v6657_v43 = vmax.f32 %v6373_v12, %v6377_v18  ;;  %v6596_v50 = vmax.f32 %v6120_v1, %v6124_v35  ;;  %v6378_v6 = vmax.f32 %v5866_v17, 0.0  ;;  %v6787_v44 = vmax.f32 %v11469_v39, %v6659_v47  ;;  %v9023_v1 = vpop.f32.mrb[226].mxu1 }
 0x2b0   : > { %v6721_v25 = vmax.f32 %v11471_v8, %v6593_v28  ;;  %v6660_v46 = vmax.f32 %v6376_v48, %v6380_v0  ;;  %v6594_v23 = vmax.f32 %v6118_v63, %v6122_v27  ;;  %v8204_v37 = vpack.c.bf16 %v6723_v38, %v6723_v38  ;;  %v4739_v51 = vpop.f32.mrb[227].mxu1 }
 0x2b1   : > { %v6785_v32 = vmax.f32 %v11473_v29, %v6657_v43  ;;  %v6724_v56 = vmax.f32 %v11475_v24, %v6596_v50  ;;  %v6658_v12 = vmax.f32 %v6374_v10, %v6378_v6  ;;  %v8268_v7 = vpack.c.bf16 %v6787_v44, %v6787_v44 }
 0x2b2   : > { %v8202_v39 = vpack.c.bf16 %v6721_v25, %v6721_v25  ;;  %v6788_v8 = vmax.f32 %v11478_v21, %v6660_v46  ;;  %v6722_v40 = vmax.f32 %v11480_v45, %v6594_v23  ;;  %7364 = vst.msk [vmem:[%s9776_s6 + $0xd8] sm:$0xf] %vm7309_vm3, %v8204_v37  ;;  %v5096_v63 = vmul.f32 %v11490_v22, %v8766_v58  ;;  %v8770_v52 = vpop.f32.mrb[228].mxu0 }
 0x2b3   : > { %v8266_v48 = vpack.c.bf16 %v6785_v32, %v6785_v32  ;;  %v8205_v29 = vpack.c.bf16 %v6724_v56, %v6724_v56  ;;  %v6786_v24 = vmax.f32 %v11484_v41, %v6658_v12  ;;  %7428 = vst.msk [vmem:[%s9776_s6 + $0x1d8] sm:$0xf] %vm7309_vm3, %v8268_v7  ;;  %v5352_v21 = vmul.f32 %v11490_v22, %v9022_v54  ;;  %v9026_v30 = vpop.f32.mrb[228].mxu1  ;;  %v3728_v62 = vpop.f32.mrb[229].mxu0 }
 0x2b4   : > { %7362 = vst.msk [vmem:[%s9776_s6 + $0xd0] sm:$0xf] %vm7309_vm3, %v8202_v39  ;;  %v8269_v60 = vpack.c.bf16 %v6788_v8, %v6788_v8  ;;  %v8203_v57 = vpack.c.bf16 %v6722_v40, %v6722_v40  ;;  %v5094_v45 = vmul.f32 %v11490_v22, %v3712_v5  ;;  %v5615_v41 = vadd.f32 %v11501_v31, %v5096_v63  ;;  %v4752_v33 = vpop.f32.mrb[229].mxu1  ;;  %v8771_v19 = vpop.f32.mrb[230].mxu0 }
 0x2b5   : > { %7426 = vst.msk [vmem:[%s9776_s6 + $0x1d0] sm:$0xf] %vm7309_vm3, %v8266_v48  ;;  %7365 = vst.msk [vmem:[%s9776_s6 + $0xdc] sm:$0xf] %vm7309_vm3, %v8205_v29  ;;  %v8267_v55 = vpack.c.bf16 %v6786_v24, %v6786_v24  ;;  %v5350_v61 = vmul.f32 %v11490_v22, %v4736_v2  ;;  %v5097_v10 = vmul.f32 %v11490_v22, %v8767_v14  ;;  %v9027_v17 = vpop.f32.mrb[230].mxu1  ;;  %v3731_v47 = vpop.f32.mrb[231].mxu0 }
 0x2b6   : > { %7429 = vst.msk [vmem:[%s9776_s6 + $0x1dc] sm:$0xf] %vm7309_vm3, %v8269_v60  ;;  %7363 = vst.msk [vmem:[%s9776_s6 + $0xd4] sm:$0xf] %vm7309_vm3, %v8203_v57  ;;  %v5871_v53 = vadd.f32 %v11501_v31, %v5352_v21  ;;  %v5613_v9 = vadd.f32 %v11501_v31, %v5094_v45  ;;  %v5353_v42 = vmul.f32 %v11490_v22, %v9023_v1  ;;  %v6127_v26 = vmax.f32 %v5615_v41, 0.0  ;;  %v4755_v38 = vpop.f32.mrb[231].mxu1 }
 0x2b7   : > { %v5095_v49 = vmul.f32 %v11490_v22, %v3715_v59  ;;  %7427 = vst.msk [vmem:[%s9776_s6 + $0x1d4] sm:$0xf] %vm7309_vm3, %v8267_v55  ;;  %v5869_v16 = vadd.f32 %v11501_v31, %v5350_v61  ;;  %v5616_v36 = vadd.f32 %v11501_v31, %v5097_v10  ;;  %v5351_v20 = vmul.f32 %v11490_v22, %v4739_v51 }
 0x2b8   : > { %v6383_v13 = vmax.f32 %v5871_v53, 0.0  ;;  %v6125_v34 = vmax.f32 %v5613_v9, 0.0  ;;  %v5872_v4 = vadd.f32 %v11501_v31, %v5353_v42  ;;  %v5100_v35 = vmul.f32 %v11490_v22, %v8770_v52 }
 0x2b9   : > { %v5614_v11 = vadd.f32 %v11501_v31, %v5095_v49  ;;  %v6381_v3 = vmax.f32 %v5869_v16, 0.0  ;;  %v6128_v15 = vmax.f32 %v5616_v36, 0.0  ;;  %v5870_v18 = vadd.f32 %v11501_v31, %v5351_v20 }
 0x2ba   : > { %v6384_v28 = vmax.f32 %v5872_v4, 0.0  ;;  %v5356_v27 = vmul.f32 %v11490_v22, %v9026_v30  ;;  %v5098_v58 = vmul.f32 %v11490_v22, %v3728_v62  ;;  %v5619_v50 = vadd.f32 %v11501_v31, %v5100_v35  ;;  %v8774_v59 = vpop.f32.mrb[232].mxu0 }
 0x2bb   : > { %v6126_v0 = vmax.f32 %v5614_v11, 0.0  ;;  %v6382_v43 = vmax.f32 %v5870_v18, 0.0  ;;  %v5354_v6 = vmul.f32 %v11490_v22, %v4752_v33  ;;  %v5101_v54 = vmul.f32 %v11490_v22, %v8771_v19  ;;  %v9030_v51 = vpop.f32.mrb[232].mxu1  ;;  %v3744_v48 = vpop.f32.mrb[233].mxu0 }
 0x2bc   : > { %v5875_v5 = vadd.f32 %v11501_v31, %v5356_v27  ;;  %v5617_v44 = vadd.f32 %v11501_v31, %v5098_v58  ;;  %v5357_v25 = vmul.f32 %v11490_v22, %v9027_v17  ;;  %v5099_v46 = vmul.f32 %v11490_v22, %v3731_v47  ;;  %v4768_v57 = vpop.f32.mrb[233].mxu1  ;;  %v8775_v21 = vpop.f32.mrb[234].mxu0 }
 0x2bd   : > { %v6131_v23 = vmax.f32 %v5619_v50, 0.0  ;;  %v5873_v2 = vadd.f32 %v11501_v31, %v5354_v6  ;;  %v5620_v14 = vadd.f32 %v11501_v31, %v5101_v54  ;;  %v5355_v37 = vmul.f32 %v11490_v22, %v4755_v38  ;;  %v9031_v10 = vpop.f32.mrb[234].mxu1  ;;  %v3747_v53 = vpop.f32.mrb[235].mxu0 }
 0x2be   : > { %v6387_v32 = vmax.f32 %v5875_v5, 0.0  ;;  %v6129_v56 = vmax.f32 %v5617_v44, 0.0  ;;  %v5876_v12 = vadd.f32 %v11501_v31, %v5357_v25  ;;  %v5618_v1 = vadd.f32 %v11501_v31, %v5099_v46 }
 0x2bf   : > { %v11580_v7 = vmax.f32 %v6127_v26, %v6131_v23  ;;  %v6385_v39 = vmax.f32 %v5873_v2, 0.0  ;;  %v6132_v8 = vmax.f32 %v5620_v14, 0.0  ;;  %v5874_v40 = vadd.f32 %v11501_v31, %v5355_v37  ;;  %v4771_v26 = vpop.f32.mrb[235].mxu1 }
 0x2c0   : > { %v11583_v29 = vmax.f32 %v6383_v13, %v6387_v32  ;;  %v11585_v24 = vmax.f32 %v6125_v34, %v6129_v56  ;;  %v6388_v63 = vmax.f32 %v5876_v12, 0.0  ;;  %v6130_v60 = vmax.f32 %v5618_v1, 0.0 }
 0x2c1   : > { %v11587_v45 = vmax.f32 %v6381_v3, %v6385_v39  ;;  %v11589_v55 = vmax.f32 %v6128_v15, %v6132_v8  ;;  %v6386_v41 = vmax.f32 %v5874_v40, 0.0  ;;  %v5104_v61 = vmul.f32 %v11490_v22, %v8774_v59 }
 0x2c2   : > { %v11592_v9 = vmax.f32 %v6384_v28, %v6388_v63  ;;  %v11594_v42 = vmax.f32 %v6126_v0, %v6130_v60  ;;  %v5360_v49 = vmul.f32 %v11490_v22, %v9030_v51  ;;  %v5102_v52 = vmul.f32 %v11490_v22, %v3744_v48 }
 0x2c3   : > { %v11598_v16 = vmax.f32 %v6382_v43, %v6386_v41  ;;  %v5623_v36 = vadd.f32 %v11501_v31, %v5104_v61  ;;  %v5358_v20 = vmul.f32 %v11490_v22, %v4768_v57  ;;  %v5105_v30 = vmul.f32 %v11490_v22, %v8775_v21  ;;  %v8778_v47 = vpop.f32.mrb[236].mxu0 }
 0x2c4   : > { %v5879_v62 = vadd.f32 %v11501_v31, %v5360_v49  ;;  %v5621_v13 = vadd.f32 %v11501_v31, %v5102_v52  ;;  %v5361_v34 = vmul.f32 %v11490_v22, %v9031_v10  ;;  %v5103_v4 = vmul.f32 %v11490_v22, %v3747_v53  ;;  %v9034_v38 = vpop.f32.mrb[236].mxu1  ;;  %v3760_v43 = vpop.f32.mrb[237].mxu0 }
 0x2c5   : > { %v6135_v11 = vmax.f32 %v5623_v36, 0.0  ;;  %v5877_v33 = vadd.f32 %v11501_v31, %v5358_v20  ;;  %v5624_v19 = vadd.f32 %v11501_v31, %v5105_v30  ;;  %v5359_v3 = vmul.f32 %v11490_v22, %v4771_v26  ;;  %v4784_v44 = vpop.f32.mrb[237].mxu1  ;;  %v8779_v25 = vpop.f32.mrb[238].mxu0 }
 0x2c6   : > { %v6391_v15 = vmax.f32 %v5879_v62, 0.0  ;;  %v6133_v18 = vmax.f32 %v5621_v13, 0.0  ;;  %v5880_v35 = vadd.f32 %v11501_v31, %v5361_v34  ;;  %v5622_v17 = vadd.f32 %v11501_v31, %v5103_v4  ;;  %v9035_v37 = vpop.f32.mrb[238].mxu1  ;;  %v3763_v32 = vpop.f32.mrb[239].mxu0 }
 0x2c7   : > { %v6389_v28 = vmax.f32 %v5877_v33, 0.0  ;;  %v6136_v0 = vmax.f32 %v5624_v19, 0.0  ;;  %v5878_v27 = vadd.f32 %v11501_v31, %v5359_v3  ;;  %v5108_v58 = vmul.f32 %v11490_v22, %v8778_v47  ;;  %v4787_v39 = vpop.f32.mrb[239].mxu1 }
 0x2c8   : > { %v6392_v50 = vmax.f32 %v5880_v35, 0.0  ;;  %v6134_v6 = vmax.f32 %v5622_v17, 0.0  ;;  %v5364_v54 = vmul.f32 %v11490_v22, %v9034_v38  ;;  %v5106_v5 = vmul.f32 %v11490_v22, %v3760_v43 }
 0x2c9   : > { %v6390_v46 = vmax.f32 %v5878_v27, 0.0  ;;  %v5627_v23 = vadd.f32 %v11501_v31, %v5108_v58  ;;  %v5362_v2 = vmul.f32 %v11490_v22, %v4784_v44  ;;  %v5109_v14 = vmul.f32 %v11490_v22, %v8779_v25 }
 0x2ca   : > { %v5883_v56 = vadd.f32 %v11501_v31, %v5364_v54  ;;  %v5625_v12 = vadd.f32 %v11501_v31, %v5106_v5  ;;  %v5365_v1 = vmul.f32 %v11490_v22, %v9035_v37  ;;  %v5107_v59 = vmul.f32 %v11490_v22, %v3763_v32 }
 0x2cb   : > { %v6139_v8 = vmax.f32 %v5627_v23, 0.0  ;;  %v5881_v40 = vadd.f32 %v11501_v31, %v5362_v2  ;;  %v5628_v51 = vadd.f32 %v11501_v31, %v5109_v14  ;;  %v5363_v48 = vmul.f32 %v11490_v22, %v4787_v39  ;;  %v8782_v20 = vpop.f32.mrb[240].mxu0 }
 0x2cc   : > { %v6395_v63 = vmax.f32 %v5883_v56, 0.0  ;;  %v6137_v60 = vmax.f32 %v5625_v12, 0.0  ;;  %v5884_v57 = vadd.f32 %v11501_v31, %v5365_v1  ;;  %v5626_v21 = vadd.f32 %v11501_v31, %v5107_v59  ;;  %v9038_v4 = vpop.f32.mrb[240].mxu1  ;;  %v3776_v33 = vpop.f32.mrb[241].mxu0 }
 0x2cd   : > { %v6599_v41 = vmax.f32 %v6135_v11, %v6139_v8  ;;  %v6393_v61 = vmax.f32 %v5881_v40, 0.0  ;;  %v6140_v10 = vmax.f32 %v5628_v51, 0.0  ;;  %v5882_v53 = vadd.f32 %v11501_v31, %v5363_v48  ;;  %v4800_v17 = vpop.f32.mrb[241].mxu1 }
 0x2ce   : > { %v6663_v49 = vmax.f32 %v6391_v15, %v6395_v63  ;;  %v6597_v52 = vmax.f32 %v6133_v18, %v6137_v60  ;;  %v6396_v26 = vmax.f32 %v5884_v57, 0.0  ;;  %v6138_v36 = vmax.f32 %v5626_v21, 0.0  ;;  %v8783_v15 = vpop.f32.mrb[242].mxu0 }
 0x2cf   : > { %v6727_v30 = vmax.f32 %v11580_v7, %v6599_v41  ;;  %v6661_v62 = vmax.f32 %v6389_v28, %v6393_v61  ;;  %v6600_v13 = vmax.f32 %v6136_v0, %v6140_v10  ;;  %v6394_v34 = vmax.f32 %v5882_v53, 0.0  ;;  %v9039_v0 = vpop.f32.mrb[242].mxu1  ;;  %v3779_v27 = vpop.f32.mrb[243].mxu0 }
 0x2d0   : > { %v6791_v19 = vmax.f32 %v11583_v29, %v6663_v49  ;;  %v6725_v11 = vmax.f32 %v11585_v24, %v6597_v52  ;;  %v6664_v3 = vmax.f32 %v6392_v50, %v6396_v26  ;;  %v6598_v35 = vmax.f32 %v6134_v6, %v6138_v36  ;;  %v4803_v43 = vpop.f32.mrb[243].mxu1 }
 0x2d1   : > { %v8208_v18 = vpack.c.bf16 %v6727_v30, %v6727_v30  ;;  %v6789_v47 = vmax.f32 %v11587_v45, %v6661_v62  ;;  %v6728_v7 = vmax.f32 %v11589_v55, %v6600_v13  ;;  %v6662_v28 = vmax.f32 %v6390_v46, %v6394_v34 }
 0x2d2   : > { %v8272_v58 = vpack.c.bf16 %v6791_v19, %v6791_v19  ;;  %v8206_v29 = vpack.c.bf16 %v6725_v11, %v6725_v11  ;;  %v6792_v24 = vmax.f32 %v11592_v9, %v6664_v3  ;;  %v6726_v38 = vmax.f32 %v11594_v42, %v6598_v35 }
 0x2d3   : > { %7368 = vst.msk [vmem:[%s9776_s6 + $0xe8] sm:$0xf] %vm7309_vm3, %v8208_v18  ;;  %v8270_v50 = vpack.c.bf16 %v6789_v47, %v6789_v47  ;;  %v8209_v45 = vpack.c.bf16 %v6728_v7, %v6728_v7  ;;  %v6790_v55 = vmax.f32 %v11598_v16, %v6662_v28  ;;  %v5112_v6 = vmul.f32 %v11490_v22, %v8782_v20  ;;  %v8786_v32 = vpop.f32.mrb[244].mxu0 }
 0x2d4   : > { %7432 = vst.msk [vmem:[%s9776_s6 + $0x1e8] sm:$0xf] %vm7309_vm3, %v8272_v58  ;;  %7366 = vst.msk [vmem:[%s9776_s6 + $0xe0] sm:$0xf] %vm7309_vm3, %v8206_v29  ;;  %v8273_v54 = vpack.c.bf16 %v6792_v24, %v6792_v24  ;;  %v8207_v5 = vpack.c.bf16 %v6726_v38, %v6726_v38  ;;  %v5368_v9 = vmul.f32 %v11490_v22, %v9038_v4  ;;  %v9042_v39 = vpop.f32.mrb[244].mxu1  ;;  %v3792_v8 = vpop.f32.mrb[245].mxu0 }
 0x2d5   : > { %v5110_v42 = vmul.f32 %v11490_v22, %v3776_v33  ;;  %7430 = vst.msk [vmem:[%s9776_s6 + $0x1e0] sm:$0xf] %vm7309_vm3, %v8270_v50  ;;  %7369 = vst.msk [vmem:[%s9776_s6 + $0xec] sm:$0xf] %vm7309_vm3, %v8209_v45  ;;  %v8271_v44 = vpack.c.bf16 %v6790_v55, %v6790_v55  ;;  %v5631_v16 = vadd.f32 %v11501_v31, %v5112_v6  ;;  %v4816_v60 = vpop.f32.mrb[245].mxu1  ;;  %v8787_v57 = vpop.f32.mrb[246].mxu0 }
 0x2d6   : > { %v5366_v25 = vmul.f32 %v11490_v22, %v4800_v17  ;;  %v5113_v46 = vmul.f32 %v11490_v22, %v8783_v15  ;;  %7433 = vst.msk [vmem:[%s9776_s6 + $0x1ec] sm:$0xf] %vm7309_vm3, %v8273_v54  ;;  %7367 = vst.msk [vmem:[%s9776_s6 + $0xe4] sm:$0xf] %vm7309_vm3, %v8207_v5  ;;  %v5887_v23 = vadd.f32 %v11501_v31, %v5368_v9  ;;  %v9043_v53 = vpop.f32.mrb[246].mxu1  ;;  %v3795_v49 = vpop.f32.mrb[247].mxu0 }
 0x2d7   : > { %v5629_v2 = vadd.f32 %v11501_v31, %v5110_v42  ;;  %v5369_v14 = vmul.f32 %v11490_v22, %v9039_v0  ;;  %v5111_v37 = vmul.f32 %v11490_v22, %v3779_v27  ;;  %7431 = vst.msk [vmem:[%s9776_s6 + $0x1e4] sm:$0xf] %vm7309_vm3, %v8271_v44  ;;  %v6143_v56 = vmax.f32 %v5631_v16, 0.0  ;;  %v4819_v30 = vpop.f32.mrb[247].mxu1 }
 0x2d8   : > { %v5885_v12 = vadd.f32 %v11501_v31, %v5366_v25  ;;  %v5632_v1 = vadd.f32 %v11501_v31, %v5113_v46  ;;  %v5367_v59 = vmul.f32 %v11490_v22, %v4803_v43  ;;  %v6399_v40 = vmax.f32 %v5887_v23, 0.0 }
 0x2d9   : > { %v6141_v51 = vmax.f32 %v5629_v2, 0.0  ;;  %v5888_v48 = vadd.f32 %v11501_v31, %v5369_v14  ;;  %v5630_v63 = vadd.f32 %v11501_v31, %v5111_v37  ;;  %v5116_v10 = vmul.f32 %v11490_v22, %v8786_v32 }
 0x2da   : > { %v6397_v21 = vmax.f32 %v5885_v12, 0.0  ;;  %v6144_v41 = vmax.f32 %v5632_v1, 0.0  ;;  %v5886_v61 = vadd.f32 %v11501_v31, %v5367_v59  ;;  %v5372_v36 = vmul.f32 %v11490_v22, %v9042_v39 }
 0x2db   : > { %v6400_v52 = vmax.f32 %v5888_v48, 0.0  ;;  %v6142_v26 = vmax.f32 %v5630_v63, 0.0  ;;  %v5114_v20 = vmul.f32 %v11490_v22, %v3792_v8  ;;  %v5635_v13 = vadd.f32 %v11501_v31, %v5116_v10  ;;  %v8790_v27 = vpop.f32.mrb[248].mxu0 }
 0x2dc   : > { %v6398_v62 = vmax.f32 %v5886_v61, 0.0  ;;  %v5370_v34 = vmul.f32 %v11490_v22, %v4816_v60  ;;  %v5117_v4 = vmul.f32 %v11490_v22, %v8787_v57  ;;  %v5891_v33 = vadd.f32 %v11501_v31, %v5372_v36  ;;  %v9046_v43 = vpop.f32.mrb[248].mxu1  ;;  %v3808_v50 = vpop.f32.mrb[249].mxu0 }
 0x2dd   : > { %v5633_v19 = vadd.f32 %v11501_v31, %v5114_v20  ;;  %v5373_v11 = vmul.f32 %v11490_v22, %v9043_v53  ;;  %v5115_v3 = vmul.f32 %v11490_v22, %v3795_v49  ;;  %v6147_v35 = vmax.f32 %v5635_v13, 0.0  ;;  %v4832_v5 = vpop.f32.mrb[249].mxu1  ;;  %v8791_v9 = vpop.f32.mrb[250].mxu0 }
 0x2de   : > { %v5889_v17 = vadd.f32 %v11501_v31, %v5370_v34  ;;  %v5636_v15 = vadd.f32 %v11501_v31, %v5117_v4  ;;  %v5371_v18 = vmul.f32 %v11490_v22, %v4819_v30  ;;  %v6403_v47 = vmax.f32 %v5891_v33, 0.0  ;;  %v9047_v46 = vpop.f32.mrb[250].mxu1  ;;  %v3811_v23 = vpop.f32.mrb[251].mxu0 }
 0x2df   : > { %v6145_v7 = vmax.f32 %v5633_v19, 0.0  ;;  %v5892_v28 = vadd.f32 %v11501_v31, %v5373_v11  ;;  %v5634_v0 = vadd.f32 %v11501_v31, %v5115_v3  ;;  %v11684_v58 = vmax.f32 %v6143_v56, %v6147_v35  ;;  %v4835_v56 = vpop.f32.mrb[251].mxu1 }
 0x2e0   : > { %v6401_v29 = vmax.f32 %v5889_v17, 0.0  ;;  %v6148_v24 = vmax.f32 %v5636_v15, 0.0  ;;  %v5890_v38 = vadd.f32 %v11501_v31, %v5371_v18  ;;  %v11687_v45 = vmax.f32 %v6399_v40, %v6403_v47 }
 0x2e1   : > { %v11689_v55 = vmax.f32 %v6141_v51, %v6145_v7  ;;  %v6404_v6 = vmax.f32 %v5892_v28, 0.0  ;;  %v6146_v54 = vmax.f32 %v5634_v0, 0.0  ;;  %v5120_v25 = vmul.f32 %v11490_v22, %v8790_v27 }
 0x2e2   : > { %v11691_v42 = vmax.f32 %v6397_v21, %v6401_v29  ;;  %v11693_v44 = vmax.f32 %v6144_v41, %v6148_v24  ;;  %v6402_v16 = vmax.f32 %v5890_v38, 0.0  ;;  %v5376_v37 = vmul.f32 %v11490_v22, %v9046_v43 }
 0x2e3   : > { %v11696_v2 = vmax.f32 %v6400_v52, %v6404_v6  ;;  %v11698_v14 = vmax.f32 %v6142_v26, %v6146_v54  ;;  %v5118_v32 = vmul.f32 %v11490_v22, %v3808_v50  ;;  %v5639_v1 = vadd.f32 %v11501_v31, %v5120_v25 }
 0x2e4   : > { %v11702_v12 = vmax.f32 %v6398_v62, %v6402_v16  ;;  %v5374_v59 = vmul.f32 %v11490_v22, %v4832_v5  ;;  %v5121_v39 = vmul.f32 %v11490_v22, %v8791_v9  ;;  %v5895_v8 = vadd.f32 %v11501_v31, %v5376_v37  ;;  %v8794_v49 = vpop.f32.mrb[252].mxu0 }
 0x2e5   : > { %v5637_v40 = vadd.f32 %v11501_v31, %v5118_v32  ;;  %v5377_v51 = vmul.f32 %v11490_v22, %v9047_v46  ;;  %v5119_v48 = vmul.f32 %v11490_v22, %v3811_v23  ;;  %v6151_v63 = vmax.f32 %v5639_v1, 0.0  ;;  %v9050_v30 = vpop.f32.mrb[252].mxu1  ;;  %v3824_v62 = vpop.f32.mrb[253].mxu0 }
 0x2e6   : > { %v5893_v60 = vadd.f32 %v11501_v31, %v5374_v59  ;;  %v5640_v57 = vadd.f32 %v11501_v31, %v5121_v39  ;;  %v5375_v21 = vmul.f32 %v11490_v22, %v4835_v56  ;;  %v6407_v41 = vmax.f32 %v5895_v8, 0.0  ;;  %v4848_v19 = vpop.f32.mrb[253].mxu1  ;;  %v8795_v11 = vpop.f32.mrb[254].mxu0 }
 0x2e7   : > { %v6149_v61 = vmax.f32 %v5637_v40, 0.0  ;;  %v5896_v10 = vadd.f32 %v11501_v31, %v5377_v51  ;;  %v5638_v53 = vadd.f32 %v11501_v31, %v5119_v48  ;;  %v5124_v20 = vmul.f32 %v11490_v22, %v8794_v49  ;;  %v9051_v18 = vpop.f32.mrb[254].mxu1  ;;  %v3827_v47 = vpop.f32.mrb[255].mxu0 }
 0x2e8   : > { %v6405_v52 = vmax.f32 %v5893_v60, 0.0  ;;  %v6152_v26 = vmax.f32 %v5640_v57, 0.0  ;;  %v5894_v36 = vadd.f32 %v11501_v31, %v5375_v21  ;;  %v5380_v4 = vmul.f32 %v11490_v22, %v9050_v30  ;;  %v4851_v29 = vpop.f32.mrb[255].mxu1 }
 0x2e9   : > { %v6408_v13 = vmax.f32 %v5896_v10, 0.0  ;;  %v6150_v34 = vmax.f32 %v5638_v53, 0.0  ;;  %v5122_v33 = vmul.f32 %v11490_v22, %v3824_v62  ;;  %v5643_v35 = vadd.f32 %v11501_v31, %v5124_v20 }
 0x2ea   : > { %v6406_v3 = vmax.f32 %v5894_v36, 0.0  ;;  %v5378_v17 = vmul.f32 %v11490_v22, %v4848_v19  ;;  %v5125_v15 = vmul.f32 %v11490_v22, %v8795_v11  ;;  %v5899_v7 = vadd.f32 %v11501_v31, %v5380_v4 }
 0x2eb   : > { %v5641_v28 = vadd.f32 %v11501_v31, %v5122_v33  ;;  %v5381_v0 = vmul.f32 %v11490_v22, %v9051_v18  ;;  %v5123_v27 = vmul.f32 %v11490_v22, %v3827_v47  ;;  %v6155_v24 = vmax.f32 %v5643_v35, 0.0 }
 0x2ec   : > { %v5897_v38 = vadd.f32 %v11501_v31, %v5378_v17  ;;  %v5644_v43 = vadd.f32 %v11501_v31, %v5125_v15  ;;  %v5379_v50 = vmul.f32 %v11490_v22, %v4851_v29  ;;  %v6411_v6 = vmax.f32 %v5899_v7, 0.0 }
 0x2ed   : > { %v6153_v54 = vmax.f32 %v5641_v28, 0.0  ;;  %v5900_v5 = vadd.f32 %v11501_v31, %v5381_v0  ;;  %v5642_v9 = vadd.f32 %v11501_v31, %v5123_v27  ;;  %v6603_v16 = vmax.f32 %v6151_v63, %v6155_v24 }
 0x2ee   : > { %v6409_v25 = vmax.f32 %v5897_v38, 0.0  ;;  %v6156_v46 = vmax.f32 %v5644_v43, 0.0  ;;  %v5898_v23 = vadd.f32 %v11501_v31, %v5379_v50  ;;  %v6667_v37 = vmax.f32 %v6407_v41, %v6411_v6 }
 0x2ef   : > { %v6601_v32 = vmax.f32 %v6149_v61, %v6153_v54  ;;  %v6412_v56 = vmax.f32 %v5900_v5, 0.0  ;;  %v6154_v1 = vmax.f32 %v5642_v9, 0.0  ;;  %v6731_v59 = vmax.f32 %v11684_v58, %v6603_v16 }
 0x2f0   : > { %v6665_v39 = vmax.f32 %v6405_v52, %v6409_v25  ;;  %v6604_v22 = vmax.f32 %v6152_v26, %v6156_v46  ;;  %v6410_v8 = vmax.f32 %v5898_v23, 0.0  ;;  %v6795_v40 = vmax.f32 %v11687_v45, %v6667_v37 }
 0x2f1   : > { %v6729_v51 = vmax.f32 %v11689_v55, %v6601_v32  ;;  %v6668_v48 = vmax.f32 %v6408_v13, %v6412_v56  ;;  %v6602_v63 = vmax.f32 %v6150_v34, %v6154_v1  ;;  %v8212_v60 = vpack.c.bf16 %v6731_v59, %v6731_v59 }
 0x2f2   : > { %v6793_v31 = vmax.f32 %v11691_v42, %v6665_v39  ;;  %v6732_v57 = vmax.f32 %v11693_v44, %v6604_v22  ;;  %v6666_v58 = vmax.f32 %v6406_v3, %v6410_v8  ;;  %v8276_v21 = vpack.c.bf16 %v6795_v40, %v6795_v40 }
 0x2f3   : > { %v8210_v41 = vpack.c.bf16 %v6729_v51, %v6729_v51  ;;  %v6796_v45 = vmax.f32 %v11696_v2, %v6668_v48  ;;  %v6730_v55 = vmax.f32 %v11698_v14, %v6602_v63  ;;  %7372 = vst.msk [vmem:[%s9776_s6 + $0xf8] sm:$0xf] %vm7309_vm3, %v8212_v60 }
 0x2f4   : > { %v8274_v61 = vpack.c.bf16 %v6793_v31, %v6793_v31  ;;  %v8213_v10 = vpack.c.bf16 %v6732_v57, %v6732_v57  ;;  %v6794_v53 = vmax.f32 %v11702_v12, %v6666_v58  ;;  %7436 = vst.msk [vmem:[%s9776_s6 + $0x1f8] sm:$0xf] %vm7309_vm3, %v8276_v21 }
 0x2f5   : > { %7370 = vst.msk [vmem:[%s9776_s6 + $0xf0] sm:$0xf] %vm7309_vm3, %v8210_v41  ;;  %v8277_v42 = vpack.c.bf16 %v6796_v45, %v6796_v45  ;;  %v8211_v44 = vpack.c.bf16 %v6730_v55, %v6730_v55 }
 0x2f6   : > { %7434 = vst.msk [vmem:[%s9776_s6 + $0x1f0] sm:$0xf] %vm7309_vm3, %v8274_v61  ;;  %7373 = vst.msk [vmem:[%s9776_s6 + $0xfc] sm:$0xf] %vm7309_vm3, %v8213_v10  ;;  %v8275_v49 = vpack.c.bf16 %v6794_v53, %v6794_v53 }
 0x2f7   : > { %7437 = vst.msk [vmem:[%s9776_s6 + $0x1fc] sm:$0xf] %vm7309_vm3, %v8277_v42  ;;  %7371 = vst.msk [vmem:[%s9776_s6 + $0xf4] sm:$0xf] %vm7309_vm3, %v8211_v44 }
 0x2f8   : > { %7435 = vst.msk [vmem:[%s9776_s6 + $0x1f4] sm:$0xf] %vm7309_vm3, %v8275_v49 }
 0x2f9 PF: > { %s14_s15 = sadd.s32 1, %s9339_s15  }
 0x2fa   : > { %p11_p4 = scmp.ge.s32.totalorder %s14_s15, 4  }
 0x2fc   :  { %13 = sbr.rel (!%p11_p4) target bundleno = 1 (0x1), region = 66 }

// kernel: forward.5
= control target key start
LH: loop header
LB: loop body
LE: loop exit
PB: predicated region body
PF: predicated region fallthrough
CT: control target
= control target key end

     0   :  { %s2858_s15 = smov 0   ;;  %s3443_s0 = inlined_call_operand.vmem [shape: bf16[2,16,4,16,256], index: 0, kind: input, shape index: {}]   ;;  %s3444_s1 = inlined_call_operand.vmem [shape: bf16[256,48], index: 1, kind: input, shape index: {}]   ;;  %s3445_s2 = inlined_call_operand.vmem [shape: f32[1,48], index: 2, kind: input, shape index: {}]   ;;  %s3446_s3 = inlined_call_operand.vmem [shape: f32[1,48], index: 3, kind: input, shape index: {}]   ;;  %s3447_s4 = inlined_call_operand.vmem [shape: bf16[2,16,16,48], index: 4, kind: output, shape index: {}]  }
   0x1 LB: > { %s2350_s16 = sadd.s32 4294967295, %s2830_s15   ;;  %p2354_p0 = scmp.ge.s32.totalorder %s2830_s15, 1  ;;  %s2830_s15 = sphi %s2858_s15, %s14_s15  }
   0x2   : > { %p162_p1 = scmp.lt.s32.totalorder %s2830_s15, 3 }
   0x4   : > { %p163_p2 = pnand %p2354_p0, %p162_p1 }
   0x5   : > { %v2614_v0 = vld [vmem:[%s3444_s1] sm:$0xff] (!%p163_p2)   ;;  %v2832_v1 = vmov (!%p163_p2), 0   ;;  %v2615_v2 = vld [vmem:[%s3444_s1 + $0x8] sm:$0xff] (!%p163_p2)   ;;  %p188_p3 = scmp.lt.s32.totalorder (!%p163_p2), %s2350_s16, 1  ;;  %v2616_v3 = vld [vmem:[%s3444_s1 + $0x10] sm:$0xff] (!%p163_p2)   ;;  %vm2262_vm0 = vcmask (!%p163_p2), 388096  }
   0x6   : > { %166 = sbr.rel (%p163_p2) target bundleno = 545 (0x221), region = 36  ;;  %1095 = vmatprep.subr.bf16.mxu0 (!%p163_p2), %v2832_v1  ;;  %2573 = vmatprep.subr.bf16.mxu1 (!%p163_p2), %v2832_v1  ;;  %v2617_v4 = vld [vmem:[%s3444_s1 + $0x18] sm:$0xff] (!%p163_p2)   ;;  %v2618_v5 = vld [vmem:[%s3444_s1 + $0x20] sm:$0xff] (!%p163_p2)   ;;  %v2619_v7 = vld [vmem:[%s3444_s1 + $0x28] sm:$0xff] (!%p163_p2)  }
   0x7   : > { %1096 = vmatpush1.bf16.msra.mxu0 (!%p163_p2), %v2614_v0  ;;  %2589 = vmatpush1.bf16.msra.mxu1 (!%p163_p2), %v2614_v0  ;;  %v2620_v9 = vld [vmem:[%s3444_s1 + $0x30] sm:$0xff] (!%p163_p2)   ;;  %v2621_v10 = vld [vmem:[%s3444_s1 + $0x38] sm:$0xff] (!%p163_p2)   ;;  %v2622_v11 = vld [vmem:[%s3444_s1 + $0x40] sm:$0xff] (!%p163_p2)  }
   0x8   : > { %1097 = vmatprep.subr.bf16.mxu0 (!%p163_p2), %v2832_v1  ;;  %2574 = vmatprep.subr.bf16.mxu1 (!%p163_p2), %v2832_v1  ;;  %v2623_v12 = vld [vmem:[%s3444_s1 + $0x48] sm:$0xff] (!%p163_p2)   ;;  %v2624_v13 = vld [vmem:[%s3444_s1 + $0x50] sm:$0xff] (!%p163_p2)   ;;  %v2625_v14 = vld [vmem:[%s3444_s1 + $0x58] sm:$0xff] (!%p163_p2)  }
   0x9   : > { %v2626_v15 = vld [vmem:[%s3444_s1 + $0x60] sm:$0xff] (!%p163_p2)   ;;  %v2627_v16 = vld [vmem:[%s3444_s1 + $0x68] sm:$0xff] (!%p163_p2)   ;;  %v2628_v17 = vld [vmem:[%s3444_s1 + $0x70] sm:$0xff] (!%p163_p2)  }
   0xa   : > { %v2629_v18 = vld [vmem:[%s3444_s1 + $0x78] sm:$0xff] (!%p163_p2)  }
   0xb   : > { %1098 = vmatpush1.bf16.msra.mxu0 (!%p163_p2), %v2615_v2  ;;  %2590 = vmatpush1.bf16.msra.mxu1 (!%p163_p2), %v2615_v2 }
   0xc   : > { %1099 = vmatprep.subr.bf16.mxu0 (!%p163_p2), %v2832_v1  ;;  %2575 = vmatprep.subr.bf16.mxu1 (!%p163_p2), %v2832_v1 }
   0xd   : > { %s3449_s16 = smov (!%p188_p3, %s2350_s16), 1 }
   0xe   : > { %s2539_s25 = sshll.u32 %s3449_s16, 10  ;;  %s2540_s8 = sshll.u32 %s3449_s16, 7 }
   0xf   : > { %1100 = vmatpush1.bf16.msra.mxu0 %v2616_v3  ;;  %2591 = vmatpush1.bf16.msra.mxu1 %v2616_v3  ;;  %s2895_s30 = scalar_lea.vmem %s3443_s0, %s2539_s25  ;;  %s3138_s16 = scalar_lea.vmem %s3447_s4, %s2540_s8 }
  0x10   : > { %1101 = vmatprep.subr.bf16.mxu0 %v2832_v1  ;;  %2576 = vmatprep.subr.bf16.mxu1 %v2832_v1  ;;  %v2632_v6 = vld [vmem:[%s2895_s30 + $0x4] ss:$8 sps:$4 sm:$0xff]   ;;  %v2630_v19 = vld [vmem:[%s2895_s30] ss:$8 sps:$4 sm:$0xff]   ;;  %v2636_v21 = vld [vmem:[%s2895_s30 + $0x14] ss:$8 sps:$4 sm:$0xff]  }
  0x11   : > { %v2635_v8 = vld [vmem:[%s2895_s30 + $0x204] ss:$8 sps:$4 sm:$0xff]   ;;  %1127 = vmatprep.mubr.bf16.mxu0 %v2632_v6  ;;  %v2633_v20 = vld [vmem:[%s2895_s30 + $0x200] ss:$8 sps:$4 sm:$0xff]   ;;  %v2638_v22 = vld [vmem:[%s2895_s30 + $0x214] ss:$8 sps:$4 sm:$0xff]  }
  0x12   : > { %1383 = vmatprep.mubr.bf16.mxu1 %v2635_v8  ;;  %v2640_v23 = vld [vmem:[%s2895_s30 + $0x10] ss:$8 sps:$4 sm:$0xff]   ;;  %v2642_v25 = vld [vmem:[%s2895_s30 + $0x24] ss:$8 sps:$4 sm:$0xff]   ;;  %v2646_v27 = vld [vmem:[%s2895_s30 + $0x20] ss:$8 sps:$4 sm:$0xff]  }
  0x13   : > { %1102 = vmatpush1.bf16.msra.mxu0 %v2617_v4  ;;  %2592 = vmatpush1.bf16.msra.mxu1 %v2617_v4  ;;  %v2641_v24 = vld [vmem:[%s2895_s30 + $0x210] ss:$8 sps:$4 sm:$0xff]   ;;  %v2644_v26 = vld [vmem:[%s2895_s30 + $0x224] ss:$8 sps:$4 sm:$0xff]   ;;  %v2647_v28 = vld [vmem:[%s2895_s30 + $0x220] ss:$8 sps:$4 sm:$0xff]  }
  0x14   : > { %1103 = vmatprep.subr.bf16.mxu0 %v2832_v1  ;;  %2577 = vmatprep.subr.bf16.mxu1 %v2832_v1  ;;  %v2648_v29 = vld [vmem:[%s2895_s30 + $0x34] ss:$8 sps:$4 sm:$0xff]   ;;  %v2652_v31 = vld [vmem:[%s2895_s30 + $0x30] ss:$8 sps:$4 sm:$0xff]   ;;  %v2654_v33 = vld [vmem:[%s2895_s30 + $0x44] ss:$8 sps:$4 sm:$0xff]  }
  0x15   : > { %v2650_v30 = vld [vmem:[%s2895_s30 + $0x234] ss:$8 sps:$4 sm:$0xff]   ;;  %v2653_v32 = vld [vmem:[%s2895_s30 + $0x230] ss:$8 sps:$4 sm:$0xff]   ;;  %v2656_v34 = vld [vmem:[%s2895_s30 + $0x244] ss:$8 sps:$4 sm:$0xff]  }
  0x16   : > { %v2658_v35 = vld [vmem:[%s2895_s30 + $0x40] ss:$8 sps:$4 sm:$0xff]   ;;  %v2660_v37 = vld [vmem:[%s2895_s30 + $0x54] ss:$8 sps:$4 sm:$0xff]   ;;  %v2664_v39 = vld [vmem:[%s2895_s30 + $0x50] ss:$8 sps:$4 sm:$0xff]  }
  0x17   : > { %1104 = vmatpush1.bf16.msra.mxu0 %v2618_v5  ;;  %2593 = vmatpush1.bf16.msra.mxu1 %v2618_v5  ;;  %v2659_v36 = vld [vmem:[%s2895_s30 + $0x240] ss:$8 sps:$4 sm:$0xff]   ;;  %v2662_v38 = vld [vmem:[%s2895_s30 + $0x254] ss:$8 sps:$4 sm:$0xff]   ;;  %v2665_v40 = vld [vmem:[%s2895_s30 + $0x250] ss:$8 sps:$4 sm:$0xff]  }
  0x18   : > { %1105 = vmatprep.subr.bf16.mxu0 %v2832_v1  ;;  %2578 = vmatprep.subr.bf16.mxu1 %v2832_v1  ;;  %v2666_v41 = vld [vmem:[%s2895_s30 + $0x64] ss:$8 sps:$4 sm:$0xff]   ;;  %v2670_v43 = vld [vmem:[%s2895_s30 + $0x60] ss:$8 sps:$4 sm:$0xff]   ;;  %v2672_v45 = vld [vmem:[%s2895_s30 + $0x74] ss:$8 sps:$4 sm:$0xff]  }
  0x19   : > { %v2668_v42 = vld [vmem:[%s2895_s30 + $0x264] ss:$8 sps:$4 sm:$0xff]   ;;  %v2671_v44 = vld [vmem:[%s2895_s30 + $0x260] ss:$8 sps:$4 sm:$0xff]   ;;  %v2674_v46 = vld [vmem:[%s2895_s30 + $0x274] ss:$8 sps:$4 sm:$0xff]  }
  0x1a   : > { %v2676_v47 = vld [vmem:[%s2895_s30 + $0x70] ss:$8 sps:$4 sm:$0xff]   ;;  %v2678_v49 = vld [vmem:[%s2895_s30 + $0x84] ss:$8 sps:$4 sm:$0xff]   ;;  %v2682_v51 = vld [vmem:[%s2895_s30 + $0x80] ss:$8 sps:$4 sm:$0xff]  }
  0x1b   : > { %1106 = vmatpush1.bf16.msra.mxu0 %v2619_v7  ;;  %2594 = vmatpush1.bf16.msra.mxu1 %v2619_v7  ;;  %v2677_v48 = vld [vmem:[%s2895_s30 + $0x270] ss:$8 sps:$4 sm:$0xff]   ;;  %v2680_v50 = vld [vmem:[%s2895_s30 + $0x284] ss:$8 sps:$4 sm:$0xff]   ;;  %v2683_v52 = vld [vmem:[%s2895_s30 + $0x280] ss:$8 sps:$4 sm:$0xff]  }
  0x1c   : > { %1107 = vmatprep.subr.bf16.mxu0 %v2832_v1  ;;  %2579 = vmatprep.subr.bf16.mxu1 %v2832_v1  ;;  %v2684_v53 = vld [vmem:[%s2895_s30 + $0x94] ss:$8 sps:$4 sm:$0xff]   ;;  %v2688_v55 = vld [vmem:[%s2895_s30 + $0x90] ss:$8 sps:$4 sm:$0xff]   ;;  %v2690_v57 = vld [vmem:[%s2895_s30 + $0xa4] ss:$8 sps:$4 sm:$0xff]  }
  0x1d   : > { %v2686_v54 = vld [vmem:[%s2895_s30 + $0x294] ss:$8 sps:$4 sm:$0xff]   ;;  %v2689_v56 = vld [vmem:[%s2895_s30 + $0x290] ss:$8 sps:$4 sm:$0xff]   ;;  %v2692_v58 = vld [vmem:[%s2895_s30 + $0x2a4] ss:$8 sps:$4 sm:$0xff]  }
  0x1e   : > { %v2694_v59 = vld [vmem:[%s2895_s30 + $0xa0] ss:$8 sps:$4 sm:$0xff]   ;;  %v2696_v61 = vld [vmem:[%s2895_s30 + $0xb4] ss:$8 sps:$4 sm:$0xff]   ;;  %v2700_v63 = vld [vmem:[%s2895_s30 + $0xb0] ss:$8 sps:$4 sm:$0xff]  }
  0x1f   : > { %1108 = vmatpush1.bf16.msra.mxu0 %v2620_v9  ;;  %2595 = vmatpush1.bf16.msra.mxu1 %v2620_v9  ;;  %v2695_v60 = vld [vmem:[%s2895_s30 + $0x2a0] ss:$8 sps:$4 sm:$0xff]   ;;  %v2698_v62 = vld [vmem:[%s2895_s30 + $0x2b4] ss:$8 sps:$4 sm:$0xff]   ;;  %v2701_v0 = vld [vmem:[%s2895_s30 + $0x2b0] ss:$8 sps:$4 sm:$0xff]  }
  0x20   : > { %1109 = vmatprep.subr.bf16.mxu0 %v2832_v1  ;;  %2580 = vmatprep.subr.bf16.mxu1 %v2832_v1  ;;  %v2704_v2 = vld [vmem:[%s2895_s30 + $0x2c4] ss:$8 sps:$4 sm:$0xff]   ;;  %v2706_v3 = vld [vmem:[%s2895_s30 + $0xc0] ss:$8 sps:$4 sm:$0xff]   ;;  %v2708_v5 = vld [vmem:[%s2895_s30 + $0xd4] ss:$8 sps:$4 sm:$0xff]  }
  0x21   : > { %v2707_v4 = vld [vmem:[%s2895_s30 + $0x2c0] ss:$8 sps:$4 sm:$0xff]   ;;  %v2710_v6 = vld [vmem:[%s2895_s30 + $0x2d4] ss:$8 sps:$4 sm:$0xff]   ;;  %v2712_v7 = vld [vmem:[%s2895_s30 + $0xd0] ss:$8 sps:$4 sm:$0xff]  }
  0x22   : > { %v2713_v8 = vld [vmem:[%s2895_s30 + $0x2d0] ss:$8 sps:$4 sm:$0xff]   ;;  %v2714_v9 = vld [vmem:[%s2895_s30 + $0xe4] ss:$8 sps:$4 sm:$0xff]  }
  0x23   : > { %1110 = vmatpush1.bf16.msra.mxu0 %v2621_v10  ;;  %2596 = vmatpush1.bf16.msra.mxu1 %v2621_v10  ;;  %v2716_v10 = vld [vmem:[%s2895_s30 + $0x2e4] ss:$8 sps:$4 sm:$0xff]  }
  0x24   : > { %1111 = vmatprep.subr.bf16.mxu0 %v2832_v1  ;;  %2581 = vmatprep.subr.bf16.mxu1 %v2832_v1 }
  0x27   : > { %1112 = vmatpush1.bf16.msra.mxu0 %v2622_v11  ;;  %2597 = vmatpush1.bf16.msra.mxu1 %v2622_v11  ;;  %v2718_v11 = vld [vmem:[%s2895_s30 + $0xe0] ss:$8 sps:$4 sm:$0xff]  }
  0x28   : > { %1113 = vmatprep.subr.bf16.mxu0 %v2832_v1  ;;  %2582 = vmatprep.subr.bf16.mxu1 %v2832_v1 }
  0x2b   : > { %1114 = vmatpush1.bf16.msra.mxu0 %v2623_v12  ;;  %2598 = vmatpush1.bf16.msra.mxu1 %v2623_v12  ;;  %v2719_v12 = vld [vmem:[%s2895_s30 + $0x2e0] ss:$8 sps:$4 sm:$0xff]  }
  0x2c   : > { %1115 = vmatprep.subr.bf16.mxu0 %v2832_v1  ;;  %2583 = vmatprep.subr.bf16.mxu1 %v2832_v1 }
  0x2f   : > { %1116 = vmatpush1.bf16.msra.mxu0 %v2624_v13  ;;  %2599 = vmatpush1.bf16.msra.mxu1 %v2624_v13  ;;  %v2720_v13 = vld [vmem:[%s2895_s30 + $0xf4] ss:$8 sps:$4 sm:$0xff]  }
  0x30   : > { %1117 = vmatprep.subr.bf16.mxu0 %v2832_v1  ;;  %2584 = vmatprep.subr.bf16.mxu1 %v2832_v1 }
  0x33   : > { %1118 = vmatpush1.bf16.msra.mxu0 %v2625_v14  ;;  %2600 = vmatpush1.bf16.msra.mxu1 %v2625_v14  ;;  %v2722_v14 = vld [vmem:[%s2895_s30 + $0x2f4] ss:$8 sps:$4 sm:$0xff]  }
  0x34   : > { %1119 = vmatprep.subr.bf16.mxu0 %v2832_v1  ;;  %2585 = vmatprep.subr.bf16.mxu1 %v2832_v1 }
  0x37   : > { %1120 = vmatpush1.bf16.msra.mxu0 %v2626_v15  ;;  %2601 = vmatpush1.bf16.msra.mxu1 %v2626_v15  ;;  %v2724_v15 = vld [vmem:[%s2895_s30 + $0xf0] ss:$8 sps:$4 sm:$0xff]  }
  0x38   : > { %1121 = vmatprep.subr.bf16.mxu0 %v2832_v1  ;;  %2586 = vmatprep.subr.bf16.mxu1 %v2832_v1 }
  0x3b   : > { %1122 = vmatpush1.bf16.msra.mxu0 %v2627_v16  ;;  %2602 = vmatpush1.bf16.msra.mxu1 %v2627_v16  ;;  %v2725_v16 = vld [vmem:[%s2895_s30 + $0x2f0] ss:$8 sps:$4 sm:$0xff]  }
  0x3c   : > { %1123 = vmatprep.subr.bf16.mxu0 %v2832_v1  ;;  %2587 = vmatprep.subr.bf16.mxu1 %v2832_v1 }
  0x3f   : > { %1124 = vmatpush1.bf16.msra.mxu0 %v2628_v17  ;;  %2603 = vmatpush1.bf16.msra.mxu1 %v2628_v17  ;;  %v2726_v17 = vld [vmem:[%s2895_s30 + $0x104] ss:$8 sps:$4 sm:$0xff]  }
  0x40   : > { %1125 = vmatprep.subr.bf16.mxu0 %v2832_v1  ;;  %2588 = vmatprep.subr.bf16.mxu1 %v2832_v1  ;;  %v2702_v1 = vld [vmem:[%s2895_s30 + $0xc4] ss:$8 sps:$4 sm:$0xff]  }
  0x43   : > { %1126 = vmatpush1.bf16.msra.mxu0 %v2629_v18  ;;  %2604 = vmatpush1.bf16.msra.mxu1 %v2629_v18  ;;  %v2728_v18 = vld [vmem:[%s2895_s30 + $0x304] ss:$8 sps:$4 sm:$0xff]  }
  0x46   : > { %1128 = vmatmul.mubr.bf16.vlgmr.msra.gmra.mrb[0].mxu0 %v2630_v19  ;;  %1384 = vmatmul.mubr.bf16.vlgmr.msra.gmra.mrb[0].mxu1 %v2633_v20  ;;  %v2730_v19 = vld [vmem:[%s2895_s30 + $0x100] ss:$8 sps:$4 sm:$0xff]  }
  0x47   : > { %1135 = vmatprep.mubr.bf16.mxu0 %v2636_v21  ;;  %1391 = vmatprep.mubr.bf16.mxu1 %v2638_v22  ;;  %v2731_v20 = vld [vmem:[%s2895_s30 + $0x300] ss:$8 sps:$4 sm:$0xff]   ;;  %v2732_v21 = vld [vmem:[%s2895_s30 + $0x114] ss:$8 sps:$4 sm:$0xff]  }
  0x48   : > { %v2734_v22 = vld [vmem:[%s2895_s30 + $0x314] ss:$8 sps:$4 sm:$0xff]  }
  0x4e   : > { %1136 = vmatmul.mubr.bf16.gmra.mrb[4].mxu0 %v2640_v23  ;;  %1392 = vmatmul.mubr.bf16.gmra.mrb[4].mxu1 %v2641_v24  ;;  %v2736_v23 = vld [vmem:[%s2895_s30 + $0x110] ss:$8 sps:$4 sm:$0xff]  }
  0x4f   : > { %1143 = vmatprep.mubr.bf16.mxu0 %v2642_v25  ;;  %1399 = vmatprep.mubr.bf16.mxu1 %v2644_v26  ;;  %v2737_v24 = vld [vmem:[%s2895_s30 + $0x310] ss:$8 sps:$4 sm:$0xff]   ;;  %v2738_v25 = vld [vmem:[%s2895_s30 + $0x124] ss:$8 sps:$4 sm:$0xff]  }
  0x50   : > { %v2740_v26 = vld [vmem:[%s2895_s30 + $0x324] ss:$8 sps:$4 sm:$0xff]  }
  0x56   : > { %1144 = vmatmul.mubr.bf16.gmra.mrb[8].mxu0 %v2646_v27  ;;  %1400 = vmatmul.mubr.bf16.gmra.mrb[8].mxu1 %v2647_v28  ;;  %v2742_v27 = vld [vmem:[%s2895_s30 + $0x120] ss:$8 sps:$4 sm:$0xff]  }
  0x57   : > { %1151 = vmatprep.mubr.bf16.mxu0 %v2648_v29  ;;  %1407 = vmatprep.mubr.bf16.mxu1 %v2650_v30  ;;  %v2743_v28 = vld [vmem:[%s2895_s30 + $0x320] ss:$8 sps:$4 sm:$0xff]   ;;  %v2744_v29 = vld [vmem:[%s2895_s30 + $0x134] ss:$8 sps:$4 sm:$0xff]  }
  0x58   : > { %v2746_v30 = vld [vmem:[%s2895_s30 + $0x334] ss:$8 sps:$4 sm:$0xff]  }
  0x5e   : > { %1152 = vmatmul.mubr.bf16.gmra.mrb[12].mxu0 %v2652_v31  ;;  %1408 = vmatmul.mubr.bf16.gmra.mrb[12].mxu1 %v2653_v32  ;;  %v2748_v31 = vld [vmem:[%s2895_s30 + $0x130] ss:$8 sps:$4 sm:$0xff]  }
  0x5f   : > { %1159 = vmatprep.mubr.bf16.mxu0 %v2654_v33  ;;  %1415 = vmatprep.mubr.bf16.mxu1 %v2656_v34  ;;  %v2749_v32 = vld [vmem:[%s2895_s30 + $0x330] ss:$8 sps:$4 sm:$0xff]   ;;  %v2750_v33 = vld [vmem:[%s2895_s30 + $0x144] ss:$8 sps:$4 sm:$0xff]  }
  0x60   : > { %v2752_v34 = vld [vmem:[%s2895_s30 + $0x344] ss:$8 sps:$4 sm:$0xff]  }
  0x66   : > { %1160 = vmatmul.mubr.bf16.gmra.mrb[16].mxu0 %v2658_v35  ;;  %1416 = vmatmul.mubr.bf16.gmra.mrb[16].mxu1 %v2659_v36  ;;  %v2754_v35 = vld [vmem:[%s2895_s30 + $0x140] ss:$8 sps:$4 sm:$0xff]  }
  0x67   : > { %1167 = vmatprep.mubr.bf16.mxu0 %v2660_v37  ;;  %1423 = vmatprep.mubr.bf16.mxu1 %v2662_v38  ;;  %v2755_v36 = vld [vmem:[%s2895_s30 + $0x340] ss:$8 sps:$4 sm:$0xff]   ;;  %v2756_v37 = vld [vmem:[%s2895_s30 + $0x154] ss:$8 sps:$4 sm:$0xff]  }
  0x68   : > { %v2758_v38 = vld [vmem:[%s2895_s30 + $0x354] ss:$8 sps:$4 sm:$0xff]  }
  0x6e   : > { %1168 = vmatmul.mubr.bf16.gmra.mrb[20].mxu0 %v2664_v39  ;;  %1424 = vmatmul.mubr.bf16.gmra.mrb[20].mxu1 %v2665_v40  ;;  %v2760_v39 = vld [vmem:[%s2895_s30 + $0x150] ss:$8 sps:$4 sm:$0xff]  }
  0x6f   : > { %1175 = vmatprep.mubr.bf16.mxu0 %v2666_v41  ;;  %1431 = vmatprep.mubr.bf16.mxu1 %v2668_v42  ;;  %v2761_v40 = vld [vmem:[%s2895_s30 + $0x350] ss:$8 sps:$4 sm:$0xff]   ;;  %v2762_v41 = vld [vmem:[%s2895_s30 + $0x164] ss:$8 sps:$4 sm:$0xff]  }
  0x70   : > { %v2764_v42 = vld [vmem:[%s2895_s30 + $0x364] ss:$8 sps:$4 sm:$0xff]  }
  0x76   : > { %1176 = vmatmul.mubr.bf16.gmra.mrb[24].mxu0 %v2670_v43  ;;  %1432 = vmatmul.mubr.bf16.gmra.mrb[24].mxu1 %v2671_v44  ;;  %v2766_v43 = vld [vmem:[%s2895_s30 + $0x160] ss:$8 sps:$4 sm:$0xff]  }
  0x77   : > { %1183 = vmatprep.mubr.bf16.mxu0 %v2672_v45  ;;  %1439 = vmatprep.mubr.bf16.mxu1 %v2674_v46  ;;  %v2767_v44 = vld [vmem:[%s2895_s30 + $0x360] ss:$8 sps:$4 sm:$0xff]   ;;  %v2768_v45 = vld [vmem:[%s2895_s30 + $0x174] ss:$8 sps:$4 sm:$0xff]  }
  0x78   : > { %v2770_v46 = vld [vmem:[%s2895_s30 + $0x374] ss:$8 sps:$4 sm:$0xff]  }
  0x7e   : > { %1184 = vmatmul.mubr.bf16.gmra.mrb[28].mxu0 %v2676_v47  ;;  %1440 = vmatmul.mubr.bf16.gmra.mrb[28].mxu1 %v2677_v48  ;;  %v2772_v47 = vld [vmem:[%s2895_s30 + $0x170] ss:$8 sps:$4 sm:$0xff]  }
  0x7f   : > { %1191 = vmatprep.mubr.bf16.mxu0 %v2678_v49  ;;  %1447 = vmatprep.mubr.bf16.mxu1 %v2680_v50  ;;  %v2773_v48 = vld [vmem:[%s2895_s30 + $0x370] ss:$8 sps:$4 sm:$0xff]   ;;  %v2774_v49 = vld [vmem:[%s2895_s30 + $0x184] ss:$8 sps:$4 sm:$0xff]  }
  0x80   : > { %v2776_v50 = vld [vmem:[%s2895_s30 + $0x384] ss:$8 sps:$4 sm:$0xff]  }
  0x86   : > { %1192 = vmatmul.mubr.bf16.gmra.mrb[32].mxu0 %v2682_v51  ;;  %1448 = vmatmul.mubr.bf16.gmra.mrb[32].mxu1 %v2683_v52  ;;  %v2778_v51 = vld [vmem:[%s2895_s30 + $0x180] ss:$8 sps:$4 sm:$0xff]  }
  0x87   : > { %1199 = vmatprep.mubr.bf16.mxu0 %v2684_v53  ;;  %1455 = vmatprep.mubr.bf16.mxu1 %v2686_v54  ;;  %v2779_v52 = vld [vmem:[%s2895_s30 + $0x380] ss:$8 sps:$4 sm:$0xff]   ;;  %v2780_v53 = vld [vmem:[%s2895_s30 + $0x194] ss:$8 sps:$4 sm:$0xff]  }
  0x88   : > { %v2782_v54 = vld [vmem:[%s2895_s30 + $0x394] ss:$8 sps:$4 sm:$0xff]  }
  0x8e   : > { %1200 = vmatmul.mubr.bf16.gmra.mrb[36].mxu0 %v2688_v55  ;;  %1456 = vmatmul.mubr.bf16.gmra.mrb[36].mxu1 %v2689_v56  ;;  %v2784_v55 = vld [vmem:[%s2895_s30 + $0x190] ss:$8 sps:$4 sm:$0xff]  }
  0x8f   : > { %1207 = vmatprep.mubr.bf16.mxu0 %v2690_v57  ;;  %1463 = vmatprep.mubr.bf16.mxu1 %v2692_v58  ;;  %v2785_v56 = vld [vmem:[%s2895_s30 + $0x390] ss:$8 sps:$4 sm:$0xff]   ;;  %v2786_v57 = vld [vmem:[%s2895_s30 + $0x1a4] ss:$8 sps:$4 sm:$0xff]  }
  0x90   : > { %v2788_v58 = vld [vmem:[%s2895_s30 + $0x3a4] ss:$8 sps:$4 sm:$0xff]  }
  0x96   : > { %1208 = vmatmul.mubr.bf16.gmra.mrb[40].mxu0 %v2694_v59  ;;  %1464 = vmatmul.mubr.bf16.gmra.mrb[40].mxu1 %v2695_v60  ;;  %v2790_v59 = vld [vmem:[%s2895_s30 + $0x1a0] ss:$8 sps:$4 sm:$0xff]  }
  0x97   : > { %1215 = vmatprep.mubr.bf16.mxu0 %v2696_v61  ;;  %1471 = vmatprep.mubr.bf16.mxu1 %v2698_v62  ;;  %v2791_v60 = vld [vmem:[%s2895_s30 + $0x3a0] ss:$8 sps:$4 sm:$0xff]   ;;  %v2792_v61 = vld [vmem:[%s2895_s30 + $0x1b4] ss:$8 sps:$4 sm:$0xff]  }
  0x98   : > { %v2794_v62 = vld [vmem:[%s2895_s30 + $0x3b4] ss:$8 sps:$4 sm:$0xff]  }
  0x9e   : > { %1216 = vmatmul.mubr.bf16.gmra.mrb[44].mxu0 %v2700_v63  ;;  %1472 = vmatmul.mubr.bf16.gmra.mrb[44].mxu1 %v2701_v0  ;;  %v3067_v0 = vld [vmem:[%s3445_s2] ss:$0 sm:$0xff] }
  0x9f   : > { %1223 = vmatprep.mubr.bf16.mxu0 %v2702_v1  ;;  %1479 = vmatprep.mubr.bf16.mxu1 %v2704_v2 }
  0xa6   : > { %1224 = vmatmul.mubr.bf16.gmra.mrb[48].mxu0 %v2706_v3  ;;  %1480 = vmatmul.mubr.bf16.gmra.mrb[48].mxu1 %v2707_v4  ;;  %v2796_v4 = vld [vmem:[%s2895_s30 + $0x1b0] ss:$8 sps:$4 sm:$0xff]  }
  0xa7   : > { %1231 = vmatprep.mubr.bf16.mxu0 %v2708_v5  ;;  %1487 = vmatprep.mubr.bf16.mxu1 %v2710_v6  ;;  %v2797_v5 = vld [vmem:[%s2895_s30 + $0x3b0] ss:$8 sps:$4 sm:$0xff]  }
  0xae   : > { %1232 = vmatmul.mubr.bf16.gmra.mrb[52].mxu0 %v2712_v7  ;;  %1488 = vmatmul.mubr.bf16.gmra.mrb[52].mxu1 %v2713_v8  ;;  %v2798_v8 = vld [vmem:[%s2895_s30 + $0x1c4] ss:$8 sps:$4 sm:$0xff]  }
  0xaf   : > { %1239 = vmatprep.mubr.bf16.mxu0 %v2714_v9  ;;  %1495 = vmatprep.mubr.bf16.mxu1 %v2716_v10  ;;  %v2800_v9 = vld [vmem:[%s2895_s30 + $0x3c4] ss:$8 sps:$4 sm:$0xff]  }
  0xb6   : > { %1240 = vmatmul.mubr.bf16.gmra.mrb[56].mxu0 %v2718_v11  ;;  %1496 = vmatmul.mubr.bf16.gmra.mrb[56].mxu1 %v2719_v12 }
  0xb7   : > { %1247 = vmatprep.mubr.bf16.mxu0 %v2720_v13  ;;  %1503 = vmatprep.mubr.bf16.mxu1 %v2722_v14  ;;  %v3078_v14 = vld [vmem:[%s3446_s3] ss:$0 sm:$0xff] }
  0xbe   : > { %1248 = vmatmul.mubr.bf16.gmra.mrb[60].mxu0 %v2724_v15  ;;  %1504 = vmatmul.mubr.bf16.gmra.mrb[60].mxu1 %v2725_v16 }
  0xbf   : > { %1255 = vmatprep.mubr.bf16.mxu0 %v2726_v17  ;;  %1511 = vmatprep.mubr.bf16.mxu1 %v2728_v18 }
  0xc6   : > { %1256 = vmatmul.mubr.bf16.gmra.mrb[64].mxu0 %v2730_v19  ;;  %1512 = vmatmul.mubr.bf16.gmra.mrb[64].mxu1 %v2731_v20 }
  0xc7   : > { %1263 = vmatprep.mubr.bf16.mxu0 %v2732_v21  ;;  %1519 = vmatprep.mubr.bf16.mxu1 %v2734_v22 }
  0xce   : > { %1264 = vmatmul.mubr.bf16.gmra.mrb[68].mxu0 %v2736_v23  ;;  %1520 = vmatmul.mubr.bf16.gmra.mrb[68].mxu1 %v2737_v24 }
  0xcf   : > { %1271 = vmatprep.mubr.bf16.mxu0 %v2738_v25  ;;  %1527 = vmatprep.mubr.bf16.mxu1 %v2740_v26  ;;  %v2802_v25 = vld [vmem:[%s2895_s30 + $0x1c0] ss:$8 sps:$4 sm:$0xff]  }
  0xd0   : > { %v2803_v26 = vld [vmem:[%s2895_s30 + $0x3c0] ss:$8 sps:$4 sm:$0xff]  }
  0xd6   : > { %1272 = vmatmul.mubr.bf16.gmra.mrb[72].mxu0 %v2742_v27  ;;  %1528 = vmatmul.mubr.bf16.gmra.mrb[72].mxu1 %v2743_v28 }
  0xd7   : > { %1279 = vmatprep.mubr.bf16.mxu0 %v2744_v29  ;;  %1535 = vmatprep.mubr.bf16.mxu1 %v2746_v30 }
  0xde   : > { %1280 = vmatmul.mubr.bf16.gmra.mrb[76].mxu0 %v2748_v31  ;;  %1536 = vmatmul.mubr.bf16.gmra.mrb[76].mxu1 %v2749_v32  ;;  %v2804_v31 = vld [vmem:[%s2895_s30 + $0x1d4] ss:$8 sps:$4 sm:$0xff]  }
  0xdf   : > { %1287 = vmatprep.mubr.bf16.mxu0 %v2750_v33  ;;  %1543 = vmatprep.mubr.bf16.mxu1 %v2752_v34  ;;  %v2806_v32 = vld [vmem:[%s2895_s30 + $0x3d4] ss:$8 sps:$4 sm:$0xff]  }
  0xe6   : > { %1288 = vmatmul.mubr.bf16.gmra.mrb[80].mxu0 %v2754_v35  ;;  %1544 = vmatmul.mubr.bf16.gmra.mrb[80].mxu1 %v2755_v36 }
  0xe7   : > { %1295 = vmatprep.mubr.bf16.mxu0 %v2756_v37  ;;  %1551 = vmatprep.mubr.bf16.mxu1 %v2758_v38 }
  0xee   : > { %1296 = vmatmul.mubr.bf16.gmra.mrb[84].mxu0 %v2760_v39  ;;  %1552 = vmatmul.mubr.bf16.gmra.mrb[84].mxu1 %v2761_v40 }
  0xef   : > { %1303 = vmatprep.mubr.bf16.mxu0 %v2762_v41  ;;  %1559 = vmatprep.mubr.bf16.mxu1 %v2764_v42 }
  0xf6   : > { %1304 = vmatmul.mubr.bf16.gmra.mrb[88].mxu0 %v2766_v43  ;;  %1560 = vmatmul.mubr.bf16.gmra.mrb[88].mxu1 %v2767_v44 }
  0xf7   : > { %1311 = vmatprep.mubr.bf16.mxu0 %v2768_v45  ;;  %1567 = vmatprep.mubr.bf16.mxu1 %v2770_v46 }
  0xfe   : > { %1312 = vmatmul.mubr.bf16.gmra.mrb[92].mxu0 %v2772_v47  ;;  %1568 = vmatmul.mubr.bf16.gmra.mrb[92].mxu1 %v2773_v48 }
  0xff   : > { %1319 = vmatprep.mubr.bf16.mxu0 %v2774_v49  ;;  %1575 = vmatprep.mubr.bf16.mxu1 %v2776_v50 }
 0x106   : > { %1320 = vmatmul.mubr.bf16.gmra.mrb[96].mxu0 %v2778_v51  ;;  %1576 = vmatmul.mubr.bf16.gmra.mrb[96].mxu1 %v2779_v52 }
 0x107   : > { %1327 = vmatprep.mubr.bf16.mxu0 %v2780_v53  ;;  %1583 = vmatprep.mubr.bf16.mxu1 %v2782_v54 }
 0x10e   : > { %1328 = vmatmul.mubr.bf16.gmra.mrb[100].mxu0 %v2784_v55  ;;  %1584 = vmatmul.mubr.bf16.gmra.mrb[100].mxu1 %v2785_v56 }
 0x10f   : > { %1335 = vmatprep.mubr.bf16.mxu0 %v2786_v57  ;;  %1591 = vmatprep.mubr.bf16.mxu1 %v2788_v58  ;;  %v2808_v57 = vld [vmem:[%s2895_s30 + $0x1d0] ss:$8 sps:$4 sm:$0xff]  }
 0x110   : > { %v2809_v58 = vld [vmem:[%s2895_s30 + $0x3d0] ss:$8 sps:$4 sm:$0xff]  }
 0x116   : > { %1336 = vmatmul.mubr.bf16.gmra.mrb[104].mxu0 %v2790_v59  ;;  %1592 = vmatmul.mubr.bf16.gmra.mrb[104].mxu1 %v2791_v60 }
 0x117   : > { %1343 = vmatprep.mubr.bf16.mxu0 %v2792_v61  ;;  %1599 = vmatprep.mubr.bf16.mxu1 %v2794_v62  ;;  %v2810_v61 = vld [vmem:[%s2895_s30 + $0x1e4] ss:$8 sps:$4 sm:$0xff]  }
 0x118   : > { %v2812_v62 = vld [vmem:[%s2895_s30 + $0x3e4] ss:$8 sps:$4 sm:$0xff]  }
 0x119   : > { %v1129_v63 = vpop.f32.mrb[0].mxu0  ;;  %v1385_v1 = vpop.f32.mrb[0].mxu1 }
 0x11a   : > { %v1131_v2 = vpop.f32.mrb[1].mxu0  ;;  %v1387_v3 = vpop.f32.mrb[1].mxu1  ;;  %v1647_v12 = vmul.f32 %v3067_v0, %v1129_v63  ;;  %v1711_v13 = vmul.f32 %v3067_v0, %v1385_v1 }
 0x11b   : > { %v1132_v6 = vpop.f32.mrb[2].mxu0  ;;  %v1388_v7 = vpop.f32.mrb[2].mxu1 }
 0x11c   : > { %v1134_v10 = vpop.f32.mrb[3].mxu0  ;;  %v1390_v11 = vpop.f32.mrb[3].mxu1  ;;  %v1648_v15 = vmul.f32 %v3067_v0, %v1132_v6  ;;  %v1712_v16 = vmul.f32 %v3067_v0, %v1388_v7  ;;  %v1782_v17 = vadd.f32 %v3078_v14, %v1647_v12  ;;  %v1846_v18 = vadd.f32 %v3078_v14, %v1711_v13 }
 0x11e   : > { %1344 = vmatmul.mubr.bf16.gmra.mrb[108].mxu0 %v2796_v4  ;;  %1600 = vmatmul.mubr.bf16.gmra.mrb[108].mxu1 %v2797_v5  ;;  %v1783_v27 = vadd.f32 %v3078_v14, %v1648_v15  ;;  %v1847_v28 = vadd.f32 %v3078_v14, %v1712_v16  ;;  %v1910_v39 = vmax.f32 %v1782_v17, 0.0  ;;  %v1974_v40 = vmax.f32 %v1846_v18, 0.0  ;;  %v2814_v15 = vld [vmem:[%s2895_s30 + $0x1e0] ss:$8 sps:$4 sm:$0xff]  }
 0x11f   : > { %1351 = vmatprep.mubr.bf16.mxu0 %v2798_v8  ;;  %1607 = vmatprep.mubr.bf16.mxu1 %v2800_v9  ;;  %v2815_v16 = vld [vmem:[%s2895_s30 + $0x3e0] ss:$8 sps:$4 sm:$0xff]  }
 0x120   : > { %v1911_v45 = vmax.f32 %v1783_v27, 0.0  ;;  %v1975_v46 = vmax.f32 %v1847_v28, 0.0 }
 0x121   : > { %v1137_v19 = vpop.f32.mrb[4].mxu0  ;;  %v1393_v20 = vpop.f32.mrb[4].mxu1 }
 0x122   : > { %v1649_v21 = vmul.f32 %v3067_v0, %v1137_v19  ;;  %v1713_v22 = vmul.f32 %v3067_v0, %v1393_v20  ;;  %v1139_v23 = vpop.f32.mrb[5].mxu0  ;;  %v1395_v24 = vpop.f32.mrb[5].mxu1 }
 0x123   : > { %v1140_v29 = vpop.f32.mrb[6].mxu0  ;;  %v1396_v30 = vpop.f32.mrb[6].mxu1 }
 0x124   : > { %v1784_v33 = vadd.f32 %v3078_v14, %v1649_v21  ;;  %v1848_v34 = vadd.f32 %v3078_v14, %v1713_v22  ;;  %v1650_v35 = vmul.f32 %v3067_v0, %v1140_v29  ;;  %v1714_v36 = vmul.f32 %v3067_v0, %v1396_v30  ;;  %v1142_v37 = vpop.f32.mrb[7].mxu0  ;;  %v1398_v38 = vpop.f32.mrb[7].mxu1  ;;  %v2816_v21 = vld [vmem:[%s2895_s30 + $0x1f4] ss:$8 sps:$4 sm:$0xff]  }
 0x125   : > { %v2818_v22 = vld [vmem:[%s2895_s30 + $0x3f4] ss:$8 sps:$4 sm:$0xff]  }
 0x126   : > { %v1912_v41 = vmax.f32 %v1784_v33, 0.0  ;;  %v1976_v42 = vmax.f32 %v1848_v34, 0.0  ;;  %v1785_v43 = vadd.f32 %v3078_v14, %v1650_v35  ;;  %v1849_v44 = vadd.f32 %v3078_v14, %v1714_v36  ;;  %1352 = vmatmul.mubr.bf16.gmra.mrb[112].mxu0 %v2802_v25  ;;  %1608 = vmatmul.mubr.bf16.gmra.mrb[112].mxu1 %v2803_v26 }
 0x127   : > { %1359 = vmatprep.mubr.bf16.mxu0 %v2804_v31  ;;  %1615 = vmatprep.mubr.bf16.mxu1 %v2806_v32 }
 0x128   : > { %v3098_v47 = vmax.f32 %v1910_v39, %v1912_v41  ;;  %v3100_v48 = vmax.f32 %v1974_v40, %v1976_v42  ;;  %v1913_v49 = vmax.f32 %v1785_v43, 0.0  ;;  %v1977_v50 = vmax.f32 %v1849_v44, 0.0 }
 0x129   : > { %v1145_v51 = vpop.f32.mrb[8].mxu0  ;;  %v1401_v52 = vpop.f32.mrb[8].mxu1 }
 0x12a   : > { %v3102_v53 = vmax.f32 %v1911_v45, %v1913_v49  ;;  %v3104_v54 = vmax.f32 %v1975_v46, %v1977_v50  ;;  %v1147_v55 = vpop.f32.mrb[9].mxu0  ;;  %v1403_v56 = vpop.f32.mrb[9].mxu1  ;;  %v1651_v2 = vmul.f32 %v3067_v0, %v1145_v51  ;;  %v1715_v3 = vmul.f32 %v3067_v0, %v1401_v52  ;;  %v2820_v51 = vld [vmem:[%s2895_s30 + $0x1f0] ss:$8 sps:$4 sm:$0xff]  }
 0x12b   : > { %v1148_v59 = vpop.f32.mrb[10].mxu0  ;;  %v1404_v60 = vpop.f32.mrb[10].mxu1  ;;  %v2821_v52 = vld [vmem:[%s2895_s30 + $0x3f0] ss:$8 sps:$4 sm:$0xff]  }
 0x12c   : > { %v1150_v63 = vpop.f32.mrb[11].mxu0  ;;  %v1406_v1 = vpop.f32.mrb[11].mxu1  ;;  %v1652_v4 = vmul.f32 %v3067_v0, %v1148_v59  ;;  %v1716_v5 = vmul.f32 %v3067_v0, %v1404_v60  ;;  %v1786_v6 = vadd.f32 %v3078_v14, %v1651_v2  ;;  %v1850_v7 = vadd.f32 %v3078_v14, %v1715_v3 }
 0x12e   : > { %1360 = vmatmul.mubr.bf16.gmra.mrb[116].mxu0 %v2808_v57  ;;  %1616 = vmatmul.mubr.bf16.gmra.mrb[116].mxu1 %v2809_v58  ;;  %v1787_v17 = vadd.f32 %v3078_v14, %v1652_v4  ;;  %v1851_v18 = vadd.f32 %v3078_v14, %v1716_v5  ;;  %v1914_v29 = vmax.f32 %v1786_v6, 0.0  ;;  %v1978_v30 = vmax.f32 %v1850_v7, 0.0 }
 0x12f   : > { %1367 = vmatprep.mubr.bf16.mxu0 %v2810_v61  ;;  %1623 = vmatprep.mubr.bf16.mxu1 %v2812_v62 }
 0x130   : > { %v1915_v35 = vmax.f32 %v1787_v17, 0.0  ;;  %v1979_v36 = vmax.f32 %v1851_v18, 0.0 }
 0x131   : > { %v1153_v8 = vpop.f32.mrb[12].mxu0  ;;  %v1409_v9 = vpop.f32.mrb[12].mxu1 }
 0x132   : > { %v1653_v10 = vmul.f32 %v3067_v0, %v1153_v8  ;;  %v1717_v11 = vmul.f32 %v3067_v0, %v1409_v9  ;;  %v1155_v12 = vpop.f32.mrb[13].mxu0  ;;  %v1411_v13 = vpop.f32.mrb[13].mxu1 }
 0x133   : > { %v1156_v19 = vpop.f32.mrb[14].mxu0  ;;  %v1412_v20 = vpop.f32.mrb[14].mxu1 }
 0x134   : > { %v1788_v23 = vadd.f32 %v3078_v14, %v1653_v10  ;;  %v1852_v24 = vadd.f32 %v3078_v14, %v1717_v11  ;;  %v1654_v25 = vmul.f32 %v3067_v0, %v1156_v19  ;;  %v1718_v26 = vmul.f32 %v3067_v0, %v1412_v20  ;;  %v1158_v27 = vpop.f32.mrb[15].mxu0  ;;  %v1414_v28 = vpop.f32.mrb[15].mxu1 }
 0x136   : > { %v1916_v31 = vmax.f32 %v1788_v23, 0.0  ;;  %v1980_v32 = vmax.f32 %v1852_v24, 0.0  ;;  %v1789_v33 = vadd.f32 %v3078_v14, %v1654_v25  ;;  %v1853_v34 = vadd.f32 %v3078_v14, %v1718_v26  ;;  %1368 = vmatmul.mubr.bf16.gmra.mrb[120].mxu0 %v2814_v15  ;;  %1624 = vmatmul.mubr.bf16.gmra.mrb[120].mxu1 %v2815_v16 }
 0x137   : > { %1375 = vmatprep.mubr.bf16.mxu0 %v2816_v21  ;;  %1631 = vmatprep.mubr.bf16.mxu1 %v2818_v22 }
 0x138   : > { %v2070_v37 = vmax.f32 %v1914_v29, %v1916_v31  ;;  %v2086_v38 = vmax.f32 %v1978_v30, %v1980_v32  ;;  %v1917_v39 = vmax.f32 %v1789_v33, 0.0  ;;  %v1981_v40 = vmax.f32 %v1853_v34, 0.0 }
 0x139   : > { %v1161_v41 = vpop.f32.mrb[16].mxu0  ;;  %v1417_v42 = vpop.f32.mrb[16].mxu1 }
 0x13a   : > { %v2102_v43 = vmax.f32 %v3098_v47, %v2070_v37  ;;  %v2118_v44 = vmax.f32 %v3100_v48, %v2086_v38  ;;  %v2071_v45 = vmax.f32 %v1915_v35, %v1917_v39  ;;  %v2087_v46 = vmax.f32 %v1979_v36, %v1981_v40  ;;  %v1163_v49 = vpop.f32.mrb[17].mxu0  ;;  %v1419_v50 = vpop.f32.mrb[17].mxu1 }
 0x13b   : > { %v1164_v55 = vpop.f32.mrb[18].mxu0  ;;  %v1420_v56 = vpop.f32.mrb[18].mxu1  ;;  %v1655_v61 = vmul.f32 %v3067_v0, %v1161_v41  ;;  %v1719_v62 = vmul.f32 %v3067_v0, %v1417_v42 }
 0x13c   : > { %v2541_v57 = vpack.c.bf16 %v2102_v43, %v2102_v43  ;;  %v2557_v47 = vpack.c.bf16 %v2118_v44, %v2118_v44  ;;  %v2103_v48 = vmax.f32 %v3102_v53, %v2071_v45  ;;  %v2119_v58 = vmax.f32 %v3104_v54, %v2087_v46  ;;  %v1166_v59 = vpop.f32.mrb[19].mxu0  ;;  %v1422_v60 = vpop.f32.mrb[19].mxu1 }
 0x13d   : > { %v1656_v2 = vmul.f32 %v3067_v0, %v1164_v55  ;;  %v1720_v53 = vmul.f32 %v3067_v0, %v1420_v56  ;;  %v1790_v54 = vadd.f32 %v3078_v14, %v1655_v61  ;;  %v1854_v3 = vadd.f32 %v3078_v14, %v1719_v62 }
 0x13e   : > { %2263 = vst.msk [vmem:[%s3138_s16] sm:$0xf] %vm2262_vm0, %v2541_v57  ;;  %2279 = vst.msk [vmem:[%s3138_s16 + $0x40] sm:$0xf] %vm2262_vm0, %v2557_v47  ;;  %v2542_v63 = vpack.c.bf16 %v2103_v48, %v2103_v48  ;;  %v2558_v1 = vpack.c.bf16 %v2119_v58, %v2119_v58  ;;  %1376 = vmatmul.mubr.bf16.gmra.mrb[124].mxu0 %v2820_v51  ;;  %1632 = vmatmul.mubr.bf16.gmra.mrb[124].mxu1 %v2821_v52 }
 0x13f   : > { %v1791_v10 = vadd.f32 %v3078_v14, %v1656_v2  ;;  %v1855_v11 = vadd.f32 %v3078_v14, %v1720_v53  ;;  %v1918_v21 = vmax.f32 %v1790_v54, 0.0  ;;  %v1982_v22 = vmax.f32 %v1854_v3, 0.0 }
 0x140   : > { %2264 = vst.msk [vmem:[%s3138_s16 + $0x4] sm:$0xf] %vm2262_vm0, %v2542_v63  ;;  %2280 = vst.msk [vmem:[%s3138_s16 + $0x44] sm:$0xf] %vm2262_vm0, %v2558_v1 }
 0x141   : > { %v1169_v4 = vpop.f32.mrb[20].mxu0  ;;  %v1425_v5 = vpop.f32.mrb[20].mxu1  ;;  %v1919_v27 = vmax.f32 %v1791_v10, 0.0  ;;  %v1983_v28 = vmax.f32 %v1855_v11, 0.0 }
 0x142   : > { %v1657_v6 = vmul.f32 %v3067_v0, %v1169_v4  ;;  %v1721_v7 = vmul.f32 %v3067_v0, %v1425_v5  ;;  %v1171_v8 = vpop.f32.mrb[21].mxu0  ;;  %v1427_v9 = vpop.f32.mrb[21].mxu1 }
 0x143   : > { %v1172_v12 = vpop.f32.mrb[22].mxu0  ;;  %v1428_v13 = vpop.f32.mrb[22].mxu1 }
 0x144   : > { %v1792_v15 = vadd.f32 %v3078_v14, %v1657_v6  ;;  %v1856_v16 = vadd.f32 %v3078_v14, %v1721_v7  ;;  %v1658_v17 = vmul.f32 %v3067_v0, %v1172_v12  ;;  %v1722_v18 = vmul.f32 %v3067_v0, %v1428_v13  ;;  %v1174_v19 = vpop.f32.mrb[23].mxu0  ;;  %v1430_v20 = vpop.f32.mrb[23].mxu1 }
 0x146   : > { %v1920_v23 = vmax.f32 %v1792_v15, 0.0  ;;  %v1984_v24 = vmax.f32 %v1856_v16, 0.0  ;;  %v1793_v25 = vadd.f32 %v3078_v14, %v1658_v17  ;;  %v1857_v26 = vadd.f32 %v3078_v14, %v1722_v18 }
 0x148   : > { %v2040_v29 = vmax.f32 %v1918_v21, %v1920_v23  ;;  %v2056_v30 = vmax.f32 %v1982_v22, %v1984_v24  ;;  %v1921_v31 = vmax.f32 %v1793_v25, 0.0  ;;  %v1985_v32 = vmax.f32 %v1857_v26, 0.0 }
 0x149   : > { %v1177_v33 = vpop.f32.mrb[24].mxu0  ;;  %v1433_v34 = vpop.f32.mrb[24].mxu1 }
 0x14a   : > { %v2041_v35 = vmax.f32 %v1919_v27, %v1921_v31  ;;  %v2057_v36 = vmax.f32 %v1983_v28, %v1985_v32  ;;  %v1179_v37 = vpop.f32.mrb[25].mxu0  ;;  %v1435_v38 = vpop.f32.mrb[25].mxu1  ;;  %v1659_v43 = vmul.f32 %v3067_v0, %v1177_v33  ;;  %v1723_v44 = vmul.f32 %v3067_v0, %v1433_v34 }
 0x14b   : > { %v1180_v39 = vpop.f32.mrb[26].mxu0  ;;  %v1436_v40 = vpop.f32.mrb[26].mxu1 }
 0x14c   : > { %v1182_v41 = vpop.f32.mrb[27].mxu0  ;;  %v1438_v42 = vpop.f32.mrb[27].mxu1  ;;  %v1660_v45 = vmul.f32 %v3067_v0, %v1180_v39  ;;  %v1724_v46 = vmul.f32 %v3067_v0, %v1436_v40  ;;  %v1794_v49 = vadd.f32 %v3078_v14, %v1659_v43  ;;  %v1858_v50 = vadd.f32 %v3078_v14, %v1723_v44 }
 0x14e   : > { %v1795_v48 = vadd.f32 %v3078_v14, %v1660_v45  ;;  %v1859_v58 = vadd.f32 %v3078_v14, %v1724_v46  ;;  %v1922_v54 = vmax.f32 %v1794_v49, 0.0  ;;  %v1986_v3 = vmax.f32 %v1858_v50, 0.0 }
 0x150   : > { %v1923_v8 = vmax.f32 %v1795_v48, 0.0  ;;  %v1987_v9 = vmax.f32 %v1859_v58, 0.0 }
 0x151   : > { %v1185_v51 = vpop.f32.mrb[28].mxu0  ;;  %v1441_v52 = vpop.f32.mrb[28].mxu1 }
 0x152   : > { %v1661_v55 = vmul.f32 %v3067_v0, %v1185_v51  ;;  %v1725_v56 = vmul.f32 %v3067_v0, %v1441_v52  ;;  %v1187_v57 = vpop.f32.mrb[29].mxu0  ;;  %v1443_v47 = vpop.f32.mrb[29].mxu1 }
 0x153   : > { %v1188_v59 = vpop.f32.mrb[30].mxu0  ;;  %v1444_v60 = vpop.f32.mrb[30].mxu1 }
 0x154   : > { %v1796_v61 = vadd.f32 %v3078_v14, %v1661_v55  ;;  %v1860_v62 = vadd.f32 %v3078_v14, %v1725_v56  ;;  %v1662_v63 = vmul.f32 %v3067_v0, %v1188_v59  ;;  %v1726_v1 = vmul.f32 %v3067_v0, %v1444_v60  ;;  %v1190_v2 = vpop.f32.mrb[31].mxu0  ;;  %v1446_v53 = vpop.f32.mrb[31].mxu1 }
 0x156   : > { %v1924_v4 = vmax.f32 %v1796_v61, 0.0  ;;  %v1988_v5 = vmax.f32 %v1860_v62, 0.0  ;;  %v1797_v6 = vadd.f32 %v3078_v14, %v1662_v63  ;;  %v1861_v7 = vadd.f32 %v3078_v14, %v1726_v1 }
 0x158   : > { %v2072_v10 = vmax.f32 %v1922_v54, %v1924_v4  ;;  %v2088_v11 = vmax.f32 %v1986_v3, %v1988_v5  ;;  %v1925_v12 = vmax.f32 %v1797_v6, 0.0  ;;  %v1989_v13 = vmax.f32 %v1861_v7, 0.0 }
 0x159   : > { %v1193_v15 = vpop.f32.mrb[32].mxu0  ;;  %v1449_v16 = vpop.f32.mrb[32].mxu1 }
 0x15a   : > { %v2104_v17 = vmax.f32 %v2040_v29, %v2072_v10  ;;  %v2120_v18 = vmax.f32 %v2056_v30, %v2088_v11  ;;  %v2073_v19 = vmax.f32 %v1923_v8, %v1925_v12  ;;  %v2089_v20 = vmax.f32 %v1987_v9, %v1989_v13  ;;  %v1195_v21 = vpop.f32.mrb[33].mxu0  ;;  %v1451_v22 = vpop.f32.mrb[33].mxu1 }
 0x15b   : > { %v1196_v23 = vpop.f32.mrb[34].mxu0  ;;  %v1452_v24 = vpop.f32.mrb[34].mxu1  ;;  %v1663_v33 = vmul.f32 %v3067_v0, %v1193_v15  ;;  %v1727_v29 = vmul.f32 %v3067_v0, %v1449_v16 }
 0x15c   : > { %v2543_v25 = vpack.c.bf16 %v2104_v17, %v2104_v17  ;;  %v2559_v26 = vpack.c.bf16 %v2120_v18, %v2120_v18  ;;  %v2105_v27 = vmax.f32 %v2041_v35, %v2073_v19  ;;  %v2121_v28 = vmax.f32 %v2057_v36, %v2089_v20  ;;  %v1198_v31 = vpop.f32.mrb[35].mxu0  ;;  %v1454_v32 = vpop.f32.mrb[35].mxu1 }
 0x15d   : > { %v1664_v37 = vmul.f32 %v3067_v0, %v1196_v23  ;;  %v1728_v38 = vmul.f32 %v3067_v0, %v1452_v24  ;;  %v1798_v35 = vadd.f32 %v3078_v14, %v1663_v33  ;;  %v1862_v36 = vadd.f32 %v3078_v14, %v1727_v29 }
 0x15e   : > { %2265 = vst.msk [vmem:[%s3138_s16 + $0x8] sm:$0xf] %vm2262_vm0, %v2543_v25  ;;  %2281 = vst.msk [vmem:[%s3138_s16 + $0x48] sm:$0xf] %vm2262_vm0, %v2559_v26  ;;  %v2544_v30 = vpack.c.bf16 %v2105_v27, %v2105_v27  ;;  %v2560_v34 = vpack.c.bf16 %v2121_v28, %v2121_v28 }
 0x15f   : > { %v1799_v45 = vadd.f32 %v3078_v14, %v1664_v37  ;;  %v1863_v46 = vadd.f32 %v3078_v14, %v1728_v38  ;;  %v1926_v48 = vmax.f32 %v1798_v35, 0.0  ;;  %v1990_v58 = vmax.f32 %v1862_v36, 0.0 }
 0x160   : > { %2266 = vst.msk [vmem:[%s3138_s16 + $0xc] sm:$0xf] %vm2262_vm0, %v2544_v30  ;;  %2282 = vst.msk [vmem:[%s3138_s16 + $0x4c] sm:$0xf] %vm2262_vm0, %v2560_v34 }
 0x161   : > { %v1201_v39 = vpop.f32.mrb[36].mxu0  ;;  %v1457_v40 = vpop.f32.mrb[36].mxu1  ;;  %v1927_v63 = vmax.f32 %v1799_v45, 0.0  ;;  %v1991_v1 = vmax.f32 %v1863_v46, 0.0 }
 0x162   : > { %v1665_v41 = vmul.f32 %v3067_v0, %v1201_v39  ;;  %v1729_v42 = vmul.f32 %v3067_v0, %v1457_v40  ;;  %v1203_v43 = vpop.f32.mrb[37].mxu0  ;;  %v1459_v44 = vpop.f32.mrb[37].mxu1 }
 0x163   : > { %v1204_v49 = vpop.f32.mrb[38].mxu0  ;;  %v1460_v50 = vpop.f32.mrb[38].mxu1 }
 0x164   : > { %v1800_v51 = vadd.f32 %v3078_v14, %v1665_v41  ;;  %v1864_v52 = vadd.f32 %v3078_v14, %v1729_v42  ;;  %v1666_v55 = vmul.f32 %v3067_v0, %v1204_v49  ;;  %v1730_v56 = vmul.f32 %v3067_v0, %v1460_v50  ;;  %v1206_v57 = vpop.f32.mrb[39].mxu0  ;;  %v1462_v47 = vpop.f32.mrb[39].mxu1 }
 0x166   : > { %v1928_v59 = vmax.f32 %v1800_v51, 0.0  ;;  %v1992_v60 = vmax.f32 %v1864_v52, 0.0  ;;  %v1801_v61 = vadd.f32 %v3078_v14, %v1666_v55  ;;  %v1865_v62 = vadd.f32 %v3078_v14, %v1730_v56 }
 0x168   : > { %v2042_v2 = vmax.f32 %v1926_v48, %v1928_v59  ;;  %v2058_v53 = vmax.f32 %v1990_v58, %v1992_v60  ;;  %v1929_v54 = vmax.f32 %v1801_v61, 0.0  ;;  %v1993_v3 = vmax.f32 %v1865_v62, 0.0 }
 0x169   : > { %v1209_v4 = vpop.f32.mrb[40].mxu0  ;;  %v1465_v5 = vpop.f32.mrb[40].mxu1 }
 0x16a   : > { %v2043_v6 = vmax.f32 %v1927_v63, %v1929_v54  ;;  %v2059_v7 = vmax.f32 %v1991_v1, %v1993_v3  ;;  %v1211_v8 = vpop.f32.mrb[41].mxu0  ;;  %v1467_v9 = vpop.f32.mrb[41].mxu1  ;;  %v1667_v15 = vmul.f32 %v3067_v0, %v1209_v4  ;;  %v1731_v16 = vmul.f32 %v3067_v0, %v1465_v5 }
 0x16b   : > { %v1212_v10 = vpop.f32.mrb[42].mxu0  ;;  %v1468_v11 = vpop.f32.mrb[42].mxu1 }
 0x16c   : > { %v1214_v12 = vpop.f32.mrb[43].mxu0  ;;  %v1470_v13 = vpop.f32.mrb[43].mxu1  ;;  %v1668_v17 = vmul.f32 %v3067_v0, %v1212_v10  ;;  %v1732_v18 = vmul.f32 %v3067_v0, %v1468_v11  ;;  %v1802_v19 = vadd.f32 %v3078_v14, %v1667_v15  ;;  %v1866_v20 = vadd.f32 %v3078_v14, %v1731_v16 }
 0x16e   : > { %v1803_v27 = vadd.f32 %v3078_v14, %v1668_v17  ;;  %v1867_v28 = vadd.f32 %v3078_v14, %v1732_v18  ;;  %v1930_v35 = vmax.f32 %v1802_v19, 0.0  ;;  %v1994_v36 = vmax.f32 %v1866_v20, 0.0 }
 0x170   : > { %v1931_v43 = vmax.f32 %v1803_v27, 0.0  ;;  %v1995_v44 = vmax.f32 %v1867_v28, 0.0 }
 0x171   : > { %v1217_v21 = vpop.f32.mrb[44].mxu0  ;;  %v1473_v22 = vpop.f32.mrb[44].mxu1 }
 0x172   : > { %v1669_v23 = vmul.f32 %v3067_v0, %v1217_v21  ;;  %v1733_v24 = vmul.f32 %v3067_v0, %v1473_v22  ;;  %v1219_v25 = vpop.f32.mrb[45].mxu0  ;;  %v1475_v26 = vpop.f32.mrb[45].mxu1 }
 0x173   : > { %v1220_v31 = vpop.f32.mrb[46].mxu0  ;;  %v1476_v32 = vpop.f32.mrb[46].mxu1 }
 0x174   : > { %v1804_v33 = vadd.f32 %v3078_v14, %v1669_v23  ;;  %v1868_v29 = vadd.f32 %v3078_v14, %v1733_v24  ;;  %v1670_v30 = vmul.f32 %v3067_v0, %v1220_v31  ;;  %v1734_v34 = vmul.f32 %v3067_v0, %v1476_v32  ;;  %v1222_v37 = vpop.f32.mrb[47].mxu0  ;;  %v1478_v38 = vpop.f32.mrb[47].mxu1 }
 0x176   : > { %v1932_v39 = vmax.f32 %v1804_v33, 0.0  ;;  %v1996_v40 = vmax.f32 %v1868_v29, 0.0  ;;  %v1805_v41 = vadd.f32 %v3078_v14, %v1670_v30  ;;  %v1869_v42 = vadd.f32 %v3078_v14, %v1734_v34 }
 0x178   : > { %v2074_v45 = vmax.f32 %v1930_v35, %v1932_v39  ;;  %v2090_v46 = vmax.f32 %v1994_v36, %v1996_v40  ;;  %v1933_v49 = vmax.f32 %v1805_v41, 0.0  ;;  %v1997_v50 = vmax.f32 %v1869_v42, 0.0 }
 0x179   : > { %v1225_v51 = vpop.f32.mrb[48].mxu0  ;;  %v1481_v52 = vpop.f32.mrb[48].mxu1 }
 0x17a   : > { %v2106_v55 = vmax.f32 %v2042_v2, %v2074_v45  ;;  %v2122_v56 = vmax.f32 %v2058_v53, %v2090_v46  ;;  %v2075_v57 = vmax.f32 %v1931_v43, %v1933_v49  ;;  %v2091_v47 = vmax.f32 %v1995_v44, %v1997_v50  ;;  %v1227_v48 = vpop.f32.mrb[49].mxu0  ;;  %v1483_v58 = vpop.f32.mrb[49].mxu1 }
 0x17b   : > { %v1228_v59 = vpop.f32.mrb[50].mxu0  ;;  %v1484_v60 = vpop.f32.mrb[50].mxu1  ;;  %v1671_v4 = vmul.f32 %v3067_v0, %v1225_v51  ;;  %v1735_v2 = vmul.f32 %v3067_v0, %v1481_v52 }
 0x17c   : > { %v2545_v61 = vpack.c.bf16 %v2106_v55, %v2106_v55  ;;  %v2561_v62 = vpack.c.bf16 %v2122_v56, %v2122_v56  ;;  %v2107_v63 = vmax.f32 %v2043_v6, %v2075_v57  ;;  %v2123_v1 = vmax.f32 %v2059_v7, %v2091_v47  ;;  %v1230_v54 = vpop.f32.mrb[51].mxu0  ;;  %v1486_v3 = vpop.f32.mrb[51].mxu1 }
 0x17d   : > { %v1672_v8 = vmul.f32 %v3067_v0, %v1228_v59  ;;  %v1736_v9 = vmul.f32 %v3067_v0, %v1484_v60  ;;  %v1806_v6 = vadd.f32 %v3078_v14, %v1671_v4  ;;  %v1870_v7 = vadd.f32 %v3078_v14, %v1735_v2 }
 0x17e   : > { %2267 = vst.msk [vmem:[%s3138_s16 + $0x10] sm:$0xf] %vm2262_vm0, %v2545_v61  ;;  %2283 = vst.msk [vmem:[%s3138_s16 + $0x50] sm:$0xf] %vm2262_vm0, %v2561_v62  ;;  %v2546_v53 = vpack.c.bf16 %v2107_v63, %v2107_v63  ;;  %v2562_v5 = vpack.c.bf16 %v2123_v1, %v2123_v1 }
 0x17f   : > { %v1807_v17 = vadd.f32 %v3078_v14, %v1672_v8  ;;  %v1871_v18 = vadd.f32 %v3078_v14, %v1736_v9  ;;  %v1934_v27 = vmax.f32 %v1806_v6, 0.0  ;;  %v1998_v28 = vmax.f32 %v1870_v7, 0.0 }
 0x180   : > { %2268 = vst.msk [vmem:[%s3138_s16 + $0x14] sm:$0xf] %vm2262_vm0, %v2546_v53  ;;  %2284 = vst.msk [vmem:[%s3138_s16 + $0x54] sm:$0xf] %vm2262_vm0, %v2562_v5 }
 0x181   : > { %v1233_v10 = vpop.f32.mrb[52].mxu0  ;;  %v1489_v11 = vpop.f32.mrb[52].mxu1  ;;  %v1935_v30 = vmax.f32 %v1807_v17, 0.0  ;;  %v1999_v34 = vmax.f32 %v1871_v18, 0.0 }
 0x182   : > { %v1673_v12 = vmul.f32 %v3067_v0, %v1233_v10  ;;  %v1737_v13 = vmul.f32 %v3067_v0, %v1489_v11  ;;  %v1235_v15 = vpop.f32.mrb[53].mxu0  ;;  %v1491_v16 = vpop.f32.mrb[53].mxu1 }
 0x183   : > { %v1236_v19 = vpop.f32.mrb[54].mxu0  ;;  %v1492_v20 = vpop.f32.mrb[54].mxu1 }
 0x184   : > { %v1808_v21 = vadd.f32 %v3078_v14, %v1673_v12  ;;  %v1872_v22 = vadd.f32 %v3078_v14, %v1737_v13  ;;  %v1674_v23 = vmul.f32 %v3067_v0, %v1236_v19  ;;  %v1738_v24 = vmul.f32 %v3067_v0, %v1492_v20  ;;  %v1238_v25 = vpop.f32.mrb[55].mxu0  ;;  %v1494_v26 = vpop.f32.mrb[55].mxu1 }
 0x186   : > { %v1936_v31 = vmax.f32 %v1808_v21, 0.0  ;;  %v2000_v32 = vmax.f32 %v1872_v22, 0.0  ;;  %v1809_v33 = vadd.f32 %v3078_v14, %v1674_v23  ;;  %v1873_v29 = vadd.f32 %v3078_v14, %v1738_v24 }
 0x188   : > { %v2044_v37 = vmax.f32 %v1934_v27, %v1936_v31  ;;  %v2060_v38 = vmax.f32 %v1998_v28, %v2000_v32  ;;  %v1937_v35 = vmax.f32 %v1809_v33, 0.0  ;;  %v2001_v36 = vmax.f32 %v1873_v29, 0.0 }
 0x189   : > { %v1241_v39 = vpop.f32.mrb[56].mxu0  ;;  %v1497_v40 = vpop.f32.mrb[56].mxu1 }
 0x18a   : > { %v2045_v41 = vmax.f32 %v1935_v30, %v1937_v35  ;;  %v2061_v42 = vmax.f32 %v1999_v34, %v2001_v36  ;;  %v1243_v43 = vpop.f32.mrb[57].mxu0  ;;  %v1499_v44 = vpop.f32.mrb[57].mxu1  ;;  %v1675_v51 = vmul.f32 %v3067_v0, %v1241_v39  ;;  %v1739_v52 = vmul.f32 %v3067_v0, %v1497_v40 }
 0x18b   : > { %v1244_v45 = vpop.f32.mrb[58].mxu0  ;;  %v1500_v46 = vpop.f32.mrb[58].mxu1 }
 0x18c   : > { %v1246_v49 = vpop.f32.mrb[59].mxu0  ;;  %v1502_v50 = vpop.f32.mrb[59].mxu1  ;;  %v1676_v55 = vmul.f32 %v3067_v0, %v1244_v45  ;;  %v1740_v56 = vmul.f32 %v3067_v0, %v1500_v46  ;;  %v1810_v57 = vadd.f32 %v3078_v14, %v1675_v51  ;;  %v1874_v47 = vadd.f32 %v3078_v14, %v1739_v52 }
 0x18e   : > { %v1811_v63 = vadd.f32 %v3078_v14, %v1676_v55  ;;  %v1875_v1 = vadd.f32 %v3078_v14, %v1740_v56  ;;  %v1938_v6 = vmax.f32 %v1810_v57, 0.0  ;;  %v2002_v7 = vmax.f32 %v1874_v47, 0.0 }
 0x190   : > { %v1939_v15 = vmax.f32 %v1811_v63, 0.0  ;;  %v2003_v16 = vmax.f32 %v1875_v1, 0.0 }
 0x191   : > { %v1249_v48 = vpop.f32.mrb[60].mxu0  ;;  %v1505_v58 = vpop.f32.mrb[60].mxu1 }
 0x192   : > { %v1677_v59 = vmul.f32 %v3067_v0, %v1249_v48  ;;  %v1741_v60 = vmul.f32 %v3067_v0, %v1505_v58  ;;  %v1251_v61 = vpop.f32.mrb[61].mxu0  ;;  %v1507_v62 = vpop.f32.mrb[61].mxu1 }
 0x193   : > { %v1252_v54 = vpop.f32.mrb[62].mxu0  ;;  %v1508_v3 = vpop.f32.mrb[62].mxu1 }
 0x194   : > { %v1812_v4 = vadd.f32 %v3078_v14, %v1677_v59  ;;  %v1876_v2 = vadd.f32 %v3078_v14, %v1741_v60  ;;  %v1678_v53 = vmul.f32 %v3067_v0, %v1252_v54  ;;  %v1742_v5 = vmul.f32 %v3067_v0, %v1508_v3  ;;  %v1254_v8 = vpop.f32.mrb[63].mxu0  ;;  %v1510_v9 = vpop.f32.mrb[63].mxu1 }
 0x196   : > { %v1940_v10 = vmax.f32 %v1812_v4, 0.0  ;;  %v2004_v11 = vmax.f32 %v1876_v2, 0.0  ;;  %v1813_v12 = vadd.f32 %v3078_v14, %v1678_v53  ;;  %v1877_v13 = vadd.f32 %v3078_v14, %v1742_v5 }
 0x198   : > { %v2076_v17 = vmax.f32 %v1938_v6, %v1940_v10  ;;  %v2092_v18 = vmax.f32 %v2002_v7, %v2004_v11  ;;  %v1941_v19 = vmax.f32 %v1813_v12, 0.0  ;;  %v2005_v20 = vmax.f32 %v1877_v13, 0.0 }
 0x199   : > { %v1257_v21 = vpop.f32.mrb[64].mxu0  ;;  %v1513_v22 = vpop.f32.mrb[64].mxu1 }
 0x19a   : > { %v2108_v23 = vmax.f32 %v2044_v37, %v2076_v17  ;;  %v2124_v24 = vmax.f32 %v2060_v38, %v2092_v18  ;;  %v2077_v25 = vmax.f32 %v1939_v15, %v1941_v19  ;;  %v2093_v26 = vmax.f32 %v2003_v16, %v2005_v20  ;;  %v1259_v27 = vpop.f32.mrb[65].mxu0  ;;  %v1515_v28 = vpop.f32.mrb[65].mxu1 }
 0x19b   : > { %v1260_v31 = vpop.f32.mrb[66].mxu0  ;;  %v1516_v32 = vpop.f32.mrb[66].mxu1  ;;  %v1679_v39 = vmul.f32 %v3067_v0, %v1257_v21  ;;  %v1743_v37 = vmul.f32 %v3067_v0, %v1513_v22 }
 0x19c   : > { %v2547_v33 = vpack.c.bf16 %v2108_v23, %v2108_v23  ;;  %v2563_v29 = vpack.c.bf16 %v2124_v24, %v2124_v24  ;;  %v2109_v30 = vmax.f32 %v2045_v41, %v2077_v25  ;;  %v2125_v34 = vmax.f32 %v2061_v42, %v2093_v26  ;;  %v1262_v35 = vpop.f32.mrb[67].mxu0  ;;  %v1518_v36 = vpop.f32.mrb[67].mxu1 }
 0x19d   : > { %v1680_v43 = vmul.f32 %v3067_v0, %v1260_v31  ;;  %v1744_v44 = vmul.f32 %v3067_v0, %v1516_v32  ;;  %v1814_v41 = vadd.f32 %v3078_v14, %v1679_v39  ;;  %v1878_v42 = vadd.f32 %v3078_v14, %v1743_v37 }
 0x19e   : > { %2269 = vst.msk [vmem:[%s3138_s16 + $0x18] sm:$0xf] %vm2262_vm0, %v2547_v33  ;;  %2285 = vst.msk [vmem:[%s3138_s16 + $0x58] sm:$0xf] %vm2262_vm0, %v2563_v29  ;;  %v2548_v38 = vpack.c.bf16 %v2109_v30, %v2109_v30  ;;  %v2564_v40 = vpack.c.bf16 %v2125_v34, %v2125_v34 }
 0x19f   : > { %v1815_v55 = vadd.f32 %v3078_v14, %v1680_v43  ;;  %v1879_v56 = vadd.f32 %v3078_v14, %v1744_v44  ;;  %v1942_v63 = vmax.f32 %v1814_v41, 0.0  ;;  %v2006_v1 = vmax.f32 %v1878_v42, 0.0 }
 0x1a0   : > { %2270 = vst.msk [vmem:[%s3138_s16 + $0x1c] sm:$0xf] %vm2262_vm0, %v2548_v38  ;;  %2286 = vst.msk [vmem:[%s3138_s16 + $0x5c] sm:$0xf] %vm2262_vm0, %v2564_v40 }
 0x1a1   : > { %v1265_v45 = vpop.f32.mrb[68].mxu0  ;;  %v1521_v46 = vpop.f32.mrb[68].mxu1  ;;  %v1943_v53 = vmax.f32 %v1815_v55, 0.0  ;;  %v2007_v5 = vmax.f32 %v1879_v56, 0.0 }
 0x1a2   : > { %v1681_v49 = vmul.f32 %v3067_v0, %v1265_v45  ;;  %v1745_v50 = vmul.f32 %v3067_v0, %v1521_v46  ;;  %v1267_v51 = vpop.f32.mrb[69].mxu0  ;;  %v1523_v52 = vpop.f32.mrb[69].mxu1 }
 0x1a3   : > { %v1268_v57 = vpop.f32.mrb[70].mxu0  ;;  %v1524_v47 = vpop.f32.mrb[70].mxu1 }
 0x1a4   : > { %v1816_v48 = vadd.f32 %v3078_v14, %v1681_v49  ;;  %v1880_v58 = vadd.f32 %v3078_v14, %v1745_v50  ;;  %v1682_v59 = vmul.f32 %v3067_v0, %v1268_v57  ;;  %v1746_v60 = vmul.f32 %v3067_v0, %v1524_v47  ;;  %v1270_v61 = vpop.f32.mrb[71].mxu0  ;;  %v1526_v62 = vpop.f32.mrb[71].mxu1 }
 0x1a6   : > { %v1944_v54 = vmax.f32 %v1816_v48, 0.0  ;;  %v2008_v3 = vmax.f32 %v1880_v58, 0.0  ;;  %v1817_v4 = vadd.f32 %v3078_v14, %v1682_v59  ;;  %v1881_v2 = vadd.f32 %v3078_v14, %v1746_v60 }
 0x1a8   : > { %v2046_v8 = vmax.f32 %v1942_v63, %v1944_v54  ;;  %v2062_v9 = vmax.f32 %v2006_v1, %v2008_v3  ;;  %v1945_v6 = vmax.f32 %v1817_v4, 0.0  ;;  %v2009_v7 = vmax.f32 %v1881_v2, 0.0 }
 0x1a9   : > { %v1273_v10 = vpop.f32.mrb[72].mxu0  ;;  %v1529_v11 = vpop.f32.mrb[72].mxu1 }
 0x1aa   : > { %v2047_v12 = vmax.f32 %v1943_v53, %v1945_v6  ;;  %v2063_v13 = vmax.f32 %v2007_v5, %v2009_v7  ;;  %v1275_v15 = vpop.f32.mrb[73].mxu0  ;;  %v1531_v16 = vpop.f32.mrb[73].mxu1  ;;  %v1683_v21 = vmul.f32 %v3067_v0, %v1273_v10  ;;  %v1747_v22 = vmul.f32 %v3067_v0, %v1529_v11 }
 0x1ab   : > { %v1276_v17 = vpop.f32.mrb[74].mxu0  ;;  %v1532_v18 = vpop.f32.mrb[74].mxu1 }
 0x1ac   : > { %v1278_v19 = vpop.f32.mrb[75].mxu0  ;;  %v1534_v20 = vpop.f32.mrb[75].mxu1  ;;  %v1684_v23 = vmul.f32 %v3067_v0, %v1276_v17  ;;  %v1748_v24 = vmul.f32 %v3067_v0, %v1532_v18  ;;  %v1818_v25 = vadd.f32 %v3078_v14, %v1683_v21  ;;  %v1882_v26 = vadd.f32 %v3078_v14, %v1747_v22 }
 0x1ae   : > { %v1819_v30 = vadd.f32 %v3078_v14, %v1684_v23  ;;  %v1883_v34 = vadd.f32 %v3078_v14, %v1748_v24  ;;  %v1946_v41 = vmax.f32 %v1818_v25, 0.0  ;;  %v2010_v42 = vmax.f32 %v1882_v26, 0.0 }
 0x1b0   : > { %v1947_v51 = vmax.f32 %v1819_v30, 0.0  ;;  %v2011_v52 = vmax.f32 %v1883_v34, 0.0 }
 0x1b1   : > { %v1281_v27 = vpop.f32.mrb[76].mxu0  ;;  %v1537_v28 = vpop.f32.mrb[76].mxu1 }
 0x1b2   : > { %v1685_v31 = vmul.f32 %v3067_v0, %v1281_v27  ;;  %v1749_v32 = vmul.f32 %v3067_v0, %v1537_v28  ;;  %v1283_v33 = vpop.f32.mrb[77].mxu0  ;;  %v1539_v29 = vpop.f32.mrb[77].mxu1 }
 0x1b3   : > { %v1284_v35 = vpop.f32.mrb[78].mxu0  ;;  %v1540_v36 = vpop.f32.mrb[78].mxu1 }
 0x1b4   : > { %v1820_v39 = vadd.f32 %v3078_v14, %v1685_v31  ;;  %v1884_v37 = vadd.f32 %v3078_v14, %v1749_v32  ;;  %v1686_v38 = vmul.f32 %v3067_v0, %v1284_v35  ;;  %v1750_v40 = vmul.f32 %v3067_v0, %v1540_v36  ;;  %v1286_v43 = vpop.f32.mrb[79].mxu0  ;;  %v1542_v44 = vpop.f32.mrb[79].mxu1 }
 0x1b6   : > { %v1948_v45 = vmax.f32 %v1820_v39, 0.0  ;;  %v2012_v46 = vmax.f32 %v1884_v37, 0.0  ;;  %v1821_v49 = vadd.f32 %v3078_v14, %v1686_v38  ;;  %v1885_v50 = vadd.f32 %v3078_v14, %v1750_v40 }
 0x1b8   : > { %v2078_v55 = vmax.f32 %v1946_v41, %v1948_v45  ;;  %v2094_v56 = vmax.f32 %v2010_v42, %v2012_v46  ;;  %v1949_v57 = vmax.f32 %v1821_v49, 0.0  ;;  %v2013_v47 = vmax.f32 %v1885_v50, 0.0 }
 0x1b9   : > { %v1289_v48 = vpop.f32.mrb[80].mxu0  ;;  %v1545_v58 = vpop.f32.mrb[80].mxu1 }
 0x1ba   : > { %v2110_v59 = vmax.f32 %v2046_v8, %v2078_v55  ;;  %v2126_v0 = vmax.f32 %v2062_v9, %v2094_v56  ;;  %v2079_v60 = vmax.f32 %v1947_v51, %v1949_v57  ;;  %v2095_v61 = vmax.f32 %v2011_v52, %v2013_v47  ;;  %v1291_v62 = vpop.f32.mrb[81].mxu0  ;;  %v1547_v63 = vpop.f32.mrb[81].mxu1  ;;  %v3305_v8 = vld [vmem:[%s3445_s2] ss:$0 sm:$0xff] }
 0x1bb   : > { %v1292_v1 = vpop.f32.mrb[82].mxu0  ;;  %v1548_v54 = vpop.f32.mrb[82].mxu1  ;;  %v1687_v9 = vmul.f32 %v3305_v8, %v1289_v48  ;;  %v1751_v6 = vmul.f32 %v3305_v8, %v1545_v58 }
 0x1bc   : > { %v2549_v14 = vpack.c.bf16 %v2110_v59, %v2110_v59  ;;  %v2565_v3 = vpack.c.bf16 %v2126_v0, %v2126_v0  ;;  %v2111_v4 = vmax.f32 %v2047_v12, %v2079_v60  ;;  %v2127_v2 = vmax.f32 %v2063_v13, %v2095_v61  ;;  %v1294_v53 = vpop.f32.mrb[83].mxu0  ;;  %v1550_v5 = vpop.f32.mrb[83].mxu1  ;;  %v3322_v13 = vld [vmem:[%s3446_s3] ss:$0 sm:$0xff] }
 0x1bd   : > { %v1688_v11 = vmul.f32 %v3305_v8, %v1292_v1  ;;  %v1752_v12 = vmul.f32 %v3305_v8, %v1548_v54  ;;  %v1822_v15 = vadd.f32 %v3322_v13, %v1687_v9  ;;  %v1886_v16 = vadd.f32 %v3322_v13, %v1751_v6 }
 0x1be   : > { %2271 = vst.msk [vmem:[%s3138_s16 + $0x20] sm:$0xf] %vm2262_vm0, %v2549_v14  ;;  %2287 = vst.msk [vmem:[%s3138_s16 + $0x60] sm:$0xf] %vm2262_vm0, %v2565_v3  ;;  %v2550_v7 = vpack.c.bf16 %v2111_v4, %v2111_v4  ;;  %v2566_v10 = vpack.c.bf16 %v2127_v2, %v2127_v2 }
 0x1bf   : > { %v1823_v23 = vadd.f32 %v3322_v13, %v1688_v11  ;;  %v1887_v24 = vadd.f32 %v3322_v13, %v1752_v12  ;;  %v1950_v30 = vmax.f32 %v1822_v15, 0.0  ;;  %v2014_v34 = vmax.f32 %v1886_v16, 0.0 }
 0x1c0   : > { %2272 = vst.msk [vmem:[%s3138_s16 + $0x24] sm:$0xf] %vm2262_vm0, %v2550_v7  ;;  %2288 = vst.msk [vmem:[%s3138_s16 + $0x64] sm:$0xf] %vm2262_vm0, %v2566_v10 }
 0x1c1   : > { %v1297_v17 = vpop.f32.mrb[84].mxu0  ;;  %v1553_v18 = vpop.f32.mrb[84].mxu1  ;;  %v1951_v38 = vmax.f32 %v1823_v23, 0.0  ;;  %v2015_v40 = vmax.f32 %v1887_v24, 0.0 }
 0x1c2   : > { %v1689_v19 = vmul.f32 %v3305_v8, %v1297_v17  ;;  %v1753_v20 = vmul.f32 %v3305_v8, %v1553_v18  ;;  %v1299_v21 = vpop.f32.mrb[85].mxu0  ;;  %v1555_v22 = vpop.f32.mrb[85].mxu1 }
 0x1c3   : > { %v1300_v25 = vpop.f32.mrb[86].mxu0  ;;  %v1556_v26 = vpop.f32.mrb[86].mxu1 }
 0x1c4   : > { %v1824_v27 = vadd.f32 %v3322_v13, %v1689_v19  ;;  %v1888_v28 = vadd.f32 %v3322_v13, %v1753_v20  ;;  %v1690_v31 = vmul.f32 %v3305_v8, %v1300_v25  ;;  %v1754_v32 = vmul.f32 %v3305_v8, %v1556_v26  ;;  %v1302_v33 = vpop.f32.mrb[87].mxu0  ;;  %v1558_v29 = vpop.f32.mrb[87].mxu1 }
 0x1c6   : > { %v1952_v35 = vmax.f32 %v1824_v27, 0.0  ;;  %v2016_v36 = vmax.f32 %v1888_v28, 0.0  ;;  %v1825_v39 = vadd.f32 %v3322_v13, %v1690_v31  ;;  %v1889_v37 = vadd.f32 %v3322_v13, %v1754_v32 }
 0x1c8   : > { %v2048_v43 = vmax.f32 %v1950_v30, %v1952_v35  ;;  %v2064_v44 = vmax.f32 %v2014_v34, %v2016_v36  ;;  %v1953_v41 = vmax.f32 %v1825_v39, 0.0  ;;  %v2017_v42 = vmax.f32 %v1889_v37, 0.0 }
 0x1c9   : > { %v1305_v45 = vpop.f32.mrb[88].mxu0  ;;  %v1561_v46 = vpop.f32.mrb[88].mxu1 }
 0x1ca   : > { %v2049_v49 = vmax.f32 %v1951_v38, %v1953_v41  ;;  %v2065_v50 = vmax.f32 %v2015_v40, %v2017_v42  ;;  %v1307_v51 = vpop.f32.mrb[89].mxu0  ;;  %v1563_v52 = vpop.f32.mrb[89].mxu1  ;;  %v1691_v48 = vmul.f32 %v3305_v8, %v1305_v45  ;;  %v1755_v58 = vmul.f32 %v3305_v8, %v1561_v46 }
 0x1cb   : > { %v1308_v55 = vpop.f32.mrb[90].mxu0  ;;  %v1564_v56 = vpop.f32.mrb[90].mxu1 }
 0x1cc   : > { %v1310_v57 = vpop.f32.mrb[91].mxu0  ;;  %v1566_v47 = vpop.f32.mrb[91].mxu1  ;;  %v1692_v59 = vmul.f32 %v3305_v8, %v1308_v55  ;;  %v1756_v0 = vmul.f32 %v3305_v8, %v1564_v56  ;;  %v1826_v60 = vadd.f32 %v3322_v13, %v1691_v48  ;;  %v1890_v61 = vadd.f32 %v3322_v13, %v1755_v58 }
 0x1ce   : > { %v1827_v4 = vadd.f32 %v3322_v13, %v1692_v59  ;;  %v1891_v2 = vadd.f32 %v3322_v13, %v1756_v0  ;;  %v1954_v15 = vmax.f32 %v1826_v60, 0.0  ;;  %v2018_v16 = vmax.f32 %v1890_v61, 0.0 }
 0x1d0   : > { %v1955_v21 = vmax.f32 %v1827_v4, 0.0  ;;  %v2019_v22 = vmax.f32 %v1891_v2, 0.0 }
 0x1d1   : > { %v1313_v62 = vpop.f32.mrb[92].mxu0  ;;  %v1569_v63 = vpop.f32.mrb[92].mxu1 }
 0x1d2   : > { %v1693_v1 = vmul.f32 %v3305_v8, %v1313_v62  ;;  %v1757_v54 = vmul.f32 %v3305_v8, %v1569_v63  ;;  %v1315_v14 = vpop.f32.mrb[93].mxu0  ;;  %v1571_v3 = vpop.f32.mrb[93].mxu1 }
 0x1d3   : > { %v1316_v53 = vpop.f32.mrb[94].mxu0  ;;  %v1572_v5 = vpop.f32.mrb[94].mxu1 }
 0x1d4   : > { %v1828_v9 = vadd.f32 %v3322_v13, %v1693_v1  ;;  %v1892_v6 = vadd.f32 %v3322_v13, %v1757_v54  ;;  %v1694_v7 = vmul.f32 %v3305_v8, %v1316_v53  ;;  %v1758_v10 = vmul.f32 %v3305_v8, %v1572_v5  ;;  %v1318_v11 = vpop.f32.mrb[95].mxu0  ;;  %v1574_v12 = vpop.f32.mrb[95].mxu1 }
 0x1d6   : > { %v1956_v17 = vmax.f32 %v1828_v9, 0.0  ;;  %v2020_v18 = vmax.f32 %v1892_v6, 0.0  ;;  %v1829_v19 = vadd.f32 %v3322_v13, %v1694_v7  ;;  %v1893_v20 = vadd.f32 %v3322_v13, %v1758_v10 }
 0x1d8   : > { %v2080_v23 = vmax.f32 %v1954_v15, %v1956_v17  ;;  %v2096_v24 = vmax.f32 %v2018_v16, %v2020_v18  ;;  %v1957_v25 = vmax.f32 %v1829_v19, 0.0  ;;  %v2021_v26 = vmax.f32 %v1893_v20, 0.0 }
 0x1d9   : > { %v1321_v27 = vpop.f32.mrb[96].mxu0  ;;  %v1577_v28 = vpop.f32.mrb[96].mxu1 }
 0x1da   : > { %v2112_v31 = vmax.f32 %v2048_v43, %v2080_v23  ;;  %v2128_v32 = vmax.f32 %v2064_v44, %v2096_v24  ;;  %v2081_v33 = vmax.f32 %v1955_v21, %v1957_v25  ;;  %v2097_v29 = vmax.f32 %v2019_v22, %v2021_v26  ;;  %v1323_v30 = vpop.f32.mrb[97].mxu0  ;;  %v1579_v34 = vpop.f32.mrb[97].mxu1 }
 0x1db   : > { %v1324_v35 = vpop.f32.mrb[98].mxu0  ;;  %v1580_v36 = vpop.f32.mrb[98].mxu1  ;;  %v1695_v45 = vmul.f32 %v3305_v8, %v1321_v27  ;;  %v1759_v43 = vmul.f32 %v3305_v8, %v1577_v28 }
 0x1dc   : > { %v2551_v39 = vpack.c.bf16 %v2112_v31, %v2112_v31  ;;  %v2567_v37 = vpack.c.bf16 %v2128_v32, %v2128_v32  ;;  %v2113_v38 = vmax.f32 %v2049_v49, %v2081_v33  ;;  %v2129_v40 = vmax.f32 %v2065_v50, %v2097_v29  ;;  %v1326_v41 = vpop.f32.mrb[99].mxu0  ;;  %v1582_v42 = vpop.f32.mrb[99].mxu1 }
 0x1dd   : > { %v1696_v51 = vmul.f32 %v3305_v8, %v1324_v35  ;;  %v1760_v52 = vmul.f32 %v3305_v8, %v1580_v36  ;;  %v1830_v49 = vadd.f32 %v3322_v13, %v1695_v45  ;;  %v1894_v50 = vadd.f32 %v3322_v13, %v1759_v43 }
 0x1de   : > { %2273 = vst.msk [vmem:[%s3138_s16 + $0x28] sm:$0xf] %vm2262_vm0, %v2551_v39  ;;  %2289 = vst.msk [vmem:[%s3138_s16 + $0x68] sm:$0xf] %vm2262_vm0, %v2567_v37  ;;  %v2552_v44 = vpack.c.bf16 %v2113_v38, %v2113_v38  ;;  %v2568_v46 = vpack.c.bf16 %v2129_v40, %v2129_v40 }
 0x1df   : > { %v1831_v59 = vadd.f32 %v3322_v13, %v1696_v51  ;;  %v1895_v0 = vadd.f32 %v3322_v13, %v1760_v52  ;;  %v1958_v4 = vmax.f32 %v1830_v49, 0.0  ;;  %v2022_v2 = vmax.f32 %v1894_v50, 0.0 }
 0x1e0   : > { %2274 = vst.msk [vmem:[%s3138_s16 + $0x2c] sm:$0xf] %vm2262_vm0, %v2552_v44  ;;  %2290 = vst.msk [vmem:[%s3138_s16 + $0x6c] sm:$0xf] %vm2262_vm0, %v2568_v46 }
 0x1e1   : > { %v1329_v55 = vpop.f32.mrb[100].mxu0  ;;  %v1585_v56 = vpop.f32.mrb[100].mxu1  ;;  %v1959_v7 = vmax.f32 %v1831_v59, 0.0  ;;  %v2023_v10 = vmax.f32 %v1895_v0, 0.0 }
 0x1e2   : > { %v1697_v57 = vmul.f32 %v3305_v8, %v1329_v55  ;;  %v1761_v47 = vmul.f32 %v3305_v8, %v1585_v56  ;;  %v1331_v48 = vpop.f32.mrb[101].mxu0  ;;  %v1587_v58 = vpop.f32.mrb[101].mxu1 }
 0x1e3   : > { %v1332_v60 = vpop.f32.mrb[102].mxu0  ;;  %v1588_v61 = vpop.f32.mrb[102].mxu1 }
 0x1e4   : > { %v1832_v62 = vadd.f32 %v3322_v13, %v1697_v57  ;;  %v1896_v63 = vadd.f32 %v3322_v13, %v1761_v47  ;;  %v1698_v1 = vmul.f32 %v3305_v8, %v1332_v60  ;;  %v1762_v54 = vmul.f32 %v3305_v8, %v1588_v61  ;;  %v1334_v14 = vpop.f32.mrb[103].mxu0  ;;  %v1590_v3 = vpop.f32.mrb[103].mxu1 }
 0x1e6   : > { %v1960_v53 = vmax.f32 %v1832_v62, 0.0  ;;  %v2024_v5 = vmax.f32 %v1896_v63, 0.0  ;;  %v1833_v9 = vadd.f32 %v3322_v13, %v1698_v1  ;;  %v1897_v6 = vadd.f32 %v3322_v13, %v1762_v54 }
 0x1e8   : > { %v2050_v11 = vmax.f32 %v1958_v4, %v1960_v53  ;;  %v2066_v12 = vmax.f32 %v2022_v2, %v2024_v5  ;;  %v1961_v15 = vmax.f32 %v1833_v9, 0.0  ;;  %v2025_v16 = vmax.f32 %v1897_v6, 0.0 }
 0x1e9   : > { %v1337_v17 = vpop.f32.mrb[104].mxu0  ;;  %v1593_v18 = vpop.f32.mrb[104].mxu1 }
 0x1ea   : > { %v2051_v19 = vmax.f32 %v1959_v7, %v1961_v15  ;;  %v2067_v20 = vmax.f32 %v2023_v10, %v2025_v16  ;;  %v1339_v21 = vpop.f32.mrb[105].mxu0  ;;  %v1595_v22 = vpop.f32.mrb[105].mxu1  ;;  %v1699_v27 = vmul.f32 %v3305_v8, %v1337_v17  ;;  %v1763_v28 = vmul.f32 %v3305_v8, %v1593_v18 }
 0x1eb   : > { %v1340_v23 = vpop.f32.mrb[106].mxu0  ;;  %v1596_v24 = vpop.f32.mrb[106].mxu1 }
 0x1ec   : > { %v1342_v25 = vpop.f32.mrb[107].mxu0  ;;  %v1598_v26 = vpop.f32.mrb[107].mxu1  ;;  %v1700_v31 = vmul.f32 %v3305_v8, %v1340_v23  ;;  %v1764_v32 = vmul.f32 %v3305_v8, %v1596_v24  ;;  %v1834_v33 = vadd.f32 %v3322_v13, %v1699_v27  ;;  %v1898_v29 = vadd.f32 %v3322_v13, %v1763_v28 }
 0x1ee   : > { %v1835_v38 = vadd.f32 %v3322_v13, %v1700_v31  ;;  %v1899_v40 = vadd.f32 %v3322_v13, %v1764_v32  ;;  %v1962_v49 = vmax.f32 %v1834_v33, 0.0  ;;  %v2026_v50 = vmax.f32 %v1898_v29, 0.0 }
 0x1f0   : > { %v1963_v48 = vmax.f32 %v1835_v38, 0.0  ;;  %v2027_v58 = vmax.f32 %v1899_v40, 0.0 }
 0x1f1   : > { %v1345_v30 = vpop.f32.mrb[108].mxu0  ;;  %v1601_v34 = vpop.f32.mrb[108].mxu1 }
 0x1f2   : > { %v1701_v35 = vmul.f32 %v3305_v8, %v1345_v30  ;;  %v1765_v36 = vmul.f32 %v3305_v8, %v1601_v34  ;;  %v1347_v39 = vpop.f32.mrb[109].mxu0  ;;  %v1603_v37 = vpop.f32.mrb[109].mxu1 }
 0x1f3   : > { %v1348_v41 = vpop.f32.mrb[110].mxu0  ;;  %v1604_v42 = vpop.f32.mrb[110].mxu1 }
 0x1f4   : > { %v1836_v45 = vadd.f32 %v3322_v13, %v1701_v35  ;;  %v1900_v43 = vadd.f32 %v3322_v13, %v1765_v36  ;;  %v1702_v44 = vmul.f32 %v3305_v8, %v1348_v41  ;;  %v1766_v46 = vmul.f32 %v3305_v8, %v1604_v42  ;;  %v1350_v51 = vpop.f32.mrb[111].mxu0  ;;  %v1606_v52 = vpop.f32.mrb[111].mxu1 }
 0x1f6   : > { %v1964_v55 = vmax.f32 %v1836_v45, 0.0  ;;  %v2028_v56 = vmax.f32 %v1900_v43, 0.0  ;;  %v1837_v57 = vadd.f32 %v3322_v13, %v1702_v44  ;;  %v1901_v47 = vadd.f32 %v3322_v13, %v1766_v46 }
 0x1f8   : > { %v2082_v59 = vmax.f32 %v1962_v49, %v1964_v55  ;;  %v2098_v0 = vmax.f32 %v2026_v50, %v2028_v56  ;;  %v1965_v60 = vmax.f32 %v1837_v57, 0.0  ;;  %v2029_v61 = vmax.f32 %v1901_v47, 0.0 }
 0x1f9   : > { %v1353_v62 = vpop.f32.mrb[112].mxu0  ;;  %v1609_v63 = vpop.f32.mrb[112].mxu1 }
 0x1fa   : > { %v2114_v1 = vmax.f32 %v2050_v11, %v2082_v59  ;;  %v2130_v54 = vmax.f32 %v2066_v12, %v2098_v0  ;;  %v2083_v14 = vmax.f32 %v1963_v48, %v1965_v60  ;;  %v2099_v3 = vmax.f32 %v2027_v58, %v2029_v61  ;;  %v1355_v4 = vpop.f32.mrb[113].mxu0  ;;  %v1611_v2 = vpop.f32.mrb[113].mxu1 }
 0x1fb   : > { %v1356_v53 = vpop.f32.mrb[114].mxu0  ;;  %v1612_v5 = vpop.f32.mrb[114].mxu1  ;;  %v1703_v17 = vmul.f32 %v3305_v8, %v1353_v62  ;;  %v1767_v11 = vmul.f32 %v3305_v8, %v1609_v63 }
 0x1fc   : > { %v2553_v9 = vpack.c.bf16 %v2114_v1, %v2114_v1  ;;  %v2569_v6 = vpack.c.bf16 %v2130_v54, %v2130_v54  ;;  %v2115_v7 = vmax.f32 %v2051_v19, %v2083_v14  ;;  %v2131_v10 = vmax.f32 %v2067_v20, %v2099_v3  ;;  %v1358_v15 = vpop.f32.mrb[115].mxu0  ;;  %v1614_v16 = vpop.f32.mrb[115].mxu1 }
 0x1fd   : > { %v1704_v21 = vmul.f32 %v3305_v8, %v1356_v53  ;;  %v1768_v22 = vmul.f32 %v3305_v8, %v1612_v5  ;;  %v1838_v19 = vadd.f32 %v3322_v13, %v1703_v17  ;;  %v1902_v20 = vadd.f32 %v3322_v13, %v1767_v11 }
 0x1fe   : > { %2275 = vst.msk [vmem:[%s3138_s16 + $0x30] sm:$0xf] %vm2262_vm0, %v2553_v9  ;;  %2291 = vst.msk [vmem:[%s3138_s16 + $0x70] sm:$0xf] %vm2262_vm0, %v2569_v6  ;;  %v2554_v12 = vpack.c.bf16 %v2115_v7, %v2115_v7  ;;  %v2570_v18 = vpack.c.bf16 %v2131_v10, %v2131_v10 }
 0x1ff   : > { %v1839_v31 = vadd.f32 %v3322_v13, %v1704_v21  ;;  %v1903_v32 = vadd.f32 %v3322_v13, %v1768_v22  ;;  %v1966_v38 = vmax.f32 %v1838_v19, 0.0  ;;  %v2030_v40 = vmax.f32 %v1902_v20, 0.0 }
 0x200   : > { %2276 = vst.msk [vmem:[%s3138_s16 + $0x34] sm:$0xf] %vm2262_vm0, %v2554_v12  ;;  %2292 = vst.msk [vmem:[%s3138_s16 + $0x74] sm:$0xf] %vm2262_vm0, %v2570_v18 }
 0x201   : > { %v1361_v23 = vpop.f32.mrb[116].mxu0  ;;  %v1617_v24 = vpop.f32.mrb[116].mxu1  ;;  %v1967_v44 = vmax.f32 %v1839_v31, 0.0  ;;  %v2031_v46 = vmax.f32 %v1903_v32, 0.0 }
 0x202   : > { %v1705_v25 = vmul.f32 %v3305_v8, %v1361_v23  ;;  %v1769_v26 = vmul.f32 %v3305_v8, %v1617_v24  ;;  %v1363_v27 = vpop.f32.mrb[117].mxu0  ;;  %v1619_v28 = vpop.f32.mrb[117].mxu1 }
 0x203   : > { %v1364_v33 = vpop.f32.mrb[118].mxu0  ;;  %v1620_v29 = vpop.f32.mrb[118].mxu1 }
 0x204   : > { %v1840_v30 = vadd.f32 %v3322_v13, %v1705_v25  ;;  %v1904_v34 = vadd.f32 %v3322_v13, %v1769_v26  ;;  %v1706_v35 = vmul.f32 %v3305_v8, %v1364_v33  ;;  %v1770_v36 = vmul.f32 %v3305_v8, %v1620_v29  ;;  %v1366_v39 = vpop.f32.mrb[119].mxu0  ;;  %v1622_v37 = vpop.f32.mrb[119].mxu1 }
 0x206   : > { %v1968_v41 = vmax.f32 %v1840_v30, 0.0  ;;  %v2032_v42 = vmax.f32 %v1904_v34, 0.0  ;;  %v1841_v45 = vadd.f32 %v3322_v13, %v1706_v35  ;;  %v1905_v43 = vadd.f32 %v3322_v13, %v1770_v36 }
 0x208   : > { %v2052_v51 = vmax.f32 %v1966_v38, %v1968_v41  ;;  %v2068_v52 = vmax.f32 %v2030_v40, %v2032_v42  ;;  %v1969_v49 = vmax.f32 %v1841_v45, 0.0  ;;  %v2033_v50 = vmax.f32 %v1905_v43, 0.0 }
 0x209   : > { %v1369_v55 = vpop.f32.mrb[120].mxu0  ;;  %v1625_v56 = vpop.f32.mrb[120].mxu1 }
 0x20a   : > { %v2053_v57 = vmax.f32 %v1967_v44, %v1969_v49  ;;  %v2069_v47 = vmax.f32 %v2031_v46, %v2033_v50  ;;  %v1371_v48 = vpop.f32.mrb[121].mxu0  ;;  %v1627_v58 = vpop.f32.mrb[121].mxu1  ;;  %v1707_v62 = vmul.f32 %v3305_v8, %v1369_v55  ;;  %v1771_v63 = vmul.f32 %v3305_v8, %v1625_v56 }
 0x20b   : > { %v1372_v59 = vpop.f32.mrb[122].mxu0  ;;  %v1628_v0 = vpop.f32.mrb[122].mxu1 }
 0x20c   : > { %v1374_v60 = vpop.f32.mrb[123].mxu0  ;;  %v1630_v61 = vpop.f32.mrb[123].mxu1  ;;  %v1708_v1 = vmul.f32 %v3305_v8, %v1372_v59  ;;  %v1772_v54 = vmul.f32 %v3305_v8, %v1628_v0  ;;  %v1842_v14 = vadd.f32 %v3322_v13, %v1707_v62  ;;  %v1906_v3 = vadd.f32 %v3322_v13, %v1771_v63 }
 0x20e   : > { %v1843_v7 = vadd.f32 %v3322_v13, %v1708_v1  ;;  %v1907_v10 = vadd.f32 %v3322_v13, %v1772_v54  ;;  %v1970_v19 = vmax.f32 %v1842_v14, 0.0  ;;  %v2034_v20 = vmax.f32 %v1906_v3, 0.0 }
 0x210   : > { %v1971_v27 = vmax.f32 %v1843_v7, 0.0  ;;  %v2035_v28 = vmax.f32 %v1907_v10, 0.0 }
 0x211   : > { %v1377_v4 = vpop.f32.mrb[124].mxu0  ;;  %v1633_v2 = vpop.f32.mrb[124].mxu1 }
 0x212   : > { %v1709_v53 = vmul.f32 %v3305_v8, %v1377_v4  ;;  %v1773_v5 = vmul.f32 %v3305_v8, %v1633_v2  ;;  %v1379_v9 = vpop.f32.mrb[125].mxu0  ;;  %v1635_v6 = vpop.f32.mrb[125].mxu1 }
 0x213   : > { %v1380_v15 = vpop.f32.mrb[126].mxu0  ;;  %v1636_v16 = vpop.f32.mrb[126].mxu1 }
 0x214   : > { %v1844_v17 = vadd.f32 %v3322_v13, %v1709_v53  ;;  %v1908_v11 = vadd.f32 %v3322_v13, %v1773_v5  ;;  %v1710_v12 = vmul.f32 %v3305_v8, %v1380_v15  ;;  %v1774_v18 = vmul.f32 %v3305_v8, %v1636_v16  ;;  %v1382_v21 = vpop.f32.mrb[127].mxu0  ;;  %v1638_v22 = vpop.f32.mrb[127].mxu1 }
 0x216   : > { %v1972_v23 = vmax.f32 %v1844_v17, 0.0  ;;  %v2036_v24 = vmax.f32 %v1908_v11, 0.0  ;;  %v1845_v25 = vadd.f32 %v3322_v13, %v1710_v12  ;;  %v1909_v26 = vadd.f32 %v3322_v13, %v1774_v18 }
 0x218   : > { %v2084_v31 = vmax.f32 %v1970_v19, %v1972_v23  ;;  %v2100_v32 = vmax.f32 %v2034_v20, %v2036_v24  ;;  %v1973_v33 = vmax.f32 %v1845_v25, 0.0  ;;  %v2037_v8 = vmax.f32 %v1909_v26, 0.0 }
 0x21a   : > { %v2116_v29 = vmax.f32 %v2052_v51, %v2084_v31  ;;  %v2132_v30 = vmax.f32 %v2068_v52, %v2100_v32  ;;  %v2085_v34 = vmax.f32 %v1971_v27, %v1973_v33  ;;  %v2101_v35 = vmax.f32 %v2035_v28, %v2037_v8 }
 0x21c   : > { %v2555_v36 = vpack.c.bf16 %v2116_v29, %v2116_v29  ;;  %v2571_v39 = vpack.c.bf16 %v2132_v30, %v2132_v30  ;;  %v2117_v37 = vmax.f32 %v2053_v57, %v2085_v34  ;;  %v2133_v38 = vmax.f32 %v2069_v47, %v2101_v35 }
 0x21e   : > { %2277 = vst.msk [vmem:[%s3138_s16 + $0x38] sm:$0xf] %vm2262_vm0, %v2555_v36  ;;  %2293 = vst.msk [vmem:[%s3138_s16 + $0x78] sm:$0xf] %vm2262_vm0, %v2571_v39  ;;  %v2556_v13 = vpack.c.bf16 %v2117_v37, %v2117_v37  ;;  %v2572_v40 = vpack.c.bf16 %v2133_v38, %v2133_v38 }
 0x220   : > { %2278 = vst.msk [vmem:[%s3138_s16 + $0x3c] sm:$0xf] %vm2262_vm0, %v2556_v13  ;;  %2294 = vst.msk [vmem:[%s3138_s16 + $0x7c] sm:$0xf] %vm2262_vm0, %v2572_v40 }
 0x221 PF: > { %s14_s15 = sadd.s32 1, %s2830_s15  }
 0x222   : > { %p11_p4 = scmp.ge.s32.totalorder %s14_s15, 4  }
 0x224   :  { %13 = sbr.rel (!%p11_p4) target bundleno = 1 (0x1), region = 66 }

// kernel: forward.6
= control target key start
LH: loop header
LB: loop body
LE: loop exit
PB: predicated region body
PF: predicated region fallthrough
CT: control target
= control target key end

     0   :  { %s1871_s15 = smov 0   ;;  %s2150_s0 = inlined_call_operand.vmem [shape: bf16[2,8,4,8,512], index: 0, kind: input, shape index: {}]   ;;  %s2151_s1 = inlined_call_operand.vmem [shape: bf16[512,96], index: 1, kind: input, shape index: {}]   ;;  %s2152_s2 = inlined_call_operand.vmem [shape: f32[1,96], index: 2, kind: input, shape index: {}]   ;;  %s2153_s3 = inlined_call_operand.vmem [shape: f32[1,96], index: 3, kind: input, shape index: {}]   ;;  %s2154_s4 = inlined_call_operand.vmem [shape: bf16[2,8,8,96], index: 4, kind: output, shape index: {}]  }
   0x1 LB: > { %s1367_s16 = sadd.s32 4294967295, %s1844_s15   ;;  %p1371_p0 = scmp.ge.s32.totalorder %s1844_s15, 1  ;;  %s1844_s15 = sphi %s1871_s15, %s14_s15  }
   0x2   : > { %p162_p1 = scmp.lt.s32.totalorder %s1844_s15, 3 }
   0x4   : > { %p163_p2 = pnand %p1371_p0, %p162_p1 }
   0x5   : > { %v1710_v0 = vld [vmem:[%s2151_s1 + $0x40] sm:$0xff] (!%p163_p2)   ;;  %v1714_v4 = vld [vmem:[%s2151_s1 + $0x48] sm:$0xff] (!%p163_p2)   ;;  %v1718_v8 = vld [vmem:[%s2151_s1 + $0x50] sm:$0xff] (!%p163_p2)   ;;  %p188_p3 = scmp.lt.s32.totalorder (!%p163_p2), %s1367_s16, 1  ;;  %vm1303_vm0 = vcmask (!%p163_p2), 781312  }
   0x6   : > { %166 = sbr.rel (%p163_p2) target bundleno = 392 (0x188), region = 36  ;;  %v1711_v1 = vld [vmem:[%s2151_s1 + $0xc0] sm:$0xff] (!%p163_p2)   ;;  %1478 = vmatprep.subr.bf16.mxu0 (!%p163_p2), %v1710_v0  ;;  %v1715_v5 = vld [vmem:[%s2151_s1 + $0xc8] sm:$0xff] (!%p163_p2)   ;;  %v1719_v9 = vld [vmem:[%s2151_s1 + $0xd0] sm:$0xff] (!%p163_p2)  }
   0x7   : > { %v1712_v2 = vld [vmem:[%s2151_s1] sm:$0xff] (!%p163_p2)   ;;  %1590 = vmatprep.subr.bf16.mxu1 (!%p163_p2), %v1711_v1  ;;  %v1716_v6 = vld [vmem:[%s2151_s1 + $0x8] sm:$0xff] (!%p163_p2)   ;;  %v1720_v10 = vld [vmem:[%s2151_s1 + $0x10] sm:$0xff] (!%p163_p2)  }
   0x8   : > { %v1713_v3 = vld [vmem:[%s2151_s1 + $0x80] sm:$0xff] (!%p163_p2)   ;;  %1479 = vmatpush3.bf16.msra.mxu0 (!%p163_p2), %v1712_v2  ;;  %v1717_v7 = vld [vmem:[%s2151_s1 + $0x88] sm:$0xff] (!%p163_p2)   ;;  %v1721_v11 = vld [vmem:[%s2151_s1 + $0x90] sm:$0xff] (!%p163_p2)  }
   0x9   : > { %1591 = vmatpush3.bf16.msra.mxu1 (!%p163_p2), %v1713_v3  ;;  %1480 = vmatprep.subr.bf16.mxu0 (!%p163_p2), %v1714_v4  ;;  %v1722_v12 = vld [vmem:[%s2151_s1 + $0x58] sm:$0xff] (!%p163_p2)   ;;  %v1726_v16 = vld [vmem:[%s2151_s1 + $0x60] sm:$0xff] (!%p163_p2)   ;;  %v1730_v20 = vld [vmem:[%s2151_s1 + $0x68] sm:$0xff] (!%p163_p2)  }
   0xa   : > { %1592 = vmatprep.subr.bf16.mxu1 (!%p163_p2), %v1715_v5  ;;  %v1723_v13 = vld [vmem:[%s2151_s1 + $0xd8] sm:$0xff] (!%p163_p2)   ;;  %v1727_v17 = vld [vmem:[%s2151_s1 + $0xe0] sm:$0xff] (!%p163_p2)   ;;  %v1731_v21 = vld [vmem:[%s2151_s1 + $0xe8] sm:$0xff] (!%p163_p2)  }
   0xb   : > { %v1724_v14 = vld [vmem:[%s2151_s1 + $0x18] sm:$0xff] (!%p163_p2)   ;;  %v1728_v18 = vld [vmem:[%s2151_s1 + $0x20] sm:$0xff] (!%p163_p2)   ;;  %v1732_v22 = vld [vmem:[%s2151_s1 + $0x28] sm:$0xff] (!%p163_p2)  }
   0xc   : > { %1481 = vmatpush3.bf16.msra.mxu0 (!%p163_p2), %v1716_v6  ;;  %v1725_v15 = vld [vmem:[%s2151_s1 + $0x98] sm:$0xff] (!%p163_p2)   ;;  %v1729_v19 = vld [vmem:[%s2151_s1 + $0xa0] sm:$0xff] (!%p163_p2)   ;;  %v1733_v23 = vld [vmem:[%s2151_s1 + $0xa8] sm:$0xff] (!%p163_p2)  }
   0xd   : > { %1593 = vmatpush3.bf16.msra.mxu1 %v1717_v7  ;;  %1482 = vmatprep.subr.bf16.mxu0 %v1718_v8  ;;  %s2156_s16 = smov (!%p188_p3, %s1367_s16), 1  ;;  %v1734_v24 = vld [vmem:[%s2151_s1 + $0x70] sm:$0xff]   ;;  %v1738_v28 = vld [vmem:[%s2151_s1 + $0x78] sm:$0xff]  }
   0xe   : > { %1594 = vmatprep.subr.bf16.mxu1 %v1719_v9  ;;  %v1735_v25 = vld [vmem:[%s2151_s1 + $0xf0] sm:$0xff]   ;;  %s1476_s23 = sshll.u32 %s2156_s16, 9  ;;  %v1739_v29 = vld [vmem:[%s2151_s1 + $0xf8] sm:$0xff]   ;;  %s1477_s17 = sshll.u32 %s2156_s16, 5 }
   0xf   : > { %v1736_v26 = vld [vmem:[%s2151_s1 + $0x30] sm:$0xff]   ;;  %s1979_s6 = scalar_lea.vmem %s2150_s0, %s1476_s23  ;;  %v1740_v30 = vld [vmem:[%s2151_s1 + $0x38] sm:$0xff]   ;;  %s2076_s20 = scalar_lea.vmem %s2154_s4, %s1477_s17 }
  0x10   : > { %1483 = vmatpush3.bf16.msra.mxu0 %v1720_v10  ;;  %v1737_v27 = vld [vmem:[%s2151_s1 + $0xb0] sm:$0xff]   ;;  %v1741_v31 = vld [vmem:[%s2151_s1 + $0xb8] sm:$0xff]  }
  0x11   : > { %1595 = vmatpush3.bf16.msra.mxu1 %v1721_v11  ;;  %1484 = vmatprep.subr.bf16.mxu0 %v1722_v12  ;;  %v1742_v32 = vld [vmem:[%s1979_s6] ss:$16 sps:$4 sm:$0xff]   ;;  %v1744_v33 = vld [vmem:[%s1979_s6 + $0x4] ss:$16 sps:$4 sm:$0xff]   ;;  %v1745_v34 = vld [vmem:[%s1979_s6 + $0x8] ss:$16 sps:$4 sm:$0xff]  }
  0x12   : > { %1596 = vmatprep.subr.bf16.mxu1 %v1723_v13  ;;  %v1747_v35 = vld [vmem:[%s1979_s6 + $0xc] ss:$16 sps:$4 sm:$0xff]   ;;  %871 = vmatprep.mubr.bf16.mxu0 %v1744_v33  ;;  %v1748_v36 = vld [vmem:[%s1979_s6 + $0x24] ss:$16 sps:$4 sm:$0xff]   ;;  %v1752_v38 = vld [vmem:[%s1979_s6 + $0x20] ss:$16 sps:$4 sm:$0xff]  }
  0x13   : > { %1032 = vmatprep.mubr.bf16.mxu1 %v1747_v35  ;;  %v1750_v37 = vld [vmem:[%s1979_s6 + $0x2c] ss:$16 sps:$4 sm:$0xff]   ;;  %v1753_v39 = vld [vmem:[%s1979_s6 + $0x28] ss:$16 sps:$4 sm:$0xff]   ;;  %v1754_v40 = vld [vmem:[%s1979_s6 + $0x44] ss:$16 sps:$4 sm:$0xff]  }
  0x14   : > { %1485 = vmatpush3.bf16.msra.mxu0 %v1724_v14  ;;  %v1756_v41 = vld [vmem:[%s1979_s6 + $0x4c] ss:$16 sps:$4 sm:$0xff]   ;;  %v1758_v42 = vld [vmem:[%s1979_s6 + $0x40] ss:$16 sps:$4 sm:$0xff]   ;;  %v1759_v43 = vld [vmem:[%s1979_s6 + $0x48] ss:$16 sps:$4 sm:$0xff]  }
  0x15   : > { %1597 = vmatpush3.bf16.msra.mxu1 %v1725_v15  ;;  %1486 = vmatprep.subr.bf16.mxu0 %v1726_v16  ;;  %v1760_v44 = vld [vmem:[%s1979_s6 + $0x64] ss:$16 sps:$4 sm:$0xff]   ;;  %v1762_v45 = vld [vmem:[%s1979_s6 + $0x6c] ss:$16 sps:$4 sm:$0xff]   ;;  %v1764_v46 = vld [vmem:[%s1979_s6 + $0x60] ss:$16 sps:$4 sm:$0xff]  }
  0x16   : > { %1598 = vmatprep.subr.bf16.mxu1 %v1727_v17  ;;  %v1765_v47 = vld [vmem:[%s1979_s6 + $0x68] ss:$16 sps:$4 sm:$0xff]   ;;  %v1766_v48 = vld [vmem:[%s1979_s6 + $0x84] ss:$16 sps:$4 sm:$0xff]   ;;  %v1768_v49 = vld [vmem:[%s1979_s6 + $0x8c] ss:$16 sps:$4 sm:$0xff]  }
  0x17   : > { %v1770_v50 = vld [vmem:[%s1979_s6 + $0x80] ss:$16 sps:$4 sm:$0xff]   ;;  %v1771_v51 = vld [vmem:[%s1979_s6 + $0x88] ss:$16 sps:$4 sm:$0xff]   ;;  %v1772_v52 = vld [vmem:[%s1979_s6 + $0xa4] ss:$16 sps:$4 sm:$0xff]  }
  0x18   : > { %1487 = vmatpush3.bf16.msra.mxu0 %v1728_v18  ;;  %v1774_v53 = vld [vmem:[%s1979_s6 + $0xac] ss:$16 sps:$4 sm:$0xff]   ;;  %v1776_v54 = vld [vmem:[%s1979_s6 + $0xa0] ss:$16 sps:$4 sm:$0xff]   ;;  %v1777_v55 = vld [vmem:[%s1979_s6 + $0xa8] ss:$16 sps:$4 sm:$0xff]  }
  0x19   : > { %1599 = vmatpush3.bf16.msra.mxu1 %v1729_v19  ;;  %1488 = vmatprep.subr.bf16.mxu0 %v1730_v20  ;;  %v1778_v56 = vld [vmem:[%s1979_s6 + $0xc4] ss:$16 sps:$4 sm:$0xff]   ;;  %v1780_v57 = vld [vmem:[%s1979_s6 + $0xcc] ss:$16 sps:$4 sm:$0xff]   ;;  %v1782_v58 = vld [vmem:[%s1979_s6 + $0xc0] ss:$16 sps:$4 sm:$0xff]  }
  0x1a   : > { %1600 = vmatprep.subr.bf16.mxu1 %v1731_v21  ;;  %v1783_v59 = vld [vmem:[%s1979_s6 + $0xc8] ss:$16 sps:$4 sm:$0xff]   ;;  %v1784_v60 = vld [vmem:[%s1979_s6 + $0xe4] ss:$16 sps:$4 sm:$0xff]   ;;  %v1786_v61 = vld [vmem:[%s1979_s6 + $0xec] ss:$16 sps:$4 sm:$0xff]  }
  0x1b   : > { %v1788_v62 = vld [vmem:[%s1979_s6 + $0xe0] ss:$16 sps:$4 sm:$0xff]   ;;  %v1789_v63 = vld [vmem:[%s1979_s6 + $0xe8] ss:$16 sps:$4 sm:$0xff]   ;;  %v1790_v0 = vld [vmem:[%s1979_s6 + $0x104] ss:$16 sps:$4 sm:$0xff]  }
  0x1c   : > { %1489 = vmatpush3.bf16.msra.mxu0 %v1732_v22  ;;  %v1792_v1 = vld [vmem:[%s1979_s6 + $0x10c] ss:$16 sps:$4 sm:$0xff]   ;;  %v1794_v2 = vld [vmem:[%s1979_s6 + $0x100] ss:$16 sps:$4 sm:$0xff]   ;;  %v1795_v3 = vld [vmem:[%s1979_s6 + $0x108] ss:$16 sps:$4 sm:$0xff]  }
  0x1d   : > { %1601 = vmatpush3.bf16.msra.mxu1 %v1733_v23  ;;  %1490 = vmatprep.subr.bf16.mxu0 %v1734_v24  ;;  %v1796_v4 = vld [vmem:[%s1979_s6 + $0x124] ss:$16 sps:$4 sm:$0xff]   ;;  %v1798_v5 = vld [vmem:[%s1979_s6 + $0x12c] ss:$16 sps:$4 sm:$0xff]   ;;  %v1800_v6 = vld [vmem:[%s1979_s6 + $0x120] ss:$16 sps:$4 sm:$0xff]  }
  0x1e   : > { %1602 = vmatprep.subr.bf16.mxu1 %v1735_v25  ;;  %v1801_v7 = vld [vmem:[%s1979_s6 + $0x128] ss:$16 sps:$4 sm:$0xff]   ;;  %v1802_v8 = vld [vmem:[%s1979_s6 + $0x144] ss:$16 sps:$4 sm:$0xff]   ;;  %v1804_v9 = vld [vmem:[%s1979_s6 + $0x14c] ss:$16 sps:$4 sm:$0xff]  }
  0x1f   : > { %v1806_v10 = vld [vmem:[%s1979_s6 + $0x140] ss:$16 sps:$4 sm:$0xff]   ;;  %v1807_v11 = vld [vmem:[%s1979_s6 + $0x148] ss:$16 sps:$4 sm:$0xff]   ;;  %v1808_v12 = vld [vmem:[%s1979_s6 + $0x164] ss:$16 sps:$4 sm:$0xff]  }
  0x20   : > { %1491 = vmatpush3.bf16.msra.mxu0 %v1736_v26  ;;  %v1810_v13 = vld [vmem:[%s1979_s6 + $0x16c] ss:$16 sps:$4 sm:$0xff]   ;;  %v1812_v14 = vld [vmem:[%s1979_s6 + $0x160] ss:$16 sps:$4 sm:$0xff]   ;;  %v1813_v15 = vld [vmem:[%s1979_s6 + $0x168] ss:$16 sps:$4 sm:$0xff]  }
  0x21   : > { %1603 = vmatpush3.bf16.msra.mxu1 %v1737_v27  ;;  %1492 = vmatprep.subr.bf16.mxu0 %v1738_v28  ;;  %v1814_v16 = vld [vmem:[%s1979_s6 + $0x184] ss:$16 sps:$4 sm:$0xff]   ;;  %v1816_v17 = vld [vmem:[%s1979_s6 + $0x18c] ss:$16 sps:$4 sm:$0xff]   ;;  %v1818_v18 = vld [vmem:[%s1979_s6 + $0x180] ss:$16 sps:$4 sm:$0xff]  }
  0x22   : > { %1604 = vmatprep.subr.bf16.mxu1 %v1739_v29  ;;  %v1819_v19 = vld [vmem:[%s1979_s6 + $0x188] ss:$16 sps:$4 sm:$0xff]   ;;  %v1820_v20 = vld [vmem:[%s1979_s6 + $0x1a4] ss:$16 sps:$4 sm:$0xff]   ;;  %v1822_v21 = vld [vmem:[%s1979_s6 + $0x1ac] ss:$16 sps:$4 sm:$0xff]  }
  0x23   : > { %v1824_v22 = vld [vmem:[%s1979_s6 + $0x1a0] ss:$16 sps:$4 sm:$0xff]   ;;  %v1825_v23 = vld [vmem:[%s1979_s6 + $0x1a8] ss:$16 sps:$4 sm:$0xff]   ;;  %v1826_v24 = vld [vmem:[%s1979_s6 + $0x1c4] ss:$16 sps:$4 sm:$0xff]  }
  0x24   : > { %1493 = vmatpush3.bf16.msra.mxu0 %v1740_v30  ;;  %v1828_v25 = vld [vmem:[%s1979_s6 + $0x1cc] ss:$16 sps:$4 sm:$0xff]   ;;  %v1830_v26 = vld [vmem:[%s1979_s6 + $0x1c0] ss:$16 sps:$4 sm:$0xff]   ;;  %v1831_v27 = vld [vmem:[%s1979_s6 + $0x1c8] ss:$16 sps:$4 sm:$0xff]  }
  0x25   : > { %1605 = vmatpush3.bf16.msra.mxu1 %v1741_v31  ;;  %v1832_v28 = vld [vmem:[%s1979_s6 + $0x1e4] ss:$16 sps:$4 sm:$0xff]   ;;  %v1834_v29 = vld [vmem:[%s1979_s6 + $0x1ec] ss:$16 sps:$4 sm:$0xff]   ;;  %v1836_v30 = vld [vmem:[%s1979_s6 + $0x1e0] ss:$16 sps:$4 sm:$0xff]  }
  0x26   : > { %v1837_v31 = vld [vmem:[%s1979_s6 + $0x1e8] ss:$16 sps:$4 sm:$0xff]  }
  0x27   : > { %872 = vmatmul.mubr.bf16.vlgmr.msra.gmra.mrb[0].mxu0 %v1742_v32 }
  0x28   : > { %1033 = vmatmul.mubr.bf16.vlgmr.msra.gmra.mrb[0].mxu1 %v1745_v34  ;;  %879 = vmatprep.mubr.bf16.mxu0 %v1748_v36 }
  0x29   : > { %1040 = vmatprep.mubr.bf16.mxu1 %v1750_v37 }
  0x2f   : > { %880 = vmatmul.mubr.bf16.gmra.mrb[4].mxu0 %v1752_v38 }
  0x30   : > { %1041 = vmatmul.mubr.bf16.gmra.mrb[4].mxu1 %v1753_v39  ;;  %887 = vmatprep.mubr.bf16.mxu0 %v1754_v40 }
  0x31   : > { %1048 = vmatprep.mubr.bf16.mxu1 %v1756_v41  ;;  %v2054_v41 = vld [vmem:[%s2152_s2] ss:$0 sm:$0xff] }
  0x37   : > { %888 = vmatmul.mubr.bf16.gmra.mrb[8].mxu0 %v1758_v42 }
  0x38   : > { %1049 = vmatmul.mubr.bf16.gmra.mrb[8].mxu1 %v1759_v43  ;;  %895 = vmatprep.mubr.bf16.mxu0 %v1760_v44 }
  0x39   : > { %1056 = vmatprep.mubr.bf16.mxu1 %v1762_v45 }
  0x3f   : > { %896 = vmatmul.mubr.bf16.gmra.mrb[12].mxu0 %v1764_v46  ;;  %v2059_v46 = vld [vmem:[%s2153_s3] ss:$0 sm:$0xff] }
  0x40   : > { %1057 = vmatmul.mubr.bf16.gmra.mrb[12].mxu1 %v1765_v47  ;;  %903 = vmatprep.mubr.bf16.mxu0 %v1766_v48 }
  0x41   : > { %1064 = vmatprep.mubr.bf16.mxu1 %v1768_v49 }
  0x47   : > { %904 = vmatmul.mubr.bf16.gmra.mrb[16].mxu0 %v1770_v50 }
  0x48   : > { %1065 = vmatmul.mubr.bf16.gmra.mrb[16].mxu1 %v1771_v51  ;;  %911 = vmatprep.mubr.bf16.mxu0 %v1772_v52 }
  0x49   : > { %1072 = vmatprep.mubr.bf16.mxu1 %v1774_v53 }
  0x4f   : > { %912 = vmatmul.mubr.bf16.gmra.mrb[20].mxu0 %v1776_v54 }
  0x50   : > { %1073 = vmatmul.mubr.bf16.gmra.mrb[20].mxu1 %v1777_v55  ;;  %919 = vmatprep.mubr.bf16.mxu0 %v1778_v56 }
  0x51   : > { %1080 = vmatprep.mubr.bf16.mxu1 %v1780_v57 }
  0x57   : > { %920 = vmatmul.mubr.bf16.gmra.mrb[24].mxu0 %v1782_v58 }
  0x58   : > { %1081 = vmatmul.mubr.bf16.gmra.mrb[24].mxu1 %v1783_v59  ;;  %927 = vmatprep.mubr.bf16.mxu0 %v1784_v60 }
  0x59   : > { %1088 = vmatprep.mubr.bf16.mxu1 %v1786_v61 }
  0x5f   : > { %928 = vmatmul.mubr.bf16.gmra.mrb[28].mxu0 %v1788_v62 }
  0x60   : > { %1089 = vmatmul.mubr.bf16.gmra.mrb[28].mxu1 %v1789_v63  ;;  %935 = vmatprep.mubr.bf16.mxu0 %v1790_v0 }
  0x61   : > { %1096 = vmatprep.mubr.bf16.mxu1 %v1792_v1 }
  0x67   : > { %936 = vmatmul.mubr.bf16.gmra.mrb[32].mxu0 %v1794_v2 }
  0x68   : > { %1097 = vmatmul.mubr.bf16.gmra.mrb[32].mxu1 %v1795_v3  ;;  %943 = vmatprep.mubr.bf16.mxu0 %v1796_v4 }
  0x69   : > { %1104 = vmatprep.mubr.bf16.mxu1 %v1798_v5 }
  0x6f   : > { %944 = vmatmul.mubr.bf16.gmra.mrb[36].mxu0 %v1800_v6 }
  0x70   : > { %1105 = vmatmul.mubr.bf16.gmra.mrb[36].mxu1 %v1801_v7  ;;  %951 = vmatprep.mubr.bf16.mxu0 %v1802_v8 }
  0x71   : > { %1112 = vmatprep.mubr.bf16.mxu1 %v1804_v9 }
  0x77   : > { %952 = vmatmul.mubr.bf16.gmra.mrb[40].mxu0 %v1806_v10 }
  0x78   : > { %1113 = vmatmul.mubr.bf16.gmra.mrb[40].mxu1 %v1807_v11  ;;  %959 = vmatprep.mubr.bf16.mxu0 %v1808_v12 }
  0x79   : > { %1120 = vmatprep.mubr.bf16.mxu1 %v1810_v13 }
  0x7f   : > { %960 = vmatmul.mubr.bf16.gmra.mrb[44].mxu0 %v1812_v14 }
  0x80   : > { %1121 = vmatmul.mubr.bf16.gmra.mrb[44].mxu1 %v1813_v15  ;;  %967 = vmatprep.mubr.bf16.mxu0 %v1814_v16 }
  0x81   : > { %1128 = vmatprep.mubr.bf16.mxu1 %v1816_v17 }
  0x87   : > { %968 = vmatmul.mubr.bf16.gmra.mrb[48].mxu0 %v1818_v18 }
  0x88   : > { %1129 = vmatmul.mubr.bf16.gmra.mrb[48].mxu1 %v1819_v19  ;;  %975 = vmatprep.mubr.bf16.mxu0 %v1820_v20 }
  0x89   : > { %1136 = vmatprep.mubr.bf16.mxu1 %v1822_v21 }
  0x8f   : > { %976 = vmatmul.mubr.bf16.gmra.mrb[52].mxu0 %v1824_v22 }
  0x90   : > { %1137 = vmatmul.mubr.bf16.gmra.mrb[52].mxu1 %v1825_v23  ;;  %983 = vmatprep.mubr.bf16.mxu0 %v1826_v24 }
  0x91   : > { %1144 = vmatprep.mubr.bf16.mxu1 %v1828_v25 }
  0x97   : > { %984 = vmatmul.mubr.bf16.gmra.mrb[56].mxu0 %v1830_v26 }
  0x98   : > { %1145 = vmatmul.mubr.bf16.gmra.mrb[56].mxu1 %v1831_v27  ;;  %991 = vmatprep.mubr.bf16.mxu0 %v1832_v28 }
  0x99   : > { %1152 = vmatprep.mubr.bf16.mxu1 %v1834_v29 }
  0x9f   : > { %992 = vmatmul.mubr.bf16.gmra.mrb[60].mxu0 %v1836_v30 }
  0xa0   : > { %1153 = vmatmul.mubr.bf16.gmra.mrb[60].mxu1 %v1837_v31 }
  0xfa   : > { %v1494_v32 = vpop.f32.mrb[0].mxu0 }
  0xfb   : > { %v1606_v33 = vpop.f32.mrb[0].mxu1  ;;  %v1495_v34 = vpop.f32.mrb[1].mxu0 }
  0xfc   : > { %v1496_v35 = vadd.f32 %v1495_v34, %v1494_v32  ;;  %v1607_v36 = vpop.f32.mrb[1].mxu1  ;;  %v1497_v37 = vpop.f32.mrb[2].mxu0 }
  0xfd   : > { %v1608_v38 = vadd.f32 %v1607_v36, %v1606_v33  ;;  %v1609_v39 = vpop.f32.mrb[2].mxu1  ;;  %v1498_v40 = vpop.f32.mrb[3].mxu0 }
  0xfe   : > { %v1499_v42 = vadd.f32 %v1498_v40, %v1497_v37  ;;  %v1610_v43 = vpop.f32.mrb[3].mxu1 }
  0xff   : > { %v1035_v44 = vadd.f32 %v1608_v38, %v1496_v35  ;;  %v1611_v45 = vadd.f32 %v1610_v43, %v1609_v39 }
 0x101   : > { %v1168_v47 = vmul.f32 %v2054_v41, %v1035_v44  ;;  %v1038_v48 = vadd.f32 %v1611_v45, %v1499_v42 }
 0x102   : > { %v1500_v49 = vpop.f32.mrb[4].mxu0 }
 0x103   : > { %v1207_v50 = vadd.f32 %v2059_v46, %v1168_v47  ;;  %v1169_v51 = vmul.f32 %v2054_v41, %v1038_v48  ;;  %v1612_v52 = vpop.f32.mrb[4].mxu1  ;;  %v1501_v53 = vpop.f32.mrb[5].mxu0 }
 0x104   : > { %v1502_v54 = vadd.f32 %v1501_v53, %v1500_v49  ;;  %v1613_v55 = vpop.f32.mrb[5].mxu1  ;;  %v1503_v56 = vpop.f32.mrb[6].mxu0 }
 0x105   : > { %v1208_v57 = vadd.f32 %v2059_v46, %v1169_v51  ;;  %v1614_v58 = vadd.f32 %v1613_v55, %v1612_v52  ;;  %v1615_v59 = vpop.f32.mrb[6].mxu1  ;;  %v1504_v60 = vpop.f32.mrb[7].mxu0  ;;  %v1239_v63 = vmax.f32 %v1207_v50, 0.0 }
 0x106   : > { %v1505_v61 = vadd.f32 %v1504_v60, %v1503_v56  ;;  %v1616_v62 = vpop.f32.mrb[7].mxu1 }
 0x107   : > { %v1240_v0 = vmax.f32 %v1208_v57, 0.0  ;;  %v1043_v1 = vadd.f32 %v1614_v58, %v1502_v54  ;;  %v1617_v2 = vadd.f32 %v1616_v62, %v1615_v59 }
 0x109   : > { %v1271_v3 = vmax.f32 %v1239_v63, %v1240_v0  ;;  %v1170_v4 = vmul.f32 %v2054_v41, %v1043_v1  ;;  %v1046_v5 = vadd.f32 %v1617_v2, %v1505_v61 }
 0x10a   : > { %v1506_v6 = vpop.f32.mrb[8].mxu0 }
 0x10b   : > { %v1209_v7 = vadd.f32 %v2059_v46, %v1170_v4  ;;  %v1171_v8 = vmul.f32 %v2054_v41, %v1046_v5  ;;  %v1618_v9 = vpop.f32.mrb[8].mxu1  ;;  %v1507_v10 = vpop.f32.mrb[9].mxu0 }
 0x10c   : > { %v1508_v11 = vadd.f32 %v1507_v10, %v1506_v6  ;;  %v1619_v12 = vpop.f32.mrb[9].mxu1  ;;  %v1509_v13 = vpop.f32.mrb[10].mxu0 }
 0x10d   : > { %v1210_v14 = vadd.f32 %v2059_v46, %v1171_v8  ;;  %v1620_v15 = vadd.f32 %v1619_v12, %v1618_v9  ;;  %v1621_v16 = vpop.f32.mrb[10].mxu1  ;;  %v1510_v17 = vpop.f32.mrb[11].mxu0  ;;  %v1241_v20 = vmax.f32 %v1209_v7, 0.0 }
 0x10e   : > { %v1511_v18 = vadd.f32 %v1510_v17, %v1509_v13  ;;  %v1622_v19 = vpop.f32.mrb[11].mxu1 }
 0x10f   : > { %v1242_v21 = vmax.f32 %v1210_v14, 0.0  ;;  %v1051_v22 = vadd.f32 %v1620_v15, %v1508_v11  ;;  %v1623_v23 = vadd.f32 %v1622_v19, %v1621_v16 }
 0x111   : > { %v1279_v24 = vmax.f32 %v1241_v20, %v1242_v21  ;;  %v1172_v25 = vmul.f32 %v2054_v41, %v1051_v22  ;;  %v1054_v26 = vadd.f32 %v1623_v23, %v1511_v18 }
 0x112   : > { %v1512_v27 = vpop.f32.mrb[12].mxu0 }
 0x113   : > { %v1287_v28 = vmax.f32 %v1271_v3, %v1279_v24  ;;  %v1211_v29 = vadd.f32 %v2059_v46, %v1172_v25  ;;  %v1173_v30 = vmul.f32 %v2054_v41, %v1054_v26  ;;  %v1624_v31 = vpop.f32.mrb[12].mxu1  ;;  %v1513_v32 = vpop.f32.mrb[13].mxu0 }
 0x114   : > { %v1514_v33 = vadd.f32 %v1513_v32, %v1512_v27  ;;  %v1625_v34 = vpop.f32.mrb[13].mxu1  ;;  %v1515_v35 = vpop.f32.mrb[14].mxu0 }
 0x115   : > { %v1295_v36 = vpack.c.bf16 %v1287_v28, %v1287_v28  ;;  %v1212_v37 = vadd.f32 %v2059_v46, %v1173_v30  ;;  %v1626_v38 = vadd.f32 %v1625_v34, %v1624_v31  ;;  %v1627_v39 = vpop.f32.mrb[14].mxu1  ;;  %v1516_v40 = vpop.f32.mrb[15].mxu0  ;;  %v1243_v44 = vmax.f32 %v1211_v29, 0.0 }
 0x116   : > { %v1517_v42 = vadd.f32 %v1516_v40, %v1515_v35  ;;  %v1628_v43 = vpop.f32.mrb[15].mxu1 }
 0x117   : > { %1304 = vst.msk [vmem:[%s2076_s20] sm:$0xf] %vm1303_vm0, %v1295_v36  ;;  %v1244_v45 = vmax.f32 %v1212_v37, 0.0  ;;  %v1059_v47 = vadd.f32 %v1626_v38, %v1514_v33  ;;  %v1629_v48 = vadd.f32 %v1628_v43, %v1627_v39 }
 0x119   : > { %v1272_v49 = vmax.f32 %v1243_v44, %v1244_v45  ;;  %v1174_v50 = vmul.f32 %v2054_v41, %v1059_v47  ;;  %v1062_v51 = vadd.f32 %v1629_v48, %v1517_v42 }
 0x11a   : > { %v1518_v52 = vpop.f32.mrb[16].mxu0 }
 0x11b   : > { %v1213_v53 = vadd.f32 %v2059_v46, %v1174_v50  ;;  %v1175_v54 = vmul.f32 %v2054_v41, %v1062_v51  ;;  %v1630_v55 = vpop.f32.mrb[16].mxu1  ;;  %v1519_v56 = vpop.f32.mrb[17].mxu0 }
 0x11c   : > { %v1520_v57 = vadd.f32 %v1519_v56, %v1518_v52  ;;  %v1631_v58 = vpop.f32.mrb[17].mxu1  ;;  %v1521_v59 = vpop.f32.mrb[18].mxu0 }
 0x11d   : > { %v1214_v60 = vadd.f32 %v2059_v46, %v1175_v54  ;;  %v1632_v61 = vadd.f32 %v1631_v58, %v1630_v55  ;;  %v1633_v62 = vpop.f32.mrb[18].mxu1  ;;  %v1522_v63 = vpop.f32.mrb[19].mxu0  ;;  %v1245_v2 = vmax.f32 %v1213_v53, 0.0 }
 0x11e   : > { %v1523_v0 = vadd.f32 %v1522_v63, %v1521_v59  ;;  %v1634_v1 = vpop.f32.mrb[19].mxu1 }
 0x11f   : > { %v1246_v3 = vmax.f32 %v1214_v60, 0.0  ;;  %v1067_v4 = vadd.f32 %v1632_v61, %v1520_v57  ;;  %v1635_v5 = vadd.f32 %v1634_v1, %v1633_v62 }
 0x121   : > { %v1280_v6 = vmax.f32 %v1245_v2, %v1246_v3  ;;  %v1176_v7 = vmul.f32 %v2054_v41, %v1067_v4  ;;  %v1070_v8 = vadd.f32 %v1635_v5, %v1523_v0 }
 0x122   : > { %v1524_v9 = vpop.f32.mrb[20].mxu0 }
 0x123   : > { %v1288_v10 = vmax.f32 %v1272_v49, %v1280_v6  ;;  %v1215_v11 = vadd.f32 %v2059_v46, %v1176_v7  ;;  %v1177_v12 = vmul.f32 %v2054_v41, %v1070_v8  ;;  %v1636_v13 = vpop.f32.mrb[20].mxu1  ;;  %v1525_v14 = vpop.f32.mrb[21].mxu0 }
 0x124   : > { %v1526_v15 = vadd.f32 %v1525_v14, %v1524_v9  ;;  %v1637_v16 = vpop.f32.mrb[21].mxu1  ;;  %v1527_v17 = vpop.f32.mrb[22].mxu0 }
 0x125   : > { %v1296_v18 = vpack.c.bf16 %v1288_v10, %v1288_v10  ;;  %v1216_v19 = vadd.f32 %v2059_v46, %v1177_v12  ;;  %v1638_v20 = vadd.f32 %v1637_v16, %v1636_v13  ;;  %v1639_v21 = vpop.f32.mrb[22].mxu1  ;;  %v1528_v22 = vpop.f32.mrb[23].mxu0  ;;  %v1247_v25 = vmax.f32 %v1215_v11, 0.0 }
 0x126   : > { %v1529_v23 = vadd.f32 %v1528_v22, %v1527_v17  ;;  %v1640_v24 = vpop.f32.mrb[23].mxu1 }
 0x127   : > { %1305 = vst.msk [vmem:[%s2076_s20 + $0x4] sm:$0xf] %vm1303_vm0, %v1296_v18  ;;  %v1248_v26 = vmax.f32 %v1216_v19, 0.0  ;;  %v1075_v27 = vadd.f32 %v1638_v20, %v1526_v15  ;;  %v1641_v28 = vadd.f32 %v1640_v24, %v1639_v21 }
 0x129   : > { %v1273_v29 = vmax.f32 %v1247_v25, %v1248_v26  ;;  %v1178_v30 = vmul.f32 %v2054_v41, %v1075_v27  ;;  %v1078_v31 = vadd.f32 %v1641_v28, %v1529_v23 }
 0x12a   : > { %v1530_v32 = vpop.f32.mrb[24].mxu0 }
 0x12b   : > { %v1217_v33 = vadd.f32 %v2059_v46, %v1178_v30  ;;  %v1179_v34 = vmul.f32 %v2054_v41, %v1078_v31  ;;  %v1642_v35 = vpop.f32.mrb[24].mxu1  ;;  %v1531_v36 = vpop.f32.mrb[25].mxu0 }
 0x12c   : > { %v1532_v37 = vadd.f32 %v1531_v36, %v1530_v32  ;;  %v1643_v38 = vpop.f32.mrb[25].mxu1  ;;  %v1533_v39 = vpop.f32.mrb[26].mxu0 }
 0x12d   : > { %v1218_v40 = vadd.f32 %v2059_v46, %v1179_v34  ;;  %v1644_v42 = vadd.f32 %v1643_v38, %v1642_v35  ;;  %v1645_v43 = vpop.f32.mrb[26].mxu1  ;;  %v1534_v44 = vpop.f32.mrb[27].mxu0  ;;  %v1249_v48 = vmax.f32 %v1217_v33, 0.0 }
 0x12e   : > { %v1535_v45 = vadd.f32 %v1534_v44, %v1533_v39  ;;  %v1646_v47 = vpop.f32.mrb[27].mxu1 }
 0x12f   : > { %v1250_v49 = vmax.f32 %v1218_v40, 0.0  ;;  %v1083_v50 = vadd.f32 %v1644_v42, %v1532_v37  ;;  %v1647_v51 = vadd.f32 %v1646_v47, %v1645_v43 }
 0x131   : > { %v1281_v52 = vmax.f32 %v1249_v48, %v1250_v49  ;;  %v1180_v53 = vmul.f32 %v2054_v41, %v1083_v50  ;;  %v1086_v54 = vadd.f32 %v1647_v51, %v1535_v45 }
 0x132   : > { %v1536_v55 = vpop.f32.mrb[28].mxu0 }
 0x133   : > { %v1289_v56 = vmax.f32 %v1273_v29, %v1281_v52  ;;  %v1219_v57 = vadd.f32 %v2059_v46, %v1180_v53  ;;  %v1181_v58 = vmul.f32 %v2054_v41, %v1086_v54  ;;  %v1648_v59 = vpop.f32.mrb[28].mxu1  ;;  %v1537_v60 = vpop.f32.mrb[29].mxu0 }
 0x134   : > { %v1538_v61 = vadd.f32 %v1537_v60, %v1536_v55  ;;  %v1649_v62 = vpop.f32.mrb[29].mxu1  ;;  %v1539_v63 = vpop.f32.mrb[30].mxu0 }
 0x135   : > { %v1297_v0 = vpack.c.bf16 %v1289_v56, %v1289_v56  ;;  %v1220_v1 = vadd.f32 %v2059_v46, %v1181_v58  ;;  %v1650_v2 = vadd.f32 %v1649_v62, %v1648_v59  ;;  %v1651_v3 = vpop.f32.mrb[30].mxu1  ;;  %v1540_v4 = vpop.f32.mrb[31].mxu0  ;;  %v1251_v7 = vmax.f32 %v1219_v57, 0.0 }
 0x136   : > { %v1541_v5 = vadd.f32 %v1540_v4, %v1539_v63  ;;  %v1652_v6 = vpop.f32.mrb[31].mxu1 }
 0x137   : > { %1306 = vst.msk [vmem:[%s2076_s20 + $0x8] sm:$0xf] %vm1303_vm0, %v1297_v0  ;;  %v1252_v8 = vmax.f32 %v1220_v1, 0.0  ;;  %v1091_v9 = vadd.f32 %v1650_v2, %v1538_v61  ;;  %v1653_v10 = vadd.f32 %v1652_v6, %v1651_v3 }
 0x139   : > { %v1274_v11 = vmax.f32 %v1251_v7, %v1252_v8  ;;  %v1182_v12 = vmul.f32 %v2054_v41, %v1091_v9  ;;  %v1094_v13 = vadd.f32 %v1653_v10, %v1541_v5 }
 0x13a   : > { %v1542_v14 = vpop.f32.mrb[32].mxu0 }
 0x13b   : > { %v1221_v15 = vadd.f32 %v2059_v46, %v1182_v12  ;;  %v1183_v16 = vmul.f32 %v2054_v41, %v1094_v13  ;;  %v1654_v17 = vpop.f32.mrb[32].mxu1  ;;  %v1543_v18 = vpop.f32.mrb[33].mxu0 }
 0x13c   : > { %v1544_v19 = vadd.f32 %v1543_v18, %v1542_v14  ;;  %v1655_v20 = vpop.f32.mrb[33].mxu1  ;;  %v1545_v21 = vpop.f32.mrb[34].mxu0 }
 0x13d   : > { %v1222_v22 = vadd.f32 %v2059_v46, %v1183_v16  ;;  %v1656_v23 = vadd.f32 %v1655_v20, %v1654_v17  ;;  %v1657_v24 = vpop.f32.mrb[34].mxu1  ;;  %v1546_v25 = vpop.f32.mrb[35].mxu0  ;;  %v1253_v28 = vmax.f32 %v1221_v15, 0.0 }
 0x13e   : > { %v1547_v26 = vadd.f32 %v1546_v25, %v1545_v21  ;;  %v1658_v27 = vpop.f32.mrb[35].mxu1 }
 0x13f   : > { %v1254_v29 = vmax.f32 %v1222_v22, 0.0  ;;  %v1099_v30 = vadd.f32 %v1656_v23, %v1544_v19  ;;  %v1659_v31 = vadd.f32 %v1658_v27, %v1657_v24 }
 0x141   : > { %v1282_v32 = vmax.f32 %v1253_v28, %v1254_v29  ;;  %v1184_v33 = vmul.f32 %v2054_v41, %v1099_v30  ;;  %v1102_v34 = vadd.f32 %v1659_v31, %v1547_v26 }
 0x142   : > { %v1548_v35 = vpop.f32.mrb[36].mxu0 }
 0x143   : > { %v1290_v36 = vmax.f32 %v1274_v11, %v1282_v32  ;;  %v1223_v37 = vadd.f32 %v2059_v46, %v1184_v33  ;;  %v1185_v38 = vmul.f32 %v2054_v41, %v1102_v34  ;;  %v1660_v39 = vpop.f32.mrb[36].mxu1  ;;  %v1549_v40 = vpop.f32.mrb[37].mxu0 }
 0x144   : > { %v1550_v42 = vadd.f32 %v1549_v40, %v1548_v35  ;;  %v1661_v43 = vpop.f32.mrb[37].mxu1  ;;  %v1551_v44 = vpop.f32.mrb[38].mxu0 }
 0x145   : > { %v1298_v45 = vpack.c.bf16 %v1290_v36, %v1290_v36  ;;  %v1224_v47 = vadd.f32 %v2059_v46, %v1185_v38  ;;  %v1662_v48 = vadd.f32 %v1661_v43, %v1660_v39  ;;  %v1663_v49 = vpop.f32.mrb[38].mxu1  ;;  %v1552_v50 = vpop.f32.mrb[39].mxu0  ;;  %v1255_v53 = vmax.f32 %v1223_v37, 0.0 }
 0x146   : > { %v1553_v51 = vadd.f32 %v1552_v50, %v1551_v44  ;;  %v1664_v52 = vpop.f32.mrb[39].mxu1 }
 0x147   : > { %1307 = vst.msk [vmem:[%s2076_s20 + $0xc] sm:$0xf] %vm1303_vm0, %v1298_v45  ;;  %v1256_v54 = vmax.f32 %v1224_v47, 0.0  ;;  %v1107_v55 = vadd.f32 %v1662_v48, %v1550_v42  ;;  %v1665_v56 = vadd.f32 %v1664_v52, %v1663_v49 }
 0x149   : > { %v1275_v57 = vmax.f32 %v1255_v53, %v1256_v54  ;;  %v1186_v58 = vmul.f32 %v2054_v41, %v1107_v55  ;;  %v1110_v59 = vadd.f32 %v1665_v56, %v1553_v51 }
 0x14a   : > { %v1554_v60 = vpop.f32.mrb[40].mxu0 }
 0x14b   : > { %v1225_v61 = vadd.f32 %v2059_v46, %v1186_v58  ;;  %v1187_v62 = vmul.f32 %v2054_v41, %v1110_v59  ;;  %v1666_v63 = vpop.f32.mrb[40].mxu1  ;;  %v1555_v0 = vpop.f32.mrb[41].mxu0 }
 0x14c   : > { %v1556_v1 = vadd.f32 %v1555_v0, %v1554_v60  ;;  %v1667_v2 = vpop.f32.mrb[41].mxu1  ;;  %v1557_v3 = vpop.f32.mrb[42].mxu0 }
 0x14d   : > { %v1226_v4 = vadd.f32 %v2059_v46, %v1187_v62  ;;  %v1668_v5 = vadd.f32 %v1667_v2, %v1666_v63  ;;  %v1669_v6 = vpop.f32.mrb[42].mxu1  ;;  %v1558_v7 = vpop.f32.mrb[43].mxu0  ;;  %v1257_v10 = vmax.f32 %v1225_v61, 0.0 }
 0x14e   : > { %v1559_v8 = vadd.f32 %v1558_v7, %v1557_v3  ;;  %v1670_v9 = vpop.f32.mrb[43].mxu1 }
 0x14f   : > { %v1258_v11 = vmax.f32 %v1226_v4, 0.0  ;;  %v1115_v12 = vadd.f32 %v1668_v5, %v1556_v1  ;;  %v1671_v13 = vadd.f32 %v1670_v9, %v1669_v6 }
 0x151   : > { %v1283_v14 = vmax.f32 %v1257_v10, %v1258_v11  ;;  %v1188_v15 = vmul.f32 %v2054_v41, %v1115_v12  ;;  %v1118_v16 = vadd.f32 %v1671_v13, %v1559_v8 }
 0x152   : > { %v1560_v17 = vpop.f32.mrb[44].mxu0 }
 0x153   : > { %v1291_v18 = vmax.f32 %v1275_v57, %v1283_v14  ;;  %v1227_v19 = vadd.f32 %v2059_v46, %v1188_v15  ;;  %v1189_v20 = vmul.f32 %v2054_v41, %v1118_v16  ;;  %v1672_v21 = vpop.f32.mrb[44].mxu1  ;;  %v1561_v22 = vpop.f32.mrb[45].mxu0 }
 0x154   : > { %v1562_v23 = vadd.f32 %v1561_v22, %v1560_v17  ;;  %v1673_v24 = vpop.f32.mrb[45].mxu1  ;;  %v1563_v25 = vpop.f32.mrb[46].mxu0 }
 0x155   : > { %v1299_v26 = vpack.c.bf16 %v1291_v18, %v1291_v18  ;;  %v1228_v27 = vadd.f32 %v2059_v46, %v1189_v20  ;;  %v1674_v28 = vadd.f32 %v1673_v24, %v1672_v21  ;;  %v1675_v29 = vpop.f32.mrb[46].mxu1  ;;  %v1564_v30 = vpop.f32.mrb[47].mxu0  ;;  %v1259_v33 = vmax.f32 %v1227_v19, 0.0 }
 0x156   : > { %v1565_v31 = vadd.f32 %v1564_v30, %v1563_v25  ;;  %v1676_v32 = vpop.f32.mrb[47].mxu1 }
 0x157   : > { %1308 = vst.msk [vmem:[%s2076_s20 + $0x10] sm:$0xf] %vm1303_vm0, %v1299_v26  ;;  %v1260_v34 = vmax.f32 %v1228_v27, 0.0  ;;  %v1123_v35 = vadd.f32 %v1674_v28, %v1562_v23  ;;  %v1677_v36 = vadd.f32 %v1676_v32, %v1675_v29 }
 0x159   : > { %v1276_v37 = vmax.f32 %v1259_v33, %v1260_v34  ;;  %v1190_v38 = vmul.f32 %v2054_v41, %v1123_v35  ;;  %v1126_v39 = vadd.f32 %v1677_v36, %v1565_v31 }
 0x15a   : > { %v1566_v40 = vpop.f32.mrb[48].mxu0 }
 0x15b   : > { %v1229_v42 = vadd.f32 %v2059_v46, %v1190_v38  ;;  %v1191_v43 = vmul.f32 %v2054_v41, %v1126_v39  ;;  %v1678_v44 = vpop.f32.mrb[48].mxu1  ;;  %v1567_v45 = vpop.f32.mrb[49].mxu0 }
 0x15c   : > { %v1568_v47 = vadd.f32 %v1567_v45, %v1566_v40  ;;  %v1679_v48 = vpop.f32.mrb[49].mxu1  ;;  %v1569_v49 = vpop.f32.mrb[50].mxu0 }
 0x15d   : > { %v1230_v50 = vadd.f32 %v2059_v46, %v1191_v43  ;;  %v1680_v51 = vadd.f32 %v1679_v48, %v1678_v44  ;;  %v1681_v52 = vpop.f32.mrb[50].mxu1  ;;  %v1570_v53 = vpop.f32.mrb[51].mxu0  ;;  %v1261_v56 = vmax.f32 %v1229_v42, 0.0 }
 0x15e   : > { %v1571_v54 = vadd.f32 %v1570_v53, %v1569_v49  ;;  %v1682_v55 = vpop.f32.mrb[51].mxu1 }
 0x15f   : > { %v1262_v57 = vmax.f32 %v1230_v50, 0.0  ;;  %v1131_v58 = vadd.f32 %v1680_v51, %v1568_v47  ;;  %v1683_v59 = vadd.f32 %v1682_v55, %v1681_v52 }
 0x161   : > { %v1284_v60 = vmax.f32 %v1261_v56, %v1262_v57  ;;  %v1192_v61 = vmul.f32 %v2054_v41, %v1131_v58  ;;  %v1134_v62 = vadd.f32 %v1683_v59, %v1571_v54 }
 0x162   : > { %v1572_v63 = vpop.f32.mrb[52].mxu0 }
 0x163   : > { %v1292_v0 = vmax.f32 %v1276_v37, %v1284_v60  ;;  %v1231_v1 = vadd.f32 %v2059_v46, %v1192_v61  ;;  %v1193_v2 = vmul.f32 %v2054_v41, %v1134_v62  ;;  %v1684_v3 = vpop.f32.mrb[52].mxu1  ;;  %v1573_v4 = vpop.f32.mrb[53].mxu0 }
 0x164   : > { %v1574_v5 = vadd.f32 %v1573_v4, %v1572_v63  ;;  %v1685_v6 = vpop.f32.mrb[53].mxu1  ;;  %v1575_v7 = vpop.f32.mrb[54].mxu0 }
 0x165   : > { %v1300_v8 = vpack.c.bf16 %v1292_v0, %v1292_v0  ;;  %v1232_v9 = vadd.f32 %v2059_v46, %v1193_v2  ;;  %v1686_v10 = vadd.f32 %v1685_v6, %v1684_v3  ;;  %v1687_v11 = vpop.f32.mrb[54].mxu1  ;;  %v1576_v12 = vpop.f32.mrb[55].mxu0  ;;  %v1263_v15 = vmax.f32 %v1231_v1, 0.0 }
 0x166   : > { %v1577_v13 = vadd.f32 %v1576_v12, %v1575_v7  ;;  %v1688_v14 = vpop.f32.mrb[55].mxu1 }
 0x167   : > { %1309 = vst.msk [vmem:[%s2076_s20 + $0x14] sm:$0xf] %vm1303_vm0, %v1300_v8  ;;  %v1264_v16 = vmax.f32 %v1232_v9, 0.0  ;;  %v1139_v17 = vadd.f32 %v1686_v10, %v1574_v5  ;;  %v1689_v18 = vadd.f32 %v1688_v14, %v1687_v11 }
 0x169   : > { %v1277_v19 = vmax.f32 %v1263_v15, %v1264_v16  ;;  %v1194_v20 = vmul.f32 %v2054_v41, %v1139_v17  ;;  %v1142_v21 = vadd.f32 %v1689_v18, %v1577_v13 }
 0x16a   : > { %v1578_v22 = vpop.f32.mrb[56].mxu0 }
 0x16b   : > { %v1233_v23 = vadd.f32 %v2059_v46, %v1194_v20  ;;  %v1195_v24 = vmul.f32 %v2054_v41, %v1142_v21  ;;  %v1690_v25 = vpop.f32.mrb[56].mxu1  ;;  %v1579_v26 = vpop.f32.mrb[57].mxu0 }
 0x16c   : > { %v1580_v27 = vadd.f32 %v1579_v26, %v1578_v22  ;;  %v1691_v28 = vpop.f32.mrb[57].mxu1  ;;  %v1581_v29 = vpop.f32.mrb[58].mxu0 }
 0x16d   : > { %v1234_v30 = vadd.f32 %v2059_v46, %v1195_v24  ;;  %v1692_v31 = vadd.f32 %v1691_v28, %v1690_v25  ;;  %v1693_v32 = vpop.f32.mrb[58].mxu1  ;;  %v1582_v33 = vpop.f32.mrb[59].mxu0  ;;  %v1265_v36 = vmax.f32 %v1233_v23, 0.0 }
 0x16e   : > { %v1583_v34 = vadd.f32 %v1582_v33, %v1581_v29  ;;  %v1694_v35 = vpop.f32.mrb[59].mxu1 }
 0x16f   : > { %v1266_v37 = vmax.f32 %v1234_v30, 0.0  ;;  %v1147_v38 = vadd.f32 %v1692_v31, %v1580_v27  ;;  %v1695_v39 = vadd.f32 %v1694_v35, %v1693_v32 }
 0x171   : > { %v1285_v40 = vmax.f32 %v1265_v36, %v1266_v37  ;;  %v1196_v42 = vmul.f32 %v2054_v41, %v1147_v38  ;;  %v1150_v43 = vadd.f32 %v1695_v39, %v1583_v34 }
 0x172   : > { %v1584_v44 = vpop.f32.mrb[60].mxu0 }
 0x173   : > { %v1293_v45 = vmax.f32 %v1277_v19, %v1285_v40  ;;  %v1235_v47 = vadd.f32 %v2059_v46, %v1196_v42  ;;  %v1197_v48 = vmul.f32 %v2054_v41, %v1150_v43  ;;  %v1696_v49 = vpop.f32.mrb[60].mxu1  ;;  %v1585_v50 = vpop.f32.mrb[61].mxu0 }
 0x174   : > { %v1586_v51 = vadd.f32 %v1585_v50, %v1584_v44  ;;  %v1697_v52 = vpop.f32.mrb[61].mxu1  ;;  %v1587_v53 = vpop.f32.mrb[62].mxu0 }
 0x175   : > { %v1301_v54 = vpack.c.bf16 %v1293_v45, %v1293_v45  ;;  %v1236_v55 = vadd.f32 %v2059_v46, %v1197_v48  ;;  %v1698_v56 = vadd.f32 %v1697_v52, %v1696_v49  ;;  %v1699_v57 = vpop.f32.mrb[62].mxu1  ;;  %v1588_v58 = vpop.f32.mrb[63].mxu0  ;;  %v1267_v61 = vmax.f32 %v1235_v47, 0.0 }
 0x176   : > { %v1589_v59 = vadd.f32 %v1588_v58, %v1587_v53  ;;  %v1700_v60 = vpop.f32.mrb[63].mxu1 }
 0x177   : > { %1310 = vst.msk [vmem:[%s2076_s20 + $0x18] sm:$0xf] %vm1303_vm0, %v1301_v54  ;;  %v1268_v62 = vmax.f32 %v1236_v55, 0.0  ;;  %v1155_v63 = vadd.f32 %v1698_v56, %v1586_v51  ;;  %v1701_v0 = vadd.f32 %v1700_v60, %v1699_v57 }
 0x179   : > { %v1278_v1 = vmax.f32 %v1267_v61, %v1268_v62  ;;  %v1198_v2 = vmul.f32 %v2054_v41, %v1155_v63  ;;  %v1158_v3 = vadd.f32 %v1701_v0, %v1589_v59 }
 0x17b   : > { %v1237_v4 = vadd.f32 %v2059_v46, %v1198_v2  ;;  %v1199_v5 = vmul.f32 %v2054_v41, %v1158_v3 }
 0x17d   : > { %v1238_v6 = vadd.f32 %v2059_v46, %v1199_v5  ;;  %v1269_v7 = vmax.f32 %v1237_v4, 0.0 }
 0x17f   : > { %v1270_v8 = vmax.f32 %v1238_v6, 0.0 }
 0x181   : > { %v1286_v9 = vmax.f32 %v1269_v7, %v1270_v8 }
 0x183   : > { %v1294_v10 = vmax.f32 %v1278_v1, %v1286_v9 }
 0x185   : > { %v1302_v11 = vpack.c.bf16 %v1294_v10, %v1294_v10 }
 0x187   : > { %1311 = vst.msk [vmem:[%s2076_s20 + $0x1c] sm:$0xf] %vm1303_vm0, %v1302_v11 }
 0x188 PF: > { %s14_s15 = sadd.s32 1, %s1844_s15  }
 0x189   : > { %p11_p4 = scmp.ge.s32.totalorder %s14_s15, 4  }
 0x18b   :  { %13 = sbr.rel (!%p11_p4) target bundleno = 1 (0x1), region = 66 }

// kernel: forward.7
= control target key start
LH: loop header
LB: loop body
LE: loop exit
PB: predicated region body
PF: predicated region fallthrough
CT: control target
= control target key end

     0   :  { %12 = vsyncpa [#allocation4], 0  ;;  %s8872_s24 = smov 0   ;;  %s10568_s0 = inlined_call_operand.vmem [shape: bf16[2,6144], index: 0, kind: input, shape index: {}]   ;;  %s10569_s1 = inlined_call_operand.vmem [shape: bf16[6144,512], index: 1, kind: input, shape index: {}]   ;;  %s10570_s2 = inlined_call_operand.vmem [shape: f32[1,512], index: 2, kind: input, shape index: {}]   ;;  %s10571_s3 = inlined_call_operand.vmem [shape: bf16[512,1024], index: 3, kind: input, shape index: {}]   ;;  %s10572_s4 = inlined_call_operand.vmem [shape: f32[1,1024], index: 4, kind: input, shape index: {}]   ;;  %s10573_s5 = inlined_call_operand.vmem [shape: bf16[1024,2], index: 5, kind: input, shape index: {}]   ;;  %s10574_s6 = inlined_call_operand.vmem [shape: f32[1,2], index: 6, kind: input, shape index: {}]   ;;  %s10575_s7 = inlined_call_operand.hbm [shape: f32[2,2], index: 7, kind: output, shape index: {}]  }
   0x1 LB: > { %s8878_s25 = sadd.s32 4294967295, %s8826_s24   ;;  %p6902_p0 = scmp.ge.s32.totalorder %s8826_s24, 1  ;;  %s8826_s24 = sphi %s8872_s24, %s18_s24  }
   0x2   : > { %p245_p1 = scmp.lt.s32.totalorder %s8826_s24, 4 }
   0x4   : > { %p246_p2 = pnand %p6902_p0, %p245_p1 }
   0x5   : > { %s6903_s26 = sshll.u32 (!%p246_p2), %s8878_s25, 4  ;;  %s6904_s27 = sshll.u32 (!%p246_p2), %s8878_s25, 8 }
   0x6   : > { %249 = sbr.rel (%p246_p2) target bundleno = 1488 (0x5d0), region = 48  ;;  %p278_p3 = scmp.lt.s32.totalorder (!%p246_p2), %s6903_s26, 47 }
   0x7   : > { %p283_p4 = scmp.lt.s32.totalorder (!%p246_p2), %s6904_s27, 767  ;;  %p6907_p5 = scmp.ne.s32.totalorder (!%p246_p2), %s8878_s25, 0 }
   0xd   : > { %s10577_s26 = smov (!%p278_p3, %s6903_s26), 47  ;;  %s10579_s27 = smov (!%p283_p4, %s6904_s27), 767 }
   0xe   : > { %s8887_s30 = scalar_lea.vmem %s10568_s0, %s10577_s26  ;;  %s7747_s8 = sshll.u32 %s10579_s27, 4  ;;  %v8828_v0 = vmov (!%p6907_p5), 0.0  }
   0xf   : > { %s8892_s11 = scalar_lea.vmem %s10569_s1, %s7747_s8  ;;  %293 = sbr.rel (%p6907_p5) target bundleno = 22 (0x16), region = 52  ;;  %294 = vst [vmem:[#allocation2] sm:$0xff] (!%p6907_p5), %v8828_v0 }
  0x16 PF: > { %v7934_v1 = vld [vmem:[%s8892_s11 + $0x4] ss:$16 sps:$4 sm:$0xff]   ;;  %v7936_v2 = vld [vmem:[%s8892_s11 + $0xc] ss:$16 sps:$4 sm:$0xff]   ;;  %v7938_v3 = vld [vmem:[%s8892_s11] ss:$16 sps:$4 sm:$0xff]   ;;  %v816_v39 = vlaneseq }
  0x17   : > { %3486 = vmatprep.subr.bf16.mxu0 %v7934_v1  ;;  %v7939_v4 = vld [vmem:[%s8892_s11 + $0x8] ss:$16 sps:$4 sm:$0xff]   ;;  %3814 = vmatprep.subr.bf16.mxu1 %v7936_v2  ;;  %v7940_v5 = vld [vmem:[%s8892_s11 + $0x24] ss:$16 sps:$4 sm:$0xff]   ;;  %v7942_v6 = vld [vmem:[%s8892_s11 + $0x2c] ss:$16 sps:$4 sm:$0xff]  }
  0x18   : > { %3487 = vmatpush1.bf16.msra.mxu0 %v7938_v3  ;;  %3815 = vmatpush1.bf16.msra.mxu1 %v7939_v4  ;;  %v7944_v7 = vld [vmem:[%s8892_s11 + $0x20] ss:$16 sps:$4 sm:$0xff]   ;;  %v7945_v8 = vld [vmem:[%s8892_s11 + $0x28] ss:$16 sps:$4 sm:$0xff]   ;;  %v7946_v9 = vld [vmem:[%s8892_s11 + $0x44] ss:$16 sps:$4 sm:$0xff]  }
  0x19   : > { %3488 = vmatprep.subr.bf16.mxu0 %v7940_v5  ;;  %3816 = vmatprep.subr.bf16.mxu1 %v7942_v6  ;;  %v7948_v10 = vld [vmem:[%s8892_s11 + $0x4c] ss:$16 sps:$4 sm:$0xff]   ;;  %v7950_v11 = vld [vmem:[%s8892_s11 + $0x40] ss:$16 sps:$4 sm:$0xff]   ;;  %v7951_v12 = vld [vmem:[%s8892_s11 + $0x48] ss:$16 sps:$4 sm:$0xff]  }
  0x1a   : > { %v7952_v13 = vld [vmem:[%s8892_s11 + $0x64] ss:$16 sps:$4 sm:$0xff]   ;;  %v7954_v14 = vld [vmem:[%s8892_s11 + $0x6c] ss:$16 sps:$4 sm:$0xff]   ;;  %v7956_v15 = vld [vmem:[%s8892_s11 + $0x60] ss:$16 sps:$4 sm:$0xff]  }
  0x1b   : > { %v7957_v16 = vld [vmem:[%s8892_s11 + $0x68] ss:$16 sps:$4 sm:$0xff]   ;;  %v7958_v17 = vld [vmem:[%s8892_s11 + $0x84] ss:$16 sps:$4 sm:$0xff]   ;;  %v7960_v18 = vld [vmem:[%s8892_s11 + $0x8c] ss:$16 sps:$4 sm:$0xff]  }
  0x1c   : > { %3489 = vmatpush1.bf16.msra.mxu0 %v7944_v7  ;;  %3817 = vmatpush1.bf16.msra.mxu1 %v7945_v8  ;;  %v7962_v19 = vld [vmem:[%s8892_s11 + $0x80] ss:$16 sps:$4 sm:$0xff]   ;;  %v7963_v20 = vld [vmem:[%s8892_s11 + $0x88] ss:$16 sps:$4 sm:$0xff]   ;;  %v7964_v21 = vld [vmem:[%s8892_s11 + $0xa4] ss:$16 sps:$4 sm:$0xff]  }
  0x1d   : > { %3490 = vmatprep.subr.bf16.mxu0 %v7946_v9  ;;  %3818 = vmatprep.subr.bf16.mxu1 %v7948_v10  ;;  %v7966_v22 = vld [vmem:[%s8892_s11 + $0xac] ss:$16 sps:$4 sm:$0xff]   ;;  %v7968_v23 = vld [vmem:[%s8892_s11 + $0xa0] ss:$16 sps:$4 sm:$0xff]   ;;  %v7969_v24 = vld [vmem:[%s8892_s11 + $0xa8] ss:$16 sps:$4 sm:$0xff]  }
  0x1e   : > { %v7970_v25 = vld [vmem:[%s8892_s11 + $0xc4] ss:$16 sps:$4 sm:$0xff]   ;;  %v7972_v26 = vld [vmem:[%s8892_s11 + $0xcc] ss:$16 sps:$4 sm:$0xff]   ;;  %v7974_v27 = vld [vmem:[%s8892_s11 + $0xc0] ss:$16 sps:$4 sm:$0xff]  }
  0x1f   : > { %v7975_v28 = vld [vmem:[%s8892_s11 + $0xc8] ss:$16 sps:$4 sm:$0xff]   ;;  %v7976_v29 = vld [vmem:[%s8892_s11 + $0xe4] ss:$16 sps:$4 sm:$0xff]   ;;  %v7978_v30 = vld [vmem:[%s8892_s11 + $0xec] ss:$16 sps:$4 sm:$0xff]  }
  0x20   : > { %3491 = vmatpush1.bf16.msra.mxu0 %v7950_v11  ;;  %3819 = vmatpush1.bf16.msra.mxu1 %v7951_v12  ;;  %v7980_v31 = vld [vmem:[%s8892_s11 + $0xe0] ss:$16 sps:$4 sm:$0xff]   ;;  %v7981_v32 = vld [vmem:[%s8892_s11 + $0xe8] ss:$16 sps:$4 sm:$0xff]   ;;  %v7982_v33 = vld [vmem:[%s8892_s11 + $0x104] ss:$16 sps:$4 sm:$0xff]  }
  0x21   : > { %3492 = vmatprep.subr.bf16.mxu0 %v7952_v13  ;;  %3820 = vmatprep.subr.bf16.mxu1 %v7954_v14  ;;  %v7984_v34 = vld [vmem:[%s8892_s11 + $0x10c] ss:$16 sps:$4 sm:$0xff]   ;;  %v7986_v35 = vld [vmem:[%s8892_s11 + $0x100] ss:$16 sps:$4 sm:$0xff]   ;;  %v7987_v36 = vld [vmem:[%s8892_s11 + $0x108] ss:$16 sps:$4 sm:$0xff]  }
  0x22   : > { %v8829_v37 = vmov 1966171168   ;;  %v7988_v40 = vld [vmem:[%s8892_s11 + $0x124] ss:$16 sps:$4 sm:$0xff]   ;;  %v7990_v41 = vld [vmem:[%s8892_s11 + $0x12c] ss:$16 sps:$4 sm:$0xff]  }
  0x23   : > { %v814_v38 = vunpack.c.l.s4 %v8829_v37  ;;  %v7992_v42 = vld [vmem:[%s8892_s11 + $0x120] ss:$16 sps:$4 sm:$0xff]   ;;  %v8934_v44 = vshrl.u32 %v816_v39, 7  ;;  %v7993_v45 = vld [vmem:[%s8892_s11 + $0x128] ss:$16 sps:$4 sm:$0xff]   ;;  %p7420_p6 = scmp.ne.s32.totalorder %s8878_s25, 2 }
  0x24   : > { %3493 = vmatpush1.bf16.msra.mxu0 %v7956_v15  ;;  %3821 = vmatpush1.bf16.msra.mxu1 %v7957_v16  ;;  %v7994_v46 = vld [vmem:[%s8892_s11 + $0x144] ss:$16 sps:$4 sm:$0xff]   ;;  %v7996_v47 = vld [vmem:[%s8892_s11 + $0x14c] ss:$16 sps:$4 sm:$0xff]   ;;  %v7998_v48 = vld [vmem:[%s8892_s11 + $0x140] ss:$16 sps:$4 sm:$0xff]  }
  0x25   : > { %3494 = vmatprep.subr.bf16.mxu0 %v7958_v17  ;;  %3822 = vmatprep.subr.bf16.mxu1 %v7960_v18  ;;  %v815_v43 = vunpack.c.0.s8 %v814_v38  ;;  %v7999_v49 = vld [vmem:[%s8892_s11 + $0x148] ss:$16 sps:$4 sm:$0xff]   ;;  %v8000_v51 = vld [vmem:[%s8892_s11 + $0x164] ss:$16 sps:$4 sm:$0xff]   ;;  %v8002_v52 = vld [vmem:[%s8892_s11 + $0x16c] ss:$16 sps:$4 sm:$0xff]  }
  0x26   : > { %v8947_v53 = vld [vmem:[%s8887_s30] sm:$0xff]  ;;  %v8005_v56 = vld [vmem:[%s8892_s11 + $0x168] ss:$16 sps:$4 sm:$0xff]   ;;  %v8008_v58 = vld [vmem:[%s8892_s11 + $0x18c] ss:$16 sps:$4 sm:$0xff]   ;;  %vm6842_vm0 = vcmask (!%p7420_p6), 9216  }
  0x27   : > { %v8942_v50 = vsub.s32 %v815_v43, %v8934_v44  ;;  %v8004_v54 = vld [vmem:[%s8892_s11 + $0x160] ss:$16 sps:$4 sm:$0xff]   ;;  %v8006_v57 = vld [vmem:[%s8892_s11 + $0x184] ss:$16 sps:$4 sm:$0xff]   ;;  %v8011_v62 = vld [vmem:[%s8892_s11 + $0x188] ss:$16 sps:$4 sm:$0xff]  }
  0x28   : > { %3495 = vmatpush1.bf16.msra.mxu0 %v7962_v19  ;;  %3823 = vmatpush1.bf16.msra.mxu1 %v7963_v20  ;;  %v8010_v60 = vld [vmem:[%s8892_s11 + $0x180] ss:$16 sps:$4 sm:$0xff]   ;;  %v8012_v63 = vld [vmem:[%s8892_s11 + $0x1a4] ss:$16 sps:$4 sm:$0xff]   ;;  %v8014_v0 = vld [vmem:[%s8892_s11 + $0x1ac] ss:$16 sps:$4 sm:$0xff]  }
  0x29   : > { %3496 = vmatprep.subr.bf16.mxu0 %v7964_v21  ;;  %3824 = vmatprep.subr.bf16.mxu1 %v7966_v22  ;;  %v819_v55 = vrot.slane %v8947_v53, %v8942_v50  ;;  %v8016_v1 = vld [vmem:[%s8892_s11 + $0x1a0] ss:$16 sps:$4 sm:$0xff]   ;;  %v8017_v2 = vld [vmem:[%s8892_s11 + $0x1a8] ss:$16 sps:$4 sm:$0xff]   ;;  %v8018_v3 = vld [vmem:[%s8892_s11 + $0x1c4] ss:$16 sps:$4 sm:$0xff]  }
  0x2a   : > { %v8020_v4 = vld [vmem:[%s8892_s11 + $0x1cc] ss:$16 sps:$4 sm:$0xff]   ;;  %v8022_v5 = vld [vmem:[%s8892_s11 + $0x1c0] ss:$16 sps:$4 sm:$0xff]   ;;  %v8023_v6 = vld [vmem:[%s8892_s11 + $0x1c8] ss:$16 sps:$4 sm:$0xff]  }
  0x2b   : > { %v827_v59 = vcombine.high %v819_v55, %v819_v55  ;;  %v8024_v7 = vld [vmem:[%s8892_s11 + $0x1e4] ss:$16 sps:$4 sm:$0xff]   ;;  %v8026_v8 = vld [vmem:[%s8892_s11 + $0x1ec] ss:$16 sps:$4 sm:$0xff]   ;;  %v8028_v9 = vld [vmem:[%s8892_s11 + $0x1e0] ss:$16 sps:$4 sm:$0xff]   ;;  %v8974_v14 = vrot.slane %v819_v55, %v8942_v50 }
  0x2c   : > { %3497 = vmatpush1.bf16.msra.mxu0 %v7968_v23  ;;  %3825 = vmatpush1.bf16.msra.mxu1 %v7969_v24  ;;  %v8029_v10 = vld [vmem:[%s8892_s11 + $0x1e8] ss:$16 sps:$4 sm:$0xff]   ;;  %v8032_v11 = vld [vmem:[%s8892_s11 + $0x204] ss:$16 sps:$4 sm:$0xff]   ;;  %v8035_v12 = vld [vmem:[%s8892_s11 + $0x20c] ss:$16 sps:$4 sm:$0xff]  }
  0x2d   : > { %3498 = vmatprep.subr.bf16.mxu0 %v7970_v25  ;;  %3826 = vmatprep.subr.bf16.mxu1 %v7972_v26  ;;  %v849_v61 = vrot.slane %v827_v59, %v8942_v50  ;;  %v8030_v13 = vld [vmem:[%s8892_s11 + $0x200] ss:$16 sps:$4 sm:$0xff]   ;;  %v8033_v15 = vld [vmem:[%s8892_s11 + $0x208] ss:$16 sps:$4 sm:$0xff]   ;;  %v8038_v16 = vld [vmem:[%s8892_s11 + $0x224] ss:$16 sps:$4 sm:$0xff]  }
  0x2e   : > { %v8041_v17 = vld [vmem:[%s8892_s11 + $0x22c] ss:$16 sps:$4 sm:$0xff]   ;;  %v8036_v19 = vld [vmem:[%s8892_s11 + $0x220] ss:$16 sps:$4 sm:$0xff]   ;;  %v8039_v20 = vld [vmem:[%s8892_s11 + $0x228] ss:$16 sps:$4 sm:$0xff]  }
  0x2f   : > { %3518 = vmatprep.mubr.bf16.mxu0 %v849_v61  ;;  %3846 = vmatprep.mubr.bf16.mxu1 %v849_v61  ;;  %v859_v18 = vcombine.high %v849_v61, %v849_v61  ;;  %v8044_v21 = vld [vmem:[%s8892_s11 + $0x244] ss:$16 sps:$4 sm:$0xff]   ;;  %v8047_v22 = vld [vmem:[%s8892_s11 + $0x24c] ss:$16 sps:$4 sm:$0xff]   ;;  %v8042_v23 = vld [vmem:[%s8892_s11 + $0x240] ss:$16 sps:$4 sm:$0xff]  }
  0x30   : > { %3499 = vmatpush1.bf16.msra.mxu0 %v7974_v27  ;;  %3827 = vmatpush1.bf16.msra.mxu1 %v7975_v28  ;;  %v8045_v24 = vld [vmem:[%s8892_s11 + $0x248] ss:$16 sps:$4 sm:$0xff]   ;;  %v8050_v25 = vld [vmem:[%s8892_s11 + $0x264] ss:$16 sps:$4 sm:$0xff]   ;;  %v8053_v26 = vld [vmem:[%s8892_s11 + $0x26c] ss:$16 sps:$4 sm:$0xff]  }
  0x31   : > { %3500 = vmatprep.subr.bf16.mxu0 %v7976_v29  ;;  %3828 = vmatprep.subr.bf16.mxu1 %v7978_v30  ;;  %v8048_v27 = vld [vmem:[%s8892_s11 + $0x260] ss:$16 sps:$4 sm:$0xff]   ;;  %v8051_v28 = vld [vmem:[%s8892_s11 + $0x268] ss:$16 sps:$4 sm:$0xff]   ;;  %v8056_v29 = vld [vmem:[%s8892_s11 + $0x284] ss:$16 sps:$4 sm:$0xff]  }
  0x32   : > { %v8059_v30 = vld [vmem:[%s8892_s11 + $0x28c] ss:$16 sps:$4 sm:$0xff]   ;;  %v8068_v37 = vld [vmem:[%s8892_s11 + $0x2c4] ss:$16 sps:$4 sm:$0xff]   ;;  %v8066_v39 = vld [vmem:[%s8892_s11 + $0x2c0] ss:$16 sps:$4 sm:$0xff]  }
  0x33   : > { %v8071_v38 = vld [vmem:[%s8892_s11 + $0x2cc] ss:$16 sps:$4 sm:$0xff]   ;;  %v8072_v43 = vld [vmem:[%s8892_s11 + $0x2e0] ss:$16 sps:$4 sm:$0xff]   ;;  %v8087_v55 = vld [vmem:[%s8892_s11 + $0x328] ss:$16 sps:$4 sm:$0xff]  }
  0x34   : > { %3501 = vmatpush1.bf16.msra.mxu0 %v7980_v31  ;;  %3829 = vmatpush1.bf16.msra.mxu1 %v7981_v32  ;;  %v8054_v31 = vld [vmem:[%s8892_s11 + $0x280] ss:$16 sps:$4 sm:$0xff]   ;;  %v8057_v32 = vld [vmem:[%s8892_s11 + $0x288] ss:$16 sps:$4 sm:$0xff]   ;;  %v8101_v61 = vld [vmem:[%s8892_s11 + $0x36c] ss:$16 sps:$4 sm:$0xff]  }
  0x35   : > { %3502 = vmatprep.subr.bf16.mxu0 %v7982_v33  ;;  %3830 = vmatprep.subr.bf16.mxu1 %v7984_v34  ;;  %v8062_v33 = vld [vmem:[%s8892_s11 + $0x2a4] ss:$16 sps:$4 sm:$0xff]   ;;  %v8065_v34 = vld [vmem:[%s8892_s11 + $0x2ac] ss:$16 sps:$4 sm:$0xff]   ;;  %v8093_v59 = vld [vmem:[%s8892_s11 + $0x348] ss:$16 sps:$4 sm:$0xff]  }
  0x38   : > { %3503 = vmatpush1.bf16.msra.mxu0 %v7986_v35  ;;  %3831 = vmatpush1.bf16.msra.mxu1 %v7987_v36  ;;  %v8060_v35 = vld [vmem:[%s8892_s11 + $0x2a0] ss:$16 sps:$4 sm:$0xff]   ;;  %v8063_v36 = vld [vmem:[%s8892_s11 + $0x2a8] ss:$16 sps:$4 sm:$0xff]  }
  0x39   : > { %3504 = vmatprep.subr.bf16.mxu0 %v7988_v40  ;;  %3832 = vmatprep.subr.bf16.mxu1 %v7990_v41  ;;  %v8069_v40 = vld [vmem:[%s8892_s11 + $0x2c8] ss:$16 sps:$4 sm:$0xff]   ;;  %v8074_v41 = vld [vmem:[%s8892_s11 + $0x2e4] ss:$16 sps:$4 sm:$0xff]  }
  0x3c   : > { %3505 = vmatpush1.bf16.msra.mxu0 %v7992_v42  ;;  %3833 = vmatpush1.bf16.msra.mxu1 %v7993_v45  ;;  %v8077_v42 = vld [vmem:[%s8892_s11 + $0x2ec] ss:$16 sps:$4 sm:$0xff]   ;;  %v8075_v45 = vld [vmem:[%s8892_s11 + $0x2e8] ss:$16 sps:$4 sm:$0xff]  }
  0x3d   : > { %3506 = vmatprep.subr.bf16.mxu0 %v7994_v46  ;;  %3834 = vmatprep.subr.bf16.mxu1 %v7996_v47  ;;  %v8080_v46 = vld [vmem:[%s8892_s11 + $0x304] ss:$16 sps:$4 sm:$0xff]   ;;  %v8083_v47 = vld [vmem:[%s8892_s11 + $0x30c] ss:$16 sps:$4 sm:$0xff]  }
  0x40   : > { %3507 = vmatpush1.bf16.msra.mxu0 %v7998_v48  ;;  %3835 = vmatpush1.bf16.msra.mxu1 %v7999_v49  ;;  %v8078_v48 = vld [vmem:[%s8892_s11 + $0x300] ss:$16 sps:$4 sm:$0xff]   ;;  %v8081_v49 = vld [vmem:[%s8892_s11 + $0x308] ss:$16 sps:$4 sm:$0xff]  }
  0x41   : > { %3508 = vmatprep.subr.bf16.mxu0 %v8000_v51  ;;  %3836 = vmatprep.subr.bf16.mxu1 %v8002_v52  ;;  %v8086_v51 = vld [vmem:[%s8892_s11 + $0x324] ss:$16 sps:$4 sm:$0xff]   ;;  %v8089_v52 = vld [vmem:[%s8892_s11 + $0x32c] ss:$16 sps:$4 sm:$0xff]  }
  0x44   : > { %3509 = vmatpush1.bf16.msra.mxu0 %v8004_v54  ;;  %3837 = vmatpush1.bf16.msra.mxu1 %v8005_v56  ;;  %v8084_v54 = vld [vmem:[%s8892_s11 + $0x320] ss:$16 sps:$4 sm:$0xff]   ;;  %v8092_v56 = vld [vmem:[%s8892_s11 + $0x344] ss:$16 sps:$4 sm:$0xff]  }
  0x45   : > { %3510 = vmatprep.subr.bf16.mxu0 %v8006_v57  ;;  %3838 = vmatprep.subr.bf16.mxu1 %v8008_v58  ;;  %v8095_v57 = vld [vmem:[%s8892_s11 + $0x34c] ss:$16 sps:$4 sm:$0xff]   ;;  %v8090_v58 = vld [vmem:[%s8892_s11 + $0x340] ss:$16 sps:$4 sm:$0xff]  }
  0x48   : > { %3511 = vmatpush1.bf16.msra.mxu0 %v8010_v60  ;;  %3839 = vmatpush1.bf16.msra.mxu1 %v8011_v62  ;;  %v8098_v60 = vld [vmem:[%s8892_s11 + $0x364] ss:$16 sps:$4 sm:$0xff]   ;;  %v8096_v62 = vld [vmem:[%s8892_s11 + $0x360] ss:$16 sps:$4 sm:$0xff]  }
  0x49   : > { %3512 = vmatprep.subr.bf16.mxu0 %v8012_v63  ;;  %3840 = vmatprep.subr.bf16.mxu1 %v8014_v0  ;;  %v8099_v63 = vld [vmem:[%s8892_s11 + $0x368] ss:$16 sps:$4 sm:$0xff]   ;;  %v8104_v0 = vld [vmem:[%s8892_s11 + $0x384] ss:$16 sps:$4 sm:$0xff]  }
  0x4c   : > { %3513 = vmatpush1.bf16.msra.mxu0 %v8016_v1  ;;  %3841 = vmatpush1.bf16.msra.mxu1 %v8017_v2  ;;  %v8107_v1 = vld [vmem:[%s8892_s11 + $0x38c] ss:$16 sps:$4 sm:$0xff]   ;;  %v8102_v2 = vld [vmem:[%s8892_s11 + $0x380] ss:$16 sps:$4 sm:$0xff]  }
  0x4d   : > { %3514 = vmatprep.subr.bf16.mxu0 %v8018_v3  ;;  %3842 = vmatprep.subr.bf16.mxu1 %v8020_v4  ;;  %v8105_v3 = vld [vmem:[%s8892_s11 + $0x388] ss:$16 sps:$4 sm:$0xff]   ;;  %v8110_v4 = vld [vmem:[%s8892_s11 + $0x3a4] ss:$16 sps:$4 sm:$0xff]  }
  0x50   : > { %3515 = vmatpush1.bf16.msra.mxu0 %v8022_v5  ;;  %3843 = vmatpush1.bf16.msra.mxu1 %v8023_v6  ;;  %v8113_v5 = vld [vmem:[%s8892_s11 + $0x3ac] ss:$16 sps:$4 sm:$0xff]   ;;  %v8108_v6 = vld [vmem:[%s8892_s11 + $0x3a0] ss:$16 sps:$4 sm:$0xff]  }
  0x51   : > { %3516 = vmatprep.subr.bf16.mxu0 %v8024_v7  ;;  %3844 = vmatprep.subr.bf16.mxu1 %v8026_v8  ;;  %v8111_v7 = vld [vmem:[%s8892_s11 + $0x3a8] ss:$16 sps:$4 sm:$0xff]   ;;  %v8116_v8 = vld [vmem:[%s8892_s11 + $0x3c4] ss:$16 sps:$4 sm:$0xff]  }
  0x54   : > { %3517 = vmatpush1.bf16.msra.mxu0 %v8028_v9  ;;  %3845 = vmatpush1.bf16.msra.mxu1 %v8029_v10  ;;  %v8119_v9 = vld [vmem:[%s8892_s11 + $0x3cc] ss:$16 sps:$4 sm:$0xff]   ;;  %v812_v10 = vcombine.high %v8947_v53, %v8947_v53  ;;  %v8123_v53 = vld [vmem:[%s8892_s11 + $0x3e8] ss:$16 sps:$4 sm:$0xff]  }
  0x55   : > { %3527 = vmatprep.subr.bf16.mxu0 %v8032_v11  ;;  %3855 = vmatprep.subr.bf16.mxu1 %v8035_v12  ;;  %v8114_v11 = vld [vmem:[%s8892_s11 + $0x3c0] ss:$16 sps:$4 sm:$0xff]   ;;  %v8117_v12 = vld [vmem:[%s8892_s11 + $0x3c8] ss:$16 sps:$4 sm:$0xff]  }
  0x57   : > { %3519 = vmatmul.mubr.bf16.vlgmr.msra.gmra.mrb[0].mxu0 %v8974_v14  ;;  %3847 = vmatmul.mubr.bf16.vlgmr.msra.gmra.mrb[0].mxu1 %v8974_v14 }
  0x58   : > { %3528 = vmatpush1.bf16.msra.mxu0 %v8030_v13  ;;  %3856 = vmatpush1.bf16.msra.mxu1 %v8033_v15  ;;  %v8122_v13 = vld [vmem:[%s8892_s11 + $0x3e4] ss:$16 sps:$4 sm:$0xff]   ;;  %v8125_v15 = vld [vmem:[%s8892_s11 + $0x3ec] ss:$16 sps:$4 sm:$0xff]  }
  0x59   : > { %3529 = vmatprep.subr.bf16.mxu0 %v8038_v16  ;;  %3857 = vmatprep.subr.bf16.mxu1 %v8041_v17  ;;  %v9040_v16 = vrot.slane %v812_v10, %v8942_v50  ;;  %v8120_v17 = vld [vmem:[%s8892_s11 + $0x3e0] ss:$16 sps:$4 sm:$0xff]   ;;  %v8201_v10 = vld [vmem:[%s8892_s11 + $0x588] ss:$16 sps:$4 sm:$0xff]  }
  0x5a   : > { %3559 = vmatprep.mubr.bf16.mxu0 %v859_v18  ;;  %3887 = vmatprep.mubr.bf16.mxu1 %v859_v18  ;;  %v8128_v18 = vld [vmem:[%s8892_s11 + $0x404] ss:$16 sps:$4 sm:$0xff]  }
  0x5c   : > { %3530 = vmatpush1.bf16.msra.mxu0 %v8036_v19  ;;  %3858 = vmatpush1.bf16.msra.mxu1 %v8039_v20  ;;  %v8131_v19 = vld [vmem:[%s8892_s11 + $0x40c] ss:$16 sps:$4 sm:$0xff]   ;;  %v828_v20 = vcombine.high %v9040_v16, %v9040_v16 }
  0x5d   : > { %3531 = vmatprep.subr.bf16.mxu0 %v8044_v21  ;;  %3859 = vmatprep.subr.bf16.mxu1 %v8047_v22  ;;  %v8126_v21 = vld [vmem:[%s8892_s11 + $0x400] ss:$16 sps:$4 sm:$0xff]   ;;  %v857_v22 = vcombine.high %v8974_v14, %v8974_v14  ;;  %v8135_v14 = vld [vmem:[%s8892_s11 + $0x428] ss:$16 sps:$4 sm:$0xff]  }
  0x60   : > { %3532 = vmatpush1.bf16.msra.mxu0 %v8042_v23  ;;  %3860 = vmatpush1.bf16.msra.mxu1 %v8045_v24  ;;  %v8129_v23 = vld [vmem:[%s8892_s11 + $0x408] ss:$16 sps:$4 sm:$0xff]   ;;  %v8134_v24 = vld [vmem:[%s8892_s11 + $0x424] ss:$16 sps:$4 sm:$0xff]  }
  0x61   : > { %3533 = vmatprep.subr.bf16.mxu0 %v8050_v25  ;;  %3861 = vmatprep.subr.bf16.mxu1 %v8053_v26  ;;  %v8137_v25 = vld [vmem:[%s8892_s11 + $0x42c] ss:$16 sps:$4 sm:$0xff]   ;;  %v9055_v26 = vrot.slane %v828_v20, %v8942_v50  ;;  %v8218_v20 = vld [vmem:[%s8892_s11 + $0x5e4] ss:$16 sps:$4 sm:$0xff]  }
  0x64   : > { %3534 = vmatpush1.bf16.msra.mxu0 %v8048_v27  ;;  %3862 = vmatpush1.bf16.msra.mxu1 %v8051_v28  ;;  %v8132_v27 = vld [vmem:[%s8892_s11 + $0x420] ss:$16 sps:$4 sm:$0xff]   ;;  %v8140_v28 = vld [vmem:[%s8892_s11 + $0x444] ss:$16 sps:$4 sm:$0xff]  }
  0x65   : > { %3535 = vmatprep.subr.bf16.mxu0 %v8056_v29  ;;  %3863 = vmatprep.subr.bf16.mxu1 %v8059_v30  ;;  %v8143_v29 = vld [vmem:[%s8892_s11 + $0x44c] ss:$16 sps:$4 sm:$0xff]   ;;  %v8138_v30 = vld [vmem:[%s8892_s11 + $0x440] ss:$16 sps:$4 sm:$0xff]  }
  0x68   : > { %3536 = vmatpush1.bf16.msra.mxu0 %v8054_v31  ;;  %3864 = vmatpush1.bf16.msra.mxu1 %v8057_v32  ;;  %v8141_v31 = vld [vmem:[%s8892_s11 + $0x448] ss:$16 sps:$4 sm:$0xff]   ;;  %v8146_v32 = vld [vmem:[%s8892_s11 + $0x464] ss:$16 sps:$4 sm:$0xff]  }
  0x69   : > { %3537 = vmatprep.subr.bf16.mxu0 %v8062_v33  ;;  %3865 = vmatprep.subr.bf16.mxu1 %v8065_v34  ;;  %v8149_v33 = vld [vmem:[%s8892_s11 + $0x46c] ss:$16 sps:$4 sm:$0xff]   ;;  %v8144_v34 = vld [vmem:[%s8892_s11 + $0x460] ss:$16 sps:$4 sm:$0xff]  }
  0x6c   : > { %3538 = vmatpush1.bf16.msra.mxu0 %v8060_v35  ;;  %3866 = vmatpush1.bf16.msra.mxu1 %v8063_v36  ;;  %v8147_v35 = vld [vmem:[%s8892_s11 + $0x468] ss:$16 sps:$4 sm:$0xff]   ;;  %v8152_v36 = vld [vmem:[%s8892_s11 + $0x484] ss:$16 sps:$4 sm:$0xff]  }
  0x6d   : > { %3539 = vmatprep.subr.bf16.mxu0 %v8068_v37  ;;  %3867 = vmatprep.subr.bf16.mxu1 %v8071_v38  ;;  %v8155_v37 = vld [vmem:[%s8892_s11 + $0x48c] ss:$16 sps:$4 sm:$0xff]   ;;  %v8150_v38 = vld [vmem:[%s8892_s11 + $0x480] ss:$16 sps:$4 sm:$0xff]  }
  0x70   : > { %3540 = vmatpush1.bf16.msra.mxu0 %v8066_v39  ;;  %3868 = vmatpush1.bf16.msra.mxu1 %v8069_v40  ;;  %v8153_v39 = vld [vmem:[%s8892_s11 + $0x488] ss:$16 sps:$4 sm:$0xff]   ;;  %v8158_v40 = vld [vmem:[%s8892_s11 + $0x4a4] ss:$16 sps:$4 sm:$0xff]  }
  0x71   : > { %3541 = vmatprep.subr.bf16.mxu0 %v8074_v41  ;;  %3869 = vmatprep.subr.bf16.mxu1 %v8077_v42  ;;  %v8161_v41 = vld [vmem:[%s8892_s11 + $0x4ac] ss:$16 sps:$4 sm:$0xff]   ;;  %v8156_v42 = vld [vmem:[%s8892_s11 + $0x4a0] ss:$16 sps:$4 sm:$0xff]  }
  0x74   : > { %3542 = vmatpush1.bf16.msra.mxu0 %v8072_v43  ;;  %3870 = vmatpush1.bf16.msra.mxu1 %v8075_v45  ;;  %v8159_v43 = vld [vmem:[%s8892_s11 + $0x4a8] ss:$16 sps:$4 sm:$0xff]   ;;  %v8164_v45 = vld [vmem:[%s8892_s11 + $0x4c4] ss:$16 sps:$4 sm:$0xff]  }
  0x75   : > { %3543 = vmatprep.subr.bf16.mxu0 %v8080_v46  ;;  %3871 = vmatprep.subr.bf16.mxu1 %v8083_v47  ;;  %v8167_v46 = vld [vmem:[%s8892_s11 + $0x4cc] ss:$16 sps:$4 sm:$0xff]   ;;  %v8162_v47 = vld [vmem:[%s8892_s11 + $0x4c0] ss:$16 sps:$4 sm:$0xff]  }
  0x78   : > { %3544 = vmatpush1.bf16.msra.mxu0 %v8078_v48  ;;  %3872 = vmatpush1.bf16.msra.mxu1 %v8081_v49  ;;  %v8165_v48 = vld [vmem:[%s8892_s11 + $0x4c8] ss:$16 sps:$4 sm:$0xff]   ;;  %v8170_v49 = vld [vmem:[%s8892_s11 + $0x4e4] ss:$16 sps:$4 sm:$0xff]  }
  0x79   : > { %3545 = vmatprep.subr.bf16.mxu0 %v8086_v51  ;;  %3873 = vmatprep.subr.bf16.mxu1 %v8089_v52  ;;  %v8173_v51 = vld [vmem:[%s8892_s11 + $0x4ec] ss:$16 sps:$4 sm:$0xff]   ;;  %v8168_v52 = vld [vmem:[%s8892_s11 + $0x4e0] ss:$16 sps:$4 sm:$0xff]  }
  0x7c   : > { %3546 = vmatpush1.bf16.msra.mxu0 %v8084_v54  ;;  %3874 = vmatpush1.bf16.msra.mxu1 %v8087_v55  ;;  %v8171_v54 = vld [vmem:[%s8892_s11 + $0x4e8] ss:$16 sps:$4 sm:$0xff]   ;;  %v8176_v55 = vld [vmem:[%s8892_s11 + $0x504] ss:$16 sps:$4 sm:$0xff]  }
  0x7d   : > { %3547 = vmatprep.subr.bf16.mxu0 %v8092_v56  ;;  %3875 = vmatprep.subr.bf16.mxu1 %v8095_v57  ;;  %v8179_v56 = vld [vmem:[%s8892_s11 + $0x50c] ss:$16 sps:$4 sm:$0xff]   ;;  %v8174_v57 = vld [vmem:[%s8892_s11 + $0x500] ss:$16 sps:$4 sm:$0xff]  }
  0x80   : > { %3548 = vmatpush1.bf16.msra.mxu0 %v8090_v58  ;;  %3876 = vmatpush1.bf16.msra.mxu1 %v8093_v59  ;;  %v8177_v58 = vld [vmem:[%s8892_s11 + $0x508] ss:$16 sps:$4 sm:$0xff]   ;;  %v8182_v59 = vld [vmem:[%s8892_s11 + $0x524] ss:$16 sps:$4 sm:$0xff]  }
  0x81   : > { %3549 = vmatprep.subr.bf16.mxu0 %v8098_v60  ;;  %3877 = vmatprep.subr.bf16.mxu1 %v8101_v61  ;;  %v8185_v60 = vld [vmem:[%s8892_s11 + $0x52c] ss:$16 sps:$4 sm:$0xff]   ;;  %v8180_v61 = vld [vmem:[%s8892_s11 + $0x520] ss:$16 sps:$4 sm:$0xff]  }
  0x84   : > { %3550 = vmatpush1.bf16.msra.mxu0 %v8096_v62  ;;  %3878 = vmatpush1.bf16.msra.mxu1 %v8099_v63  ;;  %v8183_v62 = vld [vmem:[%s8892_s11 + $0x528] ss:$16 sps:$4 sm:$0xff]   ;;  %v8188_v63 = vld [vmem:[%s8892_s11 + $0x544] ss:$16 sps:$4 sm:$0xff]  }
  0x85   : > { %3551 = vmatprep.subr.bf16.mxu0 %v8104_v0  ;;  %3879 = vmatprep.subr.bf16.mxu1 %v8107_v1  ;;  %v8191_v0 = vld [vmem:[%s8892_s11 + $0x54c] ss:$16 sps:$4 sm:$0xff]   ;;  %v8186_v1 = vld [vmem:[%s8892_s11 + $0x540] ss:$16 sps:$4 sm:$0xff]  }
  0x88   : > { %3552 = vmatpush1.bf16.msra.mxu0 %v8102_v2  ;;  %3880 = vmatpush1.bf16.msra.mxu1 %v8105_v3  ;;  %v8189_v2 = vld [vmem:[%s8892_s11 + $0x548] ss:$16 sps:$4 sm:$0xff]   ;;  %v8194_v3 = vld [vmem:[%s8892_s11 + $0x564] ss:$16 sps:$4 sm:$0xff]  }
  0x89   : > { %3553 = vmatprep.subr.bf16.mxu0 %v8110_v4  ;;  %3881 = vmatprep.subr.bf16.mxu1 %v8113_v5  ;;  %v8197_v4 = vld [vmem:[%s8892_s11 + $0x56c] ss:$16 sps:$4 sm:$0xff]   ;;  %v8192_v5 = vld [vmem:[%s8892_s11 + $0x560] ss:$16 sps:$4 sm:$0xff]  }
  0x8c   : > { %3554 = vmatpush1.bf16.msra.mxu0 %v8108_v6  ;;  %3882 = vmatpush1.bf16.msra.mxu1 %v8111_v7  ;;  %v8195_v6 = vld [vmem:[%s8892_s11 + $0x568] ss:$16 sps:$4 sm:$0xff]   ;;  %v8200_v7 = vld [vmem:[%s8892_s11 + $0x584] ss:$16 sps:$4 sm:$0xff]  }
  0x8d   : > { %3555 = vmatprep.subr.bf16.mxu0 %v8116_v8  ;;  %3883 = vmatprep.subr.bf16.mxu1 %v8119_v9  ;;  %v8203_v8 = vld [vmem:[%s8892_s11 + $0x58c] ss:$16 sps:$4 sm:$0xff]   ;;  %v8198_v9 = vld [vmem:[%s8892_s11 + $0x580] ss:$16 sps:$4 sm:$0xff]  }
  0x90   : > { %3556 = vmatpush1.bf16.msra.mxu0 %v8114_v11  ;;  %3884 = vmatpush1.bf16.msra.mxu1 %v8117_v12  ;;  %v8206_v11 = vld [vmem:[%s8892_s11 + $0x5a4] ss:$16 sps:$4 sm:$0xff]   ;;  %v8209_v12 = vld [vmem:[%s8892_s11 + $0x5ac] ss:$16 sps:$4 sm:$0xff]  }
  0x91   : > { %3557 = vmatprep.subr.bf16.mxu0 %v8122_v13  ;;  %3885 = vmatprep.subr.bf16.mxu1 %v8125_v15  ;;  %v8204_v13 = vld [vmem:[%s8892_s11 + $0x5a0] ss:$16 sps:$4 sm:$0xff]   ;;  %v8207_v15 = vld [vmem:[%s8892_s11 + $0x5a8] ss:$16 sps:$4 sm:$0xff]  }
  0x94   : > { %3558 = vmatpush1.bf16.msra.mxu0 %v8120_v17  ;;  %3886 = vmatpush1.bf16.msra.mxu1 %v8123_v53  ;;  %v8212_v17 = vld [vmem:[%s8892_s11 + $0x5c4] ss:$16 sps:$4 sm:$0xff]   ;;  %v8215_v53 = vld [vmem:[%s8892_s11 + $0x5cc] ss:$16 sps:$4 sm:$0xff]  }
  0x95   : > { %3568 = vmatprep.subr.bf16.mxu0 %v8128_v18  ;;  %3896 = vmatprep.subr.bf16.mxu1 %v8131_v19  ;;  %v8210_v18 = vld [vmem:[%s8892_s11 + $0x5c0] ss:$16 sps:$4 sm:$0xff]   ;;  %v8213_v19 = vld [vmem:[%s8892_s11 + $0x5c8] ss:$16 sps:$4 sm:$0xff]  }
  0x97   : > { %3560 = vmatmul.mubr.bf16.vlgmr.msra.gmra.mrb[0].mxu0 %v857_v22  ;;  %3888 = vmatmul.mubr.bf16.vlgmr.msra.gmra.mrb[0].mxu1 %v857_v22  ;;  %v8216_v22 = vld [vmem:[%s8892_s11 + $0x5e0] ss:$16 sps:$4 sm:$0xff]  }
  0x98   : > { %3569 = vmatpush1.bf16.msra.mxu0 %v8126_v21  ;;  %3897 = vmatpush1.bf16.msra.mxu1 %v8129_v23  ;;  %v8221_v21 = vld [vmem:[%s8892_s11 + $0x5ec] ss:$16 sps:$4 sm:$0xff]   ;;  %v8219_v23 = vld [vmem:[%s8892_s11 + $0x5e8] ss:$16 sps:$4 sm:$0xff]  }
  0x99   : > { %3570 = vmatprep.subr.bf16.mxu0 %v8134_v24  ;;  %3898 = vmatprep.subr.bf16.mxu1 %v8137_v25  ;;  %v8225_v24 = vld [vmem:[%s8892_s11 + $0x604] ss:$16 sps:$4 sm:$0xff]   ;;  %v8228_v25 = vld [vmem:[%s8892_s11 + $0x60c] ss:$16 sps:$4 sm:$0xff]  }
  0x9a   : > { %3600 = vmatprep.mubr.bf16.mxu0 %v9055_v26  ;;  %3928 = vmatprep.mubr.bf16.mxu1 %v9055_v26 }
  0x9c   : > { %3571 = vmatpush1.bf16.msra.mxu0 %v8132_v27  ;;  %3899 = vmatpush1.bf16.msra.mxu1 %v8135_v14  ;;  %v8223_v27 = vld [vmem:[%s8892_s11 + $0x600] ss:$16 sps:$4 sm:$0xff]   ;;  %v9122_v14 = vrot.slane %v9040_v16, %v8942_v50 }
  0x9d   : > { %3572 = vmatprep.subr.bf16.mxu0 %v8140_v28  ;;  %3900 = vmatprep.subr.bf16.mxu1 %v8143_v29  ;;  %v8226_v28 = vld [vmem:[%s8892_s11 + $0x608] ss:$16 sps:$4 sm:$0xff]   ;;  %v8231_v29 = vld [vmem:[%s8892_s11 + $0x624] ss:$16 sps:$4 sm:$0xff]   ;;  %v8229_v16 = vld [vmem:[%s8892_s11 + $0x620] ss:$16 sps:$4 sm:$0xff]  }
  0xa0   : > { %3573 = vmatpush1.bf16.msra.mxu0 %v8138_v30  ;;  %3901 = vmatpush1.bf16.msra.mxu1 %v8141_v31  ;;  %v8234_v30 = vld [vmem:[%s8892_s11 + $0x62c] ss:$16 sps:$4 sm:$0xff]   ;;  %v860_v31 = vcombine.high %v9055_v26, %v9055_v26  ;;  %v8235_v26 = vld [vmem:[%s8892_s11 + $0x640] ss:$16 sps:$4 sm:$0xff]  }
  0xa1   : > { %3574 = vmatprep.subr.bf16.mxu0 %v8146_v32  ;;  %3902 = vmatprep.subr.bf16.mxu1 %v8149_v33  ;;  %v8232_v32 = vld [vmem:[%s8892_s11 + $0x628] ss:$16 sps:$4 sm:$0xff]   ;;  %v8237_v33 = vld [vmem:[%s8892_s11 + $0x644] ss:$16 sps:$4 sm:$0xff]  }
  0xa4   : > { %3575 = vmatpush1.bf16.msra.mxu0 %v8144_v34  ;;  %3903 = vmatpush1.bf16.msra.mxu1 %v8147_v35  ;;  %v8240_v34 = vld [vmem:[%s8892_s11 + $0x64c] ss:$16 sps:$4 sm:$0xff]   ;;  %v8238_v35 = vld [vmem:[%s8892_s11 + $0x648] ss:$16 sps:$4 sm:$0xff]  }
  0xa5   : > { %3576 = vmatprep.subr.bf16.mxu0 %v8152_v36  ;;  %3904 = vmatprep.subr.bf16.mxu1 %v8155_v37  ;;  %v8243_v36 = vld [vmem:[%s8892_s11 + $0x664] ss:$16 sps:$4 sm:$0xff]   ;;  %v8246_v37 = vld [vmem:[%s8892_s11 + $0x66c] ss:$16 sps:$4 sm:$0xff]  }
  0xa8   : > { %3577 = vmatpush1.bf16.msra.mxu0 %v8150_v38  ;;  %3905 = vmatpush1.bf16.msra.mxu1 %v8153_v39  ;;  %v8241_v38 = vld [vmem:[%s8892_s11 + $0x660] ss:$16 sps:$4 sm:$0xff]   ;;  %v8244_v39 = vld [vmem:[%s8892_s11 + $0x668] ss:$16 sps:$4 sm:$0xff]  }
  0xa9   : > { %3578 = vmatprep.subr.bf16.mxu0 %v8158_v40  ;;  %3906 = vmatprep.subr.bf16.mxu1 %v8161_v41  ;;  %v8249_v40 = vld [vmem:[%s8892_s11 + $0x684] ss:$16 sps:$4 sm:$0xff]   ;;  %v8252_v41 = vld [vmem:[%s8892_s11 + $0x68c] ss:$16 sps:$4 sm:$0xff]  }
  0xac   : > { %3579 = vmatpush1.bf16.msra.mxu0 %v8156_v42  ;;  %3907 = vmatpush1.bf16.msra.mxu1 %v8159_v43  ;;  %v8247_v42 = vld [vmem:[%s8892_s11 + $0x680] ss:$16 sps:$4 sm:$0xff]   ;;  %v8250_v43 = vld [vmem:[%s8892_s11 + $0x688] ss:$16 sps:$4 sm:$0xff]  }
  0xad   : > { %3580 = vmatprep.subr.bf16.mxu0 %v8164_v45  ;;  %3908 = vmatprep.subr.bf16.mxu1 %v8167_v46  ;;  %v8255_v45 = vld [vmem:[%s8892_s11 + $0x6a4] ss:$16 sps:$4 sm:$0xff]   ;;  %v8258_v46 = vld [vmem:[%s8892_s11 + $0x6ac] ss:$16 sps:$4 sm:$0xff]  }
  0xb0   : > { %3581 = vmatpush1.bf16.msra.mxu0 %v8162_v47  ;;  %3909 = vmatpush1.bf16.msra.mxu1 %v8165_v48  ;;  %v8253_v47 = vld [vmem:[%s8892_s11 + $0x6a0] ss:$16 sps:$4 sm:$0xff]   ;;  %v8256_v48 = vld [vmem:[%s8892_s11 + $0x6a8] ss:$16 sps:$4 sm:$0xff]  }
  0xb1   : > { %3582 = vmatprep.subr.bf16.mxu0 %v8170_v49  ;;  %3910 = vmatprep.subr.bf16.mxu1 %v8173_v51  ;;  %v8261_v49 = vld [vmem:[%s8892_s11 + $0x6c4] ss:$16 sps:$4 sm:$0xff]   ;;  %v8264_v51 = vld [vmem:[%s8892_s11 + $0x6cc] ss:$16 sps:$4 sm:$0xff]  }
  0xb4   : > { %3583 = vmatpush1.bf16.msra.mxu0 %v8168_v52  ;;  %3911 = vmatpush1.bf16.msra.mxu1 %v8171_v54  ;;  %v8259_v52 = vld [vmem:[%s8892_s11 + $0x6c0] ss:$16 sps:$4 sm:$0xff]   ;;  %v8262_v54 = vld [vmem:[%s8892_s11 + $0x6c8] ss:$16 sps:$4 sm:$0xff]  }
  0xb5   : > { %3584 = vmatprep.subr.bf16.mxu0 %v8176_v55  ;;  %3912 = vmatprep.subr.bf16.mxu1 %v8179_v56  ;;  %v8267_v55 = vld [vmem:[%s8892_s11 + $0x6e4] ss:$16 sps:$4 sm:$0xff]   ;;  %v8270_v56 = vld [vmem:[%s8892_s11 + $0x6ec] ss:$16 sps:$4 sm:$0xff]  }
  0xb8   : > { %3585 = vmatpush1.bf16.msra.mxu0 %v8174_v57  ;;  %3913 = vmatpush1.bf16.msra.mxu1 %v8177_v58  ;;  %v8265_v57 = vld [vmem:[%s8892_s11 + $0x6e0] ss:$16 sps:$4 sm:$0xff]   ;;  %v8268_v58 = vld [vmem:[%s8892_s11 + $0x6e8] ss:$16 sps:$4 sm:$0xff]  }
  0xb9   : > { %3586 = vmatprep.subr.bf16.mxu0 %v8182_v59  ;;  %3914 = vmatprep.subr.bf16.mxu1 %v8185_v60  ;;  %v8273_v59 = vld [vmem:[%s8892_s11 + $0x704] ss:$16 sps:$4 sm:$0xff]   ;;  %v8276_v60 = vld [vmem:[%s8892_s11 + $0x70c] ss:$16 sps:$4 sm:$0xff]  }
  0xbc   : > { %3587 = vmatpush1.bf16.msra.mxu0 %v8180_v61  ;;  %3915 = vmatpush1.bf16.msra.mxu1 %v8183_v62  ;;  %v8271_v61 = vld [vmem:[%s8892_s11 + $0x700] ss:$16 sps:$4 sm:$0xff]   ;;  %v8274_v62 = vld [vmem:[%s8892_s11 + $0x708] ss:$16 sps:$4 sm:$0xff]  }
  0xbd   : > { %3588 = vmatprep.subr.bf16.mxu0 %v8188_v63  ;;  %3916 = vmatprep.subr.bf16.mxu1 %v8191_v0  ;;  %v8279_v63 = vld [vmem:[%s8892_s11 + $0x724] ss:$16 sps:$4 sm:$0xff]   ;;  %v8282_v0 = vld [vmem:[%s8892_s11 + $0x72c] ss:$16 sps:$4 sm:$0xff]  }
  0xc0   : > { %3589 = vmatpush1.bf16.msra.mxu0 %v8186_v1  ;;  %3917 = vmatpush1.bf16.msra.mxu1 %v8189_v2  ;;  %v8277_v1 = vld [vmem:[%s8892_s11 + $0x720] ss:$16 sps:$4 sm:$0xff]   ;;  %v8280_v2 = vld [vmem:[%s8892_s11 + $0x728] ss:$16 sps:$4 sm:$0xff]  }
  0xc1   : > { %3590 = vmatprep.subr.bf16.mxu0 %v8194_v3  ;;  %3918 = vmatprep.subr.bf16.mxu1 %v8197_v4  ;;  %v8285_v3 = vld [vmem:[%s8892_s11 + $0x744] ss:$16 sps:$4 sm:$0xff]   ;;  %v8288_v4 = vld [vmem:[%s8892_s11 + $0x74c] ss:$16 sps:$4 sm:$0xff]  }
  0xc4   : > { %3591 = vmatpush1.bf16.msra.mxu0 %v8192_v5  ;;  %3919 = vmatpush1.bf16.msra.mxu1 %v8195_v6  ;;  %v8283_v5 = vld [vmem:[%s8892_s11 + $0x740] ss:$16 sps:$4 sm:$0xff]   ;;  %v8286_v6 = vld [vmem:[%s8892_s11 + $0x748] ss:$16 sps:$4 sm:$0xff]  }
  0xc5   : > { %3592 = vmatprep.subr.bf16.mxu0 %v8200_v7  ;;  %3920 = vmatprep.subr.bf16.mxu1 %v8203_v8  ;;  %v8291_v7 = vld [vmem:[%s8892_s11 + $0x764] ss:$16 sps:$4 sm:$0xff]   ;;  %v8294_v8 = vld [vmem:[%s8892_s11 + $0x76c] ss:$16 sps:$4 sm:$0xff]  }
  0xc8   : > { %3593 = vmatpush1.bf16.msra.mxu0 %v8198_v9  ;;  %3921 = vmatpush1.bf16.msra.mxu1 %v8201_v10  ;;  %v8289_v9 = vld [vmem:[%s8892_s11 + $0x760] ss:$16 sps:$4 sm:$0xff]   ;;  %v8292_v10 = vld [vmem:[%s8892_s11 + $0x768] ss:$16 sps:$4 sm:$0xff]  }
  0xc9   : > { %3594 = vmatprep.subr.bf16.mxu0 %v8206_v11  ;;  %3922 = vmatprep.subr.bf16.mxu1 %v8209_v12  ;;  %v8297_v11 = vld [vmem:[%s8892_s11 + $0x784] ss:$16 sps:$4 sm:$0xff]   ;;  %v8300_v12 = vld [vmem:[%s8892_s11 + $0x78c] ss:$16 sps:$4 sm:$0xff]  }
  0xcc   : > { %3595 = vmatpush1.bf16.msra.mxu0 %v8204_v13  ;;  %3923 = vmatpush1.bf16.msra.mxu1 %v8207_v15  ;;  %v8295_v13 = vld [vmem:[%s8892_s11 + $0x780] ss:$16 sps:$4 sm:$0xff]   ;;  %v8298_v15 = vld [vmem:[%s8892_s11 + $0x788] ss:$16 sps:$4 sm:$0xff]  }
  0xcd   : > { %3596 = vmatprep.subr.bf16.mxu0 %v8212_v17  ;;  %3924 = vmatprep.subr.bf16.mxu1 %v8215_v53  ;;  %v8303_v17 = vld [vmem:[%s8892_s11 + $0x7a4] ss:$16 sps:$4 sm:$0xff]   ;;  %v8306_v53 = vld [vmem:[%s8892_s11 + $0x7ac] ss:$16 sps:$4 sm:$0xff]  }
  0xd0   : > { %3597 = vmatpush1.bf16.msra.mxu0 %v8210_v18  ;;  %3925 = vmatpush1.bf16.msra.mxu1 %v8213_v19  ;;  %v8301_v18 = vld [vmem:[%s8892_s11 + $0x7a0] ss:$16 sps:$4 sm:$0xff]   ;;  %v8304_v19 = vld [vmem:[%s8892_s11 + $0x7a8] ss:$16 sps:$4 sm:$0xff]  }
  0xd1   : > { %3598 = vmatprep.subr.bf16.mxu0 %v8218_v20  ;;  %3926 = vmatprep.subr.bf16.mxu1 %v8221_v21  ;;  %v8309_v20 = vld [vmem:[%s8892_s11 + $0x7c4] ss:$16 sps:$4 sm:$0xff]   ;;  %v8312_v21 = vld [vmem:[%s8892_s11 + $0x7cc] ss:$16 sps:$4 sm:$0xff]  }
  0xd4   : > { %3599 = vmatpush1.bf16.msra.mxu0 %v8216_v22  ;;  %3927 = vmatpush1.bf16.msra.mxu1 %v8219_v23  ;;  %v9184_v22 = vld [vmem:[%s8887_s30 + $0x8] sm:$0xff]  ;;  %v8307_v23 = vld [vmem:[%s8892_s11 + $0x7c0] ss:$16 sps:$4 sm:$0xff]  }
  0xd5   : > { %3609 = vmatprep.subr.bf16.mxu0 %v8225_v24  ;;  %3937 = vmatprep.subr.bf16.mxu1 %v8228_v25  ;;  %v8310_v24 = vld [vmem:[%s8892_s11 + $0x7c8] ss:$16 sps:$4 sm:$0xff]   ;;  %v8315_v25 = vld [vmem:[%s8892_s11 + $0x7e4] ss:$16 sps:$4 sm:$0xff]  }
  0xd7   : > { %3601 = vmatmul.mubr.bf16.vlgmr.msra.gmra.mrb[0].mxu0 %v9122_v14  ;;  %3929 = vmatmul.mubr.bf16.vlgmr.msra.gmra.mrb[0].mxu1 %v9122_v14 }
  0xd8   : > { %3610 = vmatpush1.bf16.msra.mxu0 %v8223_v27  ;;  %3938 = vmatpush1.bf16.msra.mxu1 %v8226_v28  ;;  %v8318_v27 = vld [vmem:[%s8892_s11 + $0x7ec] ss:$16 sps:$4 sm:$0xff]   ;;  %v9192_v28 = vrot.slane %v9184_v22, %v8942_v50 }
  0xd9   : > { %3611 = vmatprep.subr.bf16.mxu0 %v8231_v29  ;;  %3939 = vmatprep.subr.bf16.mxu1 %v8234_v30  ;;  %v8313_v29 = vld [vmem:[%s8892_s11 + $0x7e0] ss:$16 sps:$4 sm:$0xff]   ;;  %v8316_v30 = vld [vmem:[%s8892_s11 + $0x7e8] ss:$16 sps:$4 sm:$0xff]  }
  0xda   : > { %3641 = vmatprep.mubr.bf16.mxu0 %v860_v31  ;;  %3969 = vmatprep.mubr.bf16.mxu1 %v860_v31  ;;  %v8321_v31 = vld [vmem:[%s8892_s11 + $0x804] ss:$16 sps:$4 sm:$0xff]  }
  0xdc   : > { %3612 = vmatpush1.bf16.msra.mxu0 %v8229_v16  ;;  %3940 = vmatpush1.bf16.msra.mxu1 %v8232_v32  ;;  %v8324_v16 = vld [vmem:[%s8892_s11 + $0x80c] ss:$16 sps:$4 sm:$0xff]   ;;  %v876_v32 = vcombine.high %v9192_v28, %v9192_v28 }
  0xdd   : > { %3613 = vmatprep.subr.bf16.mxu0 %v8237_v33  ;;  %3941 = vmatprep.subr.bf16.mxu1 %v8240_v34  ;;  %v858_v33 = vcombine.high %v9122_v14, %v9122_v14  ;;  %v8319_v34 = vld [vmem:[%s8892_s11 + $0x800] ss:$16 sps:$4 sm:$0xff]  }
  0xde   : > { %v8325_v14 = vld [vmem:[%s8892_s11 + $0x820] ss:$16 sps:$4 sm:$0xff]  }
  0xe0   : > { %3614 = vmatpush1.bf16.msra.mxu0 %v8235_v26  ;;  %3942 = vmatpush1.bf16.msra.mxu1 %v8238_v35  ;;  %v8322_v26 = vld [vmem:[%s8892_s11 + $0x808] ss:$16 sps:$4 sm:$0xff]   ;;  %v8327_v35 = vld [vmem:[%s8892_s11 + $0x824] ss:$16 sps:$4 sm:$0xff]  }
  0xe1   : > { %3615 = vmatprep.subr.bf16.mxu0 %v8243_v36  ;;  %3943 = vmatprep.subr.bf16.mxu1 %v8246_v37  ;;  %v8330_v36 = vld [vmem:[%s8892_s11 + $0x82c] ss:$16 sps:$4 sm:$0xff]   ;;  %v9207_v37 = vrot.slane %v876_v32, %v8942_v50  ;;  %v8406_v32 = vld [vmem:[%s8892_s11 + $0x9c8] ss:$16 sps:$4 sm:$0xff]  }
  0xe4   : > { %3616 = vmatpush1.bf16.msra.mxu0 %v8241_v38  ;;  %3944 = vmatpush1.bf16.msra.mxu1 %v8244_v39  ;;  %v8328_v38 = vld [vmem:[%s8892_s11 + $0x828] ss:$16 sps:$4 sm:$0xff]   ;;  %v8333_v39 = vld [vmem:[%s8892_s11 + $0x844] ss:$16 sps:$4 sm:$0xff]  }
  0xe5   : > { %3617 = vmatprep.subr.bf16.mxu0 %v8249_v40  ;;  %3945 = vmatprep.subr.bf16.mxu1 %v8252_v41  ;;  %v8336_v40 = vld [vmem:[%s8892_s11 + $0x84c] ss:$16 sps:$4 sm:$0xff]   ;;  %v8331_v41 = vld [vmem:[%s8892_s11 + $0x840] ss:$16 sps:$4 sm:$0xff]  }
  0xe8   : > { %3618 = vmatpush1.bf16.msra.mxu0 %v8247_v42  ;;  %3946 = vmatpush1.bf16.msra.mxu1 %v8250_v43  ;;  %v8334_v42 = vld [vmem:[%s8892_s11 + $0x848] ss:$16 sps:$4 sm:$0xff]   ;;  %v8339_v43 = vld [vmem:[%s8892_s11 + $0x864] ss:$16 sps:$4 sm:$0xff]  }
  0xe9   : > { %3619 = vmatprep.subr.bf16.mxu0 %v8255_v45  ;;  %3947 = vmatprep.subr.bf16.mxu1 %v8258_v46  ;;  %v8342_v45 = vld [vmem:[%s8892_s11 + $0x86c] ss:$16 sps:$4 sm:$0xff]   ;;  %v8337_v46 = vld [vmem:[%s8892_s11 + $0x860] ss:$16 sps:$4 sm:$0xff]  }
  0xec   : > { %3620 = vmatpush1.bf16.msra.mxu0 %v8253_v47  ;;  %3948 = vmatpush1.bf16.msra.mxu1 %v8256_v48  ;;  %v8340_v47 = vld [vmem:[%s8892_s11 + $0x868] ss:$16 sps:$4 sm:$0xff]   ;;  %v8345_v48 = vld [vmem:[%s8892_s11 + $0x884] ss:$16 sps:$4 sm:$0xff]  }
  0xed   : > { %3621 = vmatprep.subr.bf16.mxu0 %v8261_v49  ;;  %3949 = vmatprep.subr.bf16.mxu1 %v8264_v51  ;;  %v8348_v49 = vld [vmem:[%s8892_s11 + $0x88c] ss:$16 sps:$4 sm:$0xff]   ;;  %v8343_v51 = vld [vmem:[%s8892_s11 + $0x880] ss:$16 sps:$4 sm:$0xff]  }
  0xf0   : > { %3622 = vmatpush1.bf16.msra.mxu0 %v8259_v52  ;;  %3950 = vmatpush1.bf16.msra.mxu1 %v8262_v54  ;;  %v8346_v52 = vld [vmem:[%s8892_s11 + $0x888] ss:$16 sps:$4 sm:$0xff]   ;;  %v8351_v54 = vld [vmem:[%s8892_s11 + $0x8a4] ss:$16 sps:$4 sm:$0xff]  }
  0xf1   : > { %3623 = vmatprep.subr.bf16.mxu0 %v8267_v55  ;;  %3951 = vmatprep.subr.bf16.mxu1 %v8270_v56  ;;  %v8354_v55 = vld [vmem:[%s8892_s11 + $0x8ac] ss:$16 sps:$4 sm:$0xff]   ;;  %v8349_v56 = vld [vmem:[%s8892_s11 + $0x8a0] ss:$16 sps:$4 sm:$0xff]  }
  0xf4   : > { %3624 = vmatpush1.bf16.msra.mxu0 %v8265_v57  ;;  %3952 = vmatpush1.bf16.msra.mxu1 %v8268_v58  ;;  %v8352_v57 = vld [vmem:[%s8892_s11 + $0x8a8] ss:$16 sps:$4 sm:$0xff]   ;;  %v8357_v58 = vld [vmem:[%s8892_s11 + $0x8c4] ss:$16 sps:$4 sm:$0xff]  }
  0xf5   : > { %3625 = vmatprep.subr.bf16.mxu0 %v8273_v59  ;;  %3953 = vmatprep.subr.bf16.mxu1 %v8276_v60  ;;  %v8360_v59 = vld [vmem:[%s8892_s11 + $0x8cc] ss:$16 sps:$4 sm:$0xff]   ;;  %v8355_v60 = vld [vmem:[%s8892_s11 + $0x8c0] ss:$16 sps:$4 sm:$0xff]  }
  0xf8   : > { %3626 = vmatpush1.bf16.msra.mxu0 %v8271_v61  ;;  %3954 = vmatpush1.bf16.msra.mxu1 %v8274_v62  ;;  %v8358_v61 = vld [vmem:[%s8892_s11 + $0x8c8] ss:$16 sps:$4 sm:$0xff]   ;;  %v8363_v62 = vld [vmem:[%s8892_s11 + $0x8e4] ss:$16 sps:$4 sm:$0xff]  }
  0xf9   : > { %3627 = vmatprep.subr.bf16.mxu0 %v8279_v63  ;;  %3955 = vmatprep.subr.bf16.mxu1 %v8282_v0  ;;  %v8366_v63 = vld [vmem:[%s8892_s11 + $0x8ec] ss:$16 sps:$4 sm:$0xff]   ;;  %v8361_v0 = vld [vmem:[%s8892_s11 + $0x8e0] ss:$16 sps:$4 sm:$0xff]  }
  0xfc   : > { %3628 = vmatpush1.bf16.msra.mxu0 %v8277_v1  ;;  %3956 = vmatpush1.bf16.msra.mxu1 %v8280_v2  ;;  %v8364_v1 = vld [vmem:[%s8892_s11 + $0x8e8] ss:$16 sps:$4 sm:$0xff]   ;;  %v8369_v2 = vld [vmem:[%s8892_s11 + $0x904] ss:$16 sps:$4 sm:$0xff]  }
  0xfd   : > { %3629 = vmatprep.subr.bf16.mxu0 %v8285_v3  ;;  %3957 = vmatprep.subr.bf16.mxu1 %v8288_v4  ;;  %v8372_v3 = vld [vmem:[%s8892_s11 + $0x90c] ss:$16 sps:$4 sm:$0xff]   ;;  %v8367_v4 = vld [vmem:[%s8892_s11 + $0x900] ss:$16 sps:$4 sm:$0xff]  }
 0x100   : > { %3630 = vmatpush1.bf16.msra.mxu0 %v8283_v5  ;;  %3958 = vmatpush1.bf16.msra.mxu1 %v8286_v6  ;;  %v8370_v5 = vld [vmem:[%s8892_s11 + $0x908] ss:$16 sps:$4 sm:$0xff]   ;;  %v8375_v6 = vld [vmem:[%s8892_s11 + $0x924] ss:$16 sps:$4 sm:$0xff]  }
 0x101   : > { %3631 = vmatprep.subr.bf16.mxu0 %v8291_v7  ;;  %3959 = vmatprep.subr.bf16.mxu1 %v8294_v8  ;;  %v8378_v7 = vld [vmem:[%s8892_s11 + $0x92c] ss:$16 sps:$4 sm:$0xff]   ;;  %v8373_v8 = vld [vmem:[%s8892_s11 + $0x920] ss:$16 sps:$4 sm:$0xff]  }
 0x104   : > { %3632 = vmatpush1.bf16.msra.mxu0 %v8289_v9  ;;  %3960 = vmatpush1.bf16.msra.mxu1 %v8292_v10  ;;  %v8376_v9 = vld [vmem:[%s8892_s11 + $0x928] ss:$16 sps:$4 sm:$0xff]   ;;  %v8381_v10 = vld [vmem:[%s8892_s11 + $0x944] ss:$16 sps:$4 sm:$0xff]  }
 0x105   : > { %3633 = vmatprep.subr.bf16.mxu0 %v8297_v11  ;;  %3961 = vmatprep.subr.bf16.mxu1 %v8300_v12  ;;  %v8384_v11 = vld [vmem:[%s8892_s11 + $0x94c] ss:$16 sps:$4 sm:$0xff]   ;;  %v8379_v12 = vld [vmem:[%s8892_s11 + $0x940] ss:$16 sps:$4 sm:$0xff]  }
 0x108   : > { %3634 = vmatpush1.bf16.msra.mxu0 %v8295_v13  ;;  %3962 = vmatpush1.bf16.msra.mxu1 %v8298_v15  ;;  %v8382_v13 = vld [vmem:[%s8892_s11 + $0x948] ss:$16 sps:$4 sm:$0xff]   ;;  %v8387_v15 = vld [vmem:[%s8892_s11 + $0x964] ss:$16 sps:$4 sm:$0xff]  }
 0x109   : > { %3635 = vmatprep.subr.bf16.mxu0 %v8303_v17  ;;  %3963 = vmatprep.subr.bf16.mxu1 %v8306_v53  ;;  %v8390_v17 = vld [vmem:[%s8892_s11 + $0x96c] ss:$16 sps:$4 sm:$0xff]   ;;  %v8385_v53 = vld [vmem:[%s8892_s11 + $0x960] ss:$16 sps:$4 sm:$0xff]  }
 0x10c   : > { %3636 = vmatpush1.bf16.msra.mxu0 %v8301_v18  ;;  %3964 = vmatpush1.bf16.msra.mxu1 %v8304_v19  ;;  %v8388_v18 = vld [vmem:[%s8892_s11 + $0x968] ss:$16 sps:$4 sm:$0xff]   ;;  %v8393_v19 = vld [vmem:[%s8892_s11 + $0x984] ss:$16 sps:$4 sm:$0xff]  }
 0x10d   : > { %3637 = vmatprep.subr.bf16.mxu0 %v8309_v20  ;;  %3965 = vmatprep.subr.bf16.mxu1 %v8312_v21  ;;  %v8396_v20 = vld [vmem:[%s8892_s11 + $0x98c] ss:$16 sps:$4 sm:$0xff]   ;;  %v8391_v21 = vld [vmem:[%s8892_s11 + $0x980] ss:$16 sps:$4 sm:$0xff]  }
 0x110   : > { %3638 = vmatpush1.bf16.msra.mxu0 %v8307_v23  ;;  %3966 = vmatpush1.bf16.msra.mxu1 %v8310_v24  ;;  %v8394_v23 = vld [vmem:[%s8892_s11 + $0x988] ss:$16 sps:$4 sm:$0xff]   ;;  %v8399_v24 = vld [vmem:[%s8892_s11 + $0x9a4] ss:$16 sps:$4 sm:$0xff]  }
 0x111   : > { %3639 = vmatprep.subr.bf16.mxu0 %v8315_v25  ;;  %3967 = vmatprep.subr.bf16.mxu1 %v8318_v27  ;;  %v8402_v25 = vld [vmem:[%s8892_s11 + $0x9ac] ss:$16 sps:$4 sm:$0xff]   ;;  %v8397_v27 = vld [vmem:[%s8892_s11 + $0x9a0] ss:$16 sps:$4 sm:$0xff]  }
 0x114   : > { %3640 = vmatpush1.bf16.msra.mxu0 %v8313_v29  ;;  %3968 = vmatpush1.bf16.msra.mxu1 %v8316_v30  ;;  %v8400_v29 = vld [vmem:[%s8892_s11 + $0x9a8] ss:$16 sps:$4 sm:$0xff]   ;;  %v8405_v30 = vld [vmem:[%s8892_s11 + $0x9c4] ss:$16 sps:$4 sm:$0xff]  }
 0x115   : > { %3650 = vmatprep.subr.bf16.mxu0 %v8321_v31  ;;  %3978 = vmatprep.subr.bf16.mxu1 %v8324_v16  ;;  %v8408_v31 = vld [vmem:[%s8892_s11 + $0x9cc] ss:$16 sps:$4 sm:$0xff]   ;;  %v8403_v16 = vld [vmem:[%s8892_s11 + $0x9c0] ss:$16 sps:$4 sm:$0xff]  }
 0x117   : > { %3642 = vmatmul.mubr.bf16.vlgmr.msra.gmra.mrb[0].mxu0 %v858_v33  ;;  %3970 = vmatmul.mubr.bf16.vlgmr.msra.gmra.mrb[0].mxu1 %v858_v33  ;;  %v8411_v33 = vld [vmem:[%s8892_s11 + $0x9e4] ss:$16 sps:$4 sm:$0xff]  }
 0x118   : > { %3651 = vmatpush1.bf16.msra.mxu0 %v8319_v34  ;;  %3979 = vmatpush1.bf16.msra.mxu1 %v8322_v26  ;;  %v8414_v34 = vld [vmem:[%s8892_s11 + $0x9ec] ss:$16 sps:$4 sm:$0xff]   ;;  %v8409_v26 = vld [vmem:[%s8892_s11 + $0x9e0] ss:$16 sps:$4 sm:$0xff]  }
 0x119   : > { %3652 = vmatprep.subr.bf16.mxu0 %v8327_v35  ;;  %3980 = vmatprep.subr.bf16.mxu1 %v8330_v36  ;;  %v8412_v35 = vld [vmem:[%s8892_s11 + $0x9e8] ss:$16 sps:$4 sm:$0xff]   ;;  %v8417_v36 = vld [vmem:[%s8892_s11 + $0xa04] ss:$16 sps:$4 sm:$0xff]  }
 0x11a   : > { %3682 = vmatprep.mubr.bf16.mxu0 %v9207_v37  ;;  %4010 = vmatprep.mubr.bf16.mxu1 %v9207_v37 }
 0x11c   : > { %3653 = vmatpush1.bf16.msra.mxu0 %v8325_v14  ;;  %3981 = vmatpush1.bf16.msra.mxu1 %v8328_v38  ;;  %v8420_v14 = vld [vmem:[%s8892_s11 + $0xa0c] ss:$16 sps:$4 sm:$0xff]   ;;  %v9273_v38 = vrot.slane %v9192_v28, %v8942_v50  ;;  %v8421_v28 = vld [vmem:[%s8892_s11 + $0xa20] ss:$16 sps:$4 sm:$0xff]  }
 0x11d   : > { %3654 = vmatprep.subr.bf16.mxu0 %v8333_v39  ;;  %3982 = vmatprep.subr.bf16.mxu1 %v8336_v40  ;;  %v8415_v39 = vld [vmem:[%s8892_s11 + $0xa00] ss:$16 sps:$4 sm:$0xff]   ;;  %v8418_v40 = vld [vmem:[%s8892_s11 + $0xa08] ss:$16 sps:$4 sm:$0xff]  }
 0x120   : > { %3655 = vmatpush1.bf16.msra.mxu0 %v8331_v41  ;;  %3983 = vmatpush1.bf16.msra.mxu1 %v8334_v42  ;;  %v8423_v41 = vld [vmem:[%s8892_s11 + $0xa24] ss:$16 sps:$4 sm:$0xff]   ;;  %v8426_v42 = vld [vmem:[%s8892_s11 + $0xa2c] ss:$16 sps:$4 sm:$0xff]  }
 0x121   : > { %3656 = vmatprep.subr.bf16.mxu0 %v8339_v43  ;;  %3984 = vmatprep.subr.bf16.mxu1 %v8342_v45  ;;  %v908_v43 = vcombine.high %v9207_v37, %v9207_v37  ;;  %v8424_v45 = vld [vmem:[%s8892_s11 + $0xa28] ss:$16 sps:$4 sm:$0xff]   ;;  %v8427_v37 = vld [vmem:[%s8892_s11 + $0xa40] ss:$16 sps:$4 sm:$0xff]  }
 0x124   : > { %3657 = vmatpush1.bf16.msra.mxu0 %v8337_v46  ;;  %3985 = vmatpush1.bf16.msra.mxu1 %v8340_v47  ;;  %v8429_v46 = vld [vmem:[%s8892_s11 + $0xa44] ss:$16 sps:$4 sm:$0xff]   ;;  %v8432_v47 = vld [vmem:[%s8892_s11 + $0xa4c] ss:$16 sps:$4 sm:$0xff]  }
 0x125   : > { %3658 = vmatprep.subr.bf16.mxu0 %v8345_v48  ;;  %3986 = vmatprep.subr.bf16.mxu1 %v8348_v49  ;;  %v8430_v48 = vld [vmem:[%s8892_s11 + $0xa48] ss:$16 sps:$4 sm:$0xff]   ;;  %v8435_v49 = vld [vmem:[%s8892_s11 + $0xa64] ss:$16 sps:$4 sm:$0xff]  }
 0x128   : > { %3659 = vmatpush1.bf16.msra.mxu0 %v8343_v51  ;;  %3987 = vmatpush1.bf16.msra.mxu1 %v8346_v52  ;;  %v8438_v51 = vld [vmem:[%s8892_s11 + $0xa6c] ss:$16 sps:$4 sm:$0xff]   ;;  %v8433_v52 = vld [vmem:[%s8892_s11 + $0xa60] ss:$16 sps:$4 sm:$0xff]  }
 0x129   : > { %3660 = vmatprep.subr.bf16.mxu0 %v8351_v54  ;;  %3988 = vmatprep.subr.bf16.mxu1 %v8354_v55  ;;  %v8436_v54 = vld [vmem:[%s8892_s11 + $0xa68] ss:$16 sps:$4 sm:$0xff]   ;;  %v8441_v55 = vld [vmem:[%s8892_s11 + $0xa84] ss:$16 sps:$4 sm:$0xff]  }
 0x12c   : > { %3661 = vmatpush1.bf16.msra.mxu0 %v8349_v56  ;;  %3989 = vmatpush1.bf16.msra.mxu1 %v8352_v57  ;;  %v8444_v56 = vld [vmem:[%s8892_s11 + $0xa8c] ss:$16 sps:$4 sm:$0xff]   ;;  %v8439_v57 = vld [vmem:[%s8892_s11 + $0xa80] ss:$16 sps:$4 sm:$0xff]  }
 0x12d   : > { %3662 = vmatprep.subr.bf16.mxu0 %v8357_v58  ;;  %3990 = vmatprep.subr.bf16.mxu1 %v8360_v59  ;;  %v8442_v58 = vld [vmem:[%s8892_s11 + $0xa88] ss:$16 sps:$4 sm:$0xff]   ;;  %v8447_v59 = vld [vmem:[%s8892_s11 + $0xaa4] ss:$16 sps:$4 sm:$0xff]  }
 0x130   : > { %3663 = vmatpush1.bf16.msra.mxu0 %v8355_v60  ;;  %3991 = vmatpush1.bf16.msra.mxu1 %v8358_v61  ;;  %v8450_v60 = vld [vmem:[%s8892_s11 + $0xaac] ss:$16 sps:$4 sm:$0xff]   ;;  %v8445_v61 = vld [vmem:[%s8892_s11 + $0xaa0] ss:$16 sps:$4 sm:$0xff]  }
 0x131   : > { %3664 = vmatprep.subr.bf16.mxu0 %v8363_v62  ;;  %3992 = vmatprep.subr.bf16.mxu1 %v8366_v63  ;;  %v8448_v62 = vld [vmem:[%s8892_s11 + $0xaa8] ss:$16 sps:$4 sm:$0xff]   ;;  %v8453_v63 = vld [vmem:[%s8892_s11 + $0xac4] ss:$16 sps:$4 sm:$0xff]  }
 0x134   : > { %3665 = vmatpush1.bf16.msra.mxu0 %v8361_v0  ;;  %3993 = vmatpush1.bf16.msra.mxu1 %v8364_v1  ;;  %v8456_v0 = vld [vmem:[%s8892_s11 + $0xacc] ss:$16 sps:$4 sm:$0xff]   ;;  %v8451_v1 = vld [vmem:[%s8892_s11 + $0xac0] ss:$16 sps:$4 sm:$0xff]  }
 0x135   : > { %3666 = vmatprep.subr.bf16.mxu0 %v8369_v2  ;;  %3994 = vmatprep.subr.bf16.mxu1 %v8372_v3  ;;  %v8454_v2 = vld [vmem:[%s8892_s11 + $0xac8] ss:$16 sps:$4 sm:$0xff]   ;;  %v8459_v3 = vld [vmem:[%s8892_s11 + $0xae4] ss:$16 sps:$4 sm:$0xff]  }
 0x138   : > { %3667 = vmatpush1.bf16.msra.mxu0 %v8367_v4  ;;  %3995 = vmatpush1.bf16.msra.mxu1 %v8370_v5  ;;  %v8462_v4 = vld [vmem:[%s8892_s11 + $0xaec] ss:$16 sps:$4 sm:$0xff]   ;;  %v8457_v5 = vld [vmem:[%s8892_s11 + $0xae0] ss:$16 sps:$4 sm:$0xff]  }
 0x139   : > { %3668 = vmatprep.subr.bf16.mxu0 %v8375_v6  ;;  %3996 = vmatprep.subr.bf16.mxu1 %v8378_v7  ;;  %v8460_v6 = vld [vmem:[%s8892_s11 + $0xae8] ss:$16 sps:$4 sm:$0xff]   ;;  %v8465_v7 = vld [vmem:[%s8892_s11 + $0xb04] ss:$16 sps:$4 sm:$0xff]  }
 0x13c   : > { %3669 = vmatpush1.bf16.msra.mxu0 %v8373_v8  ;;  %3997 = vmatpush1.bf16.msra.mxu1 %v8376_v9  ;;  %v8468_v8 = vld [vmem:[%s8892_s11 + $0xb0c] ss:$16 sps:$4 sm:$0xff]   ;;  %v8463_v9 = vld [vmem:[%s8892_s11 + $0xb00] ss:$16 sps:$4 sm:$0xff]  }
 0x13d   : > { %3670 = vmatprep.subr.bf16.mxu0 %v8381_v10  ;;  %3998 = vmatprep.subr.bf16.mxu1 %v8384_v11  ;;  %v8466_v10 = vld [vmem:[%s8892_s11 + $0xb08] ss:$16 sps:$4 sm:$0xff]   ;;  %v8471_v11 = vld [vmem:[%s8892_s11 + $0xb24] ss:$16 sps:$4 sm:$0xff]  }
 0x140   : > { %3671 = vmatpush1.bf16.msra.mxu0 %v8379_v12  ;;  %3999 = vmatpush1.bf16.msra.mxu1 %v8382_v13  ;;  %v8474_v12 = vld [vmem:[%s8892_s11 + $0xb2c] ss:$16 sps:$4 sm:$0xff]   ;;  %v8469_v13 = vld [vmem:[%s8892_s11 + $0xb20] ss:$16 sps:$4 sm:$0xff]  }
 0x141   : > { %3672 = vmatprep.subr.bf16.mxu0 %v8387_v15  ;;  %4000 = vmatprep.subr.bf16.mxu1 %v8390_v17  ;;  %v8472_v15 = vld [vmem:[%s8892_s11 + $0xb28] ss:$16 sps:$4 sm:$0xff]   ;;  %v8477_v17 = vld [vmem:[%s8892_s11 + $0xb44] ss:$16 sps:$4 sm:$0xff]  }
 0x144   : > { %3673 = vmatpush1.bf16.msra.mxu0 %v8385_v53  ;;  %4001 = vmatpush1.bf16.msra.mxu1 %v8388_v18  ;;  %v8480_v53 = vld [vmem:[%s8892_s11 + $0xb4c] ss:$16 sps:$4 sm:$0xff]   ;;  %v8475_v18 = vld [vmem:[%s8892_s11 + $0xb40] ss:$16 sps:$4 sm:$0xff]  }
 0x145   : > { %3674 = vmatprep.subr.bf16.mxu0 %v8393_v19  ;;  %4002 = vmatprep.subr.bf16.mxu1 %v8396_v20  ;;  %v8478_v19 = vld [vmem:[%s8892_s11 + $0xb48] ss:$16 sps:$4 sm:$0xff]   ;;  %v8483_v20 = vld [vmem:[%s8892_s11 + $0xb64] ss:$16 sps:$4 sm:$0xff]  }
 0x148   : > { %3675 = vmatpush1.bf16.msra.mxu0 %v8391_v21  ;;  %4003 = vmatpush1.bf16.msra.mxu1 %v8394_v23  ;;  %v8486_v21 = vld [vmem:[%s8892_s11 + $0xb6c] ss:$16 sps:$4 sm:$0xff]   ;;  %v8481_v23 = vld [vmem:[%s8892_s11 + $0xb60] ss:$16 sps:$4 sm:$0xff]  }
 0x149   : > { %3676 = vmatprep.subr.bf16.mxu0 %v8399_v24  ;;  %4004 = vmatprep.subr.bf16.mxu1 %v8402_v25  ;;  %v8484_v24 = vld [vmem:[%s8892_s11 + $0xb68] ss:$16 sps:$4 sm:$0xff]   ;;  %v8489_v25 = vld [vmem:[%s8892_s11 + $0xb84] ss:$16 sps:$4 sm:$0xff]  }
 0x14c   : > { %3677 = vmatpush1.bf16.msra.mxu0 %v8397_v27  ;;  %4005 = vmatpush1.bf16.msra.mxu1 %v8400_v29  ;;  %v8492_v27 = vld [vmem:[%s8892_s11 + $0xb8c] ss:$16 sps:$4 sm:$0xff]   ;;  %v8487_v29 = vld [vmem:[%s8892_s11 + $0xb80] ss:$16 sps:$4 sm:$0xff]  }
 0x14d   : > { %3678 = vmatprep.subr.bf16.mxu0 %v8405_v30  ;;  %4006 = vmatprep.subr.bf16.mxu1 %v8408_v31  ;;  %v8490_v30 = vld [vmem:[%s8892_s11 + $0xb88] ss:$16 sps:$4 sm:$0xff]   ;;  %v8495_v31 = vld [vmem:[%s8892_s11 + $0xba4] ss:$16 sps:$4 sm:$0xff]  }
 0x150   : > { %3679 = vmatpush1.bf16.msra.mxu0 %v8403_v16  ;;  %4007 = vmatpush1.bf16.msra.mxu1 %v8406_v32  ;;  %v8498_v16 = vld [vmem:[%s8892_s11 + $0xbac] ss:$16 sps:$4 sm:$0xff]   ;;  %v8493_v32 = vld [vmem:[%s8892_s11 + $0xba0] ss:$16 sps:$4 sm:$0xff]  }
 0x151   : > { %3680 = vmatprep.subr.bf16.mxu0 %v8411_v33  ;;  %4008 = vmatprep.subr.bf16.mxu1 %v8414_v34  ;;  %v8496_v33 = vld [vmem:[%s8892_s11 + $0xba8] ss:$16 sps:$4 sm:$0xff]   ;;  %v8501_v34 = vld [vmem:[%s8892_s11 + $0xbc4] ss:$16 sps:$4 sm:$0xff]  }
 0x154   : > { %3681 = vmatpush1.bf16.msra.mxu0 %v8409_v26  ;;  %4009 = vmatpush1.bf16.msra.mxu1 %v8412_v35  ;;  %v8504_v26 = vld [vmem:[%s8892_s11 + $0xbcc] ss:$16 sps:$4 sm:$0xff]   ;;  %v861_v35 = vcombine.high %v9184_v22, %v9184_v22  ;;  %v8505_v22 = vld [vmem:[%s8892_s11 + $0xbe0] ss:$16 sps:$4 sm:$0xff]  }
 0x155   : > { %3691 = vmatprep.subr.bf16.mxu0 %v8417_v36  ;;  %4019 = vmatprep.subr.bf16.mxu1 %v8420_v14  ;;  %v8499_v36 = vld [vmem:[%s8892_s11 + $0xbc0] ss:$16 sps:$4 sm:$0xff]   ;;  %v8502_v14 = vld [vmem:[%s8892_s11 + $0xbc8] ss:$16 sps:$4 sm:$0xff]  }
 0x157   : > { %3683 = vmatmul.mubr.bf16.vlgmr.msra.gmra.mrb[0].mxu0 %v9273_v38  ;;  %4011 = vmatmul.mubr.bf16.vlgmr.msra.gmra.mrb[0].mxu1 %v9273_v38 }
 0x158   : > { %3692 = vmatpush1.bf16.msra.mxu0 %v8415_v39  ;;  %4020 = vmatpush1.bf16.msra.mxu1 %v8418_v40  ;;  %v8507_v39 = vld [vmem:[%s8892_s11 + $0xbe4] ss:$16 sps:$4 sm:$0xff]   ;;  %v8510_v40 = vld [vmem:[%s8892_s11 + $0xbec] ss:$16 sps:$4 sm:$0xff]  }
 0x159   : > { %3693 = vmatprep.subr.bf16.mxu0 %v8423_v41  ;;  %4021 = vmatprep.subr.bf16.mxu1 %v8426_v42  ;;  %v9342_v41 = vrot.slane %v861_v35, %v8942_v50  ;;  %v8508_v42 = vld [vmem:[%s8892_s11 + $0xbe8] ss:$16 sps:$4 sm:$0xff]  }
 0x15a   : > { %3723 = vmatprep.mubr.bf16.mxu0 %v908_v43  ;;  %4051 = vmatprep.mubr.bf16.mxu1 %v908_v43  ;;  %v8513_v43 = vld [vmem:[%s8892_s11 + $0xc04] ss:$16 sps:$4 sm:$0xff]   ;;  %v8586_v35 = vld [vmem:[%s8892_s11 + $0xd88] ss:$16 sps:$4 sm:$0xff]  }
 0x15c   : > { %3694 = vmatpush1.bf16.msra.mxu0 %v8421_v28  ;;  %4022 = vmatpush1.bf16.msra.mxu1 %v8424_v45  ;;  %v8516_v28 = vld [vmem:[%s8892_s11 + $0xc0c] ss:$16 sps:$4 sm:$0xff]   ;;  %v877_v45 = vcombine.high %v9342_v41, %v9342_v41 }
 0x15d   : > { %3695 = vmatprep.subr.bf16.mxu0 %v8429_v46  ;;  %4023 = vmatprep.subr.bf16.mxu1 %v8432_v47  ;;  %v906_v46 = vcombine.high %v9273_v38, %v9273_v38  ;;  %v8511_v47 = vld [vmem:[%s8892_s11 + $0xc00] ss:$16 sps:$4 sm:$0xff]  }
 0x15e   : > { %v8517_v38 = vld [vmem:[%s8892_s11 + $0xc20] ss:$16 sps:$4 sm:$0xff]  }
 0x160   : > { %3696 = vmatpush1.bf16.msra.mxu0 %v8427_v37  ;;  %4024 = vmatpush1.bf16.msra.mxu1 %v8430_v48  ;;  %v8514_v37 = vld [vmem:[%s8892_s11 + $0xc08] ss:$16 sps:$4 sm:$0xff]   ;;  %v8519_v48 = vld [vmem:[%s8892_s11 + $0xc24] ss:$16 sps:$4 sm:$0xff]  }
 0x161   : > { %3697 = vmatprep.subr.bf16.mxu0 %v8435_v49  ;;  %4025 = vmatprep.subr.bf16.mxu1 %v8438_v51  ;;  %v8522_v49 = vld [vmem:[%s8892_s11 + $0xc2c] ss:$16 sps:$4 sm:$0xff]   ;;  %v9357_v51 = vrot.slane %v877_v45, %v8942_v50  ;;  %v8603_v45 = vld [vmem:[%s8892_s11 + $0xde4] ss:$16 sps:$4 sm:$0xff]  }
 0x164   : > { %3698 = vmatpush1.bf16.msra.mxu0 %v8433_v52  ;;  %4026 = vmatpush1.bf16.msra.mxu1 %v8436_v54  ;;  %v8520_v52 = vld [vmem:[%s8892_s11 + $0xc28] ss:$16 sps:$4 sm:$0xff]   ;;  %v8525_v54 = vld [vmem:[%s8892_s11 + $0xc44] ss:$16 sps:$4 sm:$0xff]  }
 0x165   : > { %3699 = vmatprep.subr.bf16.mxu0 %v8441_v55  ;;  %4027 = vmatprep.subr.bf16.mxu1 %v8444_v56  ;;  %v8528_v55 = vld [vmem:[%s8892_s11 + $0xc4c] ss:$16 sps:$4 sm:$0xff]   ;;  %v8523_v56 = vld [vmem:[%s8892_s11 + $0xc40] ss:$16 sps:$4 sm:$0xff]  }
 0x168   : > { %3700 = vmatpush1.bf16.msra.mxu0 %v8439_v57  ;;  %4028 = vmatpush1.bf16.msra.mxu1 %v8442_v58  ;;  %v8526_v57 = vld [vmem:[%s8892_s11 + $0xc48] ss:$16 sps:$4 sm:$0xff]   ;;  %v8531_v58 = vld [vmem:[%s8892_s11 + $0xc64] ss:$16 sps:$4 sm:$0xff]  }
 0x169   : > { %3701 = vmatprep.subr.bf16.mxu0 %v8447_v59  ;;  %4029 = vmatprep.subr.bf16.mxu1 %v8450_v60  ;;  %v8534_v59 = vld [vmem:[%s8892_s11 + $0xc6c] ss:$16 sps:$4 sm:$0xff]   ;;  %v8529_v60 = vld [vmem:[%s8892_s11 + $0xc60] ss:$16 sps:$4 sm:$0xff]  }
 0x16c   : > { %3702 = vmatpush1.bf16.msra.mxu0 %v8445_v61  ;;  %4030 = vmatpush1.bf16.msra.mxu1 %v8448_v62  ;;  %v8532_v61 = vld [vmem:[%s8892_s11 + $0xc68] ss:$16 sps:$4 sm:$0xff]   ;;  %v8537_v62 = vld [vmem:[%s8892_s11 + $0xc84] ss:$16 sps:$4 sm:$0xff]  }
 0x16d   : > { %3703 = vmatprep.subr.bf16.mxu0 %v8453_v63  ;;  %4031 = vmatprep.subr.bf16.mxu1 %v8456_v0  ;;  %v8540_v63 = vld [vmem:[%s8892_s11 + $0xc8c] ss:$16 sps:$4 sm:$0xff]   ;;  %v8535_v0 = vld [vmem:[%s8892_s11 + $0xc80] ss:$16 sps:$4 sm:$0xff]  }
 0x170   : > { %3704 = vmatpush1.bf16.msra.mxu0 %v8451_v1  ;;  %4032 = vmatpush1.bf16.msra.mxu1 %v8454_v2  ;;  %v8538_v1 = vld [vmem:[%s8892_s11 + $0xc88] ss:$16 sps:$4 sm:$0xff]   ;;  %v8543_v2 = vld [vmem:[%s8892_s11 + $0xca4] ss:$16 sps:$4 sm:$0xff]  }
 0x171   : > { %3705 = vmatprep.subr.bf16.mxu0 %v8459_v3  ;;  %4033 = vmatprep.subr.bf16.mxu1 %v8462_v4  ;;  %v8546_v3 = vld [vmem:[%s8892_s11 + $0xcac] ss:$16 sps:$4 sm:$0xff]   ;;  %v8541_v4 = vld [vmem:[%s8892_s11 + $0xca0] ss:$16 sps:$4 sm:$0xff]  }
 0x174   : > { %3706 = vmatpush1.bf16.msra.mxu0 %v8457_v5  ;;  %4034 = vmatpush1.bf16.msra.mxu1 %v8460_v6  ;;  %v8544_v5 = vld [vmem:[%s8892_s11 + $0xca8] ss:$16 sps:$4 sm:$0xff]   ;;  %v8549_v6 = vld [vmem:[%s8892_s11 + $0xcc4] ss:$16 sps:$4 sm:$0xff]  }
 0x175   : > { %3707 = vmatprep.subr.bf16.mxu0 %v8465_v7  ;;  %4035 = vmatprep.subr.bf16.mxu1 %v8468_v8  ;;  %v8552_v7 = vld [vmem:[%s8892_s11 + $0xccc] ss:$16 sps:$4 sm:$0xff]   ;;  %v8547_v8 = vld [vmem:[%s8892_s11 + $0xcc0] ss:$16 sps:$4 sm:$0xff]  }
 0x178   : > { %3708 = vmatpush1.bf16.msra.mxu0 %v8463_v9  ;;  %4036 = vmatpush1.bf16.msra.mxu1 %v8466_v10  ;;  %v8550_v9 = vld [vmem:[%s8892_s11 + $0xcc8] ss:$16 sps:$4 sm:$0xff]   ;;  %v8555_v10 = vld [vmem:[%s8892_s11 + $0xce4] ss:$16 sps:$4 sm:$0xff]  }
 0x179   : > { %3709 = vmatprep.subr.bf16.mxu0 %v8471_v11  ;;  %4037 = vmatprep.subr.bf16.mxu1 %v8474_v12  ;;  %v8558_v11 = vld [vmem:[%s8892_s11 + $0xcec] ss:$16 sps:$4 sm:$0xff]   ;;  %v8553_v12 = vld [vmem:[%s8892_s11 + $0xce0] ss:$16 sps:$4 sm:$0xff]  }
 0x17c   : > { %3710 = vmatpush1.bf16.msra.mxu0 %v8469_v13  ;;  %4038 = vmatpush1.bf16.msra.mxu1 %v8472_v15  ;;  %v8556_v13 = vld [vmem:[%s8892_s11 + $0xce8] ss:$16 sps:$4 sm:$0xff]   ;;  %v8561_v15 = vld [vmem:[%s8892_s11 + $0xd04] ss:$16 sps:$4 sm:$0xff]  }
 0x17d   : > { %3711 = vmatprep.subr.bf16.mxu0 %v8477_v17  ;;  %4039 = vmatprep.subr.bf16.mxu1 %v8480_v53  ;;  %v8564_v17 = vld [vmem:[%s8892_s11 + $0xd0c] ss:$16 sps:$4 sm:$0xff]   ;;  %v8559_v53 = vld [vmem:[%s8892_s11 + $0xd00] ss:$16 sps:$4 sm:$0xff]  }
 0x180   : > { %3712 = vmatpush1.bf16.msra.mxu0 %v8475_v18  ;;  %4040 = vmatpush1.bf16.msra.mxu1 %v8478_v19  ;;  %v8562_v18 = vld [vmem:[%s8892_s11 + $0xd08] ss:$16 sps:$4 sm:$0xff]   ;;  %v8567_v19 = vld [vmem:[%s8892_s11 + $0xd24] ss:$16 sps:$4 sm:$0xff]  }
 0x181   : > { %3713 = vmatprep.subr.bf16.mxu0 %v8483_v20  ;;  %4041 = vmatprep.subr.bf16.mxu1 %v8486_v21  ;;  %v8570_v20 = vld [vmem:[%s8892_s11 + $0xd2c] ss:$16 sps:$4 sm:$0xff]   ;;  %v8565_v21 = vld [vmem:[%s8892_s11 + $0xd20] ss:$16 sps:$4 sm:$0xff]  }
 0x184   : > { %3714 = vmatpush1.bf16.msra.mxu0 %v8481_v23  ;;  %4042 = vmatpush1.bf16.msra.mxu1 %v8484_v24  ;;  %v8568_v23 = vld [vmem:[%s8892_s11 + $0xd28] ss:$16 sps:$4 sm:$0xff]   ;;  %v8573_v24 = vld [vmem:[%s8892_s11 + $0xd44] ss:$16 sps:$4 sm:$0xff]  }
 0x185   : > { %3715 = vmatprep.subr.bf16.mxu0 %v8489_v25  ;;  %4043 = vmatprep.subr.bf16.mxu1 %v8492_v27  ;;  %v8576_v25 = vld [vmem:[%s8892_s11 + $0xd4c] ss:$16 sps:$4 sm:$0xff]   ;;  %v8571_v27 = vld [vmem:[%s8892_s11 + $0xd40] ss:$16 sps:$4 sm:$0xff]  }
 0x188   : > { %3716 = vmatpush1.bf16.msra.mxu0 %v8487_v29  ;;  %4044 = vmatpush1.bf16.msra.mxu1 %v8490_v30  ;;  %v8574_v29 = vld [vmem:[%s8892_s11 + $0xd48] ss:$16 sps:$4 sm:$0xff]   ;;  %v8579_v30 = vld [vmem:[%s8892_s11 + $0xd64] ss:$16 sps:$4 sm:$0xff]  }
 0x189   : > { %3717 = vmatprep.subr.bf16.mxu0 %v8495_v31  ;;  %4045 = vmatprep.subr.bf16.mxu1 %v8498_v16  ;;  %v8582_v31 = vld [vmem:[%s8892_s11 + $0xd6c] ss:$16 sps:$4 sm:$0xff]   ;;  %v8577_v16 = vld [vmem:[%s8892_s11 + $0xd60] ss:$16 sps:$4 sm:$0xff]  }
 0x18c   : > { %3718 = vmatpush1.bf16.msra.mxu0 %v8493_v32  ;;  %4046 = vmatpush1.bf16.msra.mxu1 %v8496_v33  ;;  %v8580_v32 = vld [vmem:[%s8892_s11 + $0xd68] ss:$16 sps:$4 sm:$0xff]   ;;  %v8585_v33 = vld [vmem:[%s8892_s11 + $0xd84] ss:$16 sps:$4 sm:$0xff]  }
 0x18d   : > { %3719 = vmatprep.subr.bf16.mxu0 %v8501_v34  ;;  %4047 = vmatprep.subr.bf16.mxu1 %v8504_v26  ;;  %v8588_v34 = vld [vmem:[%s8892_s11 + $0xd8c] ss:$16 sps:$4 sm:$0xff]   ;;  %v8583_v26 = vld [vmem:[%s8892_s11 + $0xd80] ss:$16 sps:$4 sm:$0xff]  }
 0x190   : > { %3720 = vmatpush1.bf16.msra.mxu0 %v8499_v36  ;;  %4048 = vmatpush1.bf16.msra.mxu1 %v8502_v14  ;;  %v8591_v36 = vld [vmem:[%s8892_s11 + $0xda4] ss:$16 sps:$4 sm:$0xff]   ;;  %v8594_v14 = vld [vmem:[%s8892_s11 + $0xdac] ss:$16 sps:$4 sm:$0xff]  }
 0x191   : > { %3721 = vmatprep.subr.bf16.mxu0 %v8507_v39  ;;  %4049 = vmatprep.subr.bf16.mxu1 %v8510_v40  ;;  %v8589_v39 = vld [vmem:[%s8892_s11 + $0xda0] ss:$16 sps:$4 sm:$0xff]   ;;  %v8592_v40 = vld [vmem:[%s8892_s11 + $0xda8] ss:$16 sps:$4 sm:$0xff]  }
 0x194   : > { %3722 = vmatpush1.bf16.msra.mxu0 %v8505_v22  ;;  %4050 = vmatpush1.bf16.msra.mxu1 %v8508_v42  ;;  %v8597_v22 = vld [vmem:[%s8892_s11 + $0xdc4] ss:$16 sps:$4 sm:$0xff]   ;;  %v8600_v42 = vld [vmem:[%s8892_s11 + $0xdcc] ss:$16 sps:$4 sm:$0xff]  }
 0x195   : > { %3732 = vmatprep.subr.bf16.mxu0 %v8513_v43  ;;  %4060 = vmatprep.subr.bf16.mxu1 %v8516_v28  ;;  %v8595_v43 = vld [vmem:[%s8892_s11 + $0xdc0] ss:$16 sps:$4 sm:$0xff]   ;;  %v8598_v28 = vld [vmem:[%s8892_s11 + $0xdc8] ss:$16 sps:$4 sm:$0xff]  }
 0x197   : > { %3724 = vmatmul.mubr.bf16.vlgmr.msra.gmra.mrb[0].mxu0 %v906_v46  ;;  %4052 = vmatmul.mubr.bf16.vlgmr.msra.gmra.mrb[0].mxu1 %v906_v46  ;;  %v8606_v46 = vld [vmem:[%s8892_s11 + $0xdec] ss:$16 sps:$4 sm:$0xff]  }
 0x198   : > { %3733 = vmatpush1.bf16.msra.mxu0 %v8511_v47  ;;  %4061 = vmatpush1.bf16.msra.mxu1 %v8514_v37  ;;  %v8601_v47 = vld [vmem:[%s8892_s11 + $0xde0] ss:$16 sps:$4 sm:$0xff]   ;;  %v8604_v37 = vld [vmem:[%s8892_s11 + $0xde8] ss:$16 sps:$4 sm:$0xff]  }
 0x199   : > { %3734 = vmatprep.subr.bf16.mxu0 %v8519_v48  ;;  %4062 = vmatprep.subr.bf16.mxu1 %v8522_v49  ;;  %v8610_v48 = vld [vmem:[%s8892_s11 + $0xe04] ss:$16 sps:$4 sm:$0xff]   ;;  %v8613_v49 = vld [vmem:[%s8892_s11 + $0xe0c] ss:$16 sps:$4 sm:$0xff]  }
 0x19a   : > { %3764 = vmatprep.mubr.bf16.mxu0 %v9357_v51  ;;  %4092 = vmatprep.mubr.bf16.mxu1 %v9357_v51 }
 0x19c   : > { %3735 = vmatpush1.bf16.msra.mxu0 %v8517_v38  ;;  %4063 = vmatpush1.bf16.msra.mxu1 %v8520_v52  ;;  %v9423_v38 = vrot.slane %v9342_v41, %v8942_v50  ;;  %v8608_v52 = vld [vmem:[%s8892_s11 + $0xe00] ss:$16 sps:$4 sm:$0xff]   ;;  %v8617_v41 = vld [vmem:[%s8892_s11 + $0xe28] ss:$16 sps:$4 sm:$0xff]  }
 0x19d   : > { %3736 = vmatprep.subr.bf16.mxu0 %v8525_v54  ;;  %4064 = vmatprep.subr.bf16.mxu1 %v8528_v55  ;;  %v8611_v54 = vld [vmem:[%s8892_s11 + $0xe08] ss:$16 sps:$4 sm:$0xff]   ;;  %v8616_v55 = vld [vmem:[%s8892_s11 + $0xe24] ss:$16 sps:$4 sm:$0xff]   ;;  %v8614_v50 = vld [vmem:[%s8892_s11 + $0xe20] ss:$16 sps:$4 sm:$0xff]  }
 0x1a0   : > { %3737 = vmatpush1.bf16.msra.mxu0 %v8523_v56  ;;  %4065 = vmatpush1.bf16.msra.mxu1 %v8526_v57  ;;  %v8619_v56 = vld [vmem:[%s8892_s11 + $0xe2c] ss:$16 sps:$4 sm:$0xff]   ;;  %v909_v57 = vcombine.high %v9357_v51, %v9357_v51  ;;  %v8620_v51 = vld [vmem:[%s8892_s11 + $0xe40] ss:$16 sps:$4 sm:$0xff]  }
 0x1a1   : > { %3738 = vmatprep.subr.bf16.mxu0 %v8531_v58  ;;  %4066 = vmatprep.subr.bf16.mxu1 %v8534_v59  ;;  %v8622_v58 = vld [vmem:[%s8892_s11 + $0xe44] ss:$16 sps:$4 sm:$0xff]   ;;  %v8625_v59 = vld [vmem:[%s8892_s11 + $0xe4c] ss:$16 sps:$4 sm:$0xff]  }
 0x1a4   : > { %3739 = vmatpush1.bf16.msra.mxu0 %v8529_v60  ;;  %4067 = vmatpush1.bf16.msra.mxu1 %v8532_v61  ;;  %v8623_v60 = vld [vmem:[%s8892_s11 + $0xe48] ss:$16 sps:$4 sm:$0xff]   ;;  %v8628_v61 = vld [vmem:[%s8892_s11 + $0xe64] ss:$16 sps:$4 sm:$0xff]  }
 0x1a5   : > { %3740 = vmatprep.subr.bf16.mxu0 %v8537_v62  ;;  %4068 = vmatprep.subr.bf16.mxu1 %v8540_v63  ;;  %v8631_v62 = vld [vmem:[%s8892_s11 + $0xe6c] ss:$16 sps:$4 sm:$0xff]   ;;  %v8626_v63 = vld [vmem:[%s8892_s11 + $0xe60] ss:$16 sps:$4 sm:$0xff]  }
 0x1a8   : > { %3741 = vmatpush1.bf16.msra.mxu0 %v8535_v0  ;;  %4069 = vmatpush1.bf16.msra.mxu1 %v8538_v1  ;;  %v8629_v0 = vld [vmem:[%s8892_s11 + $0xe68] ss:$16 sps:$4 sm:$0xff]   ;;  %v8634_v1 = vld [vmem:[%s8892_s11 + $0xe84] ss:$16 sps:$4 sm:$0xff]  }
 0x1a9   : > { %3742 = vmatprep.subr.bf16.mxu0 %v8543_v2  ;;  %4070 = vmatprep.subr.bf16.mxu1 %v8546_v3  ;;  %v8637_v2 = vld [vmem:[%s8892_s11 + $0xe8c] ss:$16 sps:$4 sm:$0xff]   ;;  %v8632_v3 = vld [vmem:[%s8892_s11 + $0xe80] ss:$16 sps:$4 sm:$0xff]  }
 0x1ac   : > { %3743 = vmatpush1.bf16.msra.mxu0 %v8541_v4  ;;  %4071 = vmatpush1.bf16.msra.mxu1 %v8544_v5  ;;  %v8635_v4 = vld [vmem:[%s8892_s11 + $0xe88] ss:$16 sps:$4 sm:$0xff]   ;;  %v8640_v5 = vld [vmem:[%s8892_s11 + $0xea4] ss:$16 sps:$4 sm:$0xff]  }
 0x1ad   : > { %3744 = vmatprep.subr.bf16.mxu0 %v8549_v6  ;;  %4072 = vmatprep.subr.bf16.mxu1 %v8552_v7  ;;  %v8643_v6 = vld [vmem:[%s8892_s11 + $0xeac] ss:$16 sps:$4 sm:$0xff]   ;;  %v8638_v7 = vld [vmem:[%s8892_s11 + $0xea0] ss:$16 sps:$4 sm:$0xff]  }
 0x1b0   : > { %3745 = vmatpush1.bf16.msra.mxu0 %v8547_v8  ;;  %4073 = vmatpush1.bf16.msra.mxu1 %v8550_v9  ;;  %v8641_v8 = vld [vmem:[%s8892_s11 + $0xea8] ss:$16 sps:$4 sm:$0xff]   ;;  %v8646_v9 = vld [vmem:[%s8892_s11 + $0xec4] ss:$16 sps:$4 sm:$0xff]  }
 0x1b1   : > { %3746 = vmatprep.subr.bf16.mxu0 %v8555_v10  ;;  %4074 = vmatprep.subr.bf16.mxu1 %v8558_v11  ;;  %v8649_v10 = vld [vmem:[%s8892_s11 + $0xecc] ss:$16 sps:$4 sm:$0xff]   ;;  %v8644_v11 = vld [vmem:[%s8892_s11 + $0xec0] ss:$16 sps:$4 sm:$0xff]  }
 0x1b4   : > { %3747 = vmatpush1.bf16.msra.mxu0 %v8553_v12  ;;  %4075 = vmatpush1.bf16.msra.mxu1 %v8556_v13  ;;  %v8647_v12 = vld [vmem:[%s8892_s11 + $0xec8] ss:$16 sps:$4 sm:$0xff]   ;;  %v8652_v13 = vld [vmem:[%s8892_s11 + $0xee4] ss:$16 sps:$4 sm:$0xff]  }
 0x1b5   : > { %3748 = vmatprep.subr.bf16.mxu0 %v8561_v15  ;;  %4076 = vmatprep.subr.bf16.mxu1 %v8564_v17  ;;  %v8655_v15 = vld [vmem:[%s8892_s11 + $0xeec] ss:$16 sps:$4 sm:$0xff]   ;;  %v8650_v17 = vld [vmem:[%s8892_s11 + $0xee0] ss:$16 sps:$4 sm:$0xff]  }
 0x1b8   : > { %3749 = vmatpush1.bf16.msra.mxu0 %v8559_v53  ;;  %4077 = vmatpush1.bf16.msra.mxu1 %v8562_v18  ;;  %v8653_v53 = vld [vmem:[%s8892_s11 + $0xee8] ss:$16 sps:$4 sm:$0xff]   ;;  %v8658_v18 = vld [vmem:[%s8892_s11 + $0xf04] ss:$16 sps:$4 sm:$0xff]  }
 0x1b9   : > { %3750 = vmatprep.subr.bf16.mxu0 %v8567_v19  ;;  %4078 = vmatprep.subr.bf16.mxu1 %v8570_v20  ;;  %v8661_v19 = vld [vmem:[%s8892_s11 + $0xf0c] ss:$16 sps:$4 sm:$0xff]   ;;  %v8656_v20 = vld [vmem:[%s8892_s11 + $0xf00] ss:$16 sps:$4 sm:$0xff]  }
 0x1bc   : > { %3751 = vmatpush1.bf16.msra.mxu0 %v8565_v21  ;;  %4079 = vmatpush1.bf16.msra.mxu1 %v8568_v23  ;;  %v8659_v21 = vld [vmem:[%s8892_s11 + $0xf08] ss:$16 sps:$4 sm:$0xff]   ;;  %v8664_v23 = vld [vmem:[%s8892_s11 + $0xf24] ss:$16 sps:$4 sm:$0xff]  }
 0x1bd   : > { %3752 = vmatprep.subr.bf16.mxu0 %v8573_v24  ;;  %4080 = vmatprep.subr.bf16.mxu1 %v8576_v25  ;;  %v8667_v24 = vld [vmem:[%s8892_s11 + $0xf2c] ss:$16 sps:$4 sm:$0xff]   ;;  %v8662_v25 = vld [vmem:[%s8892_s11 + $0xf20] ss:$16 sps:$4 sm:$0xff]  }
 0x1c0   : > { %3753 = vmatpush1.bf16.msra.mxu0 %v8571_v27  ;;  %4081 = vmatpush1.bf16.msra.mxu1 %v8574_v29  ;;  %v8665_v27 = vld [vmem:[%s8892_s11 + $0xf28] ss:$16 sps:$4 sm:$0xff]   ;;  %v8670_v29 = vld [vmem:[%s8892_s11 + $0xf44] ss:$16 sps:$4 sm:$0xff]  }
 0x1c1   : > { %3754 = vmatprep.subr.bf16.mxu0 %v8579_v30  ;;  %4082 = vmatprep.subr.bf16.mxu1 %v8582_v31  ;;  %v8673_v30 = vld [vmem:[%s8892_s11 + $0xf4c] ss:$16 sps:$4 sm:$0xff]   ;;  %v8668_v31 = vld [vmem:[%s8892_s11 + $0xf40] ss:$16 sps:$4 sm:$0xff]  }
 0x1c4   : > { %3755 = vmatpush1.bf16.msra.mxu0 %v8577_v16  ;;  %4083 = vmatpush1.bf16.msra.mxu1 %v8580_v32  ;;  %v8671_v16 = vld [vmem:[%s8892_s11 + $0xf48] ss:$16 sps:$4 sm:$0xff]   ;;  %v8676_v32 = vld [vmem:[%s8892_s11 + $0xf64] ss:$16 sps:$4 sm:$0xff]  }
 0x1c5   : > { %3756 = vmatprep.subr.bf16.mxu0 %v8585_v33  ;;  %4084 = vmatprep.subr.bf16.mxu1 %v8588_v34  ;;  %v8679_v33 = vld [vmem:[%s8892_s11 + $0xf6c] ss:$16 sps:$4 sm:$0xff]   ;;  %v8674_v34 = vld [vmem:[%s8892_s11 + $0xf60] ss:$16 sps:$4 sm:$0xff]  }
 0x1c8   : > { %3757 = vmatpush1.bf16.msra.mxu0 %v8583_v26  ;;  %4085 = vmatpush1.bf16.msra.mxu1 %v8586_v35  ;;  %v8677_v26 = vld [vmem:[%s8892_s11 + $0xf68] ss:$16 sps:$4 sm:$0xff]   ;;  %v8682_v35 = vld [vmem:[%s8892_s11 + $0xf84] ss:$16 sps:$4 sm:$0xff]  }
 0x1c9   : > { %3758 = vmatprep.subr.bf16.mxu0 %v8591_v36  ;;  %4086 = vmatprep.subr.bf16.mxu1 %v8594_v14  ;;  %v8685_v36 = vld [vmem:[%s8892_s11 + $0xf8c] ss:$16 sps:$4 sm:$0xff]   ;;  %v8680_v14 = vld [vmem:[%s8892_s11 + $0xf80] ss:$16 sps:$4 sm:$0xff]  }
 0x1cc   : > { %3759 = vmatpush1.bf16.msra.mxu0 %v8589_v39  ;;  %4087 = vmatpush1.bf16.msra.mxu1 %v8592_v40  ;;  %v8683_v39 = vld [vmem:[%s8892_s11 + $0xf88] ss:$16 sps:$4 sm:$0xff]   ;;  %v8688_v40 = vld [vmem:[%s8892_s11 + $0xfa4] ss:$16 sps:$4 sm:$0xff]  }
 0x1cd   : > { %3760 = vmatprep.subr.bf16.mxu0 %v8597_v22  ;;  %4088 = vmatprep.subr.bf16.mxu1 %v8600_v42  ;;  %v8691_v22 = vld [vmem:[%s8892_s11 + $0xfac] ss:$16 sps:$4 sm:$0xff]   ;;  %v8686_v42 = vld [vmem:[%s8892_s11 + $0xfa0] ss:$16 sps:$4 sm:$0xff]  }
 0x1d0   : > { %3761 = vmatpush1.bf16.msra.mxu0 %v8595_v43  ;;  %4089 = vmatpush1.bf16.msra.mxu1 %v8598_v28  ;;  %v8689_v43 = vld [vmem:[%s8892_s11 + $0xfa8] ss:$16 sps:$4 sm:$0xff]   ;;  %v8694_v28 = vld [vmem:[%s8892_s11 + $0xfc4] ss:$16 sps:$4 sm:$0xff]  }
 0x1d1   : > { %3762 = vmatprep.subr.bf16.mxu0 %v8603_v45  ;;  %4090 = vmatprep.subr.bf16.mxu1 %v8606_v46  ;;  %v8697_v45 = vld [vmem:[%s8892_s11 + $0xfcc] ss:$16 sps:$4 sm:$0xff]   ;;  %v8692_v46 = vld [vmem:[%s8892_s11 + $0xfc0] ss:$16 sps:$4 sm:$0xff]  }
 0x1d4   : > { %3763 = vmatpush1.bf16.msra.mxu0 %v8601_v47  ;;  %4091 = vmatpush1.bf16.msra.mxu1 %v8604_v37  ;;  %v8695_v47 = vld [vmem:[%s8892_s11 + $0xfc8] ss:$16 sps:$4 sm:$0xff]   ;;  %v8700_v37 = vld [vmem:[%s8892_s11 + $0xfe4] ss:$16 sps:$4 sm:$0xff]  }
 0x1d5   : > { %3773 = vmatprep.subr.bf16.mxu0 %v8610_v48  ;;  %4101 = vmatprep.subr.bf16.mxu1 %v8613_v49  ;;  %v8703_v48 = vld [vmem:[%s8892_s11 + $0xfec] ss:$16 sps:$4 sm:$0xff]   ;;  %v8698_v49 = vld [vmem:[%s8892_s11 + $0xfe0] ss:$16 sps:$4 sm:$0xff]  }
 0x1d7   : > { %3765 = vmatmul.mubr.bf16.vlgmr.msra.gmra.mrb[0].mxu0 %v9423_v38  ;;  %4093 = vmatmul.mubr.bf16.vlgmr.msra.gmra.mrb[0].mxu1 %v9423_v38 }
 0x1d8   : > { %3774 = vmatpush1.bf16.msra.mxu0 %v8608_v52  ;;  %4102 = vmatpush1.bf16.msra.mxu1 %v8611_v54  ;;  %v8701_v52 = vld [vmem:[%s8892_s11 + $0xfe8] ss:$16 sps:$4 sm:$0xff]   ;;  %v907_v54 = vcombine.high %v9423_v38, %v9423_v38 }
 0x1d9   : > { %3775 = vmatprep.subr.bf16.mxu0 %v8616_v55  ;;  %4103 = vmatprep.subr.bf16.mxu1 %v8619_v56  ;;  %v8830_v55 = vmov 1983009808  }
 0x1da   : > { %3805 = vmatprep.mubr.bf16.mxu0 %v909_v57  ;;  %4133 = vmatprep.mubr.bf16.mxu1 %v909_v57  ;;  %v4149_v56 = vunpack.c.l.s4 %v8830_v55 }
 0x1dc   : > { %3776 = vmatpush1.bf16.msra.mxu0 %v8614_v50  ;;  %4104 = vmatpush1.bf16.msra.mxu1 %v8617_v41  ;;  %v4150_v57 = vunpack.c.0.s8 %v4149_v56 }
 0x1dd   : > { %3777 = vmatprep.subr.bf16.mxu0 %v8622_v58  ;;  %4105 = vmatprep.subr.bf16.mxu1 %v8625_v59 }
 0x1de   : > { %v9494_v58 = vsub.s32 %v4150_v57, %v8934_v44  ;;  %v4283_v57 = vld [vmem:[%s10571_s3 + $0x180] sm:$0xff] (!%p7420_p6) }
 0x1e0   : > { %3778 = vmatpush1.bf16.msra.mxu0 %v8620_v51  ;;  %4106 = vmatpush1.bf16.msra.mxu1 %v8623_v60 }
 0x1e1   : > { %3779 = vmatprep.subr.bf16.mxu0 %v8628_v61  ;;  %4107 = vmatprep.subr.bf16.mxu1 %v8631_v62 }
 0x1e4   : > { %3780 = vmatpush1.bf16.msra.mxu0 %v8626_v63  ;;  %4108 = vmatpush1.bf16.msra.mxu1 %v8629_v0 }
 0x1e5   : > { %3781 = vmatprep.subr.bf16.mxu0 %v8634_v1  ;;  %4109 = vmatprep.subr.bf16.mxu1 %v8637_v2 }
 0x1e8   : > { %3782 = vmatpush1.bf16.msra.mxu0 %v8632_v3  ;;  %4110 = vmatpush1.bf16.msra.mxu1 %v8635_v4  ;;  %v295_v3 = vld [vmem:[#allocation2] sm:$0xff] }
 0x1e9   : > { %3783 = vmatprep.subr.bf16.mxu0 %v8640_v5  ;;  %4111 = vmatprep.subr.bf16.mxu1 %v8643_v6  ;;  %v4235_v6 = vld [vmem:[%s10571_s3] sm:$0xff] (!%p7420_p6) }
 0x1ec   : > { %3784 = vmatpush1.bf16.msra.mxu0 %v8638_v7  ;;  %4112 = vmatpush1.bf16.msra.mxu1 %v8641_v8  ;;  %v4239_v7 = vld [vmem:[%s10571_s3 + $0x20] sm:$0xff] (!%p7420_p6)  ;;  %v4236_v8 = vld [vmem:[%s10571_s3 + $0x8] sm:$0xff] (!%p7420_p6) }
 0x1ed   : > { %3785 = vmatprep.subr.bf16.mxu0 %v8646_v9  ;;  %4113 = vmatprep.subr.bf16.mxu1 %v8649_v10  ;;  %v7422_v9 = vcombine.high (!%p7420_p6), %v4235_v6, %v4239_v7  ;;  %v4240_v10 = vld [vmem:[%s10571_s3 + $0x28] sm:$0xff] (!%p7420_p6) }
 0x1f0   : > { %3786 = vmatpush1.bf16.msra.mxu0 %v8644_v11  ;;  %4114 = vmatpush1.bf16.msra.mxu1 %v8647_v12  ;;  %v7421_v11 = vcombine.low (!%p7420_p6), %v4235_v6, %v4239_v7  ;;  %v4243_v12 = vld [vmem:[%s10571_s3 + $0x40] sm:$0xff] (!%p7420_p6)  ;;  %v4292_v7 = vld [vmem:[%s10571_s3 + $0x1c8] sm:$0xff] (!%p7420_p6) }
 0x1f1   : > { %3787 = vmatprep.subr.bf16.mxu0 %v8652_v13  ;;  %4115 = vmatprep.subr.bf16.mxu1 %v8655_v15  ;;  %v4247_v13 = vld [vmem:[%s10571_s3 + $0x60] sm:$0xff] (!%p7420_p6)  ;;  %v7424_v15 = vcombine.high (!%p7420_p6), %v4236_v8, %v4240_v10 }
 0x1f4   : > { %3788 = vmatpush1.bf16.msra.mxu0 %v8650_v17  ;;  %4116 = vmatpush1.bf16.msra.mxu1 %v8653_v53  ;;  %v7423_v17 = vcombine.low (!%p7420_p6), %v4236_v8, %v4240_v10  ;;  %v7430_v53 = vcombine.high (!%p7420_p6), %v4243_v12, %v4247_v13  ;;  %v4296_v8 = vld [vmem:[%s10571_s3 + $0x1e8] sm:$0xff] (!%p7420_p6) }
 0x1f5   : > { %3789 = vmatprep.subr.bf16.mxu0 %v8658_v18  ;;  %4117 = vmatprep.subr.bf16.mxu1 %v8661_v19  ;;  %v4244_v18 = vld [vmem:[%s10571_s3 + $0x48] sm:$0xff] (!%p7420_p6) }
 0x1f6   : > { %v4248_v19 = vld [vmem:[%s10571_s3 + $0x68] sm:$0xff] (!%p7420_p6) }
 0x1f8   : > { %3790 = vmatpush1.bf16.msra.mxu0 %v8656_v20  ;;  %4118 = vmatpush1.bf16.msra.mxu1 %v8659_v21  ;;  %v4251_v20 = vld [vmem:[%s10571_s3 + $0x80] sm:$0xff] (!%p7420_p6)  ;;  %v7432_v21 = vcombine.high (!%p7420_p6), %v4244_v18, %v4248_v19 }
 0x1f9   : > { %3791 = vmatprep.subr.bf16.mxu0 %v8664_v23  ;;  %4119 = vmatprep.subr.bf16.mxu1 %v8667_v24  ;;  %v4255_v23 = vld [vmem:[%s10571_s3 + $0xa0] sm:$0xff] (!%p7420_p6)  ;;  %v4252_v24 = vld [vmem:[%s10571_s3 + $0x88] sm:$0xff] (!%p7420_p6) }
 0x1fc   : > { %3792 = vmatpush1.bf16.msra.mxu0 %v8662_v25  ;;  %4120 = vmatpush1.bf16.msra.mxu1 %v8665_v27  ;;  %v4256_v25 = vld [vmem:[%s10571_s3 + $0xa8] sm:$0xff] (!%p7420_p6)  ;;  %v7429_v27 = vcombine.low (!%p7420_p6), %v4243_v12, %v4247_v13 }
 0x1fd   : > { %3793 = vmatprep.subr.bf16.mxu0 %v8670_v29  ;;  %4121 = vmatprep.subr.bf16.mxu1 %v8673_v30  ;;  %v7431_v29 = vcombine.low (!%p7420_p6), %v4244_v18, %v4248_v19  ;;  %v7438_v30 = vcombine.high (!%p7420_p6), %v4251_v20, %v4255_v23  ;;  %v4299_v18 = vld [vmem:[%s10571_s3 + $0x200] sm:$0xff] (!%p7420_p6) }
 0x1fe   : > { %v4303_v19 = vld [vmem:[%s10571_s3 + $0x220] sm:$0xff] (!%p7420_p6) }
 0x200   : > { %3794 = vmatpush1.bf16.msra.mxu0 %v8668_v31  ;;  %4122 = vmatpush1.bf16.msra.mxu1 %v8671_v16  ;;  %v7440_v31 = vcombine.high (!%p7420_p6), %v4252_v24, %v4256_v25  ;;  %v4259_v16 = vld [vmem:[%s10571_s3 + $0xc0] sm:$0xff] (!%p7420_p6) }
 0x201   : > { %3795 = vmatprep.subr.bf16.mxu0 %v8676_v32  ;;  %4123 = vmatprep.subr.bf16.mxu1 %v8679_v33  ;;  %v4263_v32 = vld [vmem:[%s10571_s3 + $0xe0] sm:$0xff] (!%p7420_p6)  ;;  %v4260_v33 = vld [vmem:[%s10571_s3 + $0xc8] sm:$0xff] (!%p7420_p6) }
 0x204   : > { %3796 = vmatpush1.bf16.msra.mxu0 %v8674_v34  ;;  %4124 = vmatpush1.bf16.msra.mxu1 %v8677_v26  ;;  %v4264_v34 = vld [vmem:[%s10571_s3 + $0xe8] sm:$0xff] (!%p7420_p6)  ;;  %v7437_v26 = vcombine.low (!%p7420_p6), %v4251_v20, %v4255_v23 }
 0x205   : > { %3797 = vmatprep.subr.bf16.mxu0 %v8682_v35  ;;  %4125 = vmatprep.subr.bf16.mxu1 %v8685_v36  ;;  %v7439_v35 = vcombine.low (!%p7420_p6), %v4252_v24, %v4256_v25  ;;  %v7446_v36 = vcombine.high (!%p7420_p6), %v4259_v16, %v4263_v32  ;;  %v4304_v23 = vld [vmem:[%s10571_s3 + $0x228] sm:$0xff] (!%p7420_p6) }
 0x208   : > { %3798 = vmatpush1.bf16.msra.mxu0 %v8680_v14  ;;  %4126 = vmatpush1.bf16.msra.mxu1 %v8683_v39  ;;  %v7448_v14 = vcombine.high (!%p7420_p6), %v4260_v33, %v4264_v34  ;;  %v4267_v39 = vld [vmem:[%s10571_s3 + $0x100] sm:$0xff] (!%p7420_p6) }
 0x209   : > { %3799 = vmatprep.subr.bf16.mxu0 %v8688_v40  ;;  %4127 = vmatprep.subr.bf16.mxu1 %v8691_v22  ;;  %v4271_v40 = vld [vmem:[%s10571_s3 + $0x120] sm:$0xff] (!%p7420_p6)  ;;  %v4268_v22 = vld [vmem:[%s10571_s3 + $0x108] sm:$0xff] (!%p7420_p6) }
 0x20c   : > { %3800 = vmatpush1.bf16.msra.mxu0 %v8686_v42  ;;  %4128 = vmatpush1.bf16.msra.mxu1 %v8689_v43  ;;  %v4272_v42 = vld [vmem:[%s10571_s3 + $0x128] sm:$0xff] (!%p7420_p6)  ;;  %v7445_v43 = vcombine.low (!%p7420_p6), %v4259_v16, %v4263_v32  ;;  %v4307_v32 = vld [vmem:[%s10571_s3 + $0x240] sm:$0xff] (!%p7420_p6) }
 0x20d   : > { %3801 = vmatprep.subr.bf16.mxu0 %v8694_v28  ;;  %4129 = vmatprep.subr.bf16.mxu1 %v8697_v45  ;;  %v7447_v28 = vcombine.low (!%p7420_p6), %v4260_v33, %v4264_v34  ;;  %v7454_v45 = vcombine.high (!%p7420_p6), %v4267_v39, %v4271_v40  ;;  %v4311_v33 = vld [vmem:[%s10571_s3 + $0x260] sm:$0xff] (!%p7420_p6)  ;;  %v4308_v34 = vld [vmem:[%s10571_s3 + $0x248] sm:$0xff] (!%p7420_p6) }
 0x210   : > { %3802 = vmatpush1.bf16.msra.mxu0 %v8692_v46  ;;  %4130 = vmatpush1.bf16.msra.mxu1 %v8695_v47  ;;  %v7456_v46 = vcombine.high (!%p7420_p6), %v4268_v22, %v4272_v42  ;;  %v4275_v47 = vld [vmem:[%s10571_s3 + $0x140] sm:$0xff] (!%p7420_p6) }
 0x211   : > { %3803 = vmatprep.subr.bf16.mxu0 %v8700_v37  ;;  %4131 = vmatprep.subr.bf16.mxu1 %v8703_v48  ;;  %v4279_v37 = vld [vmem:[%s10571_s3 + $0x160] sm:$0xff] (!%p7420_p6)  ;;  %v4276_v48 = vld [vmem:[%s10571_s3 + $0x148] sm:$0xff] (!%p7420_p6) }
 0x212   : > { %v7462_v55 = vcombine.high (!%p7420_p6), %v4275_v47, %v4279_v37 }
 0x214   : > { %3804 = vmatpush1.bf16.msra.mxu0 %v8698_v49  ;;  %4132 = vmatpush1.bf16.msra.mxu1 %v8701_v52  ;;  %v4280_v49 = vld [vmem:[%s10571_s3 + $0x168] sm:$0xff] (!%p7420_p6)  ;;  %v7453_v52 = vcombine.low (!%p7420_p6), %v4267_v39, %v4271_v40  ;;  %v7494_v39 = vcombine.high (!%p7420_p6), %v4307_v32, %v4311_v33 }
 0x215   : > { %5813 = vmatprep.subr.bf16.mxu0 (!%p7420_p6), %v7422_v9  ;;  %5895 = vmatprep.subr.bf16.mxu1 (!%p7420_p6), %v7424_v15  ;;  %v7464_v56 = vcombine.high (!%p7420_p6), %v4276_v48, %v4280_v49 }
 0x217   : > { %3806 = vmatmul.mubr.bf16.vlgmr.msra.gmra.mrb[0].mxu0 %v907_v54  ;;  %4134 = vmatmul.mubr.bf16.vlgmr.msra.gmra.mrb[0].mxu1 %v907_v54  ;;  %v7455_v54 = vcombine.low (!%p7420_p6), %v4268_v22, %v4272_v42  ;;  %v4315_v22 = vld [vmem:[%s10571_s3 + $0x280] sm:$0xff] (!%p7420_p6) }
 0x218   : > { %5814 = vmatpush1.bf16.msra.mxu0 (!%p7420_p6), %v7421_v11  ;;  %5896 = vmatpush1.bf16.msra.mxu1 (!%p7420_p6), %v7423_v17  ;;  %v4319_v42 = vld [vmem:[%s10571_s3 + $0x2a0] sm:$0xff] (!%p7420_p6) }
 0x219   : > { %5815 = vmatprep.subr.bf16.mxu0 (!%p7420_p6), %v7430_v53  ;;  %5897 = vmatprep.subr.bf16.mxu1 (!%p7420_p6), %v7432_v21  ;;  %v7480_v53 = vcombine.high (!%p7420_p6), %v4292_v7, %v4296_v8  ;;  %v4300_v21 = vld [vmem:[%s10571_s3 + $0x208] sm:$0xff] (!%p7420_p6) }
 0x21a   : > { %v7488_v16 = vcombine.high (!%p7420_p6), %v4300_v21, %v4304_v23 }
 0x21c   : > { %5816 = vmatpush1.bf16.msra.mxu0 (!%p7420_p6), %v7429_v27  ;;  %5898 = vmatpush1.bf16.msra.mxu1 (!%p7420_p6), %v7431_v29  ;;  %v7479_v29 = vcombine.low (!%p7420_p6), %v4292_v7, %v4296_v8  ;;  %v4343_v7 = vld [vmem:[%s10571_s3 + $0x360] sm:$0xff] (!%p7420_p6) }
 0x21d   : > { %5817 = vmatprep.subr.bf16.mxu0 (!%p7420_p6), %v7438_v30  ;;  %5899 = vmatprep.subr.bf16.mxu1 (!%p7420_p6), %v7440_v31  ;;  %v7486_v30 = vcombine.high (!%p7420_p6), %v4299_v18, %v4303_v19 }
 0x220   : > { %5818 = vmatpush1.bf16.msra.mxu0 (!%p7420_p6), %v7437_v26  ;;  %5900 = vmatpush1.bf16.msra.mxu1 (!%p7420_p6), %v7439_v35  ;;  %v4312_v26 = vld [vmem:[%s10571_s3 + $0x268] sm:$0xff] (!%p7420_p6) }
 0x221   : > { %5819 = vmatprep.subr.bf16.mxu0 (!%p7420_p6), %v7446_v36  ;;  %5901 = vmatprep.subr.bf16.mxu1 (!%p7420_p6), %v7448_v14  ;;  %v7485_v36 = vcombine.low (!%p7420_p6), %v4299_v18, %v4303_v19  ;;  %v7487_v14 = vcombine.low (!%p7420_p6), %v4300_v21, %v4304_v23  ;;  %v7496_v40 = vcombine.high (!%p7420_p6), %v4308_v34, %v4312_v26  ;;  %v4351_v18 = vld [vmem:[%s10571_s3 + $0x3a0] sm:$0xff] (!%p7420_p6)  ;;  %v4348_v19 = vld [vmem:[%s10571_s3 + $0x388] sm:$0xff] (!%p7420_p6) }
 0x224   : > { %5820 = vmatpush1.bf16.msra.mxu0 (!%p7420_p6), %v7445_v43  ;;  %5902 = vmatpush1.bf16.msra.mxu1 (!%p7420_p6), %v7447_v28  ;;  %v4316_v43 = vld [vmem:[%s10571_s3 + $0x288] sm:$0xff] (!%p7420_p6) }
 0x225   : > { %5821 = vmatprep.subr.bf16.mxu0 (!%p7420_p6), %v7454_v45  ;;  %5903 = vmatprep.subr.bf16.mxu1 (!%p7420_p6), %v7456_v46  ;;  %v4320_v28 = vld [vmem:[%s10571_s3 + $0x2a8] sm:$0xff] (!%p7420_p6)  ;;  %v7493_v45 = vcombine.low (!%p7420_p6), %v4307_v32, %v4311_v33  ;;  %v7495_v46 = vcombine.low (!%p7420_p6), %v4308_v34, %v4312_v26 }
 0x228   : > { %5822 = vmatpush1.bf16.msra.mxu0 (!%p7420_p6), %v7453_v52  ;;  %5904 = vmatpush1.bf16.msra.mxu1 (!%p7420_p6), %v7455_v54  ;;  %v4324_v52 = vld [vmem:[%s10571_s3 + $0x2c8] sm:$0xff] (!%p7420_p6) }
 0x229   : > { %5823 = vmatprep.subr.bf16.mxu0 (!%p7420_p6), %v7462_v55  ;;  %5905 = vmatprep.subr.bf16.mxu1 (!%p7420_p6), %v7464_v56  ;;  %v4328_v54 = vld [vmem:[%s10571_s3 + $0x2e8] sm:$0xff] (!%p7420_p6)  ;;  %v7501_v55 = vcombine.low (!%p7420_p6), %v4315_v22, %v4319_v42  ;;  %v7503_v56 = vcombine.low (!%p7420_p6), %v4316_v43, %v4320_v28 }
 0x2ea   : > { %v3807_v50 = vpop.f32.mrb[0].mxu0  ;;  %v4135_v41 = vpop.f32.mrb[0].mxu1 }
 0x2eb   : > { %v3809_v59 = vpop.f32.mrb[1].mxu0  ;;  %v4137_v51 = vpop.f32.mrb[1].mxu1 }
 0x2ec   : > { %v4146_v60 = vcombine.low %v3807_v50, %v3809_v59  ;;  %v4147_v61 = vcombine.low %v4135_v41, %v4137_v51  ;;  %v3811_v62 = vpop.f32.mrb[2].mxu0  ;;  %v4139_v63 = vpop.f32.mrb[2].mxu1  ;;  %v4287_v50 = vld [vmem:[%s10571_s3 + $0x1a0] sm:$0xff] (!%p7420_p6)  ;;  %v4175_v41 = vsub.s32 (!%p7420_p6), 0, %v8934_v44  ;;  %v4179_v59 = vsub.s32 (!%p7420_p6), 1, %v8934_v44  ;;  %v4284_v51 = vld [vmem:[%s10571_s3 + $0x188] sm:$0xff] (!%p7420_p6) }
 0x2ed   : > { %v3812_v0 = vpop.f32.mrb[3].mxu0  ;;  %v4140_v38 = vpop.f32.mrb[3].mxu1  ;;  %v4187_v62 = vsub.s32 (!%p7420_p6), 3, %v8934_v44  ;;  %v7461_v63 = vcombine.low (!%p7420_p6), %v4275_v47, %v4279_v37  ;;  %v7469_v11 = vcombine.low (!%p7420_p6), %v4283_v57, %v4287_v50  ;;  %v7502_v47 = vcombine.high (!%p7420_p6), %v4315_v22, %v4319_v42 }
 0x2ee   : > { %v4154_v1 = vrot.slane %v4146_v60, %v9494_v58  ;;  %v4161_v2 = vrot.slane %v4147_v61, %v9494_v58  ;;  %4169 = sbr.rel (%p7420_p6) target bundleno = 1463 (0x5b7), region = 56  ;;  %v4288_v60 = vld [vmem:[%s10571_s3 + $0x1a8] sm:$0xff] (!%p7420_p6)  ;;  %v4183_v61 = vsub.s32 (!%p7420_p6), 2, %v8934_v44  ;;  %v7463_v0 = vcombine.low (!%p7420_p6), %v4276_v48, %v4280_v49  ;;  %v4323_v48 = vld [vmem:[%s10571_s3 + $0x2c0] sm:$0xff] (!%p7420_p6) }
 0x2ef   : > { %v7470_v38 = vcombine.high (!%p7420_p6), %v4283_v57, %v4287_v50  ;;  %5824 = vmatpush1.bf16.msra.mxu0 (!%p7420_p6), %v7461_v63  ;;  %v7471_v13 = vcombine.low (!%p7420_p6), %v4284_v51, %v4288_v60  ;;  %v7504_v37 = vcombine.high (!%p7420_p6), %v4316_v43, %v4320_v28  ;;  %v4327_v49 = vld [vmem:[%s10571_s3 + $0x2e0] sm:$0xff] (!%p7420_p6)  ;;  %v7512_v50 = vcombine.high (!%p7420_p6), %v4324_v52, %v4328_v54 }
 0x2f0   : > { %v4162_v4 = vcombine.low %v4154_v1, %v4161_v2  ;;  %v4171_v1 = vld [vmem:[%s10570_s2] sm:$0xf] (!%p7420_p6)  ;;  %v7472_v2 = vcombine.high (!%p7420_p6), %v4284_v51, %v4288_v60  ;;  %5906 = vmatpush1.bf16.msra.mxu1 (!%p7420_p6), %v7463_v0  ;;  %v7510_v57 = vcombine.high (!%p7420_p6), %v4323_v48, %v4327_v49  ;;  %v4332_v0 = vld [vmem:[%s10571_s3 + $0x308] sm:$0xff] (!%p7420_p6) }
 0x2f1   : > { %v4180_v6 = vrot.slane (!%p7420_p6), %v4171_v1, %v4179_v59  ;;  %v4184_v9 = vrot.slane (!%p7420_p6), %v4171_v1, %v4183_v61  ;;  %v4188_v10 = vrot.slane (!%p7420_p6), %v4171_v1, %v4187_v62  ;;  %5825 = vmatprep.subr.bf16.mxu0 (!%p7420_p6), %v7470_v38  ;;  %v4331_v51 = vld [vmem:[%s10571_s3 + $0x300] sm:$0xff] (!%p7420_p6)  ;;  %v4336_v38 = vld [vmem:[%s10571_s3 + $0x328] sm:$0xff] (!%p7420_p6) }
 0x2f2   : > { %v4164_v5 = vadd.f32 %v4162_v4, %v295_v3  ;;  %v4291_v3 = vld [vmem:[%s10571_s3 + $0x1c0] sm:$0xff] (!%p7420_p6)  ;;  %5907 = vmatprep.subr.bf16.mxu1 (!%p7420_p6), %v7472_v2 }
 0x2f3   : > { %v4295_v4 = vld [vmem:[%s10571_s3 + $0x1e0] sm:$0xff] (!%p7420_p6)  ;;  %v4190_v17 = vcombine.low (!%p7420_p6), %v4184_v9, %v4188_v10  ;;  %5826 = vmatpush1.bf16.msra.mxu0 (!%p7420_p6), %v7469_v11  ;;  %v4340_v9 = vld [vmem:[%s10571_s3 + $0x348] sm:$0xff] (!%p7420_p6) }
 0x2f4   : > { %4165 = vst [vmem:[#allocation2] sm:$0xff] %v4164_v5  ;;  %v4176_v5 = vrot.slane (!%p7420_p6), %v4171_v1, %v4175_v41  ;;  %v7478_v15 = vcombine.high (!%p7420_p6), %v4291_v3, %v4295_v4  ;;  %v7477_v25 = vcombine.low (!%p7420_p6), %v4291_v3, %v4295_v4  ;;  %5908 = vmatpush1.bf16.msra.mxu1 (!%p7420_p6), %v7471_v13  ;;  %v4335_v60 = vld [vmem:[%s10571_s3 + $0x320] sm:$0xff] (!%p7420_p6)  ;;  %v4344_v10 = vld [vmem:[%s10571_s3 + $0x368] sm:$0xff] (!%p7420_p6) }
 0x2f5   : > { %v4204_v24 = vrot.slane %v4190_v17, %v9494_v58  ;;  %5909 = vmatprep.subr.bf16.mxu1 %v7480_v53  ;;  %v7509_v1 = vcombine.low %v4323_v48, %v4327_v49  ;;  %v7511_v3 = vcombine.low %v4324_v52, %v4328_v54  ;;  %v7518_v4 = vcombine.high %v4331_v51, %v4335_v60  ;;  %v4347_v53 = vld [vmem:[%s10571_s3 + $0x380] sm:$0xff]  ;;  %v4376_v48 = vld [vmem:[%s10571_s3 + $0x468] sm:$0xff] }
 0x2f6   : > { %v4189_v12 = vcombine.low %v4176_v5, %v4180_v6  ;;  %5827 = vmatprep.subr.bf16.mxu0 %v7478_v15  ;;  %v7520_v5 = vcombine.high %v4332_v0, %v4336_v38  ;;  %v4339_v6 = vld [vmem:[%s10571_s3 + $0x340] sm:$0xff]  ;;  %v7517_v11 = vcombine.low %v4331_v51, %v4335_v60  ;;  %v7519_v13 = vcombine.low %v4332_v0, %v4336_v38  ;;  %v4384_v51 = vld [vmem:[%s10571_s3 + $0x4a8] sm:$0xff] }
 0x2f7   : > { %5828 = vmatpush1.bf16.msra.mxu0 %v7477_v25  ;;  %v7526_v15 = vcombine.high %v4339_v6, %v4343_v7  ;;  %v7528_v17 = vcombine.high %v4340_v9, %v4344_v10  ;;  %v7525_v21 = vcombine.low %v4339_v6, %v4343_v7  ;;  %v7527_v23 = vcombine.low %v4340_v9, %v4344_v10  ;;  %v4395_v9 = vld [vmem:[%s10571_s3 + $0x500] sm:$0xff] }
 0x2f8   : > { %v4197_v20 = vrot.slane %v4189_v12, %v9494_v58  ;;  %5910 = vmatpush1.bf16.msra.mxu1 %v7479_v29  ;;  %5829 = vmatprep.subr.bf16.mxu0 %v7486_v30  ;;  %v4359_v29 = vld [vmem:[%s10571_s3 + $0x3e0] sm:$0xff]  ;;  %v7533_v32 = vcombine.low %v4347_v53, %v4351_v18 }
 0x2f9   : > { %5911 = vmatprep.subr.bf16.mxu1 %v7488_v16  ;;  %v4360_v16 = vld [vmem:[%s10571_s3 + $0x3e8] sm:$0xff]  ;;  %v4399_v10 = vld [vmem:[%s10571_s3 + $0x520] sm:$0xff] }
 0x2fa   : > { %v4205_v31 = vcombine.low %v4197_v20, %v4204_v24  ;;  %v4352_v20 = vld [vmem:[%s10571_s3 + $0x3a8] sm:$0xff]  ;;  %v7534_v24 = vcombine.high %v4347_v53, %v4351_v18  ;;  %v7582_v18 = vcombine.high %v4395_v9, %v4399_v10 }
 0x2fb   : > { %v4170_v27 = vld [vmem:[#allocation2] sm:$0xff]  ;;  %5830 = vmatpush1.bf16.msra.mxu0 %v7485_v36  ;;  %v7536_v25 = vcombine.high %v4348_v19, %v4352_v20  ;;  %v7535_v33 = vcombine.low %v4348_v19, %v4352_v20 }
 0x2fc   : > { %v4207_v35 = vadd.f32 %v4205_v31, %v4170_v27  ;;  %5912 = vmatpush1.bf16.msra.mxu1 %v7487_v14  ;;  %5831 = vmatprep.subr.bf16.mxu0 %v7494_v39  ;;  %v4355_v27 = vld [vmem:[%s10571_s3 + $0x3c0] sm:$0xff]  ;;  %v4356_v31 = vld [vmem:[%s10571_s3 + $0x3c8] sm:$0xff] }
 0x2fd   : > { %5913 = vmatprep.subr.bf16.mxu1 %v7496_v40  ;;  %v7542_v34 = vcombine.high %v4355_v27, %v4359_v29  ;;  %v7544_v26 = vcombine.high %v4356_v31, %v4360_v16  ;;  %v4367_v36 = vld [vmem:[%s10571_s3 + $0x420] sm:$0xff]  ;;  %v4364_v39 = vld [vmem:[%s10571_s3 + $0x408] sm:$0xff]  ;;  %v7541_v22 = vcombine.low %v4355_v27, %v4359_v29  ;;  %v7543_v42 = vcombine.low %v4356_v31, %v4360_v16 }
 0x2fe   : > { %8768 = vtanh.f32 %v4207_v35  ;;  %v4363_v35 = vld [vmem:[%s10571_s3 + $0x400] sm:$0xff]  ;;  %v4368_v40 = vld [vmem:[%s10571_s3 + $0x428] sm:$0xff] }
 0x2ff   : > { %5832 = vmatpush1.bf16.msra.mxu0 %v7493_v45  ;;  %v7550_v43 = vcombine.high %v4363_v35, %v4367_v36  ;;  %v7552_v28 = vcombine.high %v4364_v39, %v4368_v40  ;;  %v4375_v45 = vld [vmem:[%s10571_s3 + $0x460] sm:$0xff]  ;;  %v7549_v49 = vcombine.low %v4363_v35, %v4367_v36  ;;  %v7551_v52 = vcombine.low %v4364_v39, %v4368_v40  ;;  %v4412_v16 = vld [vmem:[%s10571_s3 + $0x588] sm:$0xff] }
 0x300   : > { %5914 = vmatpush1.bf16.msra.mxu1 %v7495_v46  ;;  %5833 = vmatprep.subr.bf16.mxu0 %v7502_v47  ;;  %v4403_v19 = vld [vmem:[%s10571_s3 + $0x540] sm:$0xff]  ;;  %v4420_v40 = vld [vmem:[%s10571_s3 + $0x5c8] sm:$0xff] }
 0x301   : > { %5915 = vmatprep.subr.bf16.mxu1 %v7504_v37  ;;  %v4372_v37 = vld [vmem:[%s10571_s3 + $0x448] sm:$0xff]  ;;  %v4407_v20 = vld [vmem:[%s10571_s3 + $0x560] sm:$0xff] }
 0x302   : > { %v7559_v0 = vcombine.low %v4372_v37, %v4376_v48  ;;  %v7590_v29 = vcombine.high %v4403_v19, %v4407_v20  ;;  %v4415_v31 = vld [vmem:[%s10571_s3 + $0x5a0] sm:$0xff] }
 0x303   : > { %5834 = vmatpush1.bf16.msra.mxu0 %v7501_v55  ;;  %v4379_v55 = vld [vmem:[%s10571_s3 + $0x480] sm:$0xff] }
 0x304   : > { %5916 = vmatpush1.bf16.msra.mxu1 %v7503_v56  ;;  %5835 = vmatprep.subr.bf16.mxu0 %v7510_v57  ;;  %v4383_v56 = vld [vmem:[%s10571_s3 + $0x4a0] sm:$0xff]  ;;  %v4380_v57 = vld [vmem:[%s10571_s3 + $0x488] sm:$0xff] }
 0x305   : > { %5917 = vmatprep.subr.bf16.mxu1 %v7512_v50  ;;  %v7560_v50 = vcombine.high %v4372_v37, %v4376_v48  ;;  %v7566_v38 = vcombine.high %v4379_v55, %v4383_v56  ;;  %v7565_v6 = vcombine.low %v4379_v55, %v4383_v56  ;;  %v7567_v7 = vcombine.low %v4380_v57, %v4384_v51  ;;  %v4419_v36 = vld [vmem:[%s10571_s3 + $0x5c0] sm:$0xff]  ;;  %v4428_v37 = vld [vmem:[%s10571_s3 + $0x608] sm:$0xff] }
 0x306   : > { %v4423_v39 = vld [vmem:[%s10571_s3 + $0x5e0] sm:$0xff] }
 0x307   : > { %5836 = vmatpush1.bf16.msra.mxu0 %v7509_v1  ;;  %v4387_v1 = vld [vmem:[%s10571_s3 + $0x4c0] sm:$0xff] }
 0x308   : > { %v8769_v63 = vpop.eup %8768  ;;  %5918 = vmatpush1.bf16.msra.mxu1 %v7511_v3  ;;  %5837 = vmatprep.subr.bf16.mxu0 %v7518_v4  ;;  %v4388_v3 = vld [vmem:[%s10571_s3 + $0x4c8] sm:$0xff]  ;;  %v7568_v4 = vcombine.high %v4380_v57, %v4384_v51  ;;  %v4435_v56 = vld [vmem:[%s10571_s3 + $0x640] sm:$0xff] }
 0x309   : > { %v9673_v2 = vrot.slane %v8769_v63, %v9494_v58  ;;  %5919 = vmatprep.subr.bf16.mxu1 %v7520_v5  ;;  %v4210_v30 = vcombine.high %v8769_v63, %v8769_v63  ;;  %v4392_v5 = vld [vmem:[%s10571_s3 + $0x4e8] sm:$0xff]  ;;  %v4439_v57 = vld [vmem:[%s10571_s3 + $0x660] sm:$0xff] }
 0x30a   : > { %v7575_v53 = vcombine.low %v4388_v3, %v4392_v5 }
 0x30b   : > { %v4225_v8 = vcombine.high %v9673_v2, %v9673_v2  ;;  %5838 = vmatpush1.bf16.msra.mxu0 %v7517_v11  ;;  %v9724_v14 = vrot.slane %v4210_v30, %v9494_v58  ;;  %v4371_v58 = vld [vmem:[%s10571_s3 + $0x440] sm:$0xff]  ;;  %v9742_v47 = vpack.c.bf16 %v9673_v2, %v9673_v2  ;;  %v4396_v11 = vld [vmem:[%s10571_s3 + $0x508] sm:$0xff] }
 0x30c   : > { %5920 = vmatpush1.bf16.msra.mxu1 %v7519_v13  ;;  %5839 = vmatprep.subr.bf16.mxu0 %v7526_v15  ;;  %v7558_v54 = vcombine.high %v4371_v58, %v4375_v45  ;;  %v7557_v63 = vcombine.low %v4371_v58, %v4375_v45  ;;  %v4391_v2 = vld [vmem:[%s10571_s3 + $0x4e0] sm:$0xff]  ;;  %v7576_v13 = vcombine.high %v4388_v3, %v4392_v5  ;;  %v4400_v15 = vld [vmem:[%s10571_s3 + $0x528] sm:$0xff] }
 0x30d   : > { %v9689_v12 = vpack.c.bf16 %v4225_v8, %v4225_v8  ;;  %5921 = vmatprep.subr.bf16.mxu1 %v7528_v17  ;;  %v4226_v46 = vcombine.high %v9724_v14, %v9724_v14  ;;  %v7574_v8 = vcombine.high %v4387_v1, %v4391_v2  ;;  %v7573_v17 = vcombine.low %v4387_v1, %v4391_v2  ;;  %v4411_v30 = vld [vmem:[%s10571_s3 + $0x580] sm:$0xff] }
 0x30e   : > { %v7583_v27 = vcombine.low %v4396_v11, %v4400_v15  ;;  %v7598_v35 = vcombine.high %v4411_v30, %v4415_v31  ;;  %v7606_v58 = vcombine.high %v4419_v36, %v4423_v39  ;;  %v4427_v45 = vld [vmem:[%s10571_s3 + $0x600] sm:$0xff]  ;;  %v7622_v1 = vcombine.high %v4435_v56, %v4439_v57 }
 0x30f   : > { %5845 = vmatprep.mubr.bf16.mxu0 %v9689_v12  ;;  %5927 = vmatprep.mubr.bf16.mxu1 %v9689_v12  ;;  %v9762_v60 = vpack.c.bf16 %v4226_v46, %v4226_v46  ;;  %v4431_v46 = vld [vmem:[%s10571_s3 + $0x620] sm:$0xff] }
 0x310   : > { %5840 = vmatpush1.bf16.msra.mxu0 %v7525_v21  ;;  %5922 = vmatpush1.bf16.msra.mxu1 %v7527_v23  ;;  %v4404_v21 = vld [vmem:[%s10571_s3 + $0x548] sm:$0xff]  ;;  %v7584_v23 = vcombine.high %v4396_v11, %v4400_v15  ;;  %v7614_v55 = vcombine.high %v4427_v45, %v4431_v46  ;;  %v4443_v2 = vld [vmem:[%s10571_s3 + $0x680] sm:$0xff] }
 0x311   : > { %5841 = vmatprep.subr.bf16.mxu0 %v7534_v24  ;;  %5923 = vmatprep.subr.bf16.mxu1 %v7536_v25  ;;  %v4408_v24 = vld [vmem:[%s10571_s3 + $0x568] sm:$0xff]  ;;  %v7581_v25 = vcombine.low %v4395_v9, %v4399_v10  ;;  %v4447_v3 = vld [vmem:[%s10571_s3 + $0x6a0] sm:$0xff] }
 0x312   : > { %v7630_v9 = vcombine.high %v4443_v2, %v4447_v3  ;;  %v4451_v10 = vld [vmem:[%s10571_s3 + $0x6c0] sm:$0xff] }
 0x313   : > { %v4455_v11 = vld [vmem:[%s10571_s3 + $0x6e0] sm:$0xff] }
 0x314   : > { %5842 = vmatpush1.bf16.msra.mxu0 %v7533_v32  ;;  %5924 = vmatpush1.bf16.msra.mxu1 %v7535_v33  ;;  %v7592_v32 = vcombine.high %v4404_v21, %v4408_v24  ;;  %v4416_v33 = vld [vmem:[%s10571_s3 + $0x5a8] sm:$0xff] }
 0x315   : > { %5843 = vmatprep.subr.bf16.mxu0 %v7542_v34  ;;  %5925 = vmatprep.subr.bf16.mxu1 %v7544_v26  ;;  %v7589_v34 = vcombine.low %v4403_v19, %v4407_v20  ;;  %v7591_v26 = vcombine.low %v4404_v21, %v4408_v24  ;;  %v7638_v19 = vcombine.high %v4451_v10, %v4455_v11  ;;  %v4459_v20 = vld [vmem:[%s10571_s3 + $0x700] sm:$0xff] }
 0x316   : > { %v4463_v21 = vld [vmem:[%s10571_s3 + $0x720] sm:$0xff] }
 0x318   : > { %5844 = vmatpush1.bf16.msra.mxu0 %v7541_v22  ;;  %5926 = vmatpush1.bf16.msra.mxu1 %v7543_v42  ;;  %v7600_v22 = vcombine.high %v4412_v16, %v4416_v33  ;;  %v4424_v42 = vld [vmem:[%s10571_s3 + $0x5e8] sm:$0xff] }
 0x319   : > { %5854 = vmatprep.subr.bf16.mxu0 %v7550_v43  ;;  %5936 = vmatprep.subr.bf16.mxu1 %v7552_v28  ;;  %v7597_v43 = vcombine.low %v4411_v30, %v4415_v31  ;;  %v7599_v28 = vcombine.low %v4412_v16, %v4416_v33  ;;  %v7608_v48 = vcombine.high %v4420_v40, %v4424_v42  ;;  %v4467_v31 = vld [vmem:[%s10571_s3 + $0x740] sm:$0xff] }
 0x31a   : > { %v7646_v30 = vcombine.high %v4459_v20, %v4463_v21  ;;  %v4471_v16 = vld [vmem:[%s10571_s3 + $0x760] sm:$0xff] }
 0x31b   : > { %5846 = vmatmul.mubr.bf16.vlgmr.msra.gmra.mrb[0].mxu0 %v9742_v47  ;;  %5928 = vmatmul.mubr.bf16.vlgmr.msra.gmra.mrb[0].mxu1 %v9742_v47 }
 0x31c   : > { %5855 = vmatpush1.bf16.msra.mxu0 %v7549_v49  ;;  %5937 = vmatpush1.bf16.msra.mxu1 %v7551_v52  ;;  %v4432_v49 = vld [vmem:[%s10571_s3 + $0x628] sm:$0xff]  ;;  %v7605_v52 = vcombine.low %v4419_v36, %v4423_v39  ;;  %v7654_v36 = vcombine.high %v4467_v31, %v4471_v16  ;;  %v4475_v39 = vld [vmem:[%s10571_s3 + $0x780] sm:$0xff] }
 0x31d   : > { %5856 = vmatprep.subr.bf16.mxu0 %v7558_v54  ;;  %5938 = vmatprep.subr.bf16.mxu1 %v7560_v50  ;;  %v7607_v54 = vcombine.low %v4420_v40, %v4424_v42  ;;  %v4436_v50 = vld [vmem:[%s10571_s3 + $0x648] sm:$0xff]  ;;  %v7616_v51 = vcombine.high %v4428_v37, %v4432_v49  ;;  %v4479_v40 = vld [vmem:[%s10571_s3 + $0x7a0] sm:$0xff] }
 0x31e   : > { %5886 = vmatprep.mubr.bf16.mxu0 %v9762_v60  ;;  %5968 = vmatprep.mubr.bf16.mxu1 %v9762_v60 }
 0x320   : > { %5857 = vmatpush1.bf16.msra.mxu0 %v7557_v63  ;;  %5939 = vmatpush1.bf16.msra.mxu1 %v7559_v0  ;;  %v4440_v63 = vld [vmem:[%s10571_s3 + $0x668] sm:$0xff]  ;;  %v7613_v0 = vcombine.low %v4427_v45, %v4431_v46  ;;  %v7662_v45 = vcombine.high %v4475_v39, %v4479_v40  ;;  %v4483_v46 = vld [vmem:[%s10571_s3 + $0x7c0] sm:$0xff] }
 0x321   : > { %5858 = vmatprep.subr.bf16.mxu0 %v7566_v38  ;;  %5940 = vmatprep.subr.bf16.mxu1 %v7568_v4  ;;  %v7615_v38 = vcombine.low %v4428_v37, %v4432_v49  ;;  %v4444_v4 = vld [vmem:[%s10571_s3 + $0x688] sm:$0xff]  ;;  %v7624_v5 = vcombine.high %v4436_v50, %v4440_v63  ;;  %v4487_v37 = vld [vmem:[%s10571_s3 + $0x7e0] sm:$0xff] }
 0x324   : > { %5859 = vmatpush1.bf16.msra.mxu0 %v7565_v6  ;;  %5941 = vmatpush1.bf16.msra.mxu1 %v7567_v7  ;;  %v4448_v6 = vld [vmem:[%s10571_s3 + $0x6a8] sm:$0xff]  ;;  %v7621_v7 = vcombine.low %v4435_v56, %v4439_v57  ;;  %v7670_v56 = vcombine.high %v4483_v46, %v4487_v37  ;;  %v4237_v57 = vld [vmem:[%s10571_s3 + $0x10] sm:$0xff] }
 0x325   : > { %5860 = vmatprep.subr.bf16.mxu0 %v7574_v8  ;;  %5942 = vmatprep.subr.bf16.mxu1 %v7576_v13  ;;  %v7623_v8 = vcombine.low %v4436_v50, %v4440_v63  ;;  %v4452_v13 = vld [vmem:[%s10571_s3 + $0x6c8] sm:$0xff]  ;;  %v7632_v15 = vcombine.high %v4444_v4, %v4448_v6  ;;  %v4241_v50 = vld [vmem:[%s10571_s3 + $0x30] sm:$0xff] }
 0x328   : > { %5861 = vmatpush1.bf16.msra.mxu0 %v7573_v17  ;;  %5943 = vmatpush1.bf16.msra.mxu1 %v7575_v53  ;;  %v4456_v17 = vld [vmem:[%s10571_s3 + $0x6e8] sm:$0xff]  ;;  %v7629_v53 = vcombine.low %v4443_v2, %v4447_v3  ;;  %v7426_v2 = vcombine.high %v4237_v57, %v4241_v50  ;;  %v4245_v3 = vld [vmem:[%s10571_s3 + $0x50] sm:$0xff] }
 0x329   : > { %5862 = vmatprep.subr.bf16.mxu0 %v7582_v18  ;;  %5944 = vmatprep.subr.bf16.mxu1 %v7584_v23  ;;  %v7631_v18 = vcombine.low %v4444_v4, %v4448_v6  ;;  %v4460_v23 = vld [vmem:[%s10571_s3 + $0x708] sm:$0xff]  ;;  %v7640_v24 = vcombine.high %v4452_v13, %v4456_v17  ;;  %v4249_v4 = vld [vmem:[%s10571_s3 + $0x70] sm:$0xff] }
 0x32c   : > { %5863 = vmatpush1.bf16.msra.mxu0 %v7581_v25  ;;  %5945 = vmatpush1.bf16.msra.mxu1 %v7583_v27  ;;  %v4464_v25 = vld [vmem:[%s10571_s3 + $0x728] sm:$0xff]  ;;  %v7637_v27 = vcombine.low %v4451_v10, %v4455_v11  ;;  %v7434_v11 = vcombine.high %v4245_v3, %v4249_v4 }
 0x32d   : > { %5864 = vmatprep.subr.bf16.mxu0 %v7590_v29  ;;  %5946 = vmatprep.subr.bf16.mxu1 %v7592_v32  ;;  %v7639_v29 = vcombine.low %v4452_v13, %v4456_v17  ;;  %v4468_v32 = vld [vmem:[%s10571_s3 + $0x748] sm:$0xff]  ;;  %v7648_v33 = vcombine.high %v4460_v23, %v4464_v25  ;;  %v4257_v17 = vld [vmem:[%s10571_s3 + $0xb0] sm:$0xff] }
 0x330   : > { %5865 = vmatpush1.bf16.msra.mxu0 %v7589_v34  ;;  %5947 = vmatpush1.bf16.msra.mxu1 %v7591_v26  ;;  %v4472_v34 = vld [vmem:[%s10571_s3 + $0x768] sm:$0xff]  ;;  %v7645_v26 = vcombine.low %v4459_v20, %v4463_v21 }
 0x331   : > { %5866 = vmatprep.subr.bf16.mxu0 %v7598_v35  ;;  %5948 = vmatprep.subr.bf16.mxu1 %v7600_v22  ;;  %v7647_v35 = vcombine.low %v4460_v23, %v4464_v25  ;;  %v4476_v22 = vld [vmem:[%s10571_s3 + $0x788] sm:$0xff]  ;;  %v7656_v42 = vcombine.high %v4468_v32, %v4472_v34  ;;  %v4261_v23 = vld [vmem:[%s10571_s3 + $0xd0] sm:$0xff]  ;;  %v4262_v25 = vld [vmem:[%s10571_s3 + $0xd8] sm:$0xff] }
 0x334   : > { %5867 = vmatpush1.bf16.msra.mxu0 %v7597_v43  ;;  %5949 = vmatpush1.bf16.msra.mxu1 %v7599_v28  ;;  %v4480_v43 = vld [vmem:[%s10571_s3 + $0x7a8] sm:$0xff]  ;;  %v7653_v28 = vcombine.low %v4467_v31, %v4471_v16 }
 0x335   : > { %5868 = vmatprep.subr.bf16.mxu0 %v7606_v58  ;;  %5950 = vmatprep.subr.bf16.mxu1 %v7608_v48  ;;  %v7655_v58 = vcombine.low %v4468_v32, %v4472_v34  ;;  %v4484_v48 = vld [vmem:[%s10571_s3 + $0x7c8] sm:$0xff]  ;;  %v7664_v49 = vcombine.high %v4476_v22, %v4480_v43  ;;  %v4269_v32 = vld [vmem:[%s10571_s3 + $0x110] sm:$0xff]  ;;  %v4274_v34 = vld [vmem:[%s10571_s3 + $0x138] sm:$0xff] }
 0x338   : > { %5869 = vmatpush1.bf16.msra.mxu0 %v7605_v52  ;;  %5951 = vmatpush1.bf16.msra.mxu1 %v7607_v54  ;;  %v4488_v52 = vld [vmem:[%s10571_s3 + $0x7e8] sm:$0xff]  ;;  %v7661_v54 = vcombine.low %v4475_v39, %v4479_v40  ;;  %v4277_v40 = vld [vmem:[%s10571_s3 + $0x150] sm:$0xff] }
 0x339   : > { %5870 = vmatprep.subr.bf16.mxu0 %v7614_v55  ;;  %5952 = vmatprep.subr.bf16.mxu1 %v7616_v51  ;;  %v7663_v55 = vcombine.low %v4476_v22, %v4480_v43  ;;  %v4238_v51 = vld [vmem:[%s10571_s3 + $0x18] sm:$0xff]  ;;  %v7672_v63 = vcombine.high %v4484_v48, %v4488_v52  ;;  %v4281_v22 = vld [vmem:[%s10571_s3 + $0x170] sm:$0xff] }
 0x33a   : > { %v4282_v43 = vld [vmem:[%s10571_s3 + $0x178] sm:$0xff] }
 0x33c   : > { %5871 = vmatpush1.bf16.msra.mxu0 %v7613_v0  ;;  %5953 = vmatpush1.bf16.msra.mxu1 %v7615_v38  ;;  %v4242_v0 = vld [vmem:[%s10571_s3 + $0x38] sm:$0xff]  ;;  %v7669_v38 = vcombine.low %v4483_v46, %v4487_v37  ;;  %v4285_v37 = vld [vmem:[%s10571_s3 + $0x190] sm:$0xff] }
 0x33d   : > { %5872 = vmatprep.subr.bf16.mxu0 %v7622_v1  ;;  %5954 = vmatprep.subr.bf16.mxu1 %v7624_v5  ;;  %v7671_v1 = vcombine.low %v4484_v48, %v4488_v52  ;;  %v4246_v5 = vld [vmem:[%s10571_s3 + $0x58] sm:$0xff]  ;;  %v7428_v6 = vcombine.high %v4238_v51, %v4242_v0  ;;  %v7427_v10 = vcombine.low %v4238_v51, %v4242_v0  ;;  %v4289_v48 = vld [vmem:[%s10571_s3 + $0x1b0] sm:$0xff] }
 0x33e   : > { %v4290_v52 = vld [vmem:[%s10571_s3 + $0x1b8] sm:$0xff]  ;;  %v4297_v51 = vld [vmem:[%s10571_s3 + $0x1f0] sm:$0xff] }
 0x33f   : > { %v4298_v0 = vld [vmem:[%s10571_s3 + $0x1f8] sm:$0xff] }
 0x340   : > { %5873 = vmatpush1.bf16.msra.mxu0 %v7621_v7  ;;  %5955 = vmatpush1.bf16.msra.mxu1 %v7623_v8  ;;  %v4250_v7 = vld [vmem:[%s10571_s3 + $0x78] sm:$0xff]  ;;  %v9950_v8 = vpack.c.bf16 %v9724_v14, %v9724_v14 }
 0x341   : > { %5874 = vmatprep.subr.bf16.mxu0 %v7630_v9  ;;  %5956 = vmatprep.subr.bf16.mxu1 %v7632_v15  ;;  %v7425_v9 = vcombine.low %v4237_v57, %v4241_v50  ;;  %v7436_v13 = vcombine.high %v4246_v5, %v4250_v7  ;;  %v4253_v15 = vld [vmem:[%s10571_s3 + $0x90] sm:$0xff]  ;;  %v4254_v14 = vld [vmem:[%s10571_s3 + $0x98] sm:$0xff] }
 0x342   : > { %v7442_v20 = vcombine.high %v4253_v15, %v4257_v17  ;;  %v4293_v50 = vld [vmem:[%s10571_s3 + $0x1d0] sm:$0xff] }
 0x344   : > { %5875 = vmatpush1.bf16.msra.mxu0 %v7629_v53  ;;  %5957 = vmatpush1.bf16.msra.mxu1 %v7631_v18  ;;  %v4258_v53 = vld [vmem:[%s10571_s3 + $0xb8] sm:$0xff]  ;;  %v7433_v18 = vcombine.low %v4245_v3, %v4249_v4  ;;  %v4301_v4 = vld [vmem:[%s10571_s3 + $0x210] sm:$0xff] }
 0x345   : > { %5876 = vmatprep.subr.bf16.mxu0 %v7638_v19  ;;  %5958 = vmatprep.subr.bf16.mxu1 %v7640_v24  ;;  %v7435_v19 = vcombine.low %v4246_v5, %v4250_v7  ;;  %v7444_v21 = vcombine.high %v4254_v14, %v4258_v53  ;;  %v4265_v24 = vld [vmem:[%s10571_s3 + $0xf0] sm:$0xff]  ;;  %v4306_v7 = vld [vmem:[%s10571_s3 + $0x238] sm:$0xff] }
 0x346   : > { %v7450_v31 = vcombine.high %v4261_v23, %v4265_v24  ;;  %v4305_v5 = vld [vmem:[%s10571_s3 + $0x230] sm:$0xff] }
 0x348   : > { %5877 = vmatpush1.bf16.msra.mxu0 %v7637_v27  ;;  %5959 = vmatpush1.bf16.msra.mxu1 %v7639_v29  ;;  %v4266_v27 = vld [vmem:[%s10571_s3 + $0xf8] sm:$0xff]  ;;  %v7441_v29 = vcombine.low %v4253_v15, %v4257_v17  ;;  %v4309_v15 = vld [vmem:[%s10571_s3 + $0x250] sm:$0xff] }
 0x349   : > { %5878 = vmatprep.subr.bf16.mxu0 %v7646_v30  ;;  %5960 = vmatprep.subr.bf16.mxu1 %v7648_v33  ;;  %v7443_v30 = vcombine.low %v4254_v14, %v4258_v53  ;;  %v7452_v16 = vcombine.high %v4262_v25, %v4266_v27  ;;  %v4273_v33 = vld [vmem:[%s10571_s3 + $0x130] sm:$0xff]  ;;  %v4310_v14 = vld [vmem:[%s10571_s3 + $0x258] sm:$0xff] }
 0x34a   : > { %v4313_v17 = vld [vmem:[%s10571_s3 + $0x270] sm:$0xff]  ;;  %v4314_v53 = vld [vmem:[%s10571_s3 + $0x278] sm:$0xff] }
 0x34c   : > { %5879 = vmatpush1.bf16.msra.mxu0 %v7645_v26  ;;  %5961 = vmatpush1.bf16.msra.mxu1 %v7647_v35  ;;  %v7449_v26 = vcombine.low %v4261_v23, %v4265_v24  ;;  %v7451_v35 = vcombine.low %v4262_v25, %v4266_v27  ;;  %v4317_v23 = vld [vmem:[%s10571_s3 + $0x290] sm:$0xff]  ;;  %v4318_v25 = vld [vmem:[%s10571_s3 + $0x298] sm:$0xff] }
 0x34d   : > { %5880 = vmatprep.subr.bf16.mxu0 %v7654_v36  ;;  %5962 = vmatprep.subr.bf16.mxu1 %v7656_v42  ;;  %v7458_v36 = vcombine.high %v4269_v32, %v4273_v33  ;;  %v4278_v42 = vld [vmem:[%s10571_s3 + $0x158] sm:$0xff]  ;;  %v4321_v24 = vld [vmem:[%s10571_s3 + $0x2b0] sm:$0xff] }
 0x34e   : > { %v7468_v46 = vcombine.high %v4278_v42, %v4282_v43  ;;  %v4322_v27 = vld [vmem:[%s10571_s3 + $0x2b8] sm:$0xff] }
 0x350   : > { %5881 = vmatpush1.bf16.msra.mxu0 %v7653_v28  ;;  %5963 = vmatpush1.bf16.msra.mxu1 %v7655_v58  ;;  %v7457_v28 = vcombine.low %v4269_v32, %v4273_v33  ;;  %v4325_v32 = vld [vmem:[%s10571_s3 + $0x2d0] sm:$0xff] }
 0x351   : > { %5882 = vmatprep.subr.bf16.mxu0 %v7662_v45  ;;  %5964 = vmatprep.subr.bf16.mxu1 %v7664_v49  ;;  %v7466_v45 = vcombine.high %v4277_v40, %v4281_v22  ;;  %v4286_v49 = vld [vmem:[%s10571_s3 + $0x198] sm:$0xff]  ;;  %v4329_v33 = vld [vmem:[%s10571_s3 + $0x2f0] sm:$0xff] }
 0x352   : > { %v7476_v57 = vcombine.high %v4286_v49, %v4290_v52 }
 0x354   : > { %5883 = vmatpush1.bf16.msra.mxu0 %v7661_v54  ;;  %5965 = vmatpush1.bf16.msra.mxu1 %v7663_v55  ;;  %v7465_v54 = vcombine.low %v4277_v40, %v4281_v22  ;;  %v7467_v55 = vcombine.low %v4278_v42, %v4282_v43  ;;  %v4333_v40 = vld [vmem:[%s10571_s3 + $0x310] sm:$0xff]  ;;  %v4334_v42 = vld [vmem:[%s10571_s3 + $0x318] sm:$0xff] }
 0x355   : > { %5884 = vmatprep.subr.bf16.mxu0 %v7670_v56  ;;  %5966 = vmatprep.subr.bf16.mxu1 %v7672_v63  ;;  %v7474_v56 = vcombine.high %v4285_v37, %v4289_v48  ;;  %v4294_v63 = vld [vmem:[%s10571_s3 + $0x1d8] sm:$0xff]  ;;  %v4337_v22 = vld [vmem:[%s10571_s3 + $0x330] sm:$0xff] }
 0x356   : > { %v7484_v3 = vcombine.high %v4294_v63, %v4298_v0  ;;  %v4338_v43 = vld [vmem:[%s10571_s3 + $0x338] sm:$0xff] }
 0x358   : > { %5885 = vmatpush1.bf16.msra.mxu0 %v7669_v38  ;;  %5967 = vmatpush1.bf16.msra.mxu1 %v7671_v1  ;;  %v7473_v38 = vcombine.low %v4285_v37, %v4289_v48  ;;  %v7475_v1 = vcombine.low %v4286_v49, %v4290_v52  ;;  %v4341_v37 = vld [vmem:[%s10571_s3 + $0x350] sm:$0xff]  ;;  %v4342_v49 = vld [vmem:[%s10571_s3 + $0x358] sm:$0xff] }
 0x359   : > { %5977 = vmatprep.subr.bf16.mxu0 %v7426_v2  ;;  %6059 = vmatprep.subr.bf16.mxu1 %v7428_v6  ;;  %v7482_v2 = vcombine.high %v4293_v50, %v4297_v51  ;;  %v4302_v6 = vld [vmem:[%s10571_s3 + $0x218] sm:$0xff]  ;;  %v4345_v48 = vld [vmem:[%s10571_s3 + $0x370] sm:$0xff] }
 0x35a   : > { %v4346_v52 = vld [vmem:[%s10571_s3 + $0x378] sm:$0xff] }
 0x35b   : > { %5887 = vmatmul.mubr.bf16.vlgmr.msra.gmra.mrb[0].mxu0 %v9950_v8  ;;  %5969 = vmatmul.mubr.bf16.vlgmr.msra.gmra.mrb[0].mxu1 %v9950_v8 }
 0x35c   : > { %5978 = vmatpush1.bf16.msra.mxu0 %v7425_v9  ;;  %6060 = vmatpush1.bf16.msra.mxu1 %v7427_v10  ;;  %v7481_v9 = vcombine.low %v4293_v50, %v4297_v51  ;;  %v7483_v10 = vcombine.low %v4294_v63, %v4298_v0  ;;  %v4349_v50 = vld [vmem:[%s10571_s3 + $0x390] sm:$0xff]  ;;  %v4350_v63 = vld [vmem:[%s10571_s3 + $0x398] sm:$0xff] }
 0x35d   : > { %5979 = vmatprep.subr.bf16.mxu0 %v7434_v11  ;;  %6061 = vmatprep.subr.bf16.mxu1 %v7436_v13  ;;  %v7490_v11 = vcombine.high %v4301_v4, %v4305_v5  ;;  %v7492_v13 = vcombine.high %v4302_v6, %v4306_v7  ;;  %v4353_v51 = vld [vmem:[%s10571_s3 + $0x3b0] sm:$0xff]  ;;  %v4354_v0 = vld [vmem:[%s10571_s3 + $0x3b8] sm:$0xff] }
 0x35e   : > { %6009 = vmatprep.mubr.bf16.mxu0 %v9689_v12  ;;  %6091 = vmatprep.mubr.bf16.mxu1 %v9689_v12  ;;  %v4270_v12 = vld [vmem:[%s10571_s3 + $0x118] sm:$0xff] }
 0x35f   : > { %v7460_v39 = vcombine.high %v4270_v12, %v4274_v34  ;;  %v7459_v58 = vcombine.low %v4270_v12, %v4274_v34  ;;  %v4326_v12 = vld [vmem:[%s10571_s3 + $0x2d8] sm:$0xff] }
 0x360   : > { %5980 = vmatpush1.bf16.msra.mxu0 %v7433_v18  ;;  %6062 = vmatpush1.bf16.msra.mxu1 %v7435_v19  ;;  %v7489_v18 = vcombine.low %v4301_v4, %v4305_v5  ;;  %v7491_v19 = vcombine.low %v4302_v6, %v4306_v7  ;;  %v4330_v34 = vld [vmem:[%s10571_s3 + $0x2f8] sm:$0xff]  ;;  %v4357_v4 = vld [vmem:[%s10571_s3 + $0x3d0] sm:$0xff] }
 0x361   : > { %5981 = vmatprep.subr.bf16.mxu0 %v7442_v20  ;;  %6063 = vmatprep.subr.bf16.mxu1 %v7444_v21  ;;  %v7498_v20 = vcombine.high %v4309_v15, %v4313_v17  ;;  %v7500_v21 = vcombine.high %v4310_v14, %v4314_v53  ;;  %v4361_v5 = vld [vmem:[%s10571_s3 + $0x3f0] sm:$0xff]  ;;  %v4358_v6 = vld [vmem:[%s10571_s3 + $0x3d8] sm:$0xff] }
 0x362   : > { %v4362_v7 = vld [vmem:[%s10571_s3 + $0x3f8] sm:$0xff] }
 0x364   : > { %5982 = vmatpush1.bf16.msra.mxu0 %v7441_v29  ;;  %6064 = vmatpush1.bf16.msra.mxu1 %v7443_v30  ;;  %v7497_v29 = vcombine.low %v4309_v15, %v4313_v17  ;;  %v7499_v30 = vcombine.low %v4310_v14, %v4314_v53  ;;  %v4365_v15 = vld [vmem:[%s10571_s3 + $0x410] sm:$0xff]  ;;  %v4366_v14 = vld [vmem:[%s10571_s3 + $0x418] sm:$0xff] }
 0x365   : > { %5983 = vmatprep.subr.bf16.mxu0 %v7450_v31  ;;  %6065 = vmatprep.subr.bf16.mxu1 %v7452_v16  ;;  %v7506_v31 = vcombine.high %v4317_v23, %v4321_v24  ;;  %v7508_v16 = vcombine.high %v4318_v25, %v4322_v27  ;;  %v4369_v17 = vld [vmem:[%s10571_s3 + $0x430] sm:$0xff]  ;;  %v4370_v53 = vld [vmem:[%s10571_s3 + $0x438] sm:$0xff] }
 0x368   : > { %5984 = vmatpush1.bf16.msra.mxu0 %v7449_v26  ;;  %6066 = vmatpush1.bf16.msra.mxu1 %v7451_v35  ;;  %v7505_v26 = vcombine.low %v4317_v23, %v4321_v24  ;;  %v7507_v35 = vcombine.low %v4318_v25, %v4322_v27  ;;  %v4373_v23 = vld [vmem:[%s10571_s3 + $0x450] sm:$0xff]  ;;  %v4374_v25 = vld [vmem:[%s10571_s3 + $0x458] sm:$0xff] }
 0x369   : > { %5985 = vmatprep.subr.bf16.mxu0 %v7458_v36  ;;  %6067 = vmatprep.subr.bf16.mxu1 %v7460_v39  ;;  %v7514_v36 = vcombine.high %v4325_v32, %v4329_v33  ;;  %v7516_v39 = vcombine.high %v4326_v12, %v4330_v34  ;;  %v4377_v24 = vld [vmem:[%s10571_s3 + $0x470] sm:$0xff]  ;;  %v4378_v27 = vld [vmem:[%s10571_s3 + $0x478] sm:$0xff] }
 0x36c   : > { %5986 = vmatpush1.bf16.msra.mxu0 %v7457_v28  ;;  %6068 = vmatpush1.bf16.msra.mxu1 %v7459_v58  ;;  %v7513_v28 = vcombine.low %v4325_v32, %v4329_v33  ;;  %v7515_v58 = vcombine.low %v4326_v12, %v4330_v34  ;;  %v4381_v32 = vld [vmem:[%s10571_s3 + $0x490] sm:$0xff]  ;;  %v4382_v12 = vld [vmem:[%s10571_s3 + $0x498] sm:$0xff] }
 0x36d   : > { %5987 = vmatprep.subr.bf16.mxu0 %v7466_v45  ;;  %6069 = vmatprep.subr.bf16.mxu1 %v7468_v46  ;;  %v7522_v45 = vcombine.high %v4333_v40, %v4337_v22  ;;  %v7524_v46 = vcombine.high %v4334_v42, %v4338_v43  ;;  %v4385_v33 = vld [vmem:[%s10571_s3 + $0x4b0] sm:$0xff]  ;;  %v4386_v34 = vld [vmem:[%s10571_s3 + $0x4b8] sm:$0xff] }
 0x370   : > { %5988 = vmatpush1.bf16.msra.mxu0 %v7465_v54  ;;  %6070 = vmatpush1.bf16.msra.mxu1 %v7467_v55  ;;  %v7521_v54 = vcombine.low %v4333_v40, %v4337_v22  ;;  %v7523_v55 = vcombine.low %v4334_v42, %v4338_v43  ;;  %v4389_v40 = vld [vmem:[%s10571_s3 + $0x4d0] sm:$0xff]  ;;  %v4394_v42 = vld [vmem:[%s10571_s3 + $0x4f8] sm:$0xff]  ;;  %v7569_v43 = vcombine.low %v4381_v32, %v4385_v33 }
 0x371   : > { %5989 = vmatprep.subr.bf16.mxu0 %v7474_v56  ;;  %6071 = vmatprep.subr.bf16.mxu1 %v7476_v57  ;;  %v7530_v56 = vcombine.high %v4341_v37, %v4345_v48  ;;  %v7532_v57 = vcombine.high %v4342_v49, %v4346_v52  ;;  %v4393_v22 = vld [vmem:[%s10571_s3 + $0x4f0] sm:$0xff] }
 0x374   : > { %5990 = vmatpush1.bf16.msra.mxu0 %v7473_v38  ;;  %6072 = vmatpush1.bf16.msra.mxu1 %v7475_v1  ;;  %v7529_v38 = vcombine.low %v4341_v37, %v4345_v48  ;;  %v7531_v1 = vcombine.low %v4342_v49, %v4346_v52  ;;  %v4401_v37 = vld [vmem:[%s10571_s3 + $0x530] sm:$0xff]  ;;  %v4402_v48 = vld [vmem:[%s10571_s3 + $0x538] sm:$0xff]  ;;  %v7577_v49 = vcombine.low %v4389_v40, %v4393_v22 }
 0x375   : > { %5991 = vmatprep.subr.bf16.mxu0 %v7482_v2  ;;  %6073 = vmatprep.subr.bf16.mxu1 %v7484_v3  ;;  %v7538_v2 = vcombine.high %v4349_v50, %v4353_v51  ;;  %v7540_v3 = vcombine.high %v4350_v63, %v4354_v0 }
 0x378   : > { %5992 = vmatpush1.bf16.msra.mxu0 %v7481_v9  ;;  %6074 = vmatpush1.bf16.msra.mxu1 %v7483_v10  ;;  %v7537_v9 = vcombine.low %v4349_v50, %v4353_v51  ;;  %v7539_v10 = vcombine.low %v4350_v63, %v4354_v0  ;;  %v4406_v50 = vld [vmem:[%s10571_s3 + $0x558] sm:$0xff] }
 0x379   : > { %5993 = vmatprep.subr.bf16.mxu0 %v7490_v11  ;;  %6075 = vmatprep.subr.bf16.mxu1 %v7492_v13  ;;  %v7546_v11 = vcombine.high %v4357_v4, %v4361_v5  ;;  %v7548_v13 = vcombine.high %v4358_v6, %v4362_v7  ;;  %v4410_v51 = vld [vmem:[%s10571_s3 + $0x578] sm:$0xff] }
 0x37c   : > { %5994 = vmatpush1.bf16.msra.mxu0 %v7489_v18  ;;  %6076 = vmatpush1.bf16.msra.mxu1 %v7491_v19  ;;  %v7545_v18 = vcombine.low %v4357_v4, %v4361_v5  ;;  %v7547_v19 = vcombine.low %v4358_v6, %v4362_v7  ;;  %v4414_v4 = vld [vmem:[%s10571_s3 + $0x598] sm:$0xff]  ;;  %v7595_v7 = vcombine.low %v4406_v50, %v4410_v51 }
 0x37d   : > { %5995 = vmatprep.subr.bf16.mxu0 %v7498_v20  ;;  %6077 = vmatprep.subr.bf16.mxu1 %v7500_v21  ;;  %v7554_v20 = vcombine.high %v4365_v15, %v4369_v17  ;;  %v7556_v21 = vcombine.high %v4366_v14, %v4370_v53  ;;  %v4418_v5 = vld [vmem:[%s10571_s3 + $0x5b8] sm:$0xff] }
 0x380   : > { %5996 = vmatpush1.bf16.msra.mxu0 %v7497_v29  ;;  %6078 = vmatpush1.bf16.msra.mxu1 %v7499_v30  ;;  %v7553_v29 = vcombine.low %v4365_v15, %v4369_v17  ;;  %v7555_v30 = vcombine.low %v4366_v14, %v4370_v53  ;;  %v4422_v15 = vld [vmem:[%s10571_s3 + $0x5d8] sm:$0xff]  ;;  %v7603_v53 = vcombine.low %v4414_v4, %v4418_v5 }
 0x381   : > { %5997 = vmatprep.subr.bf16.mxu0 %v7506_v31  ;;  %6079 = vmatprep.subr.bf16.mxu1 %v7508_v16  ;;  %v7562_v31 = vcombine.high %v4373_v23, %v4377_v24  ;;  %v7564_v16 = vcombine.high %v4374_v25, %v4378_v27  ;;  %v4426_v17 = vld [vmem:[%s10571_s3 + $0x5f8] sm:$0xff] }
 0x384   : > { %5998 = vmatpush1.bf16.msra.mxu0 %v7505_v26  ;;  %6080 = vmatpush1.bf16.msra.mxu1 %v7507_v35  ;;  %v7561_v26 = vcombine.low %v4373_v23, %v4377_v24  ;;  %v7563_v35 = vcombine.low %v4374_v25, %v4378_v27  ;;  %v4430_v23 = vld [vmem:[%s10571_s3 + $0x618] sm:$0xff]  ;;  %v7611_v27 = vcombine.low %v4422_v15, %v4426_v17 }
 0x385   : > { %5999 = vmatprep.subr.bf16.mxu0 %v7514_v36  ;;  %6081 = vmatprep.subr.bf16.mxu1 %v7516_v39  ;;  %v7570_v36 = vcombine.high %v4381_v32, %v4385_v33  ;;  %v7572_v39 = vcombine.high %v4382_v12, %v4386_v34  ;;  %v4434_v24 = vld [vmem:[%s10571_s3 + $0x638] sm:$0xff] }
 0x386   : > { %v4438_v32 = vld [vmem:[%s10571_s3 + $0x658] sm:$0xff] }
 0x387   : > { %v4442_v33 = vld [vmem:[%s10571_s3 + $0x678] sm:$0xff] }
 0x388   : > { %6000 = vmatpush1.bf16.msra.mxu0 %v7513_v28  ;;  %6082 = vmatpush1.bf16.msra.mxu1 %v7515_v58  ;;  %v7571_v28 = vcombine.low %v4382_v12, %v4386_v34  ;;  %v7578_v58 = vcombine.high %v4389_v40, %v4393_v22  ;;  %v7619_v34 = vcombine.low %v4430_v23, %v4434_v24  ;;  %v4446_v40 = vld [vmem:[%s10571_s3 + $0x698] sm:$0xff] }
 0x389   : > { %6001 = vmatprep.subr.bf16.mxu0 %v7522_v45  ;;  %6083 = vmatprep.subr.bf16.mxu1 %v7524_v46  ;;  %v4397_v46 = vld [vmem:[%s10571_s3 + $0x510] sm:$0xff]  ;;  %v4450_v22 = vld [vmem:[%s10571_s3 + $0x6b8] sm:$0xff] }
 0x38a   : > { %v7585_v63 = vcombine.low %v4397_v46, %v4401_v37 }
 0x38c   : > { %6002 = vmatpush1.bf16.msra.mxu0 %v7521_v54  ;;  %6084 = vmatpush1.bf16.msra.mxu1 %v7523_v55  ;;  %v7586_v54 = vcombine.high %v4397_v46, %v4401_v37  ;;  %v4454_v46 = vld [vmem:[%s10571_s3 + $0x6d8] sm:$0xff] }
 0x38d   : > { %6003 = vmatprep.subr.bf16.mxu0 %v7530_v56  ;;  %6085 = vmatprep.subr.bf16.mxu1 %v7532_v57  ;;  %v4405_v56 = vld [vmem:[%s10571_s3 + $0x550] sm:$0xff]  ;;  %v4458_v37 = vld [vmem:[%s10571_s3 + $0x6f8] sm:$0xff] }
 0x38e   : > { %v4409_v57 = vld [vmem:[%s10571_s3 + $0x570] sm:$0xff] }
 0x38f   : > { %v7593_v6 = vcombine.low %v4405_v56, %v4409_v57 }
 0x390   : > { %6004 = vmatpush1.bf16.msra.mxu0 %v7529_v38  ;;  %6086 = vmatpush1.bf16.msra.mxu1 %v7531_v1  ;;  %v7594_v38 = vcombine.high %v4405_v56, %v4409_v57  ;;  %v7596_v1 = vcombine.high %v4406_v50, %v4410_v51  ;;  %v4462_v56 = vld [vmem:[%s10571_s3 + $0x718] sm:$0xff]  ;;  %v7643_v51 = vcombine.low %v4454_v46, %v4458_v37 }
 0x391   : > { %6005 = vmatprep.subr.bf16.mxu0 %v7538_v2  ;;  %6087 = vmatprep.subr.bf16.mxu1 %v7540_v3  ;;  %v4413_v2 = vld [vmem:[%s10571_s3 + $0x590] sm:$0xff]  ;;  %v4466_v57 = vld [vmem:[%s10571_s3 + $0x738] sm:$0xff] }
 0x392   : > { %v4417_v3 = vld [vmem:[%s10571_s3 + $0x5b0] sm:$0xff] }
 0x393   : > { %v7601_v14 = vcombine.low %v4413_v2, %v4417_v3 }
 0x394   : > { %6006 = vmatpush1.bf16.msra.mxu0 %v7537_v9  ;;  %6088 = vmatpush1.bf16.msra.mxu1 %v7539_v10  ;;  %v7602_v9 = vcombine.high %v4413_v2, %v4417_v3  ;;  %v7604_v10 = vcombine.high %v4414_v4, %v4418_v5  ;;  %v4470_v2 = vld [vmem:[%s10571_s3 + $0x758] sm:$0xff]  ;;  %v7651_v5 = vcombine.low %v4462_v56, %v4466_v57 }
 0x395   : > { %6007 = vmatprep.subr.bf16.mxu0 %v7546_v11  ;;  %6089 = vmatprep.subr.bf16.mxu1 %v7548_v13  ;;  %v4421_v11 = vld [vmem:[%s10571_s3 + $0x5d0] sm:$0xff]  ;;  %v4474_v3 = vld [vmem:[%s10571_s3 + $0x778] sm:$0xff] }
 0x396   : > { %v4425_v13 = vld [vmem:[%s10571_s3 + $0x5f0] sm:$0xff] }
 0x397   : > { %v7609_v25 = vcombine.low %v4421_v11, %v4425_v13 }
 0x398   : > { %6008 = vmatpush1.bf16.msra.mxu0 %v7545_v18  ;;  %6090 = vmatpush1.bf16.msra.mxu1 %v7547_v19  ;;  %v7610_v18 = vcombine.high %v4421_v11, %v4425_v13  ;;  %v7612_v19 = vcombine.high %v4422_v15, %v4426_v17  ;;  %v4478_v11 = vld [vmem:[%s10571_s3 + $0x798] sm:$0xff]  ;;  %v7659_v17 = vcombine.low %v4470_v2, %v4474_v3 }
 0x399   : > { %6018 = vmatprep.subr.bf16.mxu0 %v7554_v20  ;;  %6100 = vmatprep.subr.bf16.mxu1 %v7556_v21  ;;  %v4429_v20 = vld [vmem:[%s10571_s3 + $0x610] sm:$0xff]  ;;  %v4482_v13 = vld [vmem:[%s10571_s3 + $0x7b8] sm:$0xff] }
 0x39a   : > { %v4433_v21 = vld [vmem:[%s10571_s3 + $0x630] sm:$0xff] }
 0x39b   : > { %6010 = vmatmul.mubr.bf16.vlgmr.msra.gmra.mrb[4].mxu0 %v9742_v47  ;;  %6092 = vmatmul.mubr.bf16.vlgmr.msra.gmra.mrb[4].mxu1 %v9742_v47  ;;  %v4390_v47 = vld [vmem:[%s10571_s3 + $0x4d8] sm:$0xff]  ;;  %v7617_v12 = vcombine.low %v4429_v20, %v4433_v21 }
 0x39c   : > { %6019 = vmatpush1.bf16.msra.mxu0 %v7553_v29  ;;  %6101 = vmatpush1.bf16.msra.mxu1 %v7555_v30  ;;  %v7580_v45 = vcombine.high %v4390_v47, %v4394_v42  ;;  %v7579_v52 = vcombine.low %v4390_v47, %v4394_v42  ;;  %v7618_v29 = vcombine.high %v4429_v20, %v4433_v21  ;;  %v4486_v20 = vld [vmem:[%s10571_s3 + $0x7d8] sm:$0xff] }
 0x39d   : > { %6020 = vmatprep.subr.bf16.mxu0 %v7562_v31  ;;  %6102 = vmatprep.subr.bf16.mxu1 %v7564_v16  ;;  %v7620_v30 = vcombine.high %v4430_v23, %v4434_v24  ;;  %v4437_v31 = vld [vmem:[%s10571_s3 + $0x650] sm:$0xff]  ;;  %v7627_v42 = vcombine.low %v4438_v32, %v4442_v33  ;;  %v4490_v21 = vld [vmem:[%s10571_s3 + $0x7f8] sm:$0xff]  ;;  %v7667_v24 = vcombine.low %v4478_v11, %v4482_v13 }
 0x39e   : > { %6050 = vmatprep.mubr.bf16.mxu0 %v9762_v60  ;;  %6132 = vmatprep.mubr.bf16.mxu1 %v9762_v60  ;;  %v4398_v60 = vld [vmem:[%s10571_s3 + $0x518] sm:$0xff]  ;;  %v4441_v16 = vld [vmem:[%s10571_s3 + $0x670] sm:$0xff] }
 0x39f   : > { %v7588_v55 = vcombine.high %v4398_v60, %v4402_v48  ;;  %v7587_v0 = vcombine.low %v4398_v60, %v4402_v48  ;;  %v7625_v47 = vcombine.low %v4437_v31, %v4441_v16  ;;  %v7635_v48 = vcombine.low %v4446_v40, %v4450_v22 }
 0x3a0   : > { %6021 = vmatpush1.bf16.msra.mxu0 %v7561_v26  ;;  %6103 = vmatpush1.bf16.msra.mxu1 %v7563_v35  ;;  %v7626_v26 = vcombine.high %v4437_v31, %v4441_v16  ;;  %v7628_v35 = vcombine.high %v4438_v32, %v4442_v33  ;;  %v8704_v31 = vld [vmem:[%s10573_s5 + $0x40] sm:$0xff]  }
 0x3a1   : > { %6022 = vmatprep.subr.bf16.mxu0 %v7570_v36  ;;  %6104 = vmatprep.subr.bf16.mxu1 %v7572_v39  ;;  %v4445_v36 = vld [vmem:[%s10571_s3 + $0x690] sm:$0xff]  ;;  %v8705_v16 = vld [vmem:[%s10573_s5 + $0xc0] sm:$0xff]  }
 0x3a2   : > { %v4449_v39 = vld [vmem:[%s10571_s3 + $0x6b0] sm:$0xff]  ;;  %v8706_v32 = vld [vmem:[%s10573_s5] sm:$0xff]  }
 0x3a3   : > { %v7633_v60 = vcombine.low %v4445_v36, %v4449_v39  ;;  %v8707_v33 = vld [vmem:[%s10573_s5 + $0x80] sm:$0xff]  }
 0x3a4   : > { %6023 = vmatpush1.bf16.msra.mxu0 %v7569_v43  ;;  %6105 = vmatpush1.bf16.msra.mxu1 %v7571_v28  ;;  %v7634_v43 = vcombine.high %v4445_v36, %v4449_v39  ;;  %v7636_v28 = vcombine.high %v4446_v40, %v4450_v22  ;;  %v8712_v36 = vld [vmem:[%s10573_s5 + $0x50] sm:$0xff]   ;;  %v8716_v22 = vld [vmem:[%s10573_s5 + $0x58] sm:$0xff]  }
 0x3a5   : > { %6024 = vmatprep.subr.bf16.mxu0 %v7578_v58  ;;  %6106 = vmatprep.subr.bf16.mxu1 %v7580_v45  ;;  %v4453_v58 = vld [vmem:[%s10571_s3 + $0x6d0] sm:$0xff] }
 0x3a6   : > { %v4457_v45 = vld [vmem:[%s10571_s3 + $0x6f0] sm:$0xff] }
 0x3a7   : > { %v7641_v50 = vcombine.low %v4453_v58, %v4457_v45  ;;  %v8714_v39 = vld [vmem:[%s10573_s5 + $0x10] sm:$0xff]  }
 0x3a8   : > { %6025 = vmatpush1.bf16.msra.mxu0 %v7577_v49  ;;  %6107 = vmatpush1.bf16.msra.mxu1 %v7579_v52  ;;  %v7642_v49 = vcombine.high %v4453_v58, %v4457_v45  ;;  %v7644_v52 = vcombine.high %v4454_v46, %v4458_v37  ;;  %v8715_v40 = vld [vmem:[%s10573_s5 + $0x90] sm:$0xff]   ;;  %v8721_v58 = vld [vmem:[%s10573_s5 + $0xe0] sm:$0xff]   ;;  %v8724_v37 = vld [vmem:[%s10573_s5 + $0x68] sm:$0xff]  }
 0x3a9   : > { %6026 = vmatprep.subr.bf16.mxu0 %v7586_v54  ;;  %6108 = vmatprep.subr.bf16.mxu1 %v7588_v55  ;;  %v4461_v54 = vld [vmem:[%s10571_s3 + $0x710] sm:$0xff]  ;;  %v8722_v45 = vld [vmem:[%s10573_s5 + $0x20] sm:$0xff]  }
 0x3aa   : > { %v4465_v55 = vld [vmem:[%s10571_s3 + $0x730] sm:$0xff]  ;;  %v8723_v46 = vld [vmem:[%s10573_s5 + $0xa0] sm:$0xff]  }
 0x3ab   : > { %v7649_v4 = vcombine.low %v4461_v54, %v4465_v55 }
 0x3ac   : > { %6027 = vmatpush1.bf16.msra.mxu0 %v7585_v63  ;;  %6109 = vmatpush1.bf16.msra.mxu1 %v7587_v0  ;;  %v7650_v63 = vcombine.high %v4461_v54, %v4465_v55  ;;  %v7652_v0 = vcombine.high %v4462_v56, %v4466_v57  ;;  %v8729_v54 = vld [vmem:[%s10573_s5 + $0xf0] sm:$0xff]   ;;  %v8732_v57 = vld [vmem:[%s10573_s5 + $0x78] sm:$0xff]  }
 0x3ad   : > { %6028 = vmatprep.subr.bf16.mxu0 %v7594_v38  ;;  %6110 = vmatprep.subr.bf16.mxu1 %v7596_v1  ;;  %v4469_v38 = vld [vmem:[%s10571_s3 + $0x750] sm:$0xff] }
 0x3ae   : > { %v4473_v1 = vld [vmem:[%s10571_s3 + $0x770] sm:$0xff] }
 0x3af   : > { %v7657_v15 = vcombine.low %v4469_v38, %v4473_v1  ;;  %v8730_v55 = vld [vmem:[%s10573_s5 + $0x30] sm:$0xff]  }
 0x3b0   : > { %6029 = vmatpush1.bf16.msra.mxu0 %v7593_v6  ;;  %6111 = vmatpush1.bf16.msra.mxu1 %v7595_v7  ;;  %v7658_v6 = vcombine.high %v4469_v38, %v4473_v1  ;;  %v7660_v7 = vcombine.high %v4470_v2, %v4474_v3  ;;  %v8731_v56 = vld [vmem:[%s10573_s5 + $0xb0] sm:$0xff]   ;;  %v8737_v38 = vld [vmem:[%s10573_s5 + $0x1c0] sm:$0xff]  }
 0x3b1   : > { %6030 = vmatprep.subr.bf16.mxu0 %v7602_v9  ;;  %6112 = vmatprep.subr.bf16.mxu1 %v7604_v10  ;;  %v4477_v9 = vld [vmem:[%s10571_s3 + $0x790] sm:$0xff]  ;;  %v10427_v1 = vld [vmem:[%s10572_s4] sm:$0xff] }
 0x3b2   : > { %v4481_v10 = vld [vmem:[%s10571_s3 + $0x7b0] sm:$0xff]  ;;  %v4496_v2 = vrot.slane %v10427_v1, %v4175_v41  ;;  %v4504_v3 = vrot.slane %v10427_v1, %v4183_v61 }
 0x3b3   : > { %v7665_v23 = vcombine.low %v4477_v9, %v4481_v10 }
 0x3b4   : > { %6031 = vmatpush1.bf16.msra.mxu0 %v7601_v14  ;;  %6113 = vmatpush1.bf16.msra.mxu1 %v7603_v53  ;;  %v7666_v14 = vcombine.high %v4477_v9, %v4481_v10  ;;  %v7668_v53 = vcombine.high %v4478_v11, %v4482_v13 }
 0x3b5   : > { %6032 = vmatprep.subr.bf16.mxu0 %v7610_v18  ;;  %6114 = vmatprep.subr.bf16.mxu1 %v7612_v19  ;;  %v4485_v18 = vld [vmem:[%s10571_s3 + $0x7d0] sm:$0xff] }
 0x3b6   : > { %v4489_v19 = vld [vmem:[%s10571_s3 + $0x7f0] sm:$0xff] }
 0x3b8   : > { %6033 = vmatpush1.bf16.msra.mxu0 %v7609_v25  ;;  %6115 = vmatpush1.bf16.msra.mxu1 %v7611_v27  ;;  %v7674_v25 = vcombine.high %v4485_v18, %v4489_v19  ;;  %v7676_v27 = vcombine.high %v4486_v20, %v4490_v21 }
 0x3b9   : > { %6034 = vmatprep.subr.bf16.mxu0 %v7618_v29  ;;  %6116 = vmatprep.subr.bf16.mxu1 %v7620_v30  ;;  %v7673_v29 = vcombine.low %v4485_v18, %v4489_v19  ;;  %v7675_v30 = vcombine.low %v4486_v20, %v4490_v21  ;;  %v8738_v21 = vld [vmem:[%s10573_s5 + $0x100] sm:$0xff]  }
 0x3bc   : > { %6035 = vmatpush1.bf16.msra.mxu0 %v7617_v12  ;;  %6117 = vmatpush1.bf16.msra.mxu1 %v7619_v34  ;;  %v8708_v12 = vld [vmem:[%s10573_s5 + $0x48] sm:$0xff]  }
 0x3bd   : > { %6036 = vmatprep.subr.bf16.mxu0 %v7626_v26  ;;  %6118 = vmatprep.subr.bf16.mxu1 %v7628_v35  ;;  %v8709_v34 = vld [vmem:[%s10573_s5 + $0xc8] sm:$0xff]  }
 0x3be   : > { %v8710_v26 = vld [vmem:[%s10573_s5 + $0x8] sm:$0xff]  }
 0x3bf   : > { %v8711_v35 = vld [vmem:[%s10573_s5 + $0x88] sm:$0xff]  }
 0x3c0   : > { %6037 = vmatpush1.bf16.msra.mxu0 %v7625_v47  ;;  %6119 = vmatpush1.bf16.msra.mxu1 %v7627_v42  ;;  %v8717_v47 = vld [vmem:[%s10573_s5 + $0xd8] sm:$0xff]  }
 0x3c1   : > { %6038 = vmatprep.subr.bf16.mxu0 %v7634_v43  ;;  %6120 = vmatprep.subr.bf16.mxu1 %v7636_v28  ;;  %v8718_v42 = vld [vmem:[%s10573_s5 + $0x18] sm:$0xff]   ;;  %v8720_v28 = vld [vmem:[%s10573_s5 + $0x60] sm:$0xff]  }
 0x3c2   : > { %v8719_v43 = vld [vmem:[%s10573_s5 + $0x98] sm:$0xff]  }
 0x3c4   : > { %6039 = vmatpush1.bf16.msra.mxu0 %v7633_v60  ;;  %6121 = vmatpush1.bf16.msra.mxu1 %v7635_v48  ;;  %v8725_v60 = vld [vmem:[%s10573_s5 + $0xe8] sm:$0xff]  }
 0x3c5   : > { %6040 = vmatprep.subr.bf16.mxu0 %v7642_v49  ;;  %6122 = vmatprep.subr.bf16.mxu1 %v7644_v52  ;;  %v8726_v48 = vld [vmem:[%s10573_s5 + $0x28] sm:$0xff]   ;;  %v8728_v52 = vld [vmem:[%s10573_s5 + $0x70] sm:$0xff]  }
 0x3c6   : > { %v8727_v49 = vld [vmem:[%s10573_s5 + $0xa8] sm:$0xff]  }
 0x3c8   : > { %6041 = vmatpush1.bf16.msra.mxu0 %v7641_v50  ;;  %6123 = vmatpush1.bf16.msra.mxu1 %v7643_v51  ;;  %v8733_v50 = vld [vmem:[%s10573_s5 + $0xf8] sm:$0xff]  }
 0x3c9   : > { %6042 = vmatprep.subr.bf16.mxu0 %v7650_v63  ;;  %6124 = vmatprep.subr.bf16.mxu1 %v7652_v0  ;;  %v8734_v51 = vld [vmem:[%s10573_s5 + $0x38] sm:$0xff]   ;;  %v8736_v0 = vld [vmem:[%s10573_s5 + $0x140] sm:$0xff]  }
 0x3ca   : > { %v8735_v63 = vld [vmem:[%s10573_s5 + $0xb8] sm:$0xff]  }
 0x3cc   : > { %6043 = vmatpush1.bf16.msra.mxu0 %v7649_v4  ;;  %6125 = vmatpush1.bf16.msra.mxu1 %v7651_v5  ;;  %v4500_v4 = vrot.slane %v10427_v1, %v4179_v59  ;;  %v4508_v5 = vrot.slane %v10427_v1, %v4187_v62 }
 0x3cd   : > { %6044 = vmatprep.subr.bf16.mxu0 %v7658_v6  ;;  %6126 = vmatprep.subr.bf16.mxu1 %v7660_v7 }
 0x3d0   : > { %6045 = vmatpush1.bf16.msra.mxu0 %v7657_v15  ;;  %6127 = vmatpush1.bf16.msra.mxu1 %v7659_v17 }
 0x3d1   : > { %6046 = vmatprep.subr.bf16.mxu0 %v7666_v14  ;;  %6128 = vmatprep.subr.bf16.mxu1 %v7668_v53 }
 0x3d4   : > { %6047 = vmatpush1.bf16.msra.mxu0 %v7665_v23  ;;  %6129 = vmatpush1.bf16.msra.mxu1 %v7667_v24 }
 0x3d5   : > { %6048 = vmatprep.subr.bf16.mxu0 %v7674_v25  ;;  %6130 = vmatprep.subr.bf16.mxu1 %v7676_v27  ;;  %v8739_v25 = vld [vmem:[%s10573_s5 + $0x180] sm:$0xff]   ;;  %v8740_v27 = vld [vmem:[%s10573_s5 + $0x148] sm:$0xff]  }
 0x3d8   : > { %6049 = vmatpush1.bf16.msra.mxu0 %v7673_v29  ;;  %6131 = vmatpush1.bf16.msra.mxu1 %v7675_v30  ;;  %v8741_v30 = vld [vmem:[%s10573_s5 + $0x1c8] sm:$0xff]  }
 0x3d9   : > { %7748 = vmatprep.subr.bf16.mxu0 %v8704_v31  ;;  %7770 = vmatprep.subr.bf16.mxu1 %v8705_v16  ;;  %v8742_v31 = vld [vmem:[%s10573_s5 + $0x108] sm:$0xff]  }
 0x3da   : > { %v8743_v16 = vld [vmem:[%s10573_s5 + $0x188] sm:$0xff]  }
 0x3db   : > { %6051 = vmatmul.mubr.bf16.vlgmr.msra.gmra.mrb[4].mxu0 %v9950_v8  ;;  %6133 = vmatmul.mubr.bf16.vlgmr.msra.gmra.mrb[4].mxu1 %v9950_v8  ;;  %v8713_v8 = vld [vmem:[%s10573_s5 + $0xd0] sm:$0xff]  }
 0x3dc   : > { %7749 = vmatpush3.bf16.msra.mxu0 %v8706_v32  ;;  %7771 = vmatpush3.bf16.msra.mxu1 %v8707_v33  ;;  %v8744_v32 = vld [vmem:[%s10573_s5 + $0x150] sm:$0xff]  }
 0x3dd   : > { %7750 = vmatprep.subr.bf16.mxu0 %v8708_v12  ;;  %7772 = vmatprep.subr.bf16.mxu1 %v8709_v34  ;;  %v8745_v33 = vld [vmem:[%s10573_s5 + $0x1d0] sm:$0xff]  }
 0x3de   : > { %v8746_v12 = vld [vmem:[%s10573_s5 + $0x110] sm:$0xff]  }
 0x3df   : > { %v8747_v34 = vld [vmem:[%s10573_s5 + $0x190] sm:$0xff]  }
 0x3e0   : > { %7751 = vmatpush3.bf16.msra.mxu0 %v8710_v26  ;;  %7773 = vmatpush3.bf16.msra.mxu1 %v8711_v35  ;;  %v8748_v26 = vld [vmem:[%s10573_s5 + $0x158] sm:$0xff]  }
 0x3e1   : > { %7752 = vmatprep.subr.bf16.mxu0 %v8712_v36  ;;  %7774 = vmatprep.subr.bf16.mxu1 %v8713_v8  ;;  %v8749_v35 = vld [vmem:[%s10573_s5 + $0x1d8] sm:$0xff]  }
 0x3e2   : > { %v8750_v36 = vld [vmem:[%s10573_s5 + $0x118] sm:$0xff]  }
 0x3e3   : > { %v8751_v8 = vld [vmem:[%s10573_s5 + $0x198] sm:$0xff]  }
 0x3e4   : > { %7753 = vmatpush3.bf16.msra.mxu0 %v8714_v39  ;;  %7775 = vmatpush3.bf16.msra.mxu1 %v8715_v40  ;;  %v8752_v39 = vld [vmem:[%s10573_s5 + $0x160] sm:$0xff]  }
 0x3e5   : > { %7754 = vmatprep.subr.bf16.mxu0 %v8716_v22  ;;  %7776 = vmatprep.subr.bf16.mxu1 %v8717_v47  ;;  %v8753_v40 = vld [vmem:[%s10573_s5 + $0x1e0] sm:$0xff]  }
 0x3e6   : > { %v8754_v22 = vld [vmem:[%s10573_s5 + $0x120] sm:$0xff]  }
 0x3e7   : > { %v8755_v47 = vld [vmem:[%s10573_s5 + $0x1a0] sm:$0xff]  }
 0x3e8   : > { %7755 = vmatpush3.bf16.msra.mxu0 %v8718_v42  ;;  %7777 = vmatpush3.bf16.msra.mxu1 %v8719_v43  ;;  %v8756_v42 = vld [vmem:[%s10573_s5 + $0x168] sm:$0xff]  }
 0x3e9   : > { %7756 = vmatprep.subr.bf16.mxu0 %v8720_v28  ;;  %7778 = vmatprep.subr.bf16.mxu1 %v8721_v58  ;;  %v8757_v43 = vld [vmem:[%s10573_s5 + $0x1e8] sm:$0xff]  }
 0x3ea   : > { %v8758_v28 = vld [vmem:[%s10573_s5 + $0x128] sm:$0xff]  }
 0x3eb   : > { %v8759_v58 = vld [vmem:[%s10573_s5 + $0x1a8] sm:$0xff]  }
 0x3ec   : > { %7757 = vmatpush3.bf16.msra.mxu0 %v8722_v45  ;;  %7779 = vmatpush3.bf16.msra.mxu1 %v8723_v46  ;;  %v8760_v45 = vld [vmem:[%s10573_s5 + $0x170] sm:$0xff]  }
 0x3ed   : > { %7758 = vmatprep.subr.bf16.mxu0 %v8724_v37  ;;  %7780 = vmatprep.subr.bf16.mxu1 %v8725_v60  ;;  %v8761_v46 = vld [vmem:[%s10573_s5 + $0x1f0] sm:$0xff]  }
 0x3ee   : > { %v8762_v37 = vld [vmem:[%s10573_s5 + $0x130] sm:$0xff]  }
 0x3ef   : > { %v8763_v60 = vld [vmem:[%s10573_s5 + $0x1b0] sm:$0xff]  }
 0x3f0   : > { %7759 = vmatpush3.bf16.msra.mxu0 %v8726_v48  ;;  %7781 = vmatpush3.bf16.msra.mxu1 %v8727_v49  ;;  %v8764_v48 = vld [vmem:[%s10573_s5 + $0x178] sm:$0xff]  }
 0x3f1   : > { %7760 = vmatprep.subr.bf16.mxu0 %v8728_v52  ;;  %7782 = vmatprep.subr.bf16.mxu1 %v8729_v54  ;;  %v8765_v49 = vld [vmem:[%s10573_s5 + $0x1f8] sm:$0xff]  }
 0x3f2   : > { %v8766_v52 = vld [vmem:[%s10573_s5 + $0x138] sm:$0xff]  }
 0x3f3   : > { %v8767_v54 = vld [vmem:[%s10573_s5 + $0x1b8] sm:$0xff]  }
 0x3f4   : > { %7761 = vmatpush3.bf16.msra.mxu0 %v8730_v55  ;;  %7783 = vmatpush3.bf16.msra.mxu1 %v8731_v56  ;;  %v4511_v55 = vsub.s32 4, %v8934_v44  ;;  %v4519_v56 = vsub.s32 6, %v8934_v44 }
 0x3f5   : > { %7762 = vmatprep.subr.bf16.mxu0 %v8732_v57  ;;  %7784 = vmatprep.subr.bf16.mxu1 %v8733_v50  ;;  %v4515_v57 = vsub.s32 5, %v8934_v44  ;;  %v4523_v50 = vsub.s32 7, %v8934_v44 }
 0x3f8   : > { %7763 = vmatpush3.bf16.msra.mxu0 %v8734_v51  ;;  %7785 = vmatpush3.bf16.msra.mxu1 %v8735_v63  ;;  %v4512_v51 = vrot.slane %v10427_v1, %v4511_v55  ;;  %v4520_v63 = vrot.slane %v10427_v1, %v4519_v56 }
 0x3f9   : > { %7792 = vmatprep.subr.bf16.mxu0 %v8736_v0  ;;  %7814 = vmatprep.subr.bf16.mxu1 %v8737_v38  ;;  %v4516_v0 = vrot.slane %v10427_v1, %v4515_v57  ;;  %v4524_v38 = vrot.slane %v10427_v1, %v4523_v50 }
 0x42e   : > { %v5888_v6 = vpop.f32.mrb[0].mxu0  ;;  %v5970_v9 = vpop.f32.mrb[0].mxu1 }
 0x42f   : > { %v7892_v7 = vadd.f32 %v5888_v6, %v4496_v2  ;;  %v5890_v10 = vpop.f32.mrb[1].mxu0  ;;  %v7894_v11 = vadd.f32 %v5970_v9, %v4504_v3  ;;  %v5972_v15 = vpop.f32.mrb[1].mxu1 }
 0x430   : > { %v7893_v13 = vadd.f32 %v5890_v10, %v4500_v4  ;;  %v5892_v41 = vpop.f32.mrb[2].mxu0  ;;  %v7895_v17 = vadd.f32 %v5972_v15, %v4508_v5  ;;  %v5974_v14 = vpop.f32.mrb[2].mxu1 }
 0x431   : > { %8770 = vtanh.f32 %v7892_v7  ;;  %v5893_v61 = vpop.f32.mrb[3].mxu0  ;;  %v5975_v53 = vpop.f32.mrb[3].mxu1 }
 0x432   : > { %8772 = vtanh.f32 %v7894_v11 }
 0x433   : > { %8774 = vtanh.f32 %v7893_v13 }
 0x434   : > { %8776 = vtanh.f32 %v7895_v17 }
 0x43b   : > { %v8771_v59 = vpop.eup %8770 }
 0x43c   : > { %v8773_v18 = vpop.eup %8772  ;;  %v6149_v23 = vpack.c.bf16 %v8771_v59, %v8771_v59 }
 0x43d   : > { %v8775_v19 = vpop.eup %8774  ;;  %v6151_v29 = vpack.c.bf16 %v8773_v18, %v8773_v18 }
 0x43e   : > { %v8777_v62 = vpop.eup %8776  ;;  %v6150_v20 = vpack.c.bf16 %v8775_v19, %v8775_v19 }
 0x43f   : > { %v6152_v24 = vpack.c.bf16 %v8777_v62, %v8777_v62 }
 0x440   : > { %6708 = vmatprep.mubr.bf16.mxu0 %v6150_v20  ;;  %v7677_v20 = vld [vmem:[%s10574_s6] ss:$0 sm:$0xff] }
 0x441   : > { %6748 = vmatprep.mubr.bf16.mxu1 %v6152_v24  ;;  %6709 = vmatmul.mubr.bf16.vlgmr.msra.gmra.mrb[8].mxu0 %v6149_v23 }
 0x442   : > { %6749 = vmatmul.mubr.bf16.vlgmr.msra.gmra.mrb[8].mxu1 %v6151_v29  ;;  %7793 = vmatpush3.bf16.msra.mxu0 %v8738_v21 }
 0x443   : > { %7815 = vmatpush3.bf16.msra.mxu1 %v8739_v25  ;;  %7794 = vmatprep.subr.bf16.mxu0 %v8740_v27 }
 0x444   : > { %7816 = vmatprep.subr.bf16.mxu1 %v8741_v30 }
 0x446   : > { %7795 = vmatpush3.bf16.msra.mxu0 %v8742_v31 }
 0x447   : > { %7817 = vmatpush3.bf16.msra.mxu1 %v8743_v16  ;;  %7796 = vmatprep.subr.bf16.mxu0 %v8744_v32 }
 0x448   : > { %7818 = vmatprep.subr.bf16.mxu1 %v8745_v33 }
 0x44a   : > { %7797 = vmatpush3.bf16.msra.mxu0 %v8746_v12 }
 0x44b   : > { %7819 = vmatpush3.bf16.msra.mxu1 %v8747_v34  ;;  %7798 = vmatprep.subr.bf16.mxu0 %v8748_v26 }
 0x44c   : > { %7820 = vmatprep.subr.bf16.mxu1 %v8749_v35 }
 0x44e   : > { %7799 = vmatpush3.bf16.msra.mxu0 %v8750_v36 }
 0x44f   : > { %7821 = vmatpush3.bf16.msra.mxu1 %v8751_v8  ;;  %7800 = vmatprep.subr.bf16.mxu0 %v8752_v39 }
 0x450   : > { %7822 = vmatprep.subr.bf16.mxu1 %v8753_v40 }
 0x452   : > { %7801 = vmatpush3.bf16.msra.mxu0 %v8754_v22 }
 0x453   : > { %7823 = vmatpush3.bf16.msra.mxu1 %v8755_v47  ;;  %7802 = vmatprep.subr.bf16.mxu0 %v8756_v42 }
 0x454   : > { %7824 = vmatprep.subr.bf16.mxu1 %v8757_v43 }
 0x456   : > { %7803 = vmatpush3.bf16.msra.mxu0 %v8758_v28 }
 0x457   : > { %7825 = vmatpush3.bf16.msra.mxu1 %v8759_v58  ;;  %7804 = vmatprep.subr.bf16.mxu0 %v8760_v45 }
 0x458   : > { %7826 = vmatprep.subr.bf16.mxu1 %v8761_v46 }
 0x45a   : > { %7805 = vmatpush3.bf16.msra.mxu0 %v8762_v37 }
 0x45b   : > { %7827 = vmatpush3.bf16.msra.mxu1 %v8763_v60  ;;  %7806 = vmatprep.subr.bf16.mxu0 %v8764_v48 }
 0x45c   : > { %7828 = vmatprep.subr.bf16.mxu1 %v8765_v49 }
 0x45e   : > { %7807 = vmatpush3.bf16.msra.mxu0 %v8766_v52 }
 0x45f   : > { %7829 = vmatpush3.bf16.msra.mxu1 %v8767_v54 }
 0x4ae   : > { %v6052_v2 = vpop.f32.mrb[4].mxu0  ;;  %v6134_v4 = vpop.f32.mrb[4].mxu1 }
 0x4af   : > { %v7896_v3 = vadd.f32 %v6052_v2, %v4512_v51  ;;  %v6054_v5 = vpop.f32.mrb[5].mxu0  ;;  %v7898_v6 = vadd.f32 %v6134_v4, %v4520_v63  ;;  %v6136_v9 = vpop.f32.mrb[5].mxu1 }
 0x4b0   : > { %v7897_v7 = vadd.f32 %v6054_v5, %v4516_v0  ;;  %v6056_v10 = vpop.f32.mrb[6].mxu0  ;;  %v7899_v11 = vadd.f32 %v6136_v9, %v4524_v38  ;;  %v6138_v13 = vpop.f32.mrb[6].mxu1 }
 0x4b1   : > { %8778 = vtanh.f32 %v7896_v3  ;;  %v6057_v44 = vpop.f32.mrb[7].mxu0  ;;  %v6139_v15 = vpop.f32.mrb[7].mxu1 }
 0x4b2   : > { %8780 = vtanh.f32 %v7898_v6 }
 0x4b3   : > { %8782 = vtanh.f32 %v7897_v7 }
 0x4b4   : > { %8784 = vtanh.f32 %v7899_v11 }
 0x4bb   : > { %v8779_v41 = vpop.eup %8778 }
 0x4bc   : > { %v8781_v17 = vpop.eup %8780  ;;  %v6153_v53 = vpack.c.bf16 %v8779_v41, %v8779_v41 }
 0x4bd   : > { %v8783_v14 = vpop.eup %8782  ;;  %v6155_v18 = vpack.c.bf16 %v8781_v17, %v8781_v17 }
 0x4be   : > { %v8785_v1 = vpop.eup %8784  ;;  %v6154_v61 = vpack.c.bf16 %v8783_v14, %v8783_v14 }
 0x4bf   : > { %v6156_v59 = vpack.c.bf16 %v8785_v1, %v8785_v1 }
 0x4c0   : > { %6788 = vmatprep.mubr.bf16.mxu0 %v6154_v61 }
 0x4c1   : > { %6828 = vmatprep.mubr.bf16.mxu1 %v6156_v59  ;;  %6789 = vmatmul.mubr.bf16.vlgmr.msra.gmra.mrb[12].mxu0 %v6153_v53 }
 0x4c2   : > { %6829 = vmatmul.mubr.bf16.vlgmr.msra.gmra.mrb[12].mxu1 %v6155_v18 }
 0x514   : > { %v7764_v19 = vpop.f32.mrb[8].mxu0 }
 0x515   : > { %v7786_v62 = vpop.f32.mrb[8].mxu1  ;;  %v7765_v21 = vpop.f32.mrb[9].mxu0 }
 0x516   : > { %v7766_v23 = vadd.f32 %v7765_v21, %v7764_v19  ;;  %v7787_v24 = vpop.f32.mrb[9].mxu1  ;;  %v7767_v25 = vpop.f32.mrb[10].mxu0 }
 0x517   : > { %v7788_v27 = vadd.f32 %v7787_v24, %v7786_v62  ;;  %v7789_v29 = vpop.f32.mrb[10].mxu1  ;;  %v7768_v30 = vpop.f32.mrb[11].mxu0 }
 0x518   : > { %v6711_v31 = vadd.f32 %v7766_v23, %v7677_v20  ;;  %v7790_v16 = vpop.f32.mrb[11].mxu1 }
 0x51a   : > { %v6751_v32 = vadd.f32 %v7788_v27, %v6711_v31 }
 0x594   : > { %v7808_v33 = vpop.f32.mrb[12].mxu0 }
 0x595   : > { %v7830_v12 = vpop.f32.mrb[12].mxu1  ;;  %v7809_v34 = vpop.f32.mrb[13].mxu0 }
 0x596   : > { %v7810_v26 = vadd.f32 %v7809_v34, %v7808_v33  ;;  %v7831_v35 = vpop.f32.mrb[13].mxu1  ;;  %v7811_v36 = vpop.f32.mrb[14].mxu0 }
 0x597   : > { %v7832_v8 = vadd.f32 %v7831_v35, %v7830_v12  ;;  %v7833_v39 = vpop.f32.mrb[14].mxu1  ;;  %v7812_v40 = vpop.f32.mrb[15].mxu0 }
 0x598   : > { %v6791_v22 = vadd.f32 %v7810_v26, %v6751_v32  ;;  %v7834_v47 = vpop.f32.mrb[15].mxu1 }
 0x59a   : > { %v6831_v42 = vadd.f32 %v7832_v8, %v6791_v22 }
 0x59c   : > { %v7742_v43 = vmul.f32 -1.442695, %v6831_v42 }
 0x59e   : > { %8786 = vpow2.f32 %v7742_v43 }
 0x5a8   : > { %v8787_v28 = vpop.eup %8786 }
 0x5a9   : > { %v6839_v58 = vadd.f32 1.0, %v8787_v28 }
 0x5ab   : > { %8788 = vrcp.f32 %v6839_v58 }
 0x5b5   : > { %v8789_v45 = vpop.eup %8788 }
 0x5b6   : > { %6843 = vst.msk [vmem:[#allocation3] sm:$0x3] %vm6842_vm0, %v8789_v45 }
 0x5b7 PF: > { %p7920_p7 = scmp.eq.s32.totalorder %s8878_s25, 2  ;;  %s8831_s30 = smov [#allocation3]  }
 0x5b8   : > { %s6851_s8 = sshll.u32 %s8831_s30, 4  ;;  %s6852_s8 = int_to_ptr.vmem [resolvable:$true] %s6851_s8 }
 0x5b9   : > { %s8790_s9 = scalar_lea.vmem %s6852_s8, 32  ;;  %p8797_p11 = scmp.lt.s32.totalorder %s6852_s8, %s6852_s8 }
 0x5ba   : > { %p8791_p8 = scmp.ne.s32.totalorder %s6852_s8, %s8790_s9  ;;  %p8798_p12 = scmp.lt.s32.totalorder %s8790_s9, %s8790_s9 }
 0x5bc   : > { %p8792_p9 = pnand %p8791_p8, %p7920_p7  ;;  %p8799_p13 = por %p8798_p12, %p8797_p11 }
 0x5be   : > { %p8793_p10 = pneg %p8792_p9 }
 0x5c0   : > { %p8800_p0 = pnand %p8799_p13, %p8793_p10 }
 0x5c2   : > { %8803 = shalt.err (!%p8800_p0)
}
 0x5c3   : > { %s8804_s12 = scalar_lea.hbm %s10575_s7, 32 }
 0x5c4   : > { %p8805_p1 = scmp.ne.s32.totalorder %s10575_s7, %s8804_s12  ;;  %p8810_p4 = scmp.lt.u32.totalorder %s8804_s12, %s10575_s7 }
 0x5c6   : > { %p8806_p2 = pnand %p8805_p1, %p7920_p7 }
 0x5c8   : > { %p8807_p3 = pneg %p8806_p2 }
 0x5ca   : > { %p8812_p5 = pnand %p8810_p4, %p8807_p3 }
 0x5cc   : > { %8815 = shalt.err (!%p8812_p5)
}
 0x5cd   : > { %7917 = dma.vmem_to_hbm [thread:$0]  (%p7920_p7), %s6852_s8, 32, %s10575_s7, [#allocation4]  }
 0x5ce   : > { %8821 = dma.done.wait (%p7920_p7), [#allocation4], 32  }
 0x5cf   : > { %8823 = vsyncadd (%p7920_p7), [#allocation4], 4294967264 }
 0x5d0 PF: > { %s18_s24 = sadd.s32 1, %s8826_s24  }
 0x5d1   : > { %p15_p6 = scmp.ge.s32.totalorder %s18_s24, 5  }
 0x5d3   :  { %17 = sbr.rel (!%p15_p6) target bundleno = 1 (0x1), region = 86 }
 0x5da   :  { %6864 = vsyncpa [#allocation4], 1 }
 0x5db   :  { %6866 = vsyncpa [#allocation4 + $0x1], 1 }

</bundles_post_ra>
